<compile_context>
chip_gen: v6e
topology: v6e:2x2x1
jax: 0.10.0
libtpu: 0.0.40
codegen_flags: <defaults>
</compile_context>

<pallas_src>
import jax
import jax.numpy as jnp
from jax import lax
from jax.experimental import pallas as pl
from jax.experimental.pallas import tpu as pltpu

NUM_LAYERS = 4


# ---------------------------------------------------------------------------
# Fused kernel: 4 x (SA core + BatchNorm1d(batch stats) + ReLU + residual),
# output written directly in concatenated (B, 4C, N) layout.
#
#   x_ref     : (B, C, N)          f32
#   wqv_ref   : (L, C/4 + C, C)    bf16   rows [0:C/4) = q(=k) weight, rest = v
#   bv_ref    : (L, C, 1)          f32    v_conv bias
#   wt_ref    : (L, C, C)          bf16   trans_conv weight
#   bt_ref    : (L, C, 1)          f32    trans_conv bias
#   gamma_ref : (L, C, 1)          f32    BN weight
#   beta_ref  : (L, C, 1)          f32    BN bias
#   out_ref   : (B, L*C, N)        f32
# ---------------------------------------------------------------------------
def fused_sa_stack_kernel(x_ref, wqv_ref, bv_ref, wt_ref, bt_ref,
                          gamma_ref, beta_ref, out_ref):
    B, C, N = x_ref.shape
    L = wqv_ref.shape[0]
    C4 = C // 4
    inv_bn = 1.0 / float(B * N)

    # Activations stay resident across all layers (tiny working set).
    xs = [x_ref[b] for b in range(B)]                 # B x (C, N) f32

    for l in range(L):                                # static unroll (4 layers)
        wqv = wqv_ref[l]                              # (C4 + C, C) bf16
        bv = bv_ref[l]                                # (C, 1) f32
        wt = wt_ref[l]                                # (C, C) bf16
        bt = bt_ref[l]                                # (C, 1) f32
        gamma = gamma_ref[l]                          # (C, 1) f32
        beta = beta_ref[l]                            # (C, 1) f32

        ys = []
        s = jnp.zeros((C, 1), jnp.float32)            # sum(y)   per channel
        s2 = jnp.zeros((C, 1), jnp.float32)           # sum(y*y) per channel
        for b in range(B):                            # static unroll (B = 2)
            xb = xs[b]                                # (C, N) f32

            # q and v with ONE packed bf16 MXU matmul (M = C/4 + C).
            qv = jnp.dot(wqv, xb.astype(jnp.bfloat16),
                         preferred_element_type=jnp.float32)     # (C4+C, N)
            q = qv[:C4, :]                                        # (C4, N)
            v = qv[C4:, :] + bv                                   # (C, N)

            # energy = q^T @ q without an explicit transpose: contract the
            # leading (channel) dim of both operands. Kept in f32.
            energy = lax.dot_general(
                q, q, dimension_numbers=(((0,), (0,)), ((), ())),
                preferred_element_type=jnp.float32)               # (N, N)

            # softmax over last dim; divides -> EUP approx reciprocal + VPU mul
            e = jnp.exp(energy - jnp.max(energy, axis=-1, keepdims=True))
            attn = e * pl.reciprocal(jnp.sum(e, axis=-1, keepdims=True),
                                     approx=True)
            # attention / (1e-9 + attention.sum(dim=1, keepdim=True))
            # (torch dim=1 of (B, N, N) == axis 0 of the (N, N) slab)
            attn = attn * pl.reciprocal(
                1e-9 + jnp.sum(attn, axis=0, keepdims=True), approx=True)

            # x_r = v @ attn ; y = trans_conv(x - x_r)   (bf16 MXU, f32 acc)
            x_r = jnp.dot(v.astype(jnp.bfloat16), attn.astype(jnp.bfloat16),
                          preferred_element_type=jnp.float32)     # (C, N)
            d = (xb - x_r).astype(jnp.bfloat16)
            yb = jnp.dot(wt, d, preferred_element_type=jnp.float32) + bt

            ys.append(yb)
            # one-pass BN statistics
            s = s + jnp.sum(yb, axis=1, keepdims=True)
            s2 = s2 + jnp.sum(yb * yb, axis=1, keepdims=True)

        # BatchNorm1d, training-mode batch statistics over (batch, points),
        # biased variance via E[y^2] - E[y]^2.
        mean = s * inv_bn
        var = s2 * inv_bn - mean * mean
        scale = gamma * lax.rsqrt(var + 1e-5)          # (C, 1)
        shift = beta - mean * scale                    # (C, 1)

        new_xs = []
        for b in range(B):
            y_hat = ys[b] * scale + shift
            xb_new = xs[b] + jnp.maximum(y_hat, 0.0)   # ReLU + residual
            # Write straight into this layer's channel slice of the
            # concatenated (B, 4C, N) output (no jnp.concatenate afterwards).
            out_ref[b, pl.ds(l * C, C), :] = xb_new
            new_xs.append(xb_new)
        xs = new_xs


# ---------------------------------------------------------------------------
# Wrapper
# ---------------------------------------------------------------------------
@jax.jit
def point_transformer_fused(x, wqv_all, bv_all, wt_all, bt_all,
                            gamma_all, beta_all):
    """x: (B, C, N) f32 -> (B, 4C, N) f32 (the torch.cat((x1..x4), dim=1))."""
    B, C, N = x.shape
    L = wqv_all.shape[0]

    def full_spec(shape):
        return pl.BlockSpec(shape, lambda i: (0,) * len(shape))

    return pl.pallas_call(
        fused_sa_stack_kernel,
        out_shape=jax.ShapeDtypeStruct((B, L * C, N), jnp.float32),
        grid=(1,),
        in_specs=[
            full_spec((B, C, N)),            # x
            full_spec((L, C // 4 + C, C)),   # packed q|v weights (bf16)
            full_spec((L, C, 1)),            # v bias
            full_spec((L, C, C)),            # trans weight (bf16)
            full_spec((L, C, 1)),            # trans bias
            full_spec((L, C, 1)),            # BN gamma
            full_spec((L, C, 1)),            # BN beta
        ],
        out_specs=full_spec((B, L * C, N)),
        compiler_params=pltpu.CompilerParams(
            dimension_semantics=("arbitrary",),
            vmem_limit_bytes=32 * 1024 * 1024),
    )(x, wqv_all, bv_all, wt_all, bt_all, gamma_all, beta_all)


# ---------------------------------------------------------------------------
# Parameter construction (deterministic synthetic weights, PyTorch layout)
# ---------------------------------------------------------------------------
def init_sa_params(key, C):
    kq, kv, kbv, kt, kbt = jax.random.split(key, 5)
    scale = 1.0 / jnp.sqrt(jnp.float32(C))
    wq = jax.random.normal(kq, (C // 4, C), jnp.float32) * scale   # q_conv == k_conv
    wv = jax.random.normal(kv, (C, C), jnp.float32) * scale
    bv = jax.random.normal(kbv, (C, 1), jnp.float32) * 0.01
    wt = jax.random.normal(kt, (C, C), jnp.float32) * scale
    bt = jax.random.normal(kbt, (C, 1), jnp.float32) * 0.01
    gamma = jnp.ones((C, 1), jnp.float32)                          # BN weight
    beta = jnp.zeros((C, 1), jnp.float32)                          # BN bias
    return (wq, wv, bv, wt, bt, gamma, beta)


def pack_params(layer_params):
    """Stack per-layer params; pack (wq | wv) and cast matmul weights to bf16."""
    wqv_all = jnp.stack(
        [jnp.concatenate([p[0], p[1]], axis=0) for p in layer_params]
    ).astype(jnp.bfloat16)
    bv_all = jnp.stack([p[2] for p in layer_params])
    wt_all = jnp.stack([p[3] for p in layer_params]).astype(jnp.bfloat16)
    bt_all = jnp.stack([p[4] for p in layer_params])
    gamma_all = jnp.stack([p[5] for p in layer_params])
    beta_all = jnp.stack([p[6] for p in layer_params])
    return wqv_all, bv_all, wt_all, bt_all, gamma_all, beta_all


if __name__ == "__main__":
    B, C, N = 2, 64, 128   # small shapes: batch=2, channels=64, points=128

    root = jax.random.PRNGKey(0)
    kx, *layer_keys = jax.random.split(root, NUM_LAYERS + 1)

    x = jax.random.normal(kx, (B, C, N), jnp.float32)
    layer_params = tuple(init_sa_params(k, C) for k in layer_keys)
    packed = pack_params(layer_params)

    out = point_transformer_fused(x, *packed)
    out = jax.block_until_ready(out)

    assert out.shape == (B, NUM_LAYERS * C, N), out.shape
    assert bool(jnp.all(jnp.isfinite(out)))
    print("KERNEL_OK")
</pallas_src>

<mosaic_0001>
module attributes {stable_mosaic.version = 11 : i64} {
  func.func @fused_sa_stack_kernel(%arg0: i32, %arg1: memref<2x64x128xf32, #tpu.memory_space<vmem>>, %arg2: memref<4x80x64xbf16, #tpu.memory_space<vmem>>, %arg3: memref<4x64x1xf32, #tpu.memory_space<vmem>>, %arg4: memref<4x64x64xbf16, #tpu.memory_space<vmem>>, %arg5: memref<4x64x1xf32, #tpu.memory_space<vmem>>, %arg6: memref<4x64x1xf32, #tpu.memory_space<vmem>>, %arg7: memref<4x64x1xf32, #tpu.memory_space<vmem>>, %arg8: memref<2x256x128xf32, #tpu.memory_space<vmem>>) attributes {dimension_semantics = [#tpu.dimension_semantics<arbitrary>], iteration_bounds = array<i64: 1>, scalar_prefetch = 0 : i64, scratch_operands = 0 : i64, tpu.core_type = #tpu.core_type<tc>, window_params = [{pipeline_mode = #tpu.pipeline_mode<synchronous>, transform_indices = @transform_0, window_bounds = array<i64: 2, 64, 128>}, {pipeline_mode = #tpu.pipeline_mode<synchronous>, transform_indices = @transform_1, window_bounds = array<i64: 4, 80, 64>}, {pipeline_mode = #tpu.pipeline_mode<synchronous>, transform_indices = @transform_2, window_bounds = array<i64: 4, 64, 1>}, {pipeline_mode = #tpu.pipeline_mode<synchronous>, transform_indices = @transform_3, window_bounds = array<i64: 4, 64, 64>}, {pipeline_mode = #tpu.pipeline_mode<synchronous>, transform_indices = @transform_4, window_bounds = array<i64: 4, 64, 1>}, {pipeline_mode = #tpu.pipeline_mode<synchronous>, transform_indices = @transform_5, window_bounds = array<i64: 4, 64, 1>}, {pipeline_mode = #tpu.pipeline_mode<synchronous>, transform_indices = @transform_6, window_bounds = array<i64: 4, 64, 1>}, {pipeline_mode = #tpu.pipeline_mode<synchronous>, transform_indices = @transform_7, window_bounds = array<i64: 2, 256, 128>}]} {
    %c0 = arith.constant 0 : index
    %c0_0 = arith.constant 0 : index
    %c0_1 = arith.constant 0 : index
    %0 = vector.load %arg1[%c0, %c0_0, %c0_1] : memref<2x64x128xf32, #tpu.memory_space<vmem>>, vector<1x64x128xf32>
    %1 = vector.shape_cast %0 : vector<1x64x128xf32> to vector<64x128xf32>
    %c1 = arith.constant 1 : index
    %c0_2 = arith.constant 0 : index
    %c0_3 = arith.constant 0 : index
    %2 = vector.load %arg1[%c1, %c0_2, %c0_3] : memref<2x64x128xf32, #tpu.memory_space<vmem>>, vector<1x64x128xf32>
    %3 = vector.shape_cast %2 : vector<1x64x128xf32> to vector<64x128xf32>
    %c0_4 = arith.constant 0 : index
    %c0_5 = arith.constant 0 : index
    %c0_6 = arith.constant 0 : index
    %4 = vector.load %arg2[%c0_4, %c0_5, %c0_6] : memref<4x80x64xbf16, #tpu.memory_space<vmem>>, vector<1x80x64xbf16>
    %5 = vector.shape_cast %4 : vector<1x80x64xbf16> to vector<80x64xbf16>
    %c0_7 = arith.constant 0 : index
    %c0_8 = arith.constant 0 : index
    %c0_9 = arith.constant 0 : index
    %6 = vector.load %arg3[%c0_7, %c0_8, %c0_9] : memref<4x64x1xf32, #tpu.memory_space<vmem>>, vector<1x64x1xf32>
    %7 = vector.shape_cast %6 : vector<1x64x1xf32> to vector<64x1xf32>
    %c0_10 = arith.constant 0 : index
    %c0_11 = arith.constant 0 : index
    %c0_12 = arith.constant 0 : index
    %8 = vector.load %arg4[%c0_10, %c0_11, %c0_12] : memref<4x64x64xbf16, #tpu.memory_space<vmem>>, vector<1x64x64xbf16>
    %9 = vector.shape_cast %8 : vector<1x64x64xbf16> to vector<64x64xbf16>
    %c0_13 = arith.constant 0 : index
    %c0_14 = arith.constant 0 : index
    %c0_15 = arith.constant 0 : index
    %10 = vector.load %arg5[%c0_13, %c0_14, %c0_15] : memref<4x64x1xf32, #tpu.memory_space<vmem>>, vector<1x64x1xf32>
    %11 = vector.shape_cast %10 : vector<1x64x1xf32> to vector<64x1xf32>
    %c0_16 = arith.constant 0 : index
    %c0_17 = arith.constant 0 : index
    %c0_18 = arith.constant 0 : index
    %12 = vector.load %arg6[%c0_16, %c0_17, %c0_18] : memref<4x64x1xf32, #tpu.memory_space<vmem>>, vector<1x64x1xf32>
    %13 = vector.shape_cast %12 : vector<1x64x1xf32> to vector<64x1xf32>
    %c0_19 = arith.constant 0 : index
    %c0_20 = arith.constant 0 : index
    %c0_21 = arith.constant 0 : index
    %14 = vector.load %arg7[%c0_19, %c0_20, %c0_21] : memref<4x64x1xf32, #tpu.memory_space<vmem>>, vector<1x64x1xf32>
    %15 = vector.shape_cast %14 : vector<1x64x1xf32> to vector<64x1xf32>
    %cst = arith.constant 0.000000e+00 : f32
    %16 = vector.broadcast %cst : f32 to vector<64x1xf32>
    %cst_22 = arith.constant 0.000000e+00 : f32
    %17 = vector.broadcast %cst_22 : f32 to vector<64x1xf32>
    %18 = arith.truncf %1 : vector<64x128xf32> to vector<64x128xbf16>
    %cst_23 = arith.constant dense<0.000000e+00> : vector<80x128xf32>
    %19 = tpu.matmul %5, %18, %cst_23 {dimension_numbers = #tpu.dot_dimension_numbers<[1], [0], [0], [1], [0, 0, 1, 1], [], []>} : vector<80x64xbf16>, vector<64x128xbf16>, vector<80x128xf32> -> vector<80x128xf32>
    %20 = vector.extract_strided_slice %19 {offsets = [0, 0], sizes = [16, 128], strides = [1, 1]} : vector<80x128xf32> to vector<16x128xf32>
    %21 = vector.extract_strided_slice %19 {offsets = [16, 0], sizes = [64, 128], strides = [1, 1]} : vector<80x128xf32> to vector<64x128xf32>
    %22 = vector.broadcast %7 : vector<64x1xf32> to vector<64x128xf32>
    %23 = arith.addf %21, %22 : vector<64x128xf32>
    %cst_24 = arith.constant dense<0.000000e+00> : vector<128x128xf32>
    %24 = tpu.matmul %20, %20, %cst_24 {dimension_numbers = #tpu.dot_dimension_numbers<[0], [0], [1], [1], [0, 1, 1, 1], [], []>} : vector<16x128xf32>, vector<16x128xf32>, vector<128x128xf32> -> vector<128x128xf32>
    %cst_25 = arith.constant dense<0xFF800000> : vector<128xf32>
    %25 = vector.multi_reduction <maximumf>, %24, %cst_25 [1] : vector<128x128xf32> to vector<128xf32>
    %26 = vector.shape_cast %25 : vector<128xf32> to vector<128x1xf32>
    %27 = vector.broadcast %26 : vector<128x1xf32> to vector<128x128xf32>
    %28 = arith.subf %24, %27 : vector<128x128xf32>
    %29 = math.exp %28 : vector<128x128xf32>
    %cst_26 = arith.constant dense<0.000000e+00> : vector<128xf32>
    %30 = vector.multi_reduction <add>, %29, %cst_26 [1] : vector<128x128xf32> to vector<128xf32>
    %31 = vector.shape_cast %30 : vector<128xf32> to vector<128x1xf32>
    %32 = tpu.reciprocal %31 {approx = true} : vector<128x1xf32> -> vector<128x1xf32>
    %33 = vector.broadcast %32 : vector<128x1xf32> to vector<128x128xf32>
    %34 = arith.mulf %29, %33 : vector<128x128xf32>
    %cst_27 = arith.constant dense<0.000000e+00> : vector<128xf32>
    %35 = vector.multi_reduction <add>, %34, %cst_27 [0] : vector<128x128xf32> to vector<128xf32>
    %36 = vector.shape_cast %35 : vector<128xf32> to vector<1x128xf32>
    %cst_28 = arith.constant 9.99999971E-10 : f32
    %37 = vector.broadcast %cst_28 : f32 to vector<1x128xf32>
    %38 = arith.addf %37, %36 : vector<1x128xf32>
    %39 = tpu.reciprocal %38 {approx = true} : vector<1x128xf32> -> vector<1x128xf32>
    %40 = vector.broadcast %39 : vector<1x128xf32> to vector<128x128xf32>
    %41 = arith.mulf %34, %40 : vector<128x128xf32>
    %42 = arith.truncf %23 : vector<64x128xf32> to vector<64x128xbf16>
    %43 = arith.truncf %41 : vector<128x128xf32> to vector<128x128xbf16>
    %cst_29 = arith.constant dense<0.000000e+00> : vector<64x128xf32>
    %44 = tpu.matmul %42, %43, %cst_29 {dimension_numbers = #tpu.dot_dimension_numbers<[1], [0], [0], [1], [0, 0, 1, 1], [], []>} : vector<64x128xbf16>, vector<128x128xbf16>, vector<64x128xf32> -> vector<64x128xf32>
    %45 = arith.subf %1, %44 : vector<64x128xf32>
    %46 = arith.truncf %45 : vector<64x128xf32> to vector<64x128xbf16>
    %cst_30 = arith.constant dense<0.000000e+00> : vector<64x128xf32>
    %47 = tpu.matmul %9, %46, %cst_30 {dimension_numbers = #tpu.dot_dimension_numbers<[1], [0], [0], [1], [0, 0, 1, 1], [], []>} : vector<64x64xbf16>, vector<64x128xbf16>, vector<64x128xf32> -> vector<64x128xf32>
    %48 = vector.broadcast %11 : vector<64x1xf32> to vector<64x128xf32>
    %49 = arith.addf %47, %48 : vector<64x128xf32>
    %cst_31 = arith.constant dense<0.000000e+00> : vector<64xf32>
    %50 = vector.multi_reduction <add>, %49, %cst_31 [1] : vector<64x128xf32> to vector<64xf32>
    %51 = vector.shape_cast %50 : vector<64xf32> to vector<64x1xf32>
    %52 = arith.addf %16, %51 : vector<64x1xf32>
    %53 = arith.mulf %49, %49 : vector<64x128xf32>
    %cst_32 = arith.constant dense<0.000000e+00> : vector<64xf32>
    %54 = vector.multi_reduction <add>, %53, %cst_32 [1] : vector<64x128xf32> to vector<64xf32>
    %55 = vector.shape_cast %54 : vector<64xf32> to vector<64x1xf32>
    %56 = arith.addf %17, %55 : vector<64x1xf32>
    %57 = arith.truncf %3 : vector<64x128xf32> to vector<64x128xbf16>
    %cst_33 = arith.constant dense<0.000000e+00> : vector<80x128xf32>
    %58 = tpu.matmul %5, %57, %cst_33 {dimension_numbers = #tpu.dot_dimension_numbers<[1], [0], [0], [1], [0, 0, 1, 1], [], []>} : vector<80x64xbf16>, vector<64x128xbf16>, vector<80x128xf32> -> vector<80x128xf32>
    %59 = vector.extract_strided_slice %58 {offsets = [0, 0], sizes = [16, 128], strides = [1, 1]} : vector<80x128xf32> to vector<16x128xf32>
    %60 = vector.extract_strided_slice %58 {offsets = [16, 0], sizes = [64, 128], strides = [1, 1]} : vector<80x128xf32> to vector<64x128xf32>
    %61 = vector.broadcast %7 : vector<64x1xf32> to vector<64x128xf32>
    %62 = arith.addf %60, %61 : vector<64x128xf32>
    %cst_34 = arith.constant dense<0.000000e+00> : vector<128x128xf32>
    %63 = tpu.matmul %59, %59, %cst_34 {dimension_numbers = #tpu.dot_dimension_numbers<[0], [0], [1], [1], [0, 1, 1, 1], [], []>} : vector<16x128xf32>, vector<16x128xf32>, vector<128x128xf32> -> vector<128x128xf32>
    %cst_35 = arith.constant dense<0xFF800000> : vector<128xf32>
    %64 = vector.multi_reduction <maximumf>, %63, %cst_35 [1] : vector<128x128xf32> to vector<128xf32>
    %65 = vector.shape_cast %64 : vector<128xf32> to vector<128x1xf32>
    %66 = vector.broadcast %65 : vector<128x1xf32> to vector<128x128xf32>
    %67 = arith.subf %63, %66 : vector<128x128xf32>
    %68 = math.exp %67 : vector<128x128xf32>
    %cst_36 = arith.constant dense<0.000000e+00> : vector<128xf32>
    %69 = vector.multi_reduction <add>, %68, %cst_36 [1] : vector<128x128xf32> to vector<128xf32>
    %70 = vector.shape_cast %69 : vector<128xf32> to vector<128x1xf32>
    %71 = tpu.reciprocal %70 {approx = true} : vector<128x1xf32> -> vector<128x1xf32>
    %72 = vector.broadcast %71 : vector<128x1xf32> to vector<128x128xf32>
    %73 = arith.mulf %68, %72 : vector<128x128xf32>
    %cst_37 = arith.constant dense<0.000000e+00> : vector<128xf32>
    %74 = vector.multi_reduction <add>, %73, %cst_37 [0] : vector<128x128xf32> to vector<128xf32>
    %75 = vector.shape_cast %74 : vector<128xf32> to vector<1x128xf32>
    %cst_38 = arith.constant 9.99999971E-10 : f32
    %76 = vector.broadcast %cst_38 : f32 to vector<1x128xf32>
    %77 = arith.addf %76, %75 : vector<1x128xf32>
    %78 = tpu.reciprocal %77 {approx = true} : vector<1x128xf32> -> vector<1x128xf32>
    %79 = vector.broadcast %78 : vector<1x128xf32> to vector<128x128xf32>
    %80 = arith.mulf %73, %79 : vector<128x128xf32>
    %81 = arith.truncf %62 : vector<64x128xf32> to vector<64x128xbf16>
    %82 = arith.truncf %80 : vector<128x128xf32> to vector<128x128xbf16>
    %cst_39 = arith.constant dense<0.000000e+00> : vector<64x128xf32>
    %83 = tpu.matmul %81, %82, %cst_39 {dimension_numbers = #tpu.dot_dimension_numbers<[1], [0], [0], [1], [0, 0, 1, 1], [], []>} : vector<64x128xbf16>, vector<128x128xbf16>, vector<64x128xf32> -> vector<64x128xf32>
    %84 = arith.subf %3, %83 : vector<64x128xf32>
    %85 = arith.truncf %84 : vector<64x128xf32> to vector<64x128xbf16>
    %cst_40 = arith.constant dense<0.000000e+00> : vector<64x128xf32>
    %86 = tpu.matmul %9, %85, %cst_40 {dimension_numbers = #tpu.dot_dimension_numbers<[1], [0], [0], [1], [0, 0, 1, 1], [], []>} : vector<64x64xbf16>, vector<64x128xbf16>, vector<64x128xf32> -> vector<64x128xf32>
    %87 = vector.broadcast %11 : vector<64x1xf32> to vector<64x128xf32>
    %88 = arith.addf %86, %87 : vector<64x128xf32>
    %cst_41 = arith.constant dense<0.000000e+00> : vector<64xf32>
    %89 = vector.multi_reduction <add>, %88, %cst_41 [1] : vector<64x128xf32> to vector<64xf32>
    %90 = vector.shape_cast %89 : vector<64xf32> to vector<64x1xf32>
    %91 = arith.addf %52, %90 : vector<64x1xf32>
    %92 = arith.mulf %88, %88 : vector<64x128xf32>
    %cst_42 = arith.constant dense<0.000000e+00> : vector<64xf32>
    %93 = vector.multi_reduction <add>, %92, %cst_42 [1] : vector<64x128xf32> to vector<64xf32>
    %94 = vector.shape_cast %93 : vector<64xf32> to vector<64x1xf32>
    %95 = arith.addf %56, %94 : vector<64x1xf32>
    %cst_43 = arith.constant 3.906250e-03 : f32
    %96 = vector.broadcast %cst_43 : f32 to vector<64x1xf32>
    %97 = arith.mulf %91, %96 : vector<64x1xf32>
    %cst_44 = arith.constant 3.906250e-03 : f32
    %98 = vector.broadcast %cst_44 : f32 to vector<64x1xf32>
    %99 = arith.mulf %95, %98 : vector<64x1xf32>
    %100 = arith.mulf %97, %97 : vector<64x1xf32>
    %101 = arith.subf %99, %100 : vector<64x1xf32>
    %cst_45 = arith.constant 9.99999974E-6 : f32
    %102 = vector.broadcast %cst_45 : f32 to vector<64x1xf32>
    %103 = arith.addf %101, %102 : vector<64x1xf32>
    %104 = math.rsqrt %103 : vector<64x1xf32>
    %105 = arith.mulf %13, %104 : vector<64x1xf32>
    %106 = arith.mulf %97, %105 : vector<64x1xf32>
    %107 = arith.subf %15, %106 : vector<64x1xf32>
    %108 = vector.broadcast %105 : vector<64x1xf32> to vector<64x128xf32>
    %109 = arith.mulf %49, %108 : vector<64x128xf32>
    %110 = vector.broadcast %107 : vector<64x1xf32> to vector<64x128xf32>
    %111 = arith.addf %109, %110 : vector<64x128xf32>
    %cst_46 = arith.constant 0.000000e+00 : f32
    %112 = vector.broadcast %cst_46 : f32 to vector<64x128xf32>
    %113 = arith.maximumf %111, %112 : vector<64x128xf32>
    %114 = arith.addf %1, %113 : vector<64x128xf32>
    %c0_47 = arith.constant 0 : index
    %c0_48 = arith.constant 0 : index
    %c0_49 = arith.constant 0 : index
    %115 = vector.load %arg8[%c0_47, %c0_48, %c0_49] : memref<2x256x128xf32, #tpu.memory_space<vmem>>, vector<1x64x128xf32>
    %116 = vector.shape_cast %115 : vector<1x64x128xf32> to vector<64x128xf32>
    %117 = vector.shape_cast %114 : vector<64x128xf32> to vector<1x64x128xf32>
    tpu.vector_store %arg8[%c0_47, %c0_48, %c0_49], %117 {strides = array<i32>} : memref<2x256x128xf32, #tpu.memory_space<vmem>>, vector<1x64x128xf32>,
    %118 = vector.broadcast %105 : vector<64x1xf32> to vector<64x128xf32>
    %119 = arith.mulf %88, %118 : vector<64x128xf32>
    %120 = vector.broadcast %107 : vector<64x1xf32> to vector<64x128xf32>
    %121 = arith.addf %119, %120 : vector<64x128xf32>
    %cst_50 = arith.constant 0.000000e+00 : f32
    %122 = vector.broadcast %cst_50 : f32 to vector<64x128xf32>
    %123 = arith.maximumf %121, %122 : vector<64x128xf32>
    %124 = arith.addf %3, %123 : vector<64x128xf32>
    %c1_51 = arith.constant 1 : index
    %c0_52 = arith.constant 0 : index
    %c0_53 = arith.constant 0 : index
    %125 = vector.load %arg8[%c1_51, %c0_52, %c0_53] : memref<2x256x128xf32, #tpu.memory_space<vmem>>, vector<1x64x128xf32>
    %126 = vector.shape_cast %125 : vector<1x64x128xf32> to vector<64x128xf32>
    %127 = vector.shape_cast %124 : vector<64x128xf32> to vector<1x64x128xf32>
    tpu.vector_store %arg8[%c1_51, %c0_52, %c0_53], %127 {strides = array<i32>} : memref<2x256x128xf32, #tpu.memory_space<vmem>>, vector<1x64x128xf32>,
    %c1_54 = arith.constant 1 : index
    %c0_55 = arith.constant 0 : index
    %c0_56 = arith.constant 0 : index
    %128 = vector.load %arg2[%c1_54, %c0_55, %c0_56] : memref<4x80x64xbf16, #tpu.memory_space<vmem>>, vector<1x80x64xbf16>
    %129 = vector.shape_cast %128 : vector<1x80x64xbf16> to vector<80x64xbf16>
    %c1_57 = arith.constant 1 : index
    %c0_58 = arith.constant 0 : index
    %c0_59 = arith.constant 0 : index
    %130 = vector.load %arg3[%c1_57, %c0_58, %c0_59] : memref<4x64x1xf32, #tpu.memory_space<vmem>>, vector<1x64x1xf32>
    %131 = vector.shape_cast %130 : vector<1x64x1xf32> to vector<64x1xf32>
    %c1_60 = arith.constant 1 : index
    %c0_61 = arith.constant 0 : index
    %c0_62 = arith.constant 0 : index
    %132 = vector.load %arg4[%c1_60, %c0_61, %c0_62] : memref<4x64x64xbf16, #tpu.memory_space<vmem>>, vector<1x64x64xbf16>
    %133 = vector.shape_cast %132 : vector<1x64x64xbf16> to vector<64x64xbf16>
    %c1_63 = arith.constant 1 : index
    %c0_64 = arith.constant 0 : index
    %c0_65 = arith.constant 0 : index
    %134 = vector.load %arg5[%c1_63, %c0_64, %c0_65] : memref<4x64x1xf32, #tpu.memory_space<vmem>>, vector<1x64x1xf32>
    %135 = vector.shape_cast %134 : vector<1x64x1xf32> to vector<64x1xf32>
    %c1_66 = arith.constant 1 : index
    %c0_67 = arith.constant 0 : index
    %c0_68 = arith.constant 0 : index
    %136 = vector.load %arg6[%c1_66, %c0_67, %c0_68] : memref<4x64x1xf32, #tpu.memory_space<vmem>>, vector<1x64x1xf32>
    %137 = vector.shape_cast %136 : vector<1x64x1xf32> to vector<64x1xf32>
    %c1_69 = arith.constant 1 : index
    %c0_70 = arith.constant 0 : index
    %c0_71 = arith.constant 0 : index
    %138 = vector.load %arg7[%c1_69, %c0_70, %c0_71] : memref<4x64x1xf32, #tpu.memory_space<vmem>>, vector<1x64x1xf32>
    %139 = vector.shape_cast %138 : vector<1x64x1xf32> to vector<64x1xf32>
    %cst_72 = arith.constant 0.000000e+00 : f32
    %140 = vector.broadcast %cst_72 : f32 to vector<64x1xf32>
    %cst_73 = arith.constant 0.000000e+00 : f32
    %141 = vector.broadcast %cst_73 : f32 to vector<64x1xf32>
    %142 = arith.truncf %114 : vector<64x128xf32> to vector<64x128xbf16>
    %cst_74 = arith.constant dense<0.000000e+00> : vector<80x128xf32>
    %143 = tpu.matmul %129, %142, %cst_74 {dimension_numbers = #tpu.dot_dimension_numbers<[1], [0], [0], [1], [0, 0, 1, 1], [], []>} : vector<80x64xbf16>, vector<64x128xbf16>, vector<80x128xf32> -> vector<80x128xf32>
    %144 = vector.extract_strided_slice %143 {offsets = [0, 0], sizes = [16, 128], strides = [1, 1]} : vector<80x128xf32> to vector<16x128xf32>
    %145 = vector.extract_strided_slice %143 {offsets = [16, 0], sizes = [64, 128], strides = [1, 1]} : vector<80x128xf32> to vector<64x128xf32>
    %146 = vector.broadcast %131 : vector<64x1xf32> to vector<64x128xf32>
    %147 = arith.addf %145, %146 : vector<64x128xf32>
    %cst_75 = arith.constant dense<0.000000e+00> : vector<128x128xf32>
    %148 = tpu.matmul %144, %144, %cst_75 {dimension_numbers = #tpu.dot_dimension_numbers<[0], [0], [1], [1], [0, 1, 1, 1], [], []>} : vector<16x128xf32>, vector<16x128xf32>, vector<128x128xf32> -> vector<128x128xf32>
    %cst_76 = arith.constant dense<0xFF800000> : vector<128xf32>
    %149 = vector.multi_reduction <maximumf>, %148, %cst_76 [1] : vector<128x128xf32> to vector<128xf32>
    %150 = vector.shape_cast %149 : vector<128xf32> to vector<128x1xf32>
    %151 = vector.broadcast %150 : vector<128x1xf32> to vector<128x128xf32>
    %152 = arith.subf %148, %151 : vector<128x128xf32>
    %153 = math.exp %152 : vector<128x128xf32>
    %cst_77 = arith.constant dense<0.000000e+00> : vector<128xf32>
    %154 = vector.multi_reduction <add>, %153, %cst_77 [1] : vector<128x128xf32> to vector<128xf32>
    %155 = vector.shape_cast %154 : vector<128xf32> to vector<128x1xf32>
    %156 = tpu.reciprocal %155 {approx = true} : vector<128x1xf32> -> vector<128x1xf32>
    %157 = vector.broadcast %156 : vector<128x1xf32> to vector<128x128xf32>
    %158 = arith.mulf %153, %157 : vector<128x128xf32>
    %cst_78 = arith.constant dense<0.000000e+00> : vector<128xf32>
    %159 = vector.multi_reduction <add>, %158, %cst_78 [0] : vector<128x128xf32> to vector<128xf32>
    %160 = vector.shape_cast %159 : vector<128xf32> to vector<1x128xf32>
    %cst_79 = arith.constant 9.99999971E-10 : f32
    %161 = vector.broadcast %cst_79 : f32 to vector<1x128xf32>
    %162 = arith.addf %161, %160 : vector<1x128xf32>
    %163 = tpu.reciprocal %162 {approx = true} : vector<1x128xf32> -> vector<1x128xf32>
    %164 = vector.broadcast %163 : vector<1x128xf32> to vector<128x128xf32>
    %165 = arith.mulf %158, %164 : vector<128x128xf32>
    %166 = arith.truncf %147 : vector<64x128xf32> to vector<64x128xbf16>
    %167 = arith.truncf %165 : vector<128x128xf32> to vector<128x128xbf16>
    %cst_80 = arith.constant dense<0.000000e+00> : vector<64x128xf32>
    %168 = tpu.matmul %166, %167, %cst_80 {dimension_numbers = #tpu.dot_dimension_numbers<[1], [0], [0], [1], [0, 0, 1, 1], [], []>} : vector<64x128xbf16>, vector<128x128xbf16>, vector<64x128xf32> -> vector<64x128xf32>
    %169 = arith.subf %114, %168 : vector<64x128xf32>
    %170 = arith.truncf %169 : vector<64x128xf32> to vector<64x128xbf16>
    %cst_81 = arith.constant dense<0.000000e+00> : vector<64x128xf32>
    %171 = tpu.matmul %133, %170, %cst_81 {dimension_numbers = #tpu.dot_dimension_numbers<[1], [0], [0], [1], [0, 0, 1, 1], [], []>} : vector<64x64xbf16>, vector<64x128xbf16>, vector<64x128xf32> -> vector<64x128xf32>
    %172 = vector.broadcast %135 : vector<64x1xf32> to vector<64x128xf32>
    %173 = arith.addf %171, %172 : vector<64x128xf32>
    %cst_82 = arith.constant dense<0.000000e+00> : vector<64xf32>
    %174 = vector.multi_reduction <add>, %173, %cst_82 [1] : vector<64x128xf32> to vector<64xf32>
    %175 = vector.shape_cast %174 : vector<64xf32> to vector<64x1xf32>
    %176 = arith.addf %140, %175 : vector<64x1xf32>
    %177 = arith.mulf %173, %173 : vector<64x128xf32>
    %cst_83 = arith.constant dense<0.000000e+00> : vector<64xf32>
    %178 = vector.multi_reduction <add>, %177, %cst_83 [1] : vector<64x128xf32> to vector<64xf32>
    %179 = vector.shape_cast %178 : vector<64xf32> to vector<64x1xf32>
    %180 = arith.addf %141, %179 : vector<64x1xf32>
    %181 = arith.truncf %124 : vector<64x128xf32> to vector<64x128xbf16>
    %cst_84 = arith.constant dense<0.000000e+00> : vector<80x128xf32>
    %182 = tpu.matmul %129, %181, %cst_84 {dimension_numbers = #tpu.dot_dimension_numbers<[1], [0], [0], [1], [0, 0, 1, 1], [], []>} : vector<80x64xbf16>, vector<64x128xbf16>, vector<80x128xf32> -> vector<80x128xf32>
    %183 = vector.extract_strided_slice %182 {offsets = [0, 0], sizes = [16, 128], strides = [1, 1]} : vector<80x128xf32> to vector<16x128xf32>
    %184 = vector.extract_strided_slice %182 {offsets = [16, 0], sizes = [64, 128], strides = [1, 1]} : vector<80x128xf32> to vector<64x128xf32>
    %185 = vector.broadcast %131 : vector<64x1xf32> to vector<64x128xf32>
    %186 = arith.addf %184, %185 : vector<64x128xf32>
    %cst_85 = arith.constant dense<0.000000e+00> : vector<128x128xf32>
    %187 = tpu.matmul %183, %183, %cst_85 {dimension_numbers = #tpu.dot_dimension_numbers<[0], [0], [1], [1], [0, 1, 1, 1], [], []>} : vector<16x128xf32>, vector<16x128xf32>, vector<128x128xf32> -> vector<128x128xf32>
    %cst_86 = arith.constant dense<0xFF800000> : vector<128xf32>
    %188 = vector.multi_reduction <maximumf>, %187, %cst_86 [1] : vector<128x128xf32> to vector<128xf32>
    %189 = vector.shape_cast %188 : vector<128xf32> to vector<128x1xf32>
    %190 = vector.broadcast %189 : vector<128x1xf32> to vector<128x128xf32>
    %191 = arith.subf %187, %190 : vector<128x128xf32>
    %192 = math.exp %191 : vector<128x128xf32>
    %cst_87 = arith.constant dense<0.000000e+00> : vector<128xf32>
    %193 = vector.multi_reduction <add>, %192, %cst_87 [1] : vector<128x128xf32> to vector<128xf32>
    %194 = vector.shape_cast %193 : vector<128xf32> to vector<128x1xf32>
    %195 = tpu.reciprocal %194 {approx = true} : vector<128x1xf32> -> vector<128x1xf32>
    %196 = vector.broadcast %195 : vector<128x1xf32> to vector<128x128xf32>
    %197 = arith.mulf %192, %196 : vector<128x128xf32>
    %cst_88 = arith.constant dense<0.000000e+00> : vector<128xf32>
    %198 = vector.multi_reduction <add>, %197, %cst_88 [0] : vector<128x128xf32> to vector<128xf32>
    %199 = vector.shape_cast %198 : vector<128xf32> to vector<1x128xf32>
    %cst_89 = arith.constant 9.99999971E-10 : f32
    %200 = vector.broadcast %cst_89 : f32 to vector<1x128xf32>
    %201 = arith.addf %200, %199 : vector<1x128xf32>
    %202 = tpu.reciprocal %201 {approx = true} : vector<1x128xf32> -> vector<1x128xf32>
    %203 = vector.broadcast %202 : vector<1x128xf32> to vector<128x128xf32>
    %204 = arith.mulf %197, %203 : vector<128x128xf32>
    %205 = arith.truncf %186 : vector<64x128xf32> to vector<64x128xbf16>
    %206 = arith.truncf %204 : vector<128x128xf32> to vector<128x128xbf16>
    %cst_90 = arith.constant dense<0.000000e+00> : vector<64x128xf32>
    %207 = tpu.matmul %205, %206, %cst_90 {dimension_numbers = #tpu.dot_dimension_numbers<[1], [0], [0], [1], [0, 0, 1, 1], [], []>} : vector<64x128xbf16>, vector<128x128xbf16>, vector<64x128xf32> -> vector<64x128xf32>
    %208 = arith.subf %124, %207 : vector<64x128xf32>
    %209 = arith.truncf %208 : vector<64x128xf32> to vector<64x128xbf16>
    %cst_91 = arith.constant dense<0.000000e+00> : vector<64x128xf32>
    %210 = tpu.matmul %133, %209, %cst_91 {dimension_numbers = #tpu.dot_dimension_numbers<[1], [0], [0], [1], [0, 0, 1, 1], [], []>} : vector<64x64xbf16>, vector<64x128xbf16>, vector<64x128xf32> -> vector<64x128xf32>
    %211 = vector.broadcast %135 : vector<64x1xf32> to vector<64x128xf32>
    %212 = arith.addf %210, %211 : vector<64x128xf32>
    %cst_92 = arith.constant dense<0.000000e+00> : vector<64xf32>
    %213 = vector.multi_reduction <add>, %212, %cst_92 [1] : vector<64x128xf32> to vector<64xf32>
    %214 = vector.shape_cast %213 : vector<64xf32> to vector<64x1xf32>
    %215 = arith.addf %176, %214 : vector<64x1xf32>
    %216 = arith.mulf %212, %212 : vector<64x128xf32>
    %cst_93 = arith.constant dense<0.000000e+00> : vector<64xf32>
    %217 = vector.multi_reduction <add>, %216, %cst_93 [1] : vector<64x128xf32> to vector<64xf32>
    %218 = vector.shape_cast %217 : vector<64xf32> to vector<64x1xf32>
    %219 = arith.addf %180, %218 : vector<64x1xf32>
    %cst_94 = arith.constant 3.906250e-03 : f32
    %220 = vector.broadcast %cst_94 : f32 to vector<64x1xf32>
    %221 = arith.mulf %215, %220 : vector<64x1xf32>
    %cst_95 = arith.constant 3.906250e-03 : f32
    %222 = vector.broadcast %cst_95 : f32 to vector<64x1xf32>
    %223 = arith.mulf %219, %222 : vector<64x1xf32>
    %224 = arith.mulf %221, %221 : vector<64x1xf32>
    %225 = arith.subf %223, %224 : vector<64x1xf32>
    %cst_96 = arith.constant 9.99999974E-6 : f32
    %226 = vector.broadcast %cst_96 : f32 to vector<64x1xf32>
    %227 = arith.addf %225, %226 : vector<64x1xf32>
    %228 = math.rsqrt %227 : vector<64x1xf32>
    %229 = arith.mulf %137, %228 : vector<64x1xf32>
    %230 = arith.mulf %221, %229 : vector<64x1xf32>
    %231 = arith.subf %139, %230 : vector<64x1xf32>
    %232 = vector.broadcast %229 : vector<64x1xf32> to vector<64x128xf32>
    %233 = arith.mulf %173, %232 : vector<64x128xf32>
    %234 = vector.broadcast %231 : vector<64x1xf32> to vector<64x128xf32>
    %235 = arith.addf %233, %234 : vector<64x128xf32>
    %cst_97 = arith.constant 0.000000e+00 : f32
    %236 = vector.broadcast %cst_97 : f32 to vector<64x128xf32>
    %237 = arith.maximumf %235, %236 : vector<64x128xf32>
    %238 = arith.addf %114, %237 : vector<64x128xf32>
    %c0_98 = arith.constant 0 : index
    %c64 = arith.constant 64 : index
    %c0_99 = arith.constant 0 : index
    %239 = vector.load %arg8[%c0_98, %c64, %c0_99] : memref<2x256x128xf32, #tpu.memory_space<vmem>>, vector<1x64x128xf32>
    %240 = vector.shape_cast %239 : vector<1x64x128xf32> to vector<64x128xf32>
    %241 = vector.shape_cast %238 : vector<64x128xf32> to vector<1x64x128xf32>
    tpu.vector_store %arg8[%c0_98, %c64, %c0_99], %241 {strides = array<i32>} : memref<2x256x128xf32, #tpu.memory_space<vmem>>, vector<1x64x128xf32>,
    %242 = vector.broadcast %229 : vector<64x1xf32> to vector<64x128xf32>
    %243 = arith.mulf %212, %242 : vector<64x128xf32>
    %244 = vector.broadcast %231 : vector<64x1xf32> to vector<64x128xf32>
    %245 = arith.addf %243, %244 : vector<64x128xf32>
    %cst_100 = arith.constant 0.000000e+00 : f32
    %246 = vector.broadcast %cst_100 : f32 to vector<64x128xf32>
    %247 = arith.maximumf %245, %246 : vector<64x128xf32>
    %248 = arith.addf %124, %247 : vector<64x128xf32>
    %c1_101 = arith.constant 1 : index
    %c64_102 = arith.constant 64 : index
    %c0_103 = arith.constant 0 : index
    %249 = vector.load %arg8[%c1_101, %c64_102, %c0_103] : memref<2x256x128xf32, #tpu.memory_space<vmem>>, vector<1x64x128xf32>
    %250 = vector.shape_cast %249 : vector<1x64x128xf32> to vector<64x128xf32>
    %251 = vector.shape_cast %248 : vector<64x128xf32> to vector<1x64x128xf32>
    tpu.vector_store %arg8[%c1_101, %c64_102, %c0_103], %251 {strides = array<i32>} : memref<2x256x128xf32, #tpu.memory_space<vmem>>, vector<1x64x128xf32>,
    %c2 = arith.constant 2 : index
    %c0_104 = arith.constant 0 : index
    %c0_105 = arith.constant 0 : index
    %252 = vector.load %arg2[%c2, %c0_104, %c0_105] : memref<4x80x64xbf16, #tpu.memory_space<vmem>>, vector<1x80x64xbf16>
    %253 = vector.shape_cast %252 : vector<1x80x64xbf16> to vector<80x64xbf16>
    %c2_106 = arith.constant 2 : index
    %c0_107 = arith.constant 0 : index
    %c0_108 = arith.constant 0 : index
    %254 = vector.load %arg3[%c2_106, %c0_107, %c0_108] : memref<4x64x1xf32, #tpu.memory_space<vmem>>, vector<1x64x1xf32>
    %255 = vector.shape_cast %254 : vector<1x64x1xf32> to vector<64x1xf32>
    %c2_109 = arith.constant 2 : index
    %c0_110 = arith.constant 0 : index
    %c0_111 = arith.constant 0 : index
    %256 = vector.load %arg4[%c2_109, %c0_110, %c0_111] : memref<4x64x64xbf16, #tpu.memory_space<vmem>>, vector<1x64x64xbf16>
    %257 = vector.shape_cast %256 : vector<1x64x64xbf16> to vector<64x64xbf16>
    %c2_112 = arith.constant 2 : index
    %c0_113 = arith.constant 0 : index
    %c0_114 = arith.constant 0 : index
    %258 = vector.load %arg5[%c2_112, %c0_113, %c0_114] : memref<4x64x1xf32, #tpu.memory_space<vmem>>, vector<1x64x1xf32>
    %259 = vector.shape_cast %258 : vector<1x64x1xf32> to vector<64x1xf32>
    %c2_115 = arith.constant 2 : index
    %c0_116 = arith.constant 0 : index
    %c0_117 = arith.constant 0 : index
    %260 = vector.load %arg6[%c2_115, %c0_116, %c0_117] : memref<4x64x1xf32, #tpu.memory_space<vmem>>, vector<1x64x1xf32>
    %261 = vector.shape_cast %260 : vector<1x64x1xf32> to vector<64x1xf32>
    %c2_118 = arith.constant 2 : index
    %c0_119 = arith.constant 0 : index
    %c0_120 = arith.constant 0 : index
    %262 = vector.load %arg7[%c2_118, %c0_119, %c0_120] : memref<4x64x1xf32, #tpu.memory_space<vmem>>, vector<1x64x1xf32>
    %263 = vector.shape_cast %262 : vector<1x64x1xf32> to vector<64x1xf32>
    %cst_121 = arith.constant 0.000000e+00 : f32
    %264 = vector.broadcast %cst_121 : f32 to vector<64x1xf32>
    %cst_122 = arith.constant 0.000000e+00 : f32
    %265 = vector.broadcast %cst_122 : f32 to vector<64x1xf32>
    %266 = arith.truncf %238 : vector<64x128xf32> to vector<64x128xbf16>
    %cst_123 = arith.constant dense<0.000000e+00> : vector<80x128xf32>
    %267 = tpu.matmul %253, %266, %cst_123 {dimension_numbers = #tpu.dot_dimension_numbers<[1], [0], [0], [1], [0, 0, 1, 1], [], []>} : vector<80x64xbf16>, vector<64x128xbf16>, vector<80x128xf32> -> vector<80x128xf32>
    %268 = vector.extract_strided_slice %267 {offsets = [0, 0], sizes = [16, 128], strides = [1, 1]} : vector<80x128xf32> to vector<16x128xf32>
    %269 = vector.extract_strided_slice %267 {offsets = [16, 0], sizes = [64, 128], strides = [1, 1]} : vector<80x128xf32> to vector<64x128xf32>
    %270 = vector.broadcast %255 : vector<64x1xf32> to vector<64x128xf32>
    %271 = arith.addf %269, %270 : vector<64x128xf32>
    %cst_124 = arith.constant dense<0.000000e+00> : vector<128x128xf32>
    %272 = tpu.matmul %268, %268, %cst_124 {dimension_numbers = #tpu.dot_dimension_numbers<[0], [0], [1], [1], [0, 1, 1, 1], [], []>} : vector<16x128xf32>, vector<16x128xf32>, vector<128x128xf32> -> vector<128x128xf32>
    %cst_125 = arith.constant dense<0xFF800000> : vector<128xf32>
    %273 = vector.multi_reduction <maximumf>, %272, %cst_125 [1] : vector<128x128xf32> to vector<128xf32>
    %274 = vector.shape_cast %273 : vector<128xf32> to vector<128x1xf32>
    %275 = vector.broadcast %274 : vector<128x1xf32> to vector<128x128xf32>
    %276 = arith.subf %272, %275 : vector<128x128xf32>
    %277 = math.exp %276 : vector<128x128xf32>
    %cst_126 = arith.constant dense<0.000000e+00> : vector<128xf32>
    %278 = vector.multi_reduction <add>, %277, %cst_126 [1] : vector<128x128xf32> to vector<128xf32>
    %279 = vector.shape_cast %278 : vector<128xf32> to vector<128x1xf32>
    %280 = tpu.reciprocal %279 {approx = true} : vector<128x1xf32> -> vector<128x1xf32>
    %281 = vector.broadcast %280 : vector<128x1xf32> to vector<128x128xf32>
    %282 = arith.mulf %277, %281 : vector<128x128xf32>
    %cst_127 = arith.constant dense<0.000000e+00> : vector<128xf32>
    %283 = vector.multi_reduction <add>, %282, %cst_127 [0] : vector<128x128xf32> to vector<128xf32>
    %284 = vector.shape_cast %283 : vector<128xf32> to vector<1x128xf32>
    %cst_128 = arith.constant 9.99999971E-10 : f32
    %285 = vector.broadcast %cst_128 : f32 to vector<1x128xf32>
    %286 = arith.addf %285, %284 : vector<1x128xf32>
    %287 = tpu.reciprocal %286 {approx = true} : vector<1x128xf32> -> vector<1x128xf32>
    %288 = vector.broadcast %287 : vector<1x128xf32> to vector<128x128xf32>
    %289 = arith.mulf %282, %288 : vector<128x128xf32>
    %290 = arith.truncf %271 : vector<64x128xf32> to vector<64x128xbf16>
    %291 = arith.truncf %289 : vector<128x128xf32> to vector<128x128xbf16>
    %cst_129 = arith.constant dense<0.000000e+00> : vector<64x128xf32>
    %292 = tpu.matmul %290, %291, %cst_129 {dimension_numbers = #tpu.dot_dimension_numbers<[1], [0], [0], [1], [0, 0, 1, 1], [], []>} : vector<64x128xbf16>, vector<128x128xbf16>, vector<64x128xf32> -> vector<64x128xf32>
    %293 = arith.subf %238, %292 : vector<64x128xf32>
    %294 = arith.truncf %293 : vector<64x128xf32> to vector<64x128xbf16>
    %cst_130 = arith.constant dense<0.000000e+00> : vector<64x128xf32>
    %295 = tpu.matmul %257, %294, %cst_130 {dimension_numbers = #tpu.dot_dimension_numbers<[1], [0], [0], [1], [0, 0, 1, 1], [], []>} : vector<64x64xbf16>, vector<64x128xbf16>, vector<64x128xf32> -> vector<64x128xf32>
    %296 = vector.broadcast %259 : vector<64x1xf32> to vector<64x128xf32>
    %297 = arith.addf %295, %296 : vector<64x128xf32>
    %cst_131 = arith.constant dense<0.000000e+00> : vector<64xf32>
    %298 = vector.multi_reduction <add>, %297, %cst_131 [1] : vector<64x128xf32> to vector<64xf32>
    %299 = vector.shape_cast %298 : vector<64xf32> to vector<64x1xf32>
    %300 = arith.addf %264, %299 : vector<64x1xf32>
    %301 = arith.mulf %297, %297 : vector<64x128xf32>
    %cst_132 = arith.constant dense<0.000000e+00> : vector<64xf32>
    %302 = vector.multi_reduction <add>, %301, %cst_132 [1] : vector<64x128xf32> to vector<64xf32>
    %303 = vector.shape_cast %302 : vector<64xf32> to vector<64x1xf32>
    %304 = arith.addf %265, %303 : vector<64x1xf32>
    %305 = arith.truncf %248 : vector<64x128xf32> to vector<64x128xbf16>
    %cst_133 = arith.constant dense<0.000000e+00> : vector<80x128xf32>
    %306 = tpu.matmul %253, %305, %cst_133 {dimension_numbers = #tpu.dot_dimension_numbers<[1], [0], [0], [1], [0, 0, 1, 1], [], []>} : vector<80x64xbf16>, vector<64x128xbf16>, vector<80x128xf32> -> vector<80x128xf32>
    %307 = vector.extract_strided_slice %306 {offsets = [0, 0], sizes = [16, 128], strides = [1, 1]} : vector<80x128xf32> to vector<16x128xf32>
    %308 = vector.extract_strided_slice %306 {offsets = [16, 0], sizes = [64, 128], strides = [1, 1]} : vector<80x128xf32> to vector<64x128xf32>
    %309 = vector.broadcast %255 : vector<64x1xf32> to vector<64x128xf32>
    %310 = arith.addf %308, %309 : vector<64x128xf32>
    %cst_134 = arith.constant dense<0.000000e+00> : vector<128x128xf32>
    %311 = tpu.matmul %307, %307, %cst_134 {dimension_numbers = #tpu.dot_dimension_numbers<[0], [0], [1], [1], [0, 1, 1, 1], [], []>} : vector<16x128xf32>, vector<16x128xf32>, vector<128x128xf32> -> vector<128x128xf32>
    %cst_135 = arith.constant dense<0xFF800000> : vector<128xf32>
    %312 = vector.multi_reduction <maximumf>, %311, %cst_135 [1] : vector<128x128xf32> to vector<128xf32>
    %313 = vector.shape_cast %312 : vector<128xf32> to vector<128x1xf32>
    %314 = vector.broadcast %313 : vector<128x1xf32> to vector<128x128xf32>
    %315 = arith.subf %311, %314 : vector<128x128xf32>
    %316 = math.exp %315 : vector<128x128xf32>
    %cst_136 = arith.constant dense<0.000000e+00> : vector<128xf32>
    %317 = vector.multi_reduction <add>, %316, %cst_136 [1] : vector<128x128xf32> to vector<128xf32>
    %318 = vector.shape_cast %317 : vector<128xf32> to vector<128x1xf32>
    %319 = tpu.reciprocal %318 {approx = true} : vector<128x1xf32> -> vector<128x1xf32>
    %320 = vector.broadcast %319 : vector<128x1xf32> to vector<128x128xf32>
    %321 = arith.mulf %316, %320 : vector<128x128xf32>
    %cst_137 = arith.constant dense<0.000000e+00> : vector<128xf32>
    %322 = vector.multi_reduction <add>, %321, %cst_137 [0] : vector<128x128xf32> to vector<128xf32>
    %323 = vector.shape_cast %322 : vector<128xf32> to vector<1x128xf32>
    %cst_138 = arith.constant 9.99999971E-10 : f32
    %324 = vector.broadcast %cst_138 : f32 to vector<1x128xf32>
    %325 = arith.addf %324, %323 : vector<1x128xf32>
    %326 = tpu.reciprocal %325 {approx = true} : vector<1x128xf32> -> vector<1x128xf32>
    %327 = vector.broadcast %326 : vector<1x128xf32> to vector<128x128xf32>
    %328 = arith.mulf %321, %327 : vector<128x128xf32>
    %329 = arith.truncf %310 : vector<64x128xf32> to vector<64x128xbf16>
    %330 = arith.truncf %328 : vector<128x128xf32> to vector<128x128xbf16>
    %cst_139 = arith.constant dense<0.000000e+00> : vector<64x128xf32>
    %331 = tpu.matmul %329, %330, %cst_139 {dimension_numbers = #tpu.dot_dimension_numbers<[1], [0], [0], [1], [0, 0, 1, 1], [], []>} : vector<64x128xbf16>, vector<128x128xbf16>, vector<64x128xf32> -> vector<64x128xf32>
    %332 = arith.subf %248, %331 : vector<64x128xf32>
    %333 = arith.truncf %332 : vector<64x128xf32> to vector<64x128xbf16>
    %cst_140 = arith.constant dense<0.000000e+00> : vector<64x128xf32>
    %334 = tpu.matmul %257, %333, %cst_140 {dimension_numbers = #tpu.dot_dimension_numbers<[1], [0], [0], [1], [0, 0, 1, 1], [], []>} : vector<64x64xbf16>, vector<64x128xbf16>, vector<64x128xf32> -> vector<64x128xf32>
    %335 = vector.broadcast %259 : vector<64x1xf32> to vector<64x128xf32>
    %336 = arith.addf %334, %335 : vector<64x128xf32>
    %cst_141 = arith.constant dense<0.000000e+00> : vector<64xf32>
    %337 = vector.multi_reduction <add>, %336, %cst_141 [1] : vector<64x128xf32> to vector<64xf32>
    %338 = vector.shape_cast %337 : vector<64xf32> to vector<64x1xf32>
    %339 = arith.addf %300, %338 : vector<64x1xf32>
    %340 = arith.mulf %336, %336 : vector<64x128xf32>
    %cst_142 = arith.constant dense<0.000000e+00> : vector<64xf32>
    %341 = vector.multi_reduction <add>, %340, %cst_142 [1] : vector<64x128xf32> to vector<64xf32>
    %342 = vector.shape_cast %341 : vector<64xf32> to vector<64x1xf32>
    %343 = arith.addf %304, %342 : vector<64x1xf32>
    %cst_143 = arith.constant 3.906250e-03 : f32
    %344 = vector.broadcast %cst_143 : f32 to vector<64x1xf32>
    %345 = arith.mulf %339, %344 : vector<64x1xf32>
    %cst_144 = arith.constant 3.906250e-03 : f32
    %346 = vector.broadcast %cst_144 : f32 to vector<64x1xf32>
    %347 = arith.mulf %343, %346 : vector<64x1xf32>
    %348 = arith.mulf %345, %345 : vector<64x1xf32>
    %349 = arith.subf %347, %348 : vector<64x1xf32>
    %cst_145 = arith.constant 9.99999974E-6 : f32
    %350 = vector.broadcast %cst_145 : f32 to vector<64x1xf32>
    %351 = arith.addf %349, %350 : vector<64x1xf32>
    %352 = math.rsqrt %351 : vector<64x1xf32>
    %353 = arith.mulf %261, %352 : vector<64x1xf32>
    %354 = arith.mulf %345, %353 : vector<64x1xf32>
    %355 = arith.subf %263, %354 : vector<64x1xf32>
    %356 = vector.broadcast %353 : vector<64x1xf32> to vector<64x128xf32>
    %357 = arith.mulf %297, %356 : vector<64x128xf32>
    %358 = vector.broadcast %355 : vector<64x1xf32> to vector<64x128xf32>
    %359 = arith.addf %357, %358 : vector<64x128xf32>
    %cst_146 = arith.constant 0.000000e+00 : f32
    %360 = vector.broadcast %cst_146 : f32 to vector<64x128xf32>
    %361 = arith.maximumf %359, %360 : vector<64x128xf32>
    %362 = arith.addf %238, %361 : vector<64x128xf32>
    %c0_147 = arith.constant 0 : index
    %c128 = arith.constant 128 : index
    %c0_148 = arith.constant 0 : index
    %363 = vector.load %arg8[%c0_147, %c128, %c0_148] : memref<2x256x128xf32, #tpu.memory_space<vmem>>, vector<1x64x128xf32>
    %364 = vector.shape_cast %363 : vector<1x64x128xf32> to vector<64x128xf32>
    %365 = vector.shape_cast %362 : vector<64x128xf32> to vector<1x64x128xf32>
    tpu.vector_store %arg8[%c0_147, %c128, %c0_148], %365 {strides = array<i32>} : memref<2x256x128xf32, #tpu.memory_space<vmem>>, vector<1x64x128xf32>,
    %366 = vector.broadcast %353 : vector<64x1xf32> to vector<64x128xf32>
    %367 = arith.mulf %336, %366 : vector<64x128xf32>
    %368 = vector.broadcast %355 : vector<64x1xf32> to vector<64x128xf32>
    %369 = arith.addf %367, %368 : vector<64x128xf32>
    %cst_149 = arith.constant 0.000000e+00 : f32
    %370 = vector.broadcast %cst_149 : f32 to vector<64x128xf32>
    %371 = arith.maximumf %369, %370 : vector<64x128xf32>
    %372 = arith.addf %248, %371 : vector<64x128xf32>
    %c1_150 = arith.constant 1 : index
    %c128_151 = arith.constant 128 : index
    %c0_152 = arith.constant 0 : index
    %373 = vector.load %arg8[%c1_150, %c128_151, %c0_152] : memref<2x256x128xf32, #tpu.memory_space<vmem>>, vector<1x64x128xf32>
    %374 = vector.shape_cast %373 : vector<1x64x128xf32> to vector<64x128xf32>
    %375 = vector.shape_cast %372 : vector<64x128xf32> to vector<1x64x128xf32>
    tpu.vector_store %arg8[%c1_150, %c128_151, %c0_152], %375 {strides = array<i32>} : memref<2x256x128xf32, #tpu.memory_space<vmem>>, vector<1x64x128xf32>,
    %c3 = arith.constant 3 : index
    %c0_153 = arith.constant 0 : index
    %c0_154 = arith.constant 0 : index
    %376 = vector.load %arg2[%c3, %c0_153, %c0_154] : memref<4x80x64xbf16, #tpu.memory_space<vmem>>, vector<1x80x64xbf16>
    %377 = vector.shape_cast %376 : vector<1x80x64xbf16> to vector<80x64xbf16>
    %c3_155 = arith.constant 3 : index
    %c0_156 = arith.constant 0 : index
    %c0_157 = arith.constant 0 : index
    %378 = vector.load %arg3[%c3_155, %c0_156, %c0_157] : memref<4x64x1xf32, #tpu.memory_space<vmem>>, vector<1x64x1xf32>
    %379 = vector.shape_cast %378 : vector<1x64x1xf32> to vector<64x1xf32>
    %c3_158 = arith.constant 3 : index
    %c0_159 = arith.constant 0 : index
    %c0_160 = arith.constant 0 : index
    %380 = vector.load %arg4[%c3_158, %c0_159, %c0_160] : memref<4x64x64xbf16, #tpu.memory_space<vmem>>, vector<1x64x64xbf16>
    %381 = vector.shape_cast %380 : vector<1x64x64xbf16> to vector<64x64xbf16>
    %c3_161 = arith.constant 3 : index
    %c0_162 = arith.constant 0 : index
    %c0_163 = arith.constant 0 : index
    %382 = vector.load %arg5[%c3_161, %c0_162, %c0_163] : memref<4x64x1xf32, #tpu.memory_space<vmem>>, vector<1x64x1xf32>
    %383 = vector.shape_cast %382 : vector<1x64x1xf32> to vector<64x1xf32>
    %c3_164 = arith.constant 3 : index
    %c0_165 = arith.constant 0 : index
    %c0_166 = arith.constant 0 : index
    %384 = vector.load %arg6[%c3_164, %c0_165, %c0_166] : memref<4x64x1xf32, #tpu.memory_space<vmem>>, vector<1x64x1xf32>
    %385 = vector.shape_cast %384 : vector<1x64x1xf32> to vector<64x1xf32>
    %c3_167 = arith.constant 3 : index
    %c0_168 = arith.constant 0 : index
    %c0_169 = arith.constant 0 : index
    %386 = vector.load %arg7[%c3_167, %c0_168, %c0_169] : memref<4x64x1xf32, #tpu.memory_space<vmem>>, vector<1x64x1xf32>
    %387 = vector.shape_cast %386 : vector<1x64x1xf32> to vector<64x1xf32>
    %cst_170 = arith.constant 0.000000e+00 : f32
    %388 = vector.broadcast %cst_170 : f32 to vector<64x1xf32>
    %cst_171 = arith.constant 0.000000e+00 : f32
    %389 = vector.broadcast %cst_171 : f32 to vector<64x1xf32>
    %390 = arith.truncf %362 : vector<64x128xf32> to vector<64x128xbf16>
    %cst_172 = arith.constant dense<0.000000e+00> : vector<80x128xf32>
    %391 = tpu.matmul %377, %390, %cst_172 {dimension_numbers = #tpu.dot_dimension_numbers<[1], [0], [0], [1], [0, 0, 1, 1], [], []>} : vector<80x64xbf16>, vector<64x128xbf16>, vector<80x128xf32> -> vector<80x128xf32>
    %392 = vector.extract_strided_slice %391 {offsets = [0, 0], sizes = [16, 128], strides = [1, 1]} : vector<80x128xf32> to vector<16x128xf32>
    %393 = vector.extract_strided_slice %391 {offsets = [16, 0], sizes = [64, 128], strides = [1, 1]} : vector<80x128xf32> to vector<64x128xf32>
    %394 = vector.broadcast %379 : vector<64x1xf32> to vector<64x128xf32>
    %395 = arith.addf %393, %394 : vector<64x128xf32>
    %cst_173 = arith.constant dense<0.000000e+00> : vector<128x128xf32>
    %396 = tpu.matmul %392, %392, %cst_173 {dimension_numbers = #tpu.dot_dimension_numbers<[0], [0], [1], [1], [0, 1, 1, 1], [], []>} : vector<16x128xf32>, vector<16x128xf32>, vector<128x128xf32> -> vector<128x128xf32>
    %cst_174 = arith.constant dense<0xFF800000> : vector<128xf32>
    %397 = vector.multi_reduction <maximumf>, %396, %cst_174 [1] : vector<128x128xf32> to vector<128xf32>
    %398 = vector.shape_cast %397 : vector<128xf32> to vector<128x1xf32>
    %399 = vector.broadcast %398 : vector<128x1xf32> to vector<128x128xf32>
    %400 = arith.subf %396, %399 : vector<128x128xf32>
    %401 = math.exp %400 : vector<128x128xf32>
    %cst_175 = arith.constant dense<0.000000e+00> : vector<128xf32>
    %402 = vector.multi_reduction <add>, %401, %cst_175 [1] : vector<128x128xf32> to vector<128xf32>
    %403 = vector.shape_cast %402 : vector<128xf32> to vector<128x1xf32>
    %404 = tpu.reciprocal %403 {approx = true} : vector<128x1xf32> -> vector<128x1xf32>
    %405 = vector.broadcast %404 : vector<128x1xf32> to vector<128x128xf32>
    %406 = arith.mulf %401, %405 : vector<128x128xf32>
    %cst_176 = arith.constant dense<0.000000e+00> : vector<128xf32>
    %407 = vector.multi_reduction <add>, %406, %cst_176 [0] : vector<128x128xf32> to vector<128xf32>
    %408 = vector.shape_cast %407 : vector<128xf32> to vector<1x128xf32>
    %cst_177 = arith.constant 9.99999971E-10 : f32
    %409 = vector.broadcast %cst_177 : f32 to vector<1x128xf32>
    %410 = arith.addf %409, %408 : vector<1x128xf32>
    %411 = tpu.reciprocal %410 {approx = true} : vector<1x128xf32> -> vector<1x128xf32>
    %412 = vector.broadcast %411 : vector<1x128xf32> to vector<128x128xf32>
    %413 = arith.mulf %406, %412 : vector<128x128xf32>
    %414 = arith.truncf %395 : vector<64x128xf32> to vector<64x128xbf16>
    %415 = arith.truncf %413 : vector<128x128xf32> to vector<128x128xbf16>
    %cst_178 = arith.constant dense<0.000000e+00> : vector<64x128xf32>
    %416 = tpu.matmul %414, %415, %cst_178 {dimension_numbers = #tpu.dot_dimension_numbers<[1], [0], [0], [1], [0, 0, 1, 1], [], []>} : vector<64x128xbf16>, vector<128x128xbf16>, vector<64x128xf32> -> vector<64x128xf32>
    %417 = arith.subf %362, %416 : vector<64x128xf32>
    %418 = arith.truncf %417 : vector<64x128xf32> to vector<64x128xbf16>
    %cst_179 = arith.constant dense<0.000000e+00> : vector<64x128xf32>
    %419 = tpu.matmul %381, %418, %cst_179 {dimension_numbers = #tpu.dot_dimension_numbers<[1], [0], [0], [1], [0, 0, 1, 1], [], []>} : vector<64x64xbf16>, vector<64x128xbf16>, vector<64x128xf32> -> vector<64x128xf32>
    %420 = vector.broadcast %383 : vector<64x1xf32> to vector<64x128xf32>
    %421 = arith.addf %419, %420 : vector<64x128xf32>
    %cst_180 = arith.constant dense<0.000000e+00> : vector<64xf32>
    %422 = vector.multi_reduction <add>, %421, %cst_180 [1] : vector<64x128xf32> to vector<64xf32>
    %423 = vector.shape_cast %422 : vector<64xf32> to vector<64x1xf32>
    %424 = arith.addf %388, %423 : vector<64x1xf32>
    %425 = arith.mulf %421, %421 : vector<64x128xf32>
    %cst_181 = arith.constant dense<0.000000e+00> : vector<64xf32>
    %426 = vector.multi_reduction <add>, %425, %cst_181 [1] : vector<64x128xf32> to vector<64xf32>
    %427 = vector.shape_cast %426 : vector<64xf32> to vector<64x1xf32>
    %428 = arith.addf %389, %427 : vector<64x1xf32>
    %429 = arith.truncf %372 : vector<64x128xf32> to vector<64x128xbf16>
    %cst_182 = arith.constant dense<0.000000e+00> : vector<80x128xf32>
    %430 = tpu.matmul %377, %429, %cst_182 {dimension_numbers = #tpu.dot_dimension_numbers<[1], [0], [0], [1], [0, 0, 1, 1], [], []>} : vector<80x64xbf16>, vector<64x128xbf16>, vector<80x128xf32> -> vector<80x128xf32>
    %431 = vector.extract_strided_slice %430 {offsets = [0, 0], sizes = [16, 128], strides = [1, 1]} : vector<80x128xf32> to vector<16x128xf32>
    %432 = vector.extract_strided_slice %430 {offsets = [16, 0], sizes = [64, 128], strides = [1, 1]} : vector<80x128xf32> to vector<64x128xf32>
    %433 = vector.broadcast %379 : vector<64x1xf32> to vector<64x128xf32>
    %434 = arith.addf %432, %433 : vector<64x128xf32>
    %cst_183 = arith.constant dense<0.000000e+00> : vector<128x128xf32>
    %435 = tpu.matmul %431, %431, %cst_183 {dimension_numbers = #tpu.dot_dimension_numbers<[0], [0], [1], [1], [0, 1, 1, 1], [], []>} : vector<16x128xf32>, vector<16x128xf32>, vector<128x128xf32> -> vector<128x128xf32>
    %cst_184 = arith.constant dense<0xFF800000> : vector<128xf32>
    %436 = vector.multi_reduction <maximumf>, %435, %cst_184 [1] : vector<128x128xf32> to vector<128xf32>
    %437 = vector.shape_cast %436 : vector<128xf32> to vector<128x1xf32>
    %438 = vector.broadcast %437 : vector<128x1xf32> to vector<128x128xf32>
    %439 = arith.subf %435, %438 : vector<128x128xf32>
    %440 = math.exp %439 : vector<128x128xf32>
    %cst_185 = arith.constant dense<0.000000e+00> : vector<128xf32>
    %441 = vector.multi_reduction <add>, %440, %cst_185 [1] : vector<128x128xf32> to vector<128xf32>
    %442 = vector.shape_cast %441 : vector<128xf32> to vector<128x1xf32>
    %443 = tpu.reciprocal %442 {approx = true} : vector<128x1xf32> -> vector<128x1xf32>
    %444 = vector.broadcast %443 : vector<128x1xf32> to vector<128x128xf32>
    %445 = arith.mulf %440, %444 : vector<128x128xf32>
    %cst_186 = arith.constant dense<0.000000e+00> : vector<128xf32>
    %446 = vector.multi_reduction <add>, %445, %cst_186 [0] : vector<128x128xf32> to vector<128xf32>
    %447 = vector.shape_cast %446 : vector<128xf32> to vector<1x128xf32>
    %cst_187 = arith.constant 9.99999971E-10 : f32
    %448 = vector.broadcast %cst_187 : f32 to vector<1x128xf32>
    %449 = arith.addf %448, %447 : vector<1x128xf32>
    %450 = tpu.reciprocal %449 {approx = true} : vector<1x128xf32> -> vector<1x128xf32>
    %451 = vector.broadcast %450 : vector<1x128xf32> to vector<128x128xf32>
    %452 = arith.mulf %445, %451 : vector<128x128xf32>
    %453 = arith.truncf %434 : vector<64x128xf32> to vector<64x128xbf16>
    %454 = arith.truncf %452 : vector<128x128xf32> to vector<128x128xbf16>
    %cst_188 = arith.constant dense<0.000000e+00> : vector<64x128xf32>
    %455 = tpu.matmul %453, %454, %cst_188 {dimension_numbers = #tpu.dot_dimension_numbers<[1], [0], [0], [1], [0, 0, 1, 1], [], []>} : vector<64x128xbf16>, vector<128x128xbf16>, vector<64x128xf32> -> vector<64x128xf32>
    %456 = arith.subf %372, %455 : vector<64x128xf32>
    %457 = arith.truncf %456 : vector<64x128xf32> to vector<64x128xbf16>
    %cst_189 = arith.constant dense<0.000000e+00> : vector<64x128xf32>
    %458 = tpu.matmul %381, %457, %cst_189 {dimension_numbers = #tpu.dot_dimension_numbers<[1], [0], [0], [1], [0, 0, 1, 1], [], []>} : vector<64x64xbf16>, vector<64x128xbf16>, vector<64x128xf32> -> vector<64x128xf32>
    %459 = vector.broadcast %383 : vector<64x1xf32> to vector<64x128xf32>
    %460 = arith.addf %458, %459 : vector<64x128xf32>
    %cst_190 = arith.constant dense<0.000000e+00> : vector<64xf32>
    %461 = vector.multi_reduction <add>, %460, %cst_190 [1] : vector<64x128xf32> to vector<64xf32>
    %462 = vector.shape_cast %461 : vector<64xf32> to vector<64x1xf32>
    %463 = arith.addf %424, %462 : vector<64x1xf32>
    %464 = arith.mulf %460, %460 : vector<64x128xf32>
    %cst_191 = arith.constant dense<0.000000e+00> : vector<64xf32>
    %465 = vector.multi_reduction <add>, %464, %cst_191 [1] : vector<64x128xf32> to vector<64xf32>
    %466 = vector.shape_cast %465 : vector<64xf32> to vector<64x1xf32>
    %467 = arith.addf %428, %466 : vector<64x1xf32>
    %cst_192 = arith.constant 3.906250e-03 : f32
    %468 = vector.broadcast %cst_192 : f32 to vector<64x1xf32>
    %469 = arith.mulf %463, %468 : vector<64x1xf32>
    %cst_193 = arith.constant 3.906250e-03 : f32
    %470 = vector.broadcast %cst_193 : f32 to vector<64x1xf32>
    %471 = arith.mulf %467, %470 : vector<64x1xf32>
    %472 = arith.mulf %469, %469 : vector<64x1xf32>
    %473 = arith.subf %471, %472 : vector<64x1xf32>
    %cst_194 = arith.constant 9.99999974E-6 : f32
    %474 = vector.broadcast %cst_194 : f32 to vector<64x1xf32>
    %475 = arith.addf %473, %474 : vector<64x1xf32>
    %476 = math.rsqrt %475 : vector<64x1xf32>
    %477 = arith.mulf %385, %476 : vector<64x1xf32>
    %478 = arith.mulf %469, %477 : vector<64x1xf32>
    %479 = arith.subf %387, %478 : vector<64x1xf32>
    %480 = vector.broadcast %477 : vector<64x1xf32> to vector<64x128xf32>
    %481 = arith.mulf %421, %480 : vector<64x128xf32>
    %482 = vector.broadcast %479 : vector<64x1xf32> to vector<64x128xf32>
    %483 = arith.addf %481, %482 : vector<64x128xf32>
    %cst_195 = arith.constant 0.000000e+00 : f32
    %484 = vector.broadcast %cst_195 : f32 to vector<64x128xf32>
    %485 = arith.maximumf %483, %484 : vector<64x128xf32>
    %486 = arith.addf %362, %485 : vector<64x128xf32>
    %c0_196 = arith.constant 0 : index
    %c192 = arith.constant 192 : index
    %c0_197 = arith.constant 0 : index
    %487 = vector.load %arg8[%c0_196, %c192, %c0_197] : memref<2x256x128xf32, #tpu.memory_space<vmem>>, vector<1x64x128xf32>
    %488 = vector.shape_cast %487 : vector<1x64x128xf32> to vector<64x128xf32>
    %489 = vector.shape_cast %486 : vector<64x128xf32> to vector<1x64x128xf32>
    tpu.vector_store %arg8[%c0_196, %c192, %c0_197], %489 {strides = array<i32>} : memref<2x256x128xf32, #tpu.memory_space<vmem>>, vector<1x64x128xf32>,
    %490 = vector.broadcast %477 : vector<64x1xf32> to vector<64x128xf32>
    %491 = arith.mulf %460, %490 : vector<64x128xf32>
    %492 = vector.broadcast %479 : vector<64x1xf32> to vector<64x128xf32>
    %493 = arith.addf %491, %492 : vector<64x128xf32>
    %cst_198 = arith.constant 0.000000e+00 : f32
    %494 = vector.broadcast %cst_198 : f32 to vector<64x128xf32>
    %495 = arith.maximumf %493, %494 : vector<64x128xf32>
    %496 = arith.addf %372, %495 : vector<64x128xf32>
    %c1_199 = arith.constant 1 : index
    %c192_200 = arith.constant 192 : index
    %c0_201 = arith.constant 0 : index
    %497 = vector.load %arg8[%c1_199, %c192_200, %c0_201] : memref<2x256x128xf32, #tpu.memory_space<vmem>>, vector<1x64x128xf32>
    %498 = vector.shape_cast %497 : vector<1x64x128xf32> to vector<64x128xf32>
    %499 = vector.shape_cast %496 : vector<64x128xf32> to vector<1x64x128xf32>
    tpu.vector_store %arg8[%c1_199, %c192_200, %c0_201], %499 {strides = array<i32>} : memref<2x256x128xf32, #tpu.memory_space<vmem>>, vector<1x64x128xf32>,
    return
  }
  func.func @transform_0(%arg0: i32) -> (i32, i32, i32) {
    %c0_i32 = arith.constant 0 : i32
    %c0_i32_0 = arith.constant 0 : i32
    %c0_i32_1 = arith.constant 0 : i32
    %c0_i32_2 = arith.constant 0 : i32
    return %c0_i32, %c0_i32_0, %c0_i32_1 : i32, i32, i32
  }
  func.func @transform_1(%arg0: i32) -> (i32, i32, i32) {
    %c0_i32 = arith.constant 0 : i32
    %c0_i32_0 = arith.constant 0 : i32
    %c0_i32_1 = arith.constant 0 : i32
    %c0_i32_2 = arith.constant 0 : i32
    return %c0_i32, %c0_i32_0, %c0_i32_1 : i32, i32, i32
  }
  func.func @transform_2(%arg0: i32) -> (i32, i32, i32) {
    %c0_i32 = arith.constant 0 : i32
    %c0_i32_0 = arith.constant 0 : i32
    %c0_i32_1 = arith.constant 0 : i32
    %c0_i32_2 = arith.constant 0 : i32
    return %c0_i32, %c0_i32_0, %c0_i32_1 : i32, i32, i32
  }
  func.func @transform_3(%arg0: i32) -> (i32, i32, i32) {
    %c0_i32 = arith.constant 0 : i32
    %c0_i32_0 = arith.constant 0 : i32
    %c0_i32_1 = arith.constant 0 : i32
    %c0_i32_2 = arith.constant 0 : i32
    return %c0_i32, %c0_i32_0, %c0_i32_1 : i32, i32, i32
  }
  func.func @transform_4(%arg0: i32) -> (i32, i32, i32) {
    %c0_i32 = arith.constant 0 : i32
    %c0_i32_0 = arith.constant 0 : i32
    %c0_i32_1 = arith.constant 0 : i32
    %c0_i32_2 = arith.constant 0 : i32
    return %c0_i32, %c0_i32_0, %c0_i32_1 : i32, i32, i32
  }
  func.func @transform_5(%arg0: i32) -> (i32, i32, i32) {
    %c0_i32 = arith.constant 0 : i32
    %c0_i32_0 = arith.constant 0 : i32
    %c0_i32_1 = arith.constant 0 : i32
    %c0_i32_2 = arith.constant 0 : i32
    return %c0_i32, %c0_i32_0, %c0_i32_1 : i32, i32, i32
  }
  func.func @transform_6(%arg0: i32) -> (i32, i32, i32) {
    %c0_i32 = arith.constant 0 : i32
    %c0_i32_0 = arith.constant 0 : i32
    %c0_i32_1 = arith.constant 0 : i32
    %c0_i32_2 = arith.constant 0 : i32
    return %c0_i32, %c0_i32_0, %c0_i32_1 : i32, i32, i32
  }
  func.func @transform_7(%arg0: i32) -> (i32, i32, i32) {
    %c0_i32 = arith.constant 0 : i32
    %c0_i32_0 = arith.constant 0 : i32
    %c0_i32_1 = arith.constant 0 : i32
    %c0_i32_2 = arith.constant 0 : i32
    return %c0_i32, %c0_i32_0, %c0_i32_1 : i32, i32, i32
  }
}

</mosaic_0001>

<bundles_post_ra>
// kernel: point_transformer_fused.1
= control target key start
LH: loop header
LB: loop body
LE: loop exit
PB: predicated region body
PF: predicated region fallthrough
CT: control target
= control target key end

     0   :  { %v13375_v3 = vmov 0.0   ;;  %vm9711_vm0 = vmmov 0   ;;  %vm124_vm1 = vcmask 523264   ;;  %s13367_s0 = inlined_call_operand.vmem [shape: f32[2,64,128], index: 0, kind: input, shape index: {}]   ;;  %s13368_s1 = inlined_call_operand.vmem [shape: bf16[4,80,64], index: 1, kind: input, shape index: {}]   ;;  %s13369_s2 = inlined_call_operand.vmem [shape: f32[4,64,1], index: 2, kind: input, shape index: {}]   ;;  %s13370_s3 = inlined_call_operand.vmem [shape: bf16[4,64,64], index: 3, kind: input, shape index: {}]   ;;  %s13371_s4 = inlined_call_operand.vmem [shape: f32[4,64,1], index: 4, kind: input, shape index: {}]   ;;  %s13372_s5 = inlined_call_operand.vmem [shape: f32[4,64,1], index: 5, kind: input, shape index: {}]   ;;  %s13373_s6 = inlined_call_operand.vmem [shape: f32[4,64,1], index: 6, kind: input, shape index: {}]   ;;  %s13374_s7 = inlined_call_operand.hbm [shape: f32[2,256,128], index: 7, kind: output, shape index: {}]  }
   0x1   :  { %v34_v0 = vld [vmem:[%s13367_s0 + $0x30] sm:$0xff]  ;;  %v35_v1 = vld [vmem:[%s13367_s0 + $0x38] sm:$0xff]  ;;  %v32_v2 = vld [vmem:[%s13367_s0 + $0x20] sm:$0xff]  ;;  %8212 = vmatprep.subr.bf16.mxu0 %v13375_v3  ;;  %8220 = vmatprep.mubr.msk.bf16.mxu0 %vm9711_vm0, %v13375_v3 }
   0x2   :  { %v98_v4 = vpack.c.bf16 %v35_v1, %v34_v0  ;;  %v33_v5 = vld [vmem:[%s13367_s0 + $0x28] sm:$0xff]  ;;  %v30_v6 = vld [vmem:[%s13367_s0 + $0x10] sm:$0xff]  ;;  %v31_v8 = vld [vmem:[%s13367_s0 + $0x18] sm:$0xff] }
   0x3   :  { %v97_v7 = vpack.c.bf16 %v33_v5, %v32_v2  ;;  %v28_v9 = vld [vmem:[%s13367_s0] sm:$0xff]  ;;  %v29_v10 = vld [vmem:[%s13367_s0 + $0x8] sm:$0xff]  ;;  %v96_v11 = vpack.c.bf16 %v31_v8, %v30_v6 }
   0x4   :  { %8213 = vmatpush3.bf16.msra.mxu0 %v98_v4  ;;  %v95_v12 = vpack.c.bf16 %v29_v10, %v28_v9  ;;  %v9789_v13 = vld [vmem:[%s13368_s1] sm:$0xff]  }
   0x5   :  { %8214 = vmatprep.subr.bf16.mxu0 %v13375_v3 }
   0x8   :  { %8215 = vmatpush3.bf16.msra.mxu0 %v97_v7 }
   0x9   :  { %8216 = vmatprep.subr.bf16.mxu0 %v13375_v3 }
   0xc   :  { %8217 = vmatpush3.bf16.msra.mxu0 %v96_v11 }
   0xd   :  { %8218 = vmatprep.subr.bf16.mxu0 %v13375_v3 }
  0x10   :  { %8219 = vmatpush3.bf16.msra.mxu0 %v95_v12 }
  0x11   :  { %8308 = vmatprep.subr.bf16.mxu0 %v13375_v3 }
  0x13   :  { %8221 = vmatmul.mubr.msk.bf16.vlgmr.msra.gmra.mxu0 %vm124_vm1, %v9789_v13 }
  0x14   :  { %8224 = vmatprep.mubr.msk.bf16.mxu0 %vm9711_vm0, %v13375_v3 }
  0x15   :  { %12 = vsyncpa [#allocation3], 0  ;;  %vm293_vm2 = vcmask 130048   ;;  %v8989_v42 = vld [vmem:[%s13368_s1 + $0x8] sm:$0xff]   ;;  %v8990_v45 = vld [vmem:[%s13368_s1 + $0x10] sm:$0xff]   ;;  %v9712_v2 = vmov 0  }
  0x16   :  { %v8991_v48 = vld [vmem:[%s13368_s1 + $0x18] sm:$0xff]   ;;  %v7448_v49 = vld [vmem:[%s13367_s0 + $0x70] sm:$0xff]  ;;  %v7446_v53 = vld [vmem:[%s13367_s0 + $0x60] sm:$0xff]  ;;  %8986 = vset.pattern.permute.xlu1 %v9712_v2 }
  0x17   :  { %v7449_v50 = vld [vmem:[%s13367_s0 + $0x78] sm:$0xff]  ;;  %v7447_v54 = vld [vmem:[%s13367_s0 + $0x68] sm:$0xff]  ;;  %v8992_v57 = vld [vmem:[%s13368_s1 + $0x20] sm:$0xff]  }
  0x18   :  { %v955_v51 = vpack.c.bf16 %v7449_v50, %v7448_v49  ;;  %v954_v55 = vpack.c.bf16 %v7447_v54, %v7446_v53  ;;  %v7444_v58 = vld [vmem:[%s13367_s0 + $0x50] sm:$0xff]  ;;  %v7445_v59 = vld [vmem:[%s13367_s0 + $0x58] sm:$0xff]  ;;  %v7442_v62 = vld [vmem:[%s13367_s0 + $0x40] sm:$0xff] }
  0x19   :  { %v953_v60 = vpack.c.bf16 %v7445_v59, %v7444_v58  ;;  %v7443_v63 = vld [vmem:[%s13367_s0 + $0x48] sm:$0xff] }
  0x1a   :  { %8309 = vmatpush3.bf16.msra.mxu0 %v955_v51  ;;  %v952_v0 = vpack.c.bf16 %v7443_v63, %v7442_v62 }
  0x1b   :  { %8225 = vmatmul.mubr.msk.bf16.gmra.mxu0 %vm124_vm1, %v8989_v42  ;;  %8310 = vmatprep.subr.bf16.mxu0 %v13375_v3 }
  0x1c   :  { %8228 = vmatprep.mubr.msk.bf16.mxu0 %vm9711_vm0, %v13375_v3 }
  0x1e   :  { %8311 = vmatpush3.bf16.msra.mxu0 %v954_v55 }
  0x1f   :  { %8312 = vmatprep.subr.bf16.mxu0 %v13375_v3 }
  0x22   :  { %8313 = vmatpush3.bf16.msra.mxu0 %v953_v60 }
  0x23   :  { %8229 = vmatmul.mubr.msk.bf16.gmra.mxu0 %vm124_vm1, %v8990_v45  ;;  %8314 = vmatprep.subr.bf16.mxu0 %v13375_v3 }
  0x24   :  { %8232 = vmatprep.mubr.msk.bf16.mxu0 %vm9711_vm0, %v13375_v3 }
  0x26   :  { %8315 = vmatpush3.bf16.msra.mxu0 %v952_v0 }
  0x2b   :  { %8233 = vmatmul.mubr.msk.bf16.gmra.mxu0 %vm124_vm1, %v8991_v48 }
  0x2c   :  { %8236 = vmatprep.mubr.msk.bf16.mxu0 %vm9711_vm0, %v13375_v3 }
  0x33   :  { %8237 = vmatmul.mubr.msk.bf16.gmra.mxu0 %vm124_vm1, %v8992_v57 }
  0x34   :  { %8316 = vmatprep.mubr.msk.bf16.mxu0 %vm9711_vm0, %v13375_v3 }
  0x3b   :  { %8317 = vmatmul.mubr.msk.bf16.vlgmr.msra.gmra.mxu0 %vm124_vm1, %v9789_v13 }
  0x3c   :  { %8320 = vmatprep.mubr.msk.bf16.mxu0 %vm9711_vm0, %v13375_v3 }
  0x43   :  { %8321 = vmatmul.mubr.msk.bf16.gmra.mxu0 %vm124_vm1, %v8989_v42 }
  0x44   :  { %8324 = vmatprep.mubr.msk.bf16.mxu0 %vm9711_vm0, %v13375_v3 }
  0x4b   :  { %8325 = vmatmul.mubr.msk.bf16.gmra.mxu0 %vm124_vm1, %v8990_v45 }
  0x4c   :  { %8328 = vmatprep.mubr.msk.bf16.mxu0 %vm9711_vm0, %v13375_v3 }
  0x53   :  { %8329 = vmatmul.mubr.msk.bf16.gmra.mxu0 %vm124_vm1, %v8991_v48 }
  0x54   :  { %8332 = vmatprep.mubr.msk.bf16.mxu0 %vm9711_vm0, %v13375_v3 }
  0x5b   :  { %8333 = vmatmul.mubr.msk.bf16.gmra.mxu0 %vm124_vm1, %v8992_v57 }
  0xd3   :  { %v174_v14 = vpop.f32.mrf.mxu0 }
  0xd4   :  { %261 = vxpose.xlu0.b32.start [1/2] (short) %v174_v14, 128 }
  0xd5   :  { %v8222_v15 = vpop.f32.mrf.mxu0 }
  0xd7   :  { %v177_v16 = vpop.f32.mrf.mxu0 }
  0xd8   :  { %262 = vxpose.xlu0.b32.end [2/2] (short) %v177_v16, 128  ;;  %8240 = vmatprep.subr.mxu1 %v177_v16 }
  0xd9   :  { %v8223_v17 = vpop.f32.mrf.mxu0  ;;  %8241 = vmatpush3.msra.mxu1 %v177_v16 }
  0xda   :  { %8242 = vmatprep.subr.mxu1 %v174_v14 }
  0xdb   :  { %8243 = vmatpush3.msra.mxu1 %v174_v14 }
 0x101   :  { %8987 = vset.pattern.permute.xlu0 %v9712_v2 }
 0x150   :  { %v277_v18 = vpop.trf.xlu0 }
 0x151   :  { %8244 = vmatprep.mubr.msk.f32.mxu1 %vm293_vm2, %v277_v18 }
 0x154   :  { %v278_v19 = vpop.trf.xlu0 }
 0x155   :  { %8245 = vmatmul.mubr.msk.f32.vlgmr.msra.gmra.mxu1 %vm293_vm2, %v278_v19 }
 0x158   :  { %v279_v20 = vpop.trf.xlu0 }
 0x159   :  { %8247 = vmatprep.mubr.msk.f32.mxu1 %vm293_vm2, %v279_v20 }
 0x15c   :  { %v280_v21 = vpop.trf.xlu0 }
 0x15d   :  { %8248 = vmatmul.mubr.msk.f32.gmra.mxu1 %vm293_vm2, %v280_v21 }
 0x160   :  { %v281_v22 = vpop.trf.xlu0 }
 0x161   :  { %8250 = vmatprep.mubr.msk.f32.mxu1 %vm293_vm2, %v281_v22 }
 0x164   :  { %v282_v23 = vpop.trf.xlu0 }
 0x165   :  { %8251 = vmatmul.mubr.msk.f32.gmra.mxu1 %vm293_vm2, %v282_v23 }
 0x168   :  { %v283_v24 = vpop.trf.xlu0 }
 0x169   :  { %8253 = vmatprep.mubr.msk.f32.mxu1 %vm293_vm2, %v283_v24 }
 0x16c   :  { %v284_v25 = vpop.trf.xlu0 }
 0x16d   :  { %8254 = vmatmul.mubr.msk.f32.gmra.mxu1 %vm293_vm2, %v284_v25 }
 0x170   :  { %v285_v26 = vpop.trf.xlu0 }
 0x171   :  { %8256 = vmatprep.mubr.msk.f32.mxu1 %vm293_vm2, %v285_v26 }
 0x174   :  { %v286_v27 = vpop.trf.xlu0 }
 0x175   :  { %8257 = vmatmul.mubr.msk.f32.gmra.mxu1 %vm293_vm2, %v286_v27 }
 0x178   :  { %v287_v28 = vpop.trf.xlu0 }
 0x179   :  { %8259 = vmatprep.mubr.msk.f32.mxu1 %vm293_vm2, %v287_v28 }
 0x17c   :  { %v288_v29 = vpop.trf.xlu0 }
 0x17d   :  { %8260 = vmatmul.mubr.msk.f32.gmra.mxu1 %vm293_vm2, %v288_v29 }
 0x180   :  { %v289_v30 = vpop.trf.xlu0 }
 0x181   :  { %8262 = vmatprep.mubr.msk.f32.mxu1 %vm293_vm2, %v289_v30 }
 0x184   :  { %v290_v31 = vpop.trf.xlu0 }
 0x185   :  { %8263 = vmatmul.mubr.msk.f32.gmra.mxu1 %vm293_vm2, %v290_v31 }
 0x188   :  { %v291_v32 = vpop.trf.xlu0 }
 0x189   :  { %8265 = vmatprep.mubr.msk.f32.mxu1 %vm293_vm2, %v291_v32 }
 0x18c   :  { %v292_v33 = vpop.trf.xlu0 }
 0x18d   :  { %8266 = vmatmul.mubr.msk.f32.gmra.mxu1 %vm293_vm2, %v292_v33 }
 0x215   :  { %v9812_v34 = vpop.f32.mrf.mxu1 }
 0x216   :  { %489 = vmax.xlane.f32.xlu1 %v9812_v34 }
 0x217   :  { %v9815_v35 = vpop.f32.mrf.mxu1 }
 0x21a   :  { %487 = vmax.xlane.f32.xlu1 %v9815_v35 }
 0x21d   :  { %v9818_v36 = vpop.f32.mrf.mxu1 }
 0x21e   :  { %493 = vmax.xlane.f32.xlu1 %v9818_v36 }
 0x21f   :  { %v9821_v37 = vpop.f32.mrf.mxu1 }
 0x220   :  { %491 = vmax.xlane.f32.xlu0 %v9821_v37 }
 0x225   :  { %v9824_v38 = vpop.f32.mrf.mxu1 }
 0x226   :  { %497 = vmax.xlane.f32.xlu1 %v9824_v38 }
 0x227   :  { %v9827_v39 = vpop.f32.mrf.mxu1 }
 0x22a   :  { %495 = vmax.xlane.f32.xlu1 %v9827_v39 }
 0x22d   :  { %v9830_v40 = vpop.f32.mrf.mxu1 }
 0x22e   :  { %501 = vmax.xlane.f32.xlu1 %v9830_v40 }
 0x22f   :  { %v9833_v41 = vpop.f32.mrf.mxu1 }
 0x232   :  { %499 = vmax.xlane.f32.xlu1 %v9833_v41 }
 0x235   :  { %v9842_v43 = vpop.f32.mrf.mxu1 }
 0x236   :  { %505 = vmax.xlane.f32.xlu1 %v9842_v43 }
 0x237   :  { %v9845_v44 = vpop.f32.mrf.mxu1 }
 0x23a   :  { %503 = vmax.xlane.f32.xlu1 %v9845_v44 }
 0x23d   :  { %v9854_v46 = vpop.f32.mrf.mxu1 }
 0x23e   :  { %509 = vmax.xlane.f32.xlu1 %v9854_v46 }
 0x23f   :  { %v9857_v47 = vpop.f32.mrf.mxu1 }
 0x242   :  { %507 = vmax.xlane.f32.xlu1 %v9857_v47 }
 0x245   :  { %v9872_v52 = vpop.f32.mrf.mxu1 }
 0x246   :  { %513 = vmax.xlane.f32.xlu1 %v9872_v52 }
 0x247   :  { %v9882_v56 = vpop.f32.mrf.mxu1 }
 0x24a   :  { %511 = vmax.xlane.f32.xlu1 %v9882_v56 }
 0x24d   :  { %v9898_v61 = vpop.f32.mrf.mxu1 }
 0x24f   :  { %v9907_v1 = vpop.f32.mrf.mxu1 }
 0x250   :  { %515 = vmax.xlane.f32.xlu1 %v9907_v1 }
 0x254   :  { %517 = vmax.xlane.f32.xlu1 %v9898_v61 }
 0x29f   :  { %v490_v4 = vpop.xlane.xlu1 %489 }
 0x2a0   :  { %v520_v5 = vsub.f32 %v9812_v34, %v490_v4 }
 0x2a2   :  { %v537_v6 = vmul.f32 1.442695, %v520_v5 }
 0x2a3   :  { %v488_v7 = vpop.xlane.xlu1 %487 }
 0x2a4   :  { %9024 = vpow2.f32 %v537_v6  ;;  %v519_v8 = vsub.f32 %v9815_v35, %v488_v7 }
 0x2a6   :  { %v535_v9 = vmul.f32 1.442695, %v519_v8 }
 0x2a7   :  { %v494_v10 = vpop.xlane.xlu1 %493 }
 0x2a8   :  { %9026 = vpow2.f32 %v535_v9  ;;  %v522_v11 = vsub.f32 %v9818_v36, %v494_v10  ;;  %v55_v9 = vld [vmem:[%s13369_s2] sm:$0xff] }
 0x2a9   :  { %v492_v12 = vpop.xlane.xlu0 %491 }
 0x2aa   :  { %v541_v13 = vmul.f32 1.442695, %v522_v11  ;;  %v521_v14 = vsub.f32 %v9821_v37, %v492_v12  ;;  %v57_v12 = vld [vmem:[%s13369_s2 + $0x10] sm:$0xff] }
 0x2ac   :  { %9028 = vpow2.f32 %v541_v13  ;;  %v539_v15 = vmul.f32 1.442695, %v521_v14 }
 0x2ae   :  { %9030 = vpow2.f32 %v539_v15  ;;  %v58_v15 = vld [vmem:[%s13369_s2 + $0x18] sm:$0xff] }
 0x2af   :  { %v498_v16 = vpop.xlane.xlu1 %497 }
 0x2b0   :  { %v524_v17 = vsub.f32 %v9824_v38, %v498_v16  ;;  %v56_v16 = vld [vmem:[%s13369_s2 + $0x8] sm:$0xff] }
 0x2b1   :  { %v9930_v18 = vpop.eup %9024 }
 0x2b2   :  { %v545_v19 = vmul.f32 1.442695, %v524_v17  ;;  %569 = vadd.xlane.f32.xlu1 %v9930_v18 }
 0x2b3   :  { %v496_v20 = vpop.xlane.xlu1 %495 }
 0x2b4   :  { %9032 = vpow2.f32 %v545_v19  ;;  %v523_v21 = vsub.f32 %v9827_v39, %v496_v20  ;;  %v59_v20 = vld [vmem:[%s13369_s2 + $0x20] sm:$0xff] }
 0x2b5   :  { %v9934_v22 = vpop.eup %9026 }
 0x2b6   :  { %v543_v23 = vmul.f32 1.442695, %v523_v21  ;;  %567 = vadd.xlane.f32.xlu1 %v9934_v22 }
 0x2b7   :  { %v502_v24 = vpop.xlane.xlu1 %501 }
 0x2b8   :  { %9034 = vpow2.f32 %v543_v23  ;;  %v526_v25 = vsub.f32 %v9830_v40, %v502_v24  ;;  %v60_v24 = vld [vmem:[%s13369_s2 + $0x28] sm:$0xff] }
 0x2b9   :  { %v9938_v26 = vpop.eup %9028 }
 0x2ba   :  { %v549_v27 = vmul.f32 1.442695, %v526_v25  ;;  %573 = vadd.xlane.f32.xlu1 %v9938_v26 }
 0x2bb   :  { %v500_v28 = vpop.xlane.xlu1 %499  ;;  %v9942_v30 = vpop.eup %9030 }
 0x2bc   :  { %9036 = vpow2.f32 %v549_v27  ;;  %v525_v29 = vsub.f32 %v9833_v41, %v500_v28  ;;  %v61_v28 = vld [vmem:[%s13369_s2 + $0x30] sm:$0xff] }
 0x2be   :  { %v547_v31 = vmul.f32 1.442695, %v525_v29  ;;  %571 = vadd.xlane.f32.xlu1 %v9942_v30 }
 0x2bf   :  { %v506_v32 = vpop.xlane.xlu1 %505 }
 0x2c0   :  { %9038 = vpow2.f32 %v547_v31  ;;  %v528_v33 = vsub.f32 %v9842_v43, %v506_v32  ;;  %v62_v32 = vld [vmem:[%s13369_s2 + $0x38] sm:$0xff] }
 0x2c1   :  { %v9946_v34 = vpop.eup %9032 }
 0x2c2   :  { %v553_v35 = vmul.f32 1.442695, %v528_v33  ;;  %577 = vadd.xlane.f32.xlu1 %v9946_v34 }
 0x2c3   :  { %v504_v36 = vpop.xlane.xlu1 %503 }
 0x2c4   :  { %9040 = vpow2.f32 %v553_v35  ;;  %v527_v37 = vsub.f32 %v9845_v44, %v504_v36 }
 0x2c5   :  { %v9950_v38 = vpop.eup %9034 }
 0x2c6   :  { %v551_v39 = vmul.f32 1.442695, %v527_v37  ;;  %575 = vadd.xlane.f32.xlu1 %v9950_v38 }
 0x2c7   :  { %v510_v40 = vpop.xlane.xlu1 %509 }
 0x2c8   :  { %9042 = vpow2.f32 %v551_v39  ;;  %v530_v41 = vsub.f32 %v9854_v46, %v510_v40 }
 0x2c9   :  { %v9954_v42 = vpop.eup %9036 }
 0x2ca   :  { %v557_v43 = vmul.f32 1.442695, %v530_v41  ;;  %581 = vadd.xlane.f32.xlu1 %v9954_v42 }
 0x2cb   :  { %v508_v45 = vpop.xlane.xlu1 %507 }
 0x2cc   :  { %9044 = vpow2.f32 %v557_v43  ;;  %v529_v48 = vsub.f32 %v9857_v47, %v508_v45 }
 0x2cd   :  { %v9958_v49 = vpop.eup %9038 }
 0x2ce   :  { %v555_v44 = vmul.f32 1.442695, %v529_v48  ;;  %579 = vadd.xlane.f32.xlu1 %v9958_v49 }
 0x2cf   :  { %v514_v50 = vpop.xlane.xlu1 %513 }
 0x2d0   :  { %9046 = vpow2.f32 %v555_v44  ;;  %v532_v51 = vsub.f32 %v9872_v52, %v514_v50 }
 0x2d1   :  { %v9962_v53 = vpop.eup %9040 }
 0x2d2   :  { %v561_v46 = vmul.f32 1.442695, %v532_v51  ;;  %585 = vadd.xlane.f32.xlu1 %v9962_v53 }
 0x2d3   :  { %v512_v54 = vpop.xlane.xlu1 %511 }
 0x2d4   :  { %9048 = vpow2.f32 %v561_v46  ;;  %v531_v55 = vsub.f32 %v9882_v56, %v512_v54 }
 0x2d5   :  { %v9966_v57 = vpop.eup %9042 }
 0x2d6   :  { %v559_v47 = vmul.f32 1.442695, %v531_v55  ;;  %583 = vadd.xlane.f32.xlu1 %v9966_v57 }
 0x2d8   :  { %9050 = vpow2.f32 %v559_v47 }
 0x2d9   :  { %v9969_v58 = vpop.eup %9044  ;;  %v516_v59 = vpop.xlane.xlu1 %515 }
 0x2da   :  { %v533_v52 = vsub.f32 %v9907_v1, %v516_v59  ;;  %589 = vadd.xlane.f32.xlu1 %v9969_v58 }
 0x2dc   :  { %v563_v60 = vmul.f32 1.442695, %v533_v52 }
 0x2dd   :  { %v9973_v62 = vpop.eup %9046  ;;  %v518_v63 = vpop.xlane.xlu1 %517 }
 0x2de   :  { %9052 = vpow2.f32 %v563_v60  ;;  %v534_v56 = vsub.f32 %v9898_v61, %v518_v63  ;;  %587 = vadd.xlane.f32.xlu1 %v9973_v62  ;;  %v9989_v61 = vpop.f32.mrf.mxu0 }
 0x2e0   :  { %v565_v0 = vmul.f32 1.442695, %v534_v56  ;;  %v8226_v6 = vpop.f32.mrf.mxu0 }
 0x2e1   :  { %v9977_v2 = vpop.eup %9048 }
 0x2e2   :  { %9054 = vpow2.f32 %v565_v0  ;;  %593 = vadd.xlane.f32.xlu0 %v9977_v2  ;;  %v9991_v7 = vpop.f32.mrf.mxu0 }
 0x2e4   :  { %v8227_v8 = vpop.f32.mrf.mxu0 }
 0x2e5   :  { %v9980_v4 = vpop.eup %9050 }
 0x2e6   :  { %591 = vadd.xlane.f32.xlu1 %v9980_v4  ;;  %v9996_v10 = vpop.f32.mrf.mxu0 }
 0x2e8   :  { %v8230_v11 = vpop.f32.mrf.mxu0 }
 0x2ea   :  { %v10001_v13 = vpop.f32.mrf.mxu0 }
 0x2eb   :  { %v9983_v1 = vpop.eup %9052 }
 0x2ec   :  { %595 = vadd.xlane.f32.xlu1 %v9983_v1  ;;  %v8231_v14 = vpop.f32.mrf.mxu0 }
 0x2ee   :  { %v10009_v17 = vpop.f32.mrf.mxu0 }
 0x2ef   :  { %v9986_v5 = vpop.eup %9054 }
 0x2f0   :  { %597 = vadd.xlane.f32.xlu0 %v9986_v5  ;;  %v8234_v19 = vpop.f32.mrf.mxu0 }
 0x2f2   :  { %v10014_v21 = vpop.f32.mrf.mxu0 }
 0x2f4   :  { %v8235_v23 = vpop.f32.mrf.mxu0 }
 0x2f6   :  { %v10019_v25 = vpop.f32.mrf.mxu0 }
 0x2f8   :  { %v8238_v27 = vpop.f32.mrf.mxu0 }
 0x2fa   :  { %v10024_v29 = vpop.f32.mrf.mxu0 }
 0x2fc   :  { %v8239_v31 = vpop.f32.mrf.mxu0 }
 0x2fd   :  { %215 = vperm.xlu1 %8986, %v55_v9  }
 0x2fe   :  { %v10029_v33 = vpop.f32.mrf.mxu0 }
 0x300   :  { %v8318_v35 = vpop.f32.mrf.mxu0 }
 0x301   :  { %225 = vperm.xlu1 %8986, %v57_v12  }
 0x302   :  { %v10031_v36 = vpop.f32.mrf.mxu0 }
 0x304   :  { %v8319_v37 = vpop.f32.mrf.mxu0 }
 0x305   :  { %230 = vperm.xlu1 %8986, %v58_v15  }
 0x306   :  { %220 = vperm.xlu0 %8987, %v56_v16   ;;  %v10033_v39 = vpop.f32.mrf.mxu0 }
 0x308   :  { %v8322_v40 = vpop.f32.mrf.mxu0 }
 0x309   :  { %235 = vperm.xlu1 %8986, %v59_v20  }
 0x30a   :  { %v10035_v41 = vpop.f32.mrf.mxu0 }
 0x30c   :  { %v8323_v43 = vpop.f32.mrf.mxu0 }
 0x30d   :  { %240 = vperm.xlu1 %8986, %v60_v24  }
 0x30e   :  { %v10037_v45 = vpop.f32.mrf.mxu0 }
 0x310   :  { %v8326_v48 = vpop.f32.mrf.mxu0 }
 0x311   :  { %245 = vperm.xlu1 %8986, %v61_v28  }
 0x312   :  { %v10039_v44 = vpop.f32.mrf.mxu0 }
 0x314   :  { %v8327_v50 = vpop.f32.mrf.mxu0 }
 0x315   :  { %250 = vperm.xlu1 %8986, %v62_v32  }
 0x316   :  { %v10041_v51 = vpop.f32.mrf.mxu0 }
 0x318   :  { %v8330_v46 = vpop.f32.mrf.mxu0 }
 0x31a   :  { %v10043_v54 = vpop.f32.mrf.mxu0 }
 0x31c   :  { %v8331_v55 = vpop.f32.mrf.mxu0 }
 0x31e   :  { %v10045_v47 = vpop.f32.mrf.mxu0 }
 0x320   :  { %v8334_v59 = vpop.f32.mrf.mxu0 }
 0x322   :  { %v10047_v52 = vpop.f32.mrf.mxu0 }
 0x324   :  { %v8335_v60 = vpop.f32.mrf.mxu0 }
 0x33b   :  { %v570_v63 = vpop.xlane.xlu1 %569 }
 0x33e   :  { %1037 = vxpose.xlu1.b32.start [1/2] (short) %v10029_v33, 128 }
 0x33f   :  { %v568_v56 = vpop.xlane.xlu1 %567 }
 0x340   :  { %9056 = vrcp.f32 %v568_v56 }
 0x341   :  { %9058 = vrcp.f32 %v570_v63 }
 0x342   :  { %1038 = vxpose.xlu1.b32.end [2/2] (short) %v10031_v36, 128 }
 0x343   :  { %v574_v0 = vpop.xlane.xlu1 %573 }
 0x347   :  { %v572_v6 = vpop.xlane.xlu1 %571 }
 0x348   :  { %9060 = vrcp.f32 %v572_v6 }
 0x349   :  { %9062 = vrcp.f32 %v574_v0 }
 0x34b   :  { %v578_v8 = vpop.xlane.xlu1 %577 }
 0x34d   :  { %v9057_v14 = vpop.eup %9056 }
 0x34e   :  { %v9059_v16 = vpop.eup %9058  ;;  %v10052_v20 = vmul.f32 %v9057_v14, %v9934_v22 }
 0x34f   :  { %v576_v9 = vpop.xlane.xlu1 %575  ;;  %v10055_v24 = vmul.f32 %v9059_v16, %v9930_v18 }
 0x350   :  { %9064 = vrcp.f32 %v576_v9 }
 0x351   :  { %9066 = vrcp.f32 %v578_v8  ;;  %v631_v31 = vadd.f32 %v10055_v24, %v10052_v20 }
 0x353   :  { %v582_v11 = vpop.xlane.xlu1 %581 }
 0x355   :  { %v9061_v19 = vpop.eup %9060 }
 0x356   :  { %v10058_v27 = vmul.f32 %v9061_v19, %v9942_v30  ;;  %v9063_v28 = vpop.eup %9062 }
 0x357   :  { %v580_v12 = vpop.xlane.xlu1 %579  ;;  %v10064_v22 = vmul.f32 %v9063_v28, %v9938_v26 }
 0x358   :  { %9068 = vrcp.f32 %v580_v12  ;;  %v632_v37 = vadd.f32 %v631_v31, %v10058_v27 }
 0x359   :  { %9070 = vrcp.f32 %v582_v11 }
 0x35a   :  { %v633_v43 = vadd.f32 %v632_v37, %v10064_v22 }
 0x35b   :  { %v586_v15 = vpop.xlane.xlu1 %585 }
 0x35d   :  { %v9065_v32 = vpop.eup %9064 }
 0x35e   :  { %v10067_v40 = vmul.f32 %v9065_v32, %v9950_v38  ;;  %v9067_v30 = vpop.eup %9066 }
 0x35f   :  { %v584_v23 = vpop.xlane.xlu1 %583  ;;  %v10072_v46 = vmul.f32 %v9067_v30, %v9946_v34 }
 0x360   :  { %9072 = vrcp.f32 %v584_v23  ;;  %v634_v50 = vadd.f32 %v633_v43, %v10067_v40 }
 0x361   :  { %9074 = vrcp.f32 %v586_v15 }
 0x362   :  { %v635_v59 = vadd.f32 %v634_v50, %v10072_v46 }
 0x363   :  { %v590_v35 = vpop.xlane.xlu1 %589 }
 0x365   :  { %v9069_v48 = vpop.eup %9068 }
 0x366   :  { %v10075_v55 = vmul.f32 %v9069_v48, %v9958_v49  ;;  %v9071_v26 = vpop.eup %9070 }
 0x367   :  { %v588_v18 = vpop.xlane.xlu1 %587  ;;  %v10080_v0 = vmul.f32 %v9071_v26, %v9954_v42 }
 0x368   :  { %9076 = vrcp.f32 %v588_v18  ;;  %v636_v63 = vadd.f32 %v635_v59, %v10075_v55 }
 0x369   :  { %9078 = vrcp.f32 %v590_v35 }
 0x36a   :  { %v637_v8 = vadd.f32 %v636_v63, %v10080_v0 }
 0x36b   :  { %v594_v56 = vpop.xlane.xlu0 %593 }
 0x36d   :  { %v9073_v38 = vpop.eup %9072 }
 0x36e   :  { %v623_v6 = vmul.f32 %v9073_v38, %v9966_v57  ;;  %v9075_v34 = vpop.eup %9074 }
 0x36f   :  { %v592_v60 = vpop.xlane.xlu1 %591  ;;  %v624_v12 = vmul.f32 %v9075_v34, %v9962_v53 }
 0x370   :  { %9080 = vrcp.f32 %v592_v60  ;;  %v638_v11 = vadd.f32 %v637_v8, %v623_v6 }
 0x371   :  { %9082 = vrcp.f32 %v594_v56 }
 0x372   :  { %v639_v16 = vadd.f32 %v638_v11, %v624_v12 }
 0x375   :  { %v9077_v49 = vpop.eup %9076  ;;  %v596_v9 = vpop.xlane.xlu1 %595 }
 0x376   :  { %9084 = vrcp.f32 %v596_v9  ;;  %v625_v14 = vmul.f32 %v9077_v49, %v9973_v62  ;;  %v9079_v19 = vpop.eup %9078 }
 0x377   :  { %v626_v57 = vmul.f32 %v9079_v19, %v9969_v58 }
 0x378   :  { %v640_v42 = vadd.f32 %v639_v16, %v625_v14 }
 0x379   :  { %v598_v15 = vpop.xlane.xlu0 %597  ;;  %v216_v31 = vpop.permute.xlu1 %215 }
 0x37a   :  { %9086 = vrcp.f32 %v598_v15  ;;  %v253_v32 = vadd.f32 %v216_v31, %v9989_v61  ;;  %v641_v35 = vadd.f32 %v640_v42, %v626_v57  ;;  %v1029_v18 = vadd.f32 %v10033_v39, %v216_v31 }
 0x37d   :  { %v9081_v23 = vpop.eup %9080 }
 0x37e   :  { %v627_v28 = vmul.f32 %v9081_v23, %v9980_v4  ;;  %v9083_v37 = vpop.eup %9082  ;;  %v10095_v23 = vpop.permute.xlu1 %225 }
 0x37f   :  { %v628_v50 = vmul.f32 %v9083_v37, %v9977_v2 }
 0x380   :  { %v642_v30 = vadd.f32 %v641_v35, %v627_v28 }
 0x381   :  { %v221_v53 = vpop.permute.xlu0 %220 }
 0x382   :  { %v254_v62 = vadd.f32 %v221_v53, %v9991_v7  ;;  %v1030_v48 = vadd.f32 %v10035_v41, %v221_v53  ;;  %v643_v59 = vadd.f32 %v642_v30, %v628_v50  ;;  %v10097_v37 = vpop.permute.xlu1 %230 }
 0x383   :  { %v9085_v43 = vpop.eup %9084 }
 0x384   :  { %v629_v58 = vmul.f32 %v9085_v43, %v9983_v1  ;;  %v670_v26 = vpack.c.bf16 %v254_v62, %v253_v32  ;;  %v1445_v4 = vpack.c.bf16 %v1030_v48, %v1029_v18 }
 0x386   :  { %8284 = vmatprep.mubr.bf16.mxu1 %v670_v26  ;;  %8380 = vmatprep.mubr.bf16.mxu0 %v1445_v4  ;;  %v644_v39 = vadd.f32 %v643_v59, %v629_v58  ;;  %v10103_v62 = vpop.permute.xlu1 %235 }
 0x387   :  { %v9087_v61 = vpop.eup %9086 }
 0x388   :  { %v630_v38 = vmul.f32 %v9087_v61, %v9986_v5 }
 0x38a   :  { %v645_v60 = vadd.f32 %v644_v39, %v630_v38 }
 0x38c   :  { %v646_v63 = vrot.slane %v645_v60, 4 }
 0x38e   :  { %v647_v56 = vadd.f32 %v646_v63, %v645_v60 }
 0x390   :  { %v648_v7 = vrot.slane %v647_v56, 2 }
 0x392   :  { %v649_v34 = vadd.f32 %v648_v7, %v647_v56 }
 0x394   :  { %v650_v8 = vrot.slane %v649_v34, 1 }
 0x396   :  { %v651_v41 = vadd.f32 %v650_v8, %v649_v34 }
 0x398   :  { %v652_v49 = vadd.f32 1e-09, %v651_v41  ;;  %v9616_v41 = vld [vmem:[%s13367_s0 + $0x30] sm:$0xff] }
 0x39a   :  { %9088 = vrcp.f32 %v652_v49 }
 0x3a7   :  { %v9089_v2 = vpop.eup %9088 }
 0x3a8   :  { %v668_v1 = vmul.f32 %v9089_v2, %v629_v58  ;;  %v669_v9 = vmul.f32 %v9089_v2, %v630_v38  ;;  %v666_v11 = vmul.f32 %v9089_v2, %v627_v28  ;;  %v667_v15 = vmul.f32 %v9089_v2, %v628_v50 }
 0x3a9   :  { %v664_v42 = vmul.f32 %v9089_v2, %v625_v14  ;;  %v665_v5 = vmul.f32 %v9089_v2, %v626_v57  ;;  %v662_v32 = vmul.f32 %v9089_v2, %v623_v6  ;;  %v663_v35 = vmul.f32 %v9089_v2, %v624_v12 }
 0x3aa   :  { %v681_v16 = vpack.c.bf16 %v669_v9, %v668_v1  ;;  %v680_v19 = vpack.c.bf16 %v667_v15, %v666_v11  ;;  %v660_v28 = vmul.f32 %v9089_v2, %v10075_v55  ;;  %v661_v53 = vmul.f32 %v9089_v2, %v10080_v0  ;;  %v10107_v55 = vpop.permute.xlu1 %240  ;;  %v9618_v15 = vld [vmem:[%s13367_s0 + $0x20] sm:$0xff] }
 0x3ab   :  { %v679_v31 = vpack.c.bf16 %v665_v5, %v664_v42  ;;  %v678_v18 = vpack.c.bf16 %v663_v35, %v662_v32  ;;  %v658_v57 = vmul.f32 %v9089_v2, %v10067_v40  ;;  %v659_v30 = vmul.f32 %v9089_v2, %v10072_v46  ;;  %v9619_v42 = vld [vmem:[%s13367_s0 + $0x28] sm:$0xff] }
 0x3ac   :  { %8268 = vmatprep.subr.bf16.mxu1 %v681_v16  ;;  %v677_v14 = vpack.c.bf16 %v661_v53, %v660_v28  ;;  %v656_v12 = vmul.f32 %v9089_v2, %v10058_v27  ;;  %v657_v43 = vmul.f32 %v9089_v2, %v10064_v22  ;;  %v654_v48 = vmul.f32 %v9089_v2, %v10052_v20 }
 0x3ad   :  { %8269 = vmatpush3.bf16.msra.mxu1 %v681_v16  ;;  %v676_v6 = vpack.c.bf16 %v659_v30, %v658_v57  ;;  %v655_v40 = vmul.f32 %v9089_v2, %v10055_v24  ;;  %v255_v27 = vadd.f32 %v10095_v23, %v9996_v10  ;;  %v256_v22 = vadd.f32 %v10097_v37, %v10001_v13  ;;  %v9617_v2 = vld [vmem:[%s13367_s0 + $0x38] sm:$0xff]  ;;  %v9622_v57 = vld [vmem:[%s13367_s0 + $0x8] sm:$0xff] }
 0x3ae   :  { %8270 = vmatprep.subr.bf16.mxu1 %v680_v19  ;;  %v675_v0 = vpack.c.bf16 %v657_v43, %v656_v12  ;;  %v10111_v50 = vpop.permute.xlu1 %245  ;;  %v257_v58 = vadd.f32 %v10103_v62, %v10009_v17  ;;  %v258_v20 = vadd.f32 %v10107_v55, %v10014_v21  ;;  %v10130_v17 = vld [vmem:[%s13370_s3] sm:$0xff]  }
 0x3af   :  { %v674_v46 = vpack.c.bf16 %v655_v40, %v654_v48  ;;  %v671_v24 = vpack.c.bf16 %v256_v22, %v255_v27  ;;  %v259_v10 = vadd.f32 %v10111_v50, %v10019_v25  ;;  %v10161_v48 = vld [vmem:[%s13370_s3 + $0x8] sm:$0xff]   ;;  %v10166_v40 = vld [vmem:[%s13370_s3 + $0x10] sm:$0xff]   ;;  %v10179_v27 = vld [vmem:[%s13370_s3 + $0x18] sm:$0xff]  }
 0x3b0   :  { %v672_v4 = vpack.c.bf16 %v258_v20, %v257_v58 }
 0x3b1   :  { %8271 = vmatpush3.bf16.msra.mxu1 %v680_v19 }
 0x3b2   :  { %8272 = vmatprep.subr.bf16.mxu1 %v679_v31  ;;  %v10121_v26 = vpop.permute.xlu1 %250 }
 0x3b3   :  { %v260_v13 = vadd.f32 %v10121_v26, %v10024_v29 }
 0x3b5   :  { %8273 = vmatpush3.bf16.msra.mxu1 %v679_v31  ;;  %v673_v59 = vpack.c.bf16 %v260_v13, %v259_v10  ;;  %v9620_v31 = vld [vmem:[%s13367_s0 + $0x18] sm:$0xff] }
 0x3b6   :  { %8274 = vmatprep.subr.bf16.mxu1 %v678_v18 }
 0x3b9   :  { %8275 = vmatpush3.bf16.msra.mxu1 %v678_v18  ;;  %v9621_v18 = vld [vmem:[%s13367_s0 + $0x10] sm:$0xff] }
 0x3ba   :  { %8276 = vmatprep.subr.bf16.mxu1 %v677_v14  ;;  %v1053_v21 = vpop.trf.xlu1 }
 0x3bd   :  { %8277 = vmatpush3.bf16.msra.mxu1 %v677_v14 }
 0x3be   :  { %8278 = vmatprep.subr.bf16.mxu1 %v676_v6  ;;  %v1054_v61 = vpop.trf.xlu1 }
 0x3c1   :  { %8279 = vmatpush3.bf16.msra.mxu1 %v676_v6  ;;  %v9623_v6 = vld [vmem:[%s13367_s0] sm:$0xff] }
 0x3c2   :  { %8280 = vmatprep.subr.bf16.mxu1 %v675_v0  ;;  %v1055_v38 = vpop.trf.xlu1 }
 0x3c5   :  { %8281 = vmatpush3.bf16.msra.mxu1 %v675_v0 }
 0x3c6   :  { %8282 = vmatprep.subr.bf16.mxu1 %v674_v46  ;;  %v1056_v63 = vpop.trf.xlu1 }
 0x3c9   :  { %8283 = vmatpush3.bf16.msra.mxu1 %v674_v46 }
 0x3ca   :  { %v1057_v29 = vpop.trf.xlu1 }
 0x3cc   :  { %8285 = vmatmul.mubr.bf16.vlgmr.msra.gmra.mxu1 %v671_v24 }
 0x3cd   :  { %8288 = vmatprep.mubr.bf16.mxu1 %v672_v4 }
 0x3ce   :  { %v1058_v11 = vpop.trf.xlu1 }
 0x3d2   :  { %v1059_v53 = vpop.trf.xlu1 }
 0x3d4   :  { %8289 = vmatmul.mubr.bf16.gmra.mxu1 %v673_v59 }
 0x3d5   :  { %8300 = vmatprep.mubr.msk.bf16.mxu1 %vm124_vm1, %v10130_v17 }
 0x3d6   :  { %v1060_v0 = vpop.trf.xlu1 }
 0x3da   :  { %v1061_v46 = vpop.trf.xlu1 }
 0x3de   :  { %v1062_v22 = vpop.trf.xlu1 }
 0x3e2   :  { %v1063_v58 = vpop.trf.xlu1 }
 0x48c   :  { %v8286_v39 = vpop.f32.mrf.mxu1 }
 0x48d   :  { %v749_v28 = vsub.f32 %v9621_v18, %v8286_v39 }
 0x48e   :  { %v716_v60 = vpop.f32.mrf.mxu1 }
 0x48f   :  { %v747_v12 = vsub.f32 %v9623_v6, %v716_v60 }
 0x490   :  { %v8287_v25 = vpop.f32.mrf.mxu1 }
 0x491   :  { %v750_v32 = vsub.f32 %v9620_v31, %v8287_v25 }
 0x492   :  { %v719_v56 = vpop.f32.mrf.mxu1 }
 0x493   :  { %v756_v14 = vpack.c.bf16 %v750_v32, %v749_v28  ;;  %v748_v30 = vsub.f32 %v9622_v57, %v719_v56 }
 0x494   :  { %v8290_v7 = vpop.f32.mrf.mxu1 }
 0x495   :  { %v753_v49 = vsub.f32 %v9616_v41, %v8290_v7  ;;  %v755_v43 = vpack.c.bf16 %v748_v30, %v747_v12 }
 0x496   :  { %v732_v34 = vpop.f32.mrf.mxu1 }
 0x497   :  { %v751_v16 = vsub.f32 %v9618_v15, %v732_v34 }
 0x498   :  { %v8291_v8 = vpop.f32.mrf.mxu1 }
 0x499   :  { %v754_v1 = vsub.f32 %v9617_v2, %v8291_v8 }
 0x49a   :  { %v735_v9 = vpop.f32.mrf.mxu1 }
 0x49b   :  { %v758_v19 = vpack.c.bf16 %v754_v1, %v753_v49  ;;  %v752_v5 = vsub.f32 %v9619_v42, %v735_v9 }
 0x49d   :  { %v757_v35 = vpack.c.bf16 %v752_v5, %v751_v16  ;;  %8292 = vmatprep.subr.bf16.mxu1 %v758_v19 }
 0x49e   :  { %8293 = vmatpush3.bf16.msra.mxu1 %v758_v19 }
 0x49f   :  { %8294 = vmatprep.subr.bf16.mxu1 %v757_v35 }
 0x4a2   :  { %8295 = vmatpush3.bf16.msra.mxu1 %v757_v35 }
 0x4a3   :  { %8296 = vmatprep.subr.bf16.mxu1 %v756_v14 }
 0x4a6   :  { %8297 = vmatpush3.bf16.msra.mxu1 %v756_v14 }
 0x4a7   :  { %8298 = vmatprep.subr.bf16.mxu1 %v755_v43 }
 0x4aa   :  { %8299 = vmatpush3.bf16.msra.mxu1 %v755_v43 }
 0x4ab   :  { %8336 = vmatprep.subr.mxu1 %v10031_v36 }
 0x4ad   :  { %8301 = vmatmul.mubr.msk.bf16.vlgmr.msra.gmra.mxu1 %vm124_vm1, %v10161_v48 }
 0x4ae   :  { %8337 = vmatpush3.msra.mxu1 %v10031_v36  ;;  %8304 = vmatprep.mubr.msk.bf16.mxu1 %vm124_vm1, %v10166_v40  ;;  %v1064_v36 = vpop.trf.xlu1 }
 0x4af   :  { %8338 = vmatprep.subr.mxu1 %v10029_v33 }
 0x4b0   :  { %8339 = vmatpush3.msra.mxu1 %v10029_v33 }
 0x4b2   :  { %v1065_v33 = vpop.trf.xlu1 }
 0x4b5   :  { %8305 = vmatmul.mubr.msk.bf16.gmra.mxu1 %vm124_vm1, %v10179_v27 }
 0x4b6   :  { %8340 = vmatprep.mubr.msk.f32.mxu1 %vm293_vm2, %v1053_v21  ;;  %v1066_v20 = vpop.trf.xlu1 }
 0x4ba   :  { %v1067_v24 = vpop.trf.xlu1 }
 0x4bd   :  { %8341 = vmatmul.mubr.msk.f32.vlgmr.msra.gmra.mxu1 %vm293_vm2, %v1054_v61 }
 0x4be   :  { %8343 = vmatprep.mubr.msk.f32.mxu1 %vm293_vm2, %v1055_v38  ;;  %v1068_v4 = vpop.trf.xlu1 }
 0x4c1   :  { %8344 = vmatmul.mubr.msk.f32.gmra.mxu1 %vm293_vm2, %v1056_v63 }
 0x4c2   :  { %8346 = vmatprep.mubr.msk.f32.mxu1 %vm293_vm2, %v1057_v29 }
 0x4c5   :  { %8347 = vmatmul.mubr.msk.f32.gmra.mxu1 %vm293_vm2, %v1058_v11 }
 0x4c6   :  { %8349 = vmatprep.mubr.msk.f32.mxu1 %vm293_vm2, %v1059_v53 }
 0x4c9   :  { %8350 = vmatmul.mubr.msk.f32.gmra.mxu1 %vm293_vm2, %v1060_v0 }
 0x4ca   :  { %8352 = vmatprep.mubr.msk.f32.mxu1 %vm293_vm2, %v1061_v46 }
 0x4cd   :  { %8353 = vmatmul.mubr.msk.f32.gmra.mxu1 %vm293_vm2, %v1062_v22 }
 0x4ce   :  { %8355 = vmatprep.mubr.msk.f32.mxu1 %vm293_vm2, %v1063_v58 }
 0x4d1   :  { %8356 = vmatmul.mubr.msk.f32.gmra.mxu1 %vm293_vm2, %v1064_v36 }
 0x4d2   :  { %8358 = vmatprep.mubr.msk.f32.mxu1 %vm293_vm2, %v1065_v33 }
 0x4d5   :  { %8359 = vmatmul.mubr.msk.f32.gmra.mxu1 %vm293_vm2, %v1066_v20 }
 0x4d6   :  { %8361 = vmatprep.mubr.msk.f32.mxu1 %vm293_vm2, %v1067_v24 }
 0x4d9   :  { %8362 = vmatmul.mubr.msk.f32.gmra.mxu1 %vm293_vm2, %v1068_v4 }
 0x4da   :  { %8396 = vmatprep.mubr.msk.bf16.mxu1 %vm124_vm1, %v10130_v17 }
 0x56d   :  { %v10201_v10 = vpop.f32.mrf.mxu1 }
 0x56f   :  { %v10203_v13 = vpop.f32.mrf.mxu1 }
 0x571   :  { %v10205_v59 = vpop.f32.mrf.mxu1 }
 0x573   :  { %v10207_v21 = vpop.f32.mrf.mxu1 }
 0x575   :  { %v10209_v61 = vpop.f32.mrf.mxu1 }
 0x577   :  { %v10211_v38 = vpop.f32.mrf.mxu1 }
 0x579   :  { %v10213_v39 = vpop.f32.mrf.mxu1 }
 0x57b   :  { %v10215_v60 = vpop.f32.mrf.mxu1 }
 0x57d   :  { %v8342_v63 = vpop.f32.mrf.mxu1 }
 0x57e   :  { %1264 = vmax.xlane.f32.xlu0 %v8342_v63 }
 0x57f   :  { %v1183_v25 = vpop.f32.mrf.mxu1 }
 0x581   :  { %v8345_v17 = vpop.f32.mrf.mxu1 }
 0x582   :  { %1262 = vmax.xlane.f32.xlu0 %v1183_v25 }
 0x583   :  { %v1193_v56 = vpop.f32.mrf.mxu1 }
 0x585   :  { %v8348_v7 = vpop.f32.mrf.mxu1 }
 0x586   :  { %1268 = vmax.xlane.f32.xlu0 %v8345_v17 }
 0x587   :  { %v1203_v29 = vpop.f32.mrf.mxu1 }
 0x588   :  { %1270 = vmax.xlane.f32.xlu1 %v1203_v29 }
 0x589   :  { %v8351_v34 = vpop.f32.mrf.mxu1 }
 0x58a   :  { %1266 = vmax.xlane.f32.xlu0 %v1193_v56 }
 0x58b   :  { %v1213_v8 = vpop.f32.mrf.mxu1 }
 0x58d   :  { %v8354_v41 = vpop.f32.mrf.mxu1 }
 0x58e   :  { %1272 = vmax.xlane.f32.xlu0 %v8348_v7 }
 0x58f   :  { %v10217_v49 = vpop.f32.mrf.mxu1 }
 0x591   :  { %v10220_v2 = vpop.f32.mrf.mxu1 }
 0x592   :  { %1276 = vmax.xlane.f32.xlu0 %v8351_v34 }
 0x593   :  { %v10223_v1 = vpop.f32.mrf.mxu1 }
 0x595   :  { %v10226_v9 = vpop.f32.mrf.mxu1 }
 0x596   :  { %1274 = vmax.xlane.f32.xlu0 %v1213_v8 }
 0x597   :  { %v10229_v11 = vpop.f32.mrf.mxu1 }
 0x599   :  { %v10231_v15 = vpop.f32.mrf.mxu1 }
 0x59a   :  { %1280 = vmax.xlane.f32.xlu0 %v8354_v41 }
 0x59b   :  { %v10234_v16 = vpop.f32.mrf.mxu1 }
 0x59e   :  { %1278 = vmax.xlane.f32.xlu0 %v10217_v49 }
 0x5a2   :  { %1284 = vmax.xlane.f32.xlu0 %v10220_v2 }
 0x5a6   :  { %1282 = vmax.xlane.f32.xlu0 %v10223_v1 }
 0x5aa   :  { %1288 = vmax.xlane.f32.xlu0 %v10226_v9 }
 0x5ae   :  { %1286 = vmax.xlane.f32.xlu0 %v10229_v11 }
 0x5b2   :  { %1290 = vmax.xlane.f32.xlu0 %v10234_v16 }
 0x5b6   :  { %1292 = vmax.xlane.f32.xlu0 %v10231_v15 }
 0x607   :  { %v1265_v19 = vpop.xlane.xlu0 %1264 }
 0x608   :  { %v1295_v42 = vsub.f32 %v8342_v63, %v1265_v19 }
 0x60a   :  { %v1312_v5 = vmul.f32 1.442695, %v1295_v42 }
 0x60b   :  { %v1263_v31 = vpop.xlane.xlu0 %1262 }
 0x60c   :  { %9090 = vpow2.f32 %v1312_v5  ;;  %v1294_v32 = vsub.f32 %v1183_v25, %v1263_v31 }
 0x60e   :  { %v1310_v35 = vmul.f32 1.442695, %v1294_v32 }
 0x60f   :  { %v1269_v18 = vpop.xlane.xlu0 %1268 }
 0x610   :  { %9092 = vpow2.f32 %v1310_v35  ;;  %v1297_v28 = vsub.f32 %v8345_v17, %v1269_v18 }
 0x611   :  { %v1271_v30 = vpop.xlane.xlu1 %1270 }
 0x612   :  { %v1316_v53 = vmul.f32 1.442695, %v1297_v28  ;;  %v1298_v43 = vsub.f32 %v1203_v29, %v1271_v30 }
 0x613   :  { %v1267_v14 = vpop.xlane.xlu0 %1266 }
 0x614   :  { %9094 = vpow2.f32 %v1316_v53  ;;  %v1296_v57 = vsub.f32 %v1193_v56, %v1267_v14  ;;  %v1318_v36 = vmul.f32 1.442695, %v1298_v43 }
 0x616   :  { %v1314_v6 = vmul.f32 1.442695, %v1296_v57 }
 0x617   :  { %v1273_v12 = vpop.xlane.xlu0 %1272 }
 0x618   :  { %9096 = vpow2.f32 %v1314_v6  ;;  %v1299_v0 = vsub.f32 %v8348_v7, %v1273_v12 }
 0x619   :  { %v10238_v46 = vpop.eup %9090 }
 0x61a   :  { %v1320_v22 = vmul.f32 1.442695, %v1299_v0  ;;  %1344 = vadd.xlane.f32.xlu0 %v10238_v46 }
 0x61b   :  { %v1277_v58 = vpop.xlane.xlu0 %1276 }
 0x61c   :  { %9098 = vpow2.f32 %v1320_v22  ;;  %v1301_v33 = vsub.f32 %v8351_v34, %v1277_v58 }
 0x61d   :  { %v10241_v20 = vpop.eup %9092  ;;  %9100 = vpow2.f32 %v1318_v36 }
 0x61e   :  { %1342 = vadd.xlane.f32.xlu0 %v10241_v20  ;;  %v1324_v4 = vmul.f32 1.442695, %v1301_v33 }
 0x61f   :  { %v1275_v24 = vpop.xlane.xlu0 %1274 }
 0x620   :  { %v1300_v63 = vsub.f32 %v1213_v8, %v1275_v24  ;;  %9102 = vpow2.f32 %v1324_v4 }
 0x621   :  { %v10244_v25 = vpop.eup %9094 }
 0x622   :  { %1348 = vadd.xlane.f32.xlu0 %v10244_v25  ;;  %v1322_v56 = vmul.f32 1.442695, %v1300_v63 }
 0x623   :  { %v1281_v17 = vpop.xlane.xlu0 %1280 }
 0x624   :  { %v1303_v7 = vsub.f32 %v8354_v41, %v1281_v17  ;;  %9104 = vpow2.f32 %v1322_v56  ;;  %v78_v56 = vld [vmem:[%s13371_s4 + $0x38] sm:$0xff] }
 0x625   :  { %v10247_v29 = vpop.eup %9096 }
 0x626   :  { %1346 = vadd.xlane.f32.xlu0 %v10247_v29  ;;  %v1328_v19 = vmul.f32 1.442695, %v1303_v7  ;;  %v77_v7 = vld [vmem:[%s13371_s4 + $0x30] sm:$0xff] }
 0x627   :  { %v1279_v34 = vpop.xlane.xlu0 %1278 }
 0x628   :  { %v1302_v42 = vsub.f32 %v10217_v49, %v1279_v34  ;;  %9106 = vpow2.f32 %v1328_v19  ;;  %v75_v34 = vld [vmem:[%s13371_s4 + $0x20] sm:$0xff]  ;;  %v76_v19 = vld [vmem:[%s13371_s4 + $0x28] sm:$0xff] }
 0x629   :  { %v10251_v5 = vpop.eup %9098 }
 0x62a   :  { %1352 = vadd.xlane.f32.xlu0 %v10251_v5  ;;  %v1326_v31 = vmul.f32 1.442695, %v1302_v42  ;;  %v10255_v35 = vpop.eup %9100  ;;  %v73_v42 = vld [vmem:[%s13371_s4 + $0x10] sm:$0xff] }
 0x62b   :  { %v1285_v8 = vpop.xlane.xlu0 %1284 }
 0x62c   :  { %v1305_v32 = vsub.f32 %v10220_v2, %v1285_v8  ;;  %9108 = vpow2.f32 %v1326_v31  ;;  %v74_v8 = vld [vmem:[%s13371_s4 + $0x18] sm:$0xff]  ;;  %v71_v31 = vld [vmem:[%s13371_s4] sm:$0xff] }
 0x62d   :  { %v10259_v53 = vpop.eup %9102 }
 0x62e   :  { %1350 = vadd.xlane.f32.xlu0 %v10255_v35  ;;  %v1332_v18 = vmul.f32 1.442695, %v1305_v32  ;;  %v72_v32 = vld [vmem:[%s13371_s4 + $0x8] sm:$0xff] }
 0x62f   :  { %v1283_v41 = vpop.xlane.xlu0 %1282 }
 0x630   :  { %v1304_v28 = vsub.f32 %v10223_v1, %v1283_v41  ;;  %9110 = vpow2.f32 %v1332_v18 }
 0x631   :  { %v10263_v30 = vpop.eup %9104 }
 0x632   :  { %1356 = vadd.xlane.f32.xlu0 %v10259_v53  ;;  %v1330_v49 = vmul.f32 1.442695, %v1304_v28 }
 0x633   :  { %v1289_v14 = vpop.xlane.xlu0 %1288 }
 0x634   :  { %v1307_v57 = vsub.f32 %v10226_v9, %v1289_v14  ;;  %9112 = vpow2.f32 %v1330_v49 }
 0x635   :  { %v10267_v1 = vpop.eup %9106 }
 0x636   :  { %v1336_v2 = vmul.f32 1.442695, %v1307_v57  ;;  %1354 = vadd.xlane.f32.xlu0 %v10263_v30 }
 0x637   :  { %v1287_v6 = vpop.xlane.xlu0 %1286 }
 0x638   :  { %9114 = vpow2.f32 %v1336_v2  ;;  %v1306_v12 = vsub.f32 %v10229_v11, %v1287_v6 }
 0x639   :  { %v10271_v9 = vpop.eup %9108 }
 0x63a   :  { %v1334_v43 = vmul.f32 1.442695, %v1306_v12  ;;  %1360 = vadd.xlane.f32.xlu0 %v10267_v1 }
 0x63b   :  { %v1291_v0 = vpop.xlane.xlu0 %1290 }
 0x63c   :  { %9116 = vpow2.f32 %v1334_v43  ;;  %v1308_v22 = vsub.f32 %v10234_v16, %v1291_v0 }
 0x63d   :  { %v10275_v24 = vpop.eup %9110 }
 0x63e   :  { %v1338_v58 = vmul.f32 1.442695, %v1308_v22  ;;  %1358 = vadd.xlane.f32.xlu0 %v10271_v9 }
 0x63f   :  { %v1293_v36 = vpop.xlane.xlu0 %1292 }
 0x640   :  { %9118 = vpow2.f32 %v1338_v58  ;;  %v1309_v33 = vsub.f32 %v10231_v15, %v1293_v36 }
 0x641   :  { %v10278_v4 = vpop.eup %9112 }
 0x642   :  { %v1340_v11 = vmul.f32 1.442695, %v1309_v33  ;;  %1364 = vadd.xlane.f32.xlu0 %v10275_v24 }
 0x644   :  { %9120 = vpow2.f32 %v1340_v11 }
 0x645   :  { %v10280_v63 = vpop.eup %9114 }
 0x646   :  { %1368 = vadd.xlane.f32.xlu1 %v10280_v63  ;;  %1362 = vadd.xlane.f32.xlu0 %v10278_v4 }
 0x649   :  { %v10284_v16 = vpop.eup %9116 }
 0x64a   :  { %1366 = vadd.xlane.f32.xlu0 %v10284_v16 }
 0x64d   :  { %v10287_v17 = vpop.eup %9118 }
 0x64e   :  { %1370 = vadd.xlane.f32.xlu0 %v10287_v17 }
 0x651   :  { %v10290_v15 = vpop.eup %9120 }
 0x652   :  { %1372 = vadd.xlane.f32.xlu1 %v10290_v15 }
 0x663   :  { %796 = vperm.xlu1 %8986, %v78_v56  }
 0x664   :  { %791 = vperm.xlu0 %8987, %v77_v7  }
 0x667   :  { %781 = vperm.xlu1 %8986, %v75_v34  }
 0x668   :  { %786 = vperm.xlu0 %8987, %v76_v19  }
 0x66b   :  { %771 = vperm.xlu1 %8986, %v73_v42  }
 0x66c   :  { %776 = vperm.xlu0 %8987, %v74_v8  }
 0x66f   :  { %761 = vperm.xlu1 %8986, %v71_v31  }
 0x670   :  { %766 = vperm.xlu0 %8987, %v72_v32  }
 0x6a3   :  { %v1345_v41 = vpop.xlane.xlu0 %1344 }
 0x6a7   :  { %v1343_v18 = vpop.xlane.xlu0 %1342 }
 0x6a8   :  { %9122 = vrcp.f32 %v1343_v18 }
 0x6a9   :  { %9124 = vrcp.f32 %v1345_v41 }
 0x6ab   :  { %v1349_v28 = vpop.xlane.xlu0 %1348 }
 0x6af   :  { %v1347_v49 = vpop.xlane.xlu0 %1346 }
 0x6b0   :  { %9126 = vrcp.f32 %v1347_v49 }
 0x6b1   :  { %9128 = vrcp.f32 %v1349_v28 }
 0x6b3   :  { %v1353_v14 = vpop.xlane.xlu0 %1352 }
 0x6b5   :  { %v9123_v12 = vpop.eup %9122 }
 0x6b6   :  { %v9125_v43 = vpop.eup %9124  ;;  %v10318_v22 = vmul.f32 %v9123_v12, %v10241_v20 }
 0x6b7   :  { %v1351_v57 = vpop.xlane.xlu0 %1350  ;;  %v10321_v36 = vmul.f32 %v9125_v43, %v10238_v46 }
 0x6b8   :  { %9130 = vrcp.f32 %v1351_v57 }
 0x6b9   :  { %9132 = vrcp.f32 %v1353_v14  ;;  %v1406_v56 = vadd.f32 %v10321_v36, %v10318_v22 }
 0x6bb   :  { %v1357_v2 = vpop.xlane.xlu0 %1356 }
 0x6bd   :  { %v9127_v0 = vpop.eup %9126 }
 0x6be   :  { %v10324_v33 = vmul.f32 %v9127_v0, %v10247_v29  ;;  %v9129_v11 = vpop.eup %9128 }
 0x6bf   :  { %v1355_v6 = vpop.xlane.xlu0 %1354  ;;  %v10330_v20 = vmul.f32 %v9129_v11, %v10244_v25 }
 0x6c0   :  { %9134 = vrcp.f32 %v1355_v6  ;;  %v1407_v19 = vadd.f32 %v1406_v56, %v10324_v33 }
 0x6c1   :  { %9136 = vrcp.f32 %v1357_v2 }
 0x6c2   :  { %v1408_v29 = vadd.f32 %v1407_v19, %v10330_v20 }
 0x6c3   :  { %v1361_v58 = vpop.xlane.xlu0 %1360 }
 0x6c5   :  { %v9131_v34 = vpop.eup %9130 }
 0x6c6   :  { %v10333_v42 = vmul.f32 %v9131_v34, %v10255_v35  ;;  %v9133_v8 = vpop.eup %9132 }
 0x6c7   :  { %v1359_v7 = vpop.xlane.xlu0 %1358  ;;  %v10338_v18 = vmul.f32 %v9133_v8, %v10251_v5 }
 0x6c8   :  { %9138 = vrcp.f32 %v1359_v7  ;;  %v1409_v32 = vadd.f32 %v1408_v29, %v10333_v42 }
 0x6c9   :  { %9140 = vrcp.f32 %v1361_v58 }
 0x6ca   :  { %v1410_v35 = vadd.f32 %v1409_v32, %v10338_v18 }
 0x6cb   :  { %v1365_v46 = vpop.xlane.xlu0 %1364 }
 0x6cc   :  { %9142 = vrcp.f32 %v1365_v46 }
 0x6cd   :  { %v9135_v31 = vpop.eup %9134 }
 0x6ce   :  { %v10341_v28 = vmul.f32 %v9135_v31, %v10263_v30  ;;  %v9137_v14 = vpop.eup %9136 }
 0x6cf   :  { %v1363_v41 = vpop.xlane.xlu0 %1362  ;;  %v1369_v25 = vpop.xlane.xlu1 %1368  ;;  %v10346_v6 = vmul.f32 %v9137_v14, %v10259_v53 }
 0x6d0   :  { %9144 = vrcp.f32 %v1363_v41  ;;  %v1411_v2 = vadd.f32 %v1410_v35, %v10341_v28 }
 0x6d2   :  { %v1412_v30 = vadd.f32 %v1411_v2, %v10346_v6 }
 0x6d3   :  { %v1367_v49 = vpop.xlane.xlu0 %1366 }
 0x6d4   :  { %9146 = vrcp.f32 %v1367_v49 }
 0x6d5   :  { %v9139_v57 = vpop.eup %9138  ;;  %9148 = vrcp.f32 %v1369_v25 }
 0x6d6   :  { %v10349_v5 = vmul.f32 %v9139_v57, %v10271_v9  ;;  %v9141_v43 = vpop.eup %9140 }
 0x6d7   :  { %v1371_v12 = vpop.xlane.xlu0 %1370  ;;  %v10354_v56 = vmul.f32 %v9141_v43, %v10267_v1 }
 0x6d8   :  { %9150 = vrcp.f32 %v1371_v12  ;;  %v1413_v0 = vadd.f32 %v1412_v30, %v10349_v5 }
 0x6d9   :  { %v9143_v11 = vpop.eup %9142 }
 0x6da   :  { %v1414_v53 = vadd.f32 %v1413_v0, %v10354_v56  ;;  %v10373_v29 = vmul.f32 %v9143_v11, %v10275_v24 }
 0x6db   :  { %v1373_v58 = vpop.xlane.xlu1 %1372 }
 0x6dc   :  { %9152 = vrcp.f32 %v1373_v58 }
 0x6dd   :  { %v9145_v7 = vpop.eup %9144 }
 0x6de   :  { %v10358_v34 = vmul.f32 %v9145_v7, %v10278_v4 }
 0x6df   :  { %v10360_v9 = vpop.permute.xlu1 %796  ;;  %v10362_v19 = vpop.permute.xlu0 %791 }
 0x6e0   :  { %v10366_v46 = vadd.f32 %v10213_v39, %v10360_v9  ;;  %v10370_v8 = vadd.f32 %v10209_v61, %v10362_v19  ;;  %v1415_v31 = vadd.f32 %v1414_v53, %v10358_v34 }
 0x6e1   :  { %v9147_v1 = vpop.eup %9146 }
 0x6e2   :  { %v9149_v4 = vpop.eup %9148  ;;  %v1402_v32 = vmul.f32 %v9147_v1, %v10284_v16  ;;  %910 = vadd.xlane.f32.xlu0 %v10366_v46  ;;  %908 = vadd.xlane.f32.xlu1 %v10370_v8  ;;  %v1416_v39 = vadd.f32 %v1415_v31, %v10373_v29  ;;  %v927_v41 = vmul.f32 %v10366_v46, %v10366_v46 }
 0x6e3   :  { %v926_v61 = vmul.f32 %v10370_v8, %v10370_v8  ;;  %v10384_v24 = vpop.permute.xlu1 %781  ;;  %v10386_v35 = vpop.permute.xlu0 %786  ;;  %v1403_v49 = vmul.f32 %v9149_v4, %v10280_v63 }
 0x6e4   :  { %v1417_v16 = vadd.f32 %v1416_v39, %v1402_v32  ;;  %v10392_v2 = vadd.f32 %v10211_v38, %v10384_v24  ;;  %v10396_v12 = vadd.f32 %v10215_v60, %v10386_v35 }
 0x6e5   :  { %v9151_v25 = vpop.eup %9150 }
 0x6e6   :  { %942 = vadd.xlane.f32.xlu1 %v927_v41  ;;  %940 = vadd.xlane.f32.xlu0 %v926_v61  ;;  %v1404_v14 = vmul.f32 %v9151_v25, %v10287_v17  ;;  %v1418_v57 = vadd.f32 %v1417_v16, %v1403_v49  ;;  %v924_v17 = vmul.f32 %v10392_v2, %v10392_v2 }
 0x6e7   :  { %v925_v0 = vmul.f32 %v10396_v12, %v10396_v12  ;;  %v10405_v58 = vpop.permute.xlu1 %771  ;;  %v10407_v11 = vpop.permute.xlu0 %776 }
 0x6e8   :  { %v1419_v43 = vadd.f32 %v1418_v57, %v1404_v14  ;;  %v10411_v7 = vadd.f32 %v10201_v10, %v10405_v58 }
 0x6e9   :  { %v9153_v30 = vpop.eup %9152 }
 0x6ea   :  { %904 = vadd.xlane.f32.xlu0 %v10392_v2  ;;  %906 = vadd.xlane.f32.xlu1 %v10396_v12  ;;  %v1405_v63 = vmul.f32 %v9153_v30, %v10290_v15  ;;  %v10415_v15 = vadd.f32 %v10205_v59, %v10407_v11  ;;  %v922_v31 = vmul.f32 %v10411_v7, %v10411_v7 }
 0x6eb   :  { %v10423_v41 = vpop.permute.xlu1 %761  ;;  %v10425_v10 = vpop.permute.xlu0 %766 }
 0x6ec   :  { %v1420_v38 = vadd.f32 %v1419_v43, %v1405_v63  ;;  %v923_v4 = vmul.f32 %v10415_v15, %v10415_v15  ;;  %v10429_v61 = vadd.f32 %v10203_v13, %v10423_v41  ;;  %v10433_v25 = vadd.f32 %v10207_v21, %v10425_v10 }
 0x6ee   :  { %936 = vadd.xlane.f32.xlu0 %v924_v17  ;;  %938 = vadd.xlane.f32.xlu1 %v925_v0  ;;  %v1421_v60 = vrot.slane %v1420_v38, 4 }
 0x6f0   :  { %v1422_v53 = vadd.f32 %v1421_v60, %v1420_v38 }
 0x6f2   :  { %900 = vadd.xlane.f32.xlu0 %v10411_v7  ;;  %902 = vadd.xlane.f32.xlu1 %v10415_v15  ;;  %v1423_v1 = vrot.slane %v1422_v53, 2 }
 0x6f4   :  { %v1424_v39 = vadd.f32 %v1423_v1, %v1422_v53 }
 0x6f6   :  { %932 = vadd.xlane.f32.xlu0 %v922_v31  ;;  %934 = vadd.xlane.f32.xlu1 %v923_v4  ;;  %v1425_v59 = vrot.slane %v1424_v39, 1 }
 0x6f8   :  { %v1426_v16 = vadd.f32 %v1425_v59, %v1424_v39 }
 0x6fa   :  { %896 = vadd.xlane.f32.xlu0 %v10429_v61  ;;  %898 = vadd.xlane.f32.xlu1 %v10433_v25  ;;  %v1427_v57 = vadd.f32 1e-09, %v1426_v16 }
 0x6fc   :  { %9154 = vrcp.f32 %v1427_v57 }
 0x709   :  { %v9155_v30 = vpop.eup %9154 }
 0x70a   :  { %v1443_v43 = vmul.f32 %v9155_v30, %v1404_v14  ;;  %v1444_v17 = vmul.f32 %v9155_v30, %v1405_v63  ;;  %v1441_v0 = vmul.f32 %v9155_v30, %v1402_v32  ;;  %v1442_v38 = vmul.f32 %v9155_v30, %v1403_v49 }
 0x70b   :  { %v1439_v53 = vmul.f32 %v9155_v30, %v10358_v34  ;;  %v1440_v21 = vmul.f32 %v9155_v30, %v10373_v29  ;;  %v1437_v31 = vmul.f32 %v9155_v30, %v10349_v5  ;;  %v1438_v4 = vmul.f32 %v9155_v30, %v10354_v56 }
 0x70c   :  { %v1456_v60 = vpack.c.bf16 %v1444_v17, %v1443_v43  ;;  %v1455_v13 = vpack.c.bf16 %v1442_v38, %v1441_v0  ;;  %v1435_v32 = vmul.f32 %v9155_v30, %v10341_v28  ;;  %v1436_v49 = vmul.f32 %v9155_v30, %v10346_v6  ;;  %v10467_v43 = vld [vmem:[%s13367_s0 + $0x70] sm:$0xff]  ;;  %v10479_v17 = vld [vmem:[%s13367_s0 + $0x60] sm:$0xff] }
 0x70d   :  { %v1454_v1 = vpack.c.bf16 %v1440_v21, %v1439_v53  ;;  %v1453_v14 = vpack.c.bf16 %v1438_v4, %v1437_v31  ;;  %v1433_v34 = vmul.f32 %v9155_v30, %v10333_v42  ;;  %v1434_v29 = vmul.f32 %v9155_v30, %v10338_v18  ;;  %v10491_v53 = vld [vmem:[%s13367_s0 + $0x58] sm:$0xff]  ;;  %v10497_v31 = vld [vmem:[%s13367_s0 + $0x50] sm:$0xff] }
 0x70e   :  { %8364 = vmatprep.subr.bf16.mxu0 %v1456_v60  ;;  %v1452_v63 = vpack.c.bf16 %v1436_v49, %v1435_v32  ;;  %v1431_v5 = vmul.f32 %v9155_v30, %v10324_v33  ;;  %v1432_v56 = vmul.f32 %v9155_v30, %v10330_v20  ;;  %v1429_v28 = vmul.f32 %v9155_v30, %v10318_v22  ;;  %v10503_v32 = vld [vmem:[%s13367_s0 + $0x48] sm:$0xff] }
 0x70f   :  { %8365 = vmatpush3.bf16.msra.mxu0 %v1456_v60  ;;  %v1451_v39 = vpack.c.bf16 %v1434_v29, %v1433_v34  ;;  %v1430_v6 = vmul.f32 %v9155_v30, %v10321_v36  ;;  %v1031_v42 = vadd.f32 %v10037_v45, %v10095_v23  ;;  %v1032_v18 = vadd.f32 %v10039_v44, %v10097_v37  ;;  %v10485_v60 = vld [vmem:[%s13367_s0 + $0x68] sm:$0xff] }
 0x710   :  { %8366 = vmatprep.subr.bf16.mxu0 %v1455_v13  ;;  %v1450_v59 = vpack.c.bf16 %v1432_v56, %v1431_v5  ;;  %v1033_v33 = vadd.f32 %v10041_v51, %v10103_v62  ;;  %v1034_v20 = vadd.f32 %v10043_v54, %v10107_v55  ;;  %v1035_v45 = vadd.f32 %v10045_v47, %v10111_v50 }
 0x711   :  { %v1449_v16 = vpack.c.bf16 %v1430_v6, %v1429_v28  ;;  %v1446_v22 = vpack.c.bf16 %v1032_v18, %v1031_v42  ;;  %v1036_v44 = vadd.f32 %v10047_v52, %v10121_v26  ;;  %v10473_v52 = vld [vmem:[%s13367_s0 + $0x78] sm:$0xff] }
 0x712   :  { %v1447_v36 = vpack.c.bf16 %v1034_v20, %v1033_v33 }
 0x713   :  { %8367 = vmatpush3.bf16.msra.mxu0 %v1455_v13  ;;  %v1448_v23 = vpack.c.bf16 %v1036_v44, %v1035_v45  ;;  %v921_v45 = vmul.f32 %v10433_v25, %v10433_v25 }
 0x714   :  { %8368 = vmatprep.subr.bf16.mxu0 %v1454_v1 }
 0x717   :  { %8369 = vmatpush3.bf16.msra.mxu0 %v1454_v1 }
 0x718   :  { %8370 = vmatprep.subr.bf16.mxu0 %v1453_v14 }
 0x71b   :  { %8371 = vmatpush3.bf16.msra.mxu0 %v1453_v14 }
 0x71c   :  { %8372 = vmatprep.subr.bf16.mxu0 %v1452_v63 }
 0x71f   :  { %8373 = vmatpush3.bf16.msra.mxu0 %v1452_v63  ;;  %v10509_v63 = vld [vmem:[%s13367_s0 + $0x40] sm:$0xff] }
 0x720   :  { %8374 = vmatprep.subr.bf16.mxu0 %v1451_v39 }
 0x723   :  { %8375 = vmatpush3.bf16.msra.mxu0 %v1451_v39 }
 0x724   :  { %8376 = vmatprep.subr.bf16.mxu0 %v1450_v59 }
 0x727   :  { %8377 = vmatpush3.bf16.msra.mxu0 %v1450_v59 }
 0x728   :  { %8378 = vmatprep.subr.bf16.mxu0 %v1449_v16 }
 0x72b   :  { %8379 = vmatpush3.bf16.msra.mxu0 %v1449_v16 }
 0x72c   :  { %8404 = vmatprep.subr.bf16.mxu0 %v13375_v3 }
 0x72e   :  { %8381 = vmatmul.mubr.bf16.vlgmr.msra.gmra.mxu0 %v1446_v22 }
 0x72f   :  { %8384 = vmatprep.mubr.bf16.mxu0 %v1447_v36  ;;  %v920_v36 = vmul.f32 %v10429_v61, %v10429_v61 }
 0x736   :  { %8385 = vmatmul.mubr.bf16.gmra.mxu0 %v1448_v23 }
 0x737   :  { %8412 = vmatprep.mubr.msk.bf16.mxu0 %vm9711_vm0, %v13375_v3 }
 0x76b   :  { %v911_v23 = vpop.xlane.xlu0 %910 }
 0x7ee   :  { %v8382_v51 = vpop.f32.mrf.mxu0 }
 0x7ef   :  { %v1524_v4 = vsub.f32 %v10497_v31, %v8382_v51  ;;  %v909_v51 = vpop.xlane.xlu1 %908 }
 0x7f0   :  { %v1491_v54 = vpop.f32.mrf.mxu0 }
 0x7f1   :  { %v1522_v34 = vsub.f32 %v10509_v63, %v1491_v54  ;;  %v941_v54 = vpop.xlane.xlu0 %940 }
 0x7f2   :  { %v8383_v37 = vpop.f32.mrf.mxu0 }
 0x7f3   :  { %v1525_v21 = vsub.f32 %v10491_v53, %v8383_v37  ;;  %v943_v37 = vpop.xlane.xlu1 %942 }
 0x7f4   :  { %v1494_v62 = vpop.f32.mrf.mxu0 }
 0x7f5   :  { %v1531_v14 = vpack.c.bf16 %v1525_v21, %v1524_v4  ;;  %v1523_v49 = vsub.f32 %v10503_v32, %v1494_v62  ;;  %v905_v62 = vpop.xlane.xlu0 %904 }
 0x7f6   :  { %v8386_v55 = vpop.f32.mrf.mxu0 }
 0x7f7   :  { %v1528_v47 = vsub.f32 %v10467_v43, %v8386_v55  ;;  %v1530_v29 = vpack.c.bf16 %v1523_v49, %v1522_v34  ;;  %v907_v55 = vpop.xlane.xlu1 %906 }
 0x7f8   :  { %v1507_v57 = vpop.f32.mrf.mxu0 }
 0x7f9   :  { %v1526_v0 = vsub.f32 %v10479_v17, %v1507_v57  ;;  %v937_v57 = vpop.xlane.xlu0 %936 }
 0x7fa   :  { %v8387_v30 = vpop.f32.mrf.mxu0 }
 0x7fb   :  { %v1529_v50 = vsub.f32 %v10473_v52, %v8387_v30  ;;  %v10570_v30 = vpop.xlane.xlu1 %938 }
 0x7fc   :  { %v1510_v26 = vpop.f32.mrf.mxu0 }
 0x7fd   :  { %v1533_v38 = vpack.c.bf16 %v1529_v50, %v1528_v47  ;;  %v1527_v13 = vsub.f32 %v10485_v60, %v1510_v26  ;;  %v901_v47 = vpop.xlane.xlu0 %900 }
 0x7ff   :  { %v1532_v1 = vpack.c.bf16 %v1527_v13, %v1526_v0  ;;  %8388 = vmatprep.subr.bf16.mxu1 %v1533_v38  ;;  %v903_v50 = vpop.xlane.xlu1 %902 }
 0x800   :  { %8389 = vmatpush3.bf16.msra.mxu1 %v1533_v38 }
 0x801   :  { %8390 = vmatprep.subr.bf16.mxu1 %v1532_v1  ;;  %v933_v26 = vpop.xlane.xlu0 %932 }
 0x803   :  { %v935_v0 = vpop.xlane.xlu1 %934 }
 0x804   :  { %8391 = vmatpush3.bf16.msra.mxu1 %v1532_v1 }
 0x805   :  { %8392 = vmatprep.subr.bf16.mxu1 %v1531_v14  ;;  %v897_v38 = vpop.xlane.xlu0 %896 }
 0x807   :  { %v10572_v13 = vpop.xlane.xlu1 %898 }
 0x808   :  { %8393 = vmatpush3.bf16.msra.mxu1 %v1531_v14 }
 0x809   :  { %8394 = vmatprep.subr.bf16.mxu1 %v1530_v29 }
 0x80c   :  { %8395 = vmatpush3.bf16.msra.mxu1 %v1530_v29 }
 0x80f   :  { %8397 = vmatmul.mubr.msk.bf16.vlgmr.msra.gmra.mxu1 %vm124_vm1, %v10161_v48 }
 0x810   :  { %8400 = vmatprep.mubr.msk.bf16.mxu1 %vm124_vm1, %v10166_v40 }
 0x817   :  { %8401 = vmatmul.mubr.msk.bf16.gmra.mxu1 %vm124_vm1, %v10179_v27 }
 0x8cf   :  { %v8398_v39 = vpop.f32.mrf.mxu1 }
 0x8d0   :  { %v10519_v5 = vadd.f32 %v8398_v39, %v10405_v58 }
 0x8d1   :  { %v1568_v56 = vpop.f32.mrf.mxu1 }
 0x8d2   :  { %1603 = vadd.xlane.f32.xlu0 %v10519_v5  ;;  %v1625_v48 = vmul.f32 %v10519_v5, %v10519_v5  ;;  %v10529_v27 = vadd.f32 %v1568_v56, %v10423_v41 }
 0x8d3   :  { %v8399_v59 = vpop.f32.mrf.mxu1 }
 0x8d4   :  { %v10523_v28 = vadd.f32 %v8399_v59, %v10407_v11 }
 0x8d5   :  { %v1571_v6 = vpop.f32.mrf.mxu1 }
 0x8d6   :  { %1635 = vadd.xlane.f32.xlu0 %v1625_v48  ;;  %1605 = vadd.xlane.f32.xlu1 %v10523_v28  ;;  %v1626_v58 = vmul.f32 %v10523_v28, %v10523_v28  ;;  %v10535_v11 = vadd.f32 %v1571_v6, %v10425_v10 }
 0x8d7   :  { %v8402_v40 = vpop.f32.mrf.mxu1 }
 0x8d8   :  { %v10538_v42 = vadd.f32 %v8402_v40, %v10362_v19  ;;  %v1624_v44 = vmul.f32 %v10535_v11, %v10535_v11 }
 0x8d9   :  { %v1584_v16 = vpop.f32.mrf.mxu1 }
 0x8da   :  { %1637 = vadd.xlane.f32.xlu1 %v1626_v58  ;;  %1599 = vadd.xlane.f32.xlu0 %v10529_v27  ;;  %v1629_v33 = vmul.f32 %v10538_v42, %v10538_v42  ;;  %v10549_v10 = vadd.f32 %v1584_v16, %v10384_v24 }
 0x8db   :  { %v8403_v18 = vpop.f32.mrf.mxu1 }
 0x8dc   :  { %v10543_v41 = vadd.f32 %v8403_v18, %v10360_v9  ;;  %v1627_v9 = vmul.f32 %v10549_v10, %v10549_v10 }
 0x8dd   :  { %v1587_v20 = vpop.f32.mrf.mxu1 }
 0x8de   :  { %1601 = vadd.xlane.f32.xlu1 %v10535_v11  ;;  %1611 = vadd.xlane.f32.xlu0 %v10538_v42  ;;  %v1630_v19 = vmul.f32 %v10543_v41, %v10543_v41  ;;  %v10555_v22 = vadd.f32 %v1587_v20, %v10386_v35  ;;  %v1623_v35 = vmul.f32 %v10529_v27, %v10529_v27 }
 0x8e0   :  { %v1628_v24 = vmul.f32 %v10555_v22, %v10555_v22 }
 0x8e2   :  { %1613 = vadd.xlane.f32.xlu1 %v10543_v41  ;;  %1643 = vadd.xlane.f32.xlu0 %v1629_v33 }
 0x8e6   :  { %1645 = vadd.xlane.f32.xlu1 %v1630_v19  ;;  %1607 = vadd.xlane.f32.xlu0 %v10549_v10 }
 0x8ea   :  { %1609 = vadd.xlane.f32.xlu1 %v10555_v22  ;;  %1639 = vadd.xlane.f32.xlu0 %v1627_v9 }
 0x8ee   :  { %1641 = vadd.xlane.f32.xlu1 %v1628_v24  ;;  %928 = vadd.xlane.f32.xlu0 %v920_v36 }
 0x8f2   :  { %930 = vadd.xlane.f32.xlu1 %v921_v45  ;;  %1631 = vadd.xlane.f32.xlu0 %v1623_v35 }
 0x8f6   :  { %1633 = vadd.xlane.f32.xlu1 %v1624_v44 }
 0x95b   :  { %v1604_v21 = vpop.xlane.xlu0 %1603 }
 0x95c   :  { %v1617_v1 = vadd.f32 %v1604_v21, %v901_v47 }
 0x95e   :  { %v1657_v4 = vmul.f32 0.00390625, %v1617_v1 }
 0x95f   :  { %v1636_v14 = vpop.xlane.xlu0 %1635  ;;  %v1606_v49 = vpop.xlane.xlu1 %1605 }
 0x960   :  { %v1649_v34 = vadd.f32 %v1636_v14, %v933_v26  ;;  %v1618_v29 = vadd.f32 %v1606_v49, %v903_v50  ;;  %v1673_v39 = vmul.f32 %v1657_v4, %v1657_v4 }
 0x962   :  { %v1665_v56 = vmul.f32 0.00390625, %v1649_v34  ;;  %v10574_v59 = vmul.f32 0.00390625, %v1618_v29 }
 0x963   :  { %v1638_v48 = vpop.xlane.xlu1 %1637  ;;  %v1600_v6 = vpop.xlane.xlu0 %1599 }
 0x964   :  { %v1681_v40 = vsub.f32 %v1665_v56, %v1673_v39  ;;  %v1650_v58 = vadd.f32 %v1638_v48, %v935_v0  ;;  %v1674_v18 = vmul.f32 %v10574_v59, %v10574_v59 }
 0x966   :  { %v1689_v16 = vadd.f32 1e-05, %v1681_v40  ;;  %v1666_v33 = vmul.f32 0.00390625, %v1650_v58  ;;  %v81_v40 = vld [vmem:[%s13372_s5 + $0x10] sm:$0xff] }
 0x967   :  { %v1602_v19 = vpop.xlane.xlu1 %1601  ;;  %v1612_v20 = vpop.xlane.xlu0 %1611 }
 0x968   :  { %9156 = vrsqrt.f32 %v1689_v16  ;;  %v1682_v9 = vsub.f32 %v1666_v33, %v1674_v18  ;;  %v1621_v24 = vadd.f32 %v1612_v20, %v909_v51  ;;  %v1615_v33 = vadd.f32 %v1600_v6, %v897_v38 }
 0x96a   :  { %v1690_v36 = vadd.f32 1e-05, %v1682_v9  ;;  %v10578_v45 = vmul.f32 0.00390625, %v1621_v24 }
 0x96b   :  { %v1614_v35 = vpop.xlane.xlu1 %1613  ;;  %v1644_v44 = vpop.xlane.xlu0 %1643 }
 0x96c   :  { %9158 = vrsqrt.f32 %v1690_v36  ;;  %v1622_v47 = vadd.f32 %v1614_v35, %v911_v23  ;;  %v1653_v50 = vadd.f32 %v1644_v44, %v941_v54  ;;  %v1677_v26 = vmul.f32 %v10578_v45, %v10578_v45 }
 0x96e   :  { %v10582_v0 = vmul.f32 0.00390625, %v1622_v47  ;;  %v1669_v21 = vmul.f32 0.00390625, %v1653_v50  ;;  %v89_v47 = vld [vmem:[%s13373_s6 + $0x10] sm:$0xff]  ;;  %v10602_v50 = vmul.f32 0.00390625, %v1615_v33 }
 0x96f   :  { %v1646_v1 = vpop.xlane.xlu1 %1645  ;;  %v1608_v14 = vpop.xlane.xlu0 %1607 }
 0x970   :  { %v1685_v49 = vsub.f32 %v1669_v21, %v1677_v26  ;;  %v1654_v34 = vadd.f32 %v1646_v1, %v943_v37  ;;  %v1619_v29 = vadd.f32 %v1608_v14, %v905_v62  ;;  %v1678_v51 = vmul.f32 %v10582_v0, %v10582_v0 }
 0x971   :  { %v1616_v26 = vadd.f32 %v1602_v19, %v10572_v13 }
 0x972   :  { %v1693_v39 = vadd.f32 1e-05, %v1685_v49  ;;  %v1670_v56 = vmul.f32 0.00390625, %v1654_v34  ;;  %v10586_v48 = vmul.f32 0.00390625, %v1619_v29 }
 0x973   :  { %v1610_v23 = vpop.xlane.xlu1 %1609  ;;  %v1640_v54 = vpop.xlane.xlu0 %1639  ;;  %v1656_v13 = vmul.f32 0.00390625, %v1616_v26 }
 0x974   :  { %9160 = vrsqrt.f32 %v1693_v39  ;;  %v1686_v58 = vsub.f32 %v1670_v56, %v1678_v51  ;;  %v1620_v16 = vadd.f32 %v1610_v23, %v907_v55  ;;  %v1651_v37 = vadd.f32 %v1640_v54, %v937_v57  ;;  %v82_v55 = vld [vmem:[%s13372_s5 + $0x18] sm:$0xff] }
 0x975   :  { %v9157_v18 = vpop.eup %9156  ;;  %v1675_v24 = vmul.f32 %v10586_v48, %v10586_v48  ;;  %v1672_v33 = vmul.f32 %v1656_v13, %v1656_v13 }
 0x976   :  { %v1694_v62 = vadd.f32 1e-05, %v1686_v58  ;;  %v10591_v20 = vmul.f32 0.00390625, %v1620_v16  ;;  %v1705_v9 = vmul.f32 %v9157_v18, %v81_v40  ;;  %v1667_v36 = vmul.f32 0.00390625, %v1651_v37  ;;  %v85_v40 = vld [vmem:[%s13372_s5 + $0x30] sm:$0xff] }
 0x977   :  { %v1642_v35 = vpop.xlane.xlu1 %1641  ;;  %v929_v44 = vpop.xlane.xlu0 %928 }
 0x978   :  { %v1652_v57 = vadd.f32 %v1642_v35, %v10570_v30  ;;  %1739 = vperm.xlu1 %8986, %v1705_v9   ;;  %v1713_v38 = vmul.f32 %v1705_v9, %v1657_v4  ;;  %9162 = vrsqrt.f32 %v1694_v62  ;;  %v1683_v21 = vsub.f32 %v1667_v36, %v1675_v24  ;;  %v90_v36 = vld [vmem:[%s13373_s6 + $0x18] sm:$0xff] }
 0x979   :  { %v9159_v6 = vpop.eup %9158  ;;  %v1676_v1 = vmul.f32 %v10591_v20, %v10591_v20  ;;  %v1671_v4 = vmul.f32 %v10602_v50, %v10602_v50 }
 0x97a   :  { %v1668_v14 = vmul.f32 0.00390625, %v1652_v57  ;;  %v1721_v49 = vsub.f32 %v89_v47, %v1713_v38  ;;  %v1706_v34 = vmul.f32 %v9159_v6, %v82_v55  ;;  %v1691_v29 = vadd.f32 1e-05, %v1683_v21  ;;  %v86_v57 = vld [vmem:[%s13372_s5 + $0x38] sm:$0xff]  ;;  %v84_v21 = vld [vmem:[%s13372_s5 + $0x28] sm:$0xff] }
 0x97b   :  { %v931_v51 = vpop.xlane.xlu1 %930  ;;  %v1632_v39 = vpop.xlane.xlu0 %1631 }
 0x97c   :  { %v1684_v56 = vsub.f32 %v1668_v14, %v1676_v1  ;;  %v1647_v30 = vadd.f32 %v1632_v39, %v929_v44  ;;  %1787 = vperm.xlu1 %8986, %v1721_v49   ;;  %1744 = vperm.xlu0 %8987, %v1706_v34   ;;  %9164 = vrsqrt.f32 %v1691_v29  ;;  %v1714_v9 = vmul.f32 %v1706_v34, %v10574_v59  ;;  %v83_v59 = vld [vmem:[%s13372_s5 + $0x20] sm:$0xff]  ;;  %v94_v29 = vld [vmem:[%s13373_s6 + $0x38] sm:$0xff] }
 0x97e   :  { %v1692_v19 = vadd.f32 1e-05, %v1684_v56  ;;  %v1663_v23 = vmul.f32 0.00390625, %v1647_v30  ;;  %v1722_v55 = vsub.f32 %v90_v36, %v1714_v9 }
 0x97f   :  { %v1634_v54 = vpop.xlane.xlu1 %1633 }
 0x980   :  { %9166 = vrsqrt.f32 %v1692_v19  ;;  %v1679_v58 = vsub.f32 %v1663_v23, %v1671_v4  ;;  %v1648_v16 = vadd.f32 %v1634_v54, %v931_v51  ;;  %v93_v51 = vld [vmem:[%s13373_s6 + $0x30] sm:$0xff]  ;;  %v91_v23 = vld [vmem:[%s13373_s6 + $0x20] sm:$0xff] }
 0x981   :  { %v9161_v18 = vpop.eup %9160 }
 0x982   :  { %v1664_v37 = vmul.f32 0.00390625, %v1648_v16  ;;  %v1709_v62 = vmul.f32 %v9161_v18, %v85_v40  ;;  %v1687_v24 = vadd.f32 1e-05, %v1679_v58 }
 0x984   :  { %v1680_v35 = vsub.f32 %v1664_v37, %v1672_v33  ;;  %1759 = vperm.xlu0 %8987, %v1709_v62   ;;  %9168 = vrsqrt.f32 %v1687_v24  ;;  %v1717_v34 = vmul.f32 %v1709_v62, %v10578_v45  ;;  %v92_v45 = vld [vmem:[%s13373_s6 + $0x28] sm:$0xff]  ;;  %v87_v62 = vld [vmem:[%s13373_s6] sm:$0xff] }
 0x985   :  { %v9163_v44 = vpop.eup %9162  ;;  %v88_v33 = vld [vmem:[%s13373_s6 + $0x8] sm:$0xff] }
 0x986   :  { %v1688_v47 = vadd.f32 1e-05, %v1680_v35  ;;  %v1710_v6 = vmul.f32 %v9163_v44, %v86_v57  ;;  %v1725_v30 = vsub.f32 %v93_v51, %v1717_v34  ;;  %v9633_v51 = vld [vmem:[%s13367_s0 + $0x18] sm:$0xff] }
 0x988   :  { %9170 = vrsqrt.f32 %v1688_v47  ;;  %1792 = vperm.xlu0 %8987, %v1722_v55   ;;  %v1718_v49 = vmul.f32 %v1710_v6, %v10582_v0  ;;  %v80_v0 = vld [vmem:[%s13372_s5 + $0x8] sm:$0xff] }
 0x989   :  { %v9165_v38 = vpop.eup %9164 }
 0x98a   :  { %v1707_v26 = vmul.f32 %v9165_v38, %v83_v59  ;;  %v1726_v39 = vsub.f32 %v94_v29, %v1718_v49  ;;  %v9632_v38 = vld [vmem:[%s13367_s0 + $0x10] sm:$0xff] }
 0x98c   :  { %1749 = vperm.xlu1 %8986, %v1707_v26   ;;  %v1715_v4 = vmul.f32 %v1707_v26, %v10586_v48 }
 0x98d   :  { %v9167_v1 = vpop.eup %9166 }
 0x98e   :  { %v1708_v14 = vmul.f32 %v9167_v1, %v84_v21  ;;  %v1723_v58 = vsub.f32 %v91_v23, %v1715_v4 }
 0x990   :  { %1754 = vperm.xlu0 %8987, %v1708_v14   ;;  %1764 = vperm.xlu1 %8986, %v1710_v6   ;;  %v1716_v56 = vmul.f32 %v1708_v14, %v10591_v20  ;;  %v79_v20 = vld [vmem:[%s13372_s5] sm:$0xff] }
 0x991   :  { %v9169_v19 = vpop.eup %9168 }
 0x992   :  { %v1724_v48 = vsub.f32 %v92_v45, %v1716_v56  ;;  %v1703_v16 = vmul.f32 %v9169_v19, %v79_v20 }
 0x994   :  { %1812 = vperm.xlu0 %8987, %v1726_v39   ;;  %1807 = vperm.xlu1 %8986, %v1725_v30   ;;  %v1711_v37 = vmul.f32 %v1703_v16, %v10602_v50 }
 0x995   :  { %v9171_v54 = vpop.eup %9170 }
 0x996   :  { %v1704_v40 = vmul.f32 %v9171_v54, %v80_v0  ;;  %v1719_v24 = vsub.f32 %v87_v62, %v1711_v37 }
 0x998   :  { %1802 = vperm.xlu0 %8987, %v1724_v48   ;;  %1797 = vperm.xlu1 %8986, %v1723_v58   ;;  %v1712_v18 = vmul.f32 %v1704_v40, %v1656_v13 }
 0x99a   :  { %v1720_v9 = vsub.f32 %v88_v33, %v1712_v18 }
 0x99c   :  { %1734 = vperm.xlu0 %8987, %v1704_v40   ;;  %1729 = vperm.xlu1 %8986, %v1703_v16  }
 0x9a0   :  { %1782 = vperm.xlu0 %8987, %v1720_v9   ;;  %1777 = vperm.xlu1 %8986, %v1719_v24  }
 0x9f3   :  { %v1740_v36 = vpop.permute.xlu1 %1739 }
 0x9f4   :  { %v1769_v35 = vmul.f32 %v1740_v36, %v10411_v7  ;;  %v1849_v13 = vmul.f32 %v1740_v36, %v10519_v5 }
 0x9f7   :  { %v1788_v44 = vpop.permute.xlu1 %1787  ;;  %v1745_v59 = vpop.permute.xlu0 %1744 }
 0x9f8   :  { %v1817_v47 = vadd.f32 %v1788_v44, %v1769_v35  ;;  %v1857_v55 = vadd.f32 %v1849_v13, %v1788_v44  ;;  %v1770_v5 = vmul.f32 %v1745_v59, %v10415_v15  ;;  %v1850_v21 = vmul.f32 %v1745_v59, %v10523_v28 }
 0x9fa   :  { %v1825_v57 = vmax.f32 %v1817_v47, 0.0  ;;  %v1865_v50 = vmax.f32 %v1857_v55, 0.0 }
 0x9fc   :  { %v10659_v6 = vadd.f32 %v9632_v38, %v1825_v57  ;;  %v10662_v26 = vadd.f32 %v10497_v31, %v1865_v50 }
 0x9fe   :  { %1841 = vst [vmem:[#allocation2 + $0x10] sm:$0xff] %v10659_v6  ;;  %1882 = vst [vmem:[#allocation2 + $0x110] sm:$0xff] %v10662_v26 }
 0x9ff   :  { %v1760_v7 = vpop.permute.xlu0 %1759 }
 0xa00   :  { %v1773_v45 = vmul.f32 %v1760_v7, %v10370_v8  ;;  %v1853_v0 = vmul.f32 %v1760_v7, %v10538_v42  ;;  %v9634_v42 = vld [vmem:[%s13367_s0 + $0x38] sm:$0xff] }
 0xa03   :  { %v1793_v1 = vpop.permute.xlu0 %1792 }
 0xa04   :  { %v1818_v14 = vadd.f32 %v1793_v1, %v1770_v5  ;;  %v1858_v49 = vadd.f32 %v1850_v21, %v1793_v1  ;;  %v9637_v5 = vld [vmem:[%s13367_s0 + $0x20] sm:$0xff] }
 0xa06   :  { %v1826_v34 = vmax.f32 %v1818_v14, 0.0  ;;  %v1866_v29 = vmax.f32 %v1858_v49, 0.0 }
 0xa07   :  { %v1750_v56 = vpop.permute.xlu1 %1749 }
 0xa08   :  { %v10671_v31 = vadd.f32 %v9633_v51, %v1826_v34  ;;  %v10674_v39 = vadd.f32 %v10491_v53, %v1866_v29 }
 0xa0a   :  { %1842 = vst [vmem:[#allocation2 + $0x18] sm:$0xff] %v10671_v31  ;;  %1883 = vst [vmem:[#allocation2 + $0x118] sm:$0xff] %v10674_v39 }
 0xa0b   :  { %v1755_v15 = vpop.permute.xlu0 %1754  ;;  %v1765_v28 = vpop.permute.xlu1 %1764 }
 0xa0c   :  { %v1774_v30 = vmul.f32 %v1765_v28, %v10366_v46  ;;  %v1854_v4 = vmul.f32 %v1765_v28, %v10543_v41  ;;  %v1772_v40 = vmul.f32 %v1755_v15, %v10396_v12  ;;  %v1852_v58 = vmul.f32 %v1755_v15, %v10555_v22 }
 0xa0d   :  { %v1771_v46 = vmul.f32 %v1750_v56, %v10392_v2  ;;  %v1851_v41 = vmul.f32 %v1750_v56, %v10549_v10  ;;  %v9635_v2 = vld [vmem:[%s13367_s0 + $0x30] sm:$0xff] }
 0xa0f   :  { %v1813_v19 = vpop.permute.xlu0 %1812  ;;  %v1808_v23 = vpop.permute.xlu1 %1807 }
 0xa10   :  { %v1822_v20 = vadd.f32 %v1813_v19, %v1774_v30  ;;  %v1862_v53 = vadd.f32 %v1854_v4, %v1813_v19  ;;  %v1821_v54 = vadd.f32 %v1808_v23, %v1773_v45  ;;  %v1861_v48 = vadd.f32 %v1853_v0, %v1808_v23  ;;  %v9639_v23 = vld [vmem:[%s13367_s0] sm:$0xff] }
 0xa12   :  { %v1830_v16 = vmax.f32 %v1822_v20, 0.0  ;;  %v1870_v18 = vmax.f32 %v1862_v53, 0.0  ;;  %v1829_v33 = vmax.f32 %v1821_v54, 0.0  ;;  %v1869_v8 = vmax.f32 %v1861_v48, 0.0  ;;  %v10764_v54 = vld [vmem:[%s13368_s1 + $0x28] sm:$0xff]  }
 0xa13   :  { %v1803_v37 = vpop.permute.xlu0 %1802  ;;  %v1798_v12 = vpop.permute.xlu1 %1797 }
 0xa14   :  { %v10689_v62 = vadd.f32 %v9634_v42, %v1830_v16  ;;  %v10692_v9 = vadd.f32 %v10473_v52, %v1870_v18  ;;  %v1820_v22 = vadd.f32 %v1803_v37, %v1772_v40  ;;  %v1860_v24 = vadd.f32 %v1852_v58, %v1803_v37 }
 0xa15   :  { %v10697_v10 = vadd.f32 %v9635_v2, %v1829_v33  ;;  %v10700_v36 = vadd.f32 %v10467_v43, %v1869_v8  ;;  %v1819_v35 = vadd.f32 %v1798_v12, %v1771_v46  ;;  %v1859_v13 = vadd.f32 %v1851_v41, %v1798_v12  ;;  %v9636_v43 = vld [vmem:[%s13367_s0 + $0x28] sm:$0xff] }
 0xa16   :  { %1846 = vst [vmem:[#allocation2 + $0x38] sm:$0xff] %v10689_v62  ;;  %1887 = vst [vmem:[#allocation2 + $0x138] sm:$0xff] %v10692_v9  ;;  %v1828_v52 = vmax.f32 %v1820_v22, 0.0  ;;  %v1868_v44 = vmax.f32 %v1860_v24, 0.0 }
 0xa17   :  { %1845 = vst [vmem:[#allocation2 + $0x30] sm:$0xff] %v10697_v10  ;;  %1886 = vst [vmem:[#allocation2 + $0x130] sm:$0xff] %v10700_v36  ;;  %v1827_v47 = vmax.f32 %v1819_v35, 0.0  ;;  %v1867_v55 = vmax.f32 %v1859_v13, 0.0  ;;  %v1735_v57 = vpop.permute.xlu0 %1734  ;;  %v1947_v50 = vpack.c.bf16 %v10689_v62, %v10697_v10  ;;  %v1730_v7 = vpop.permute.xlu1 %1729 }
 0xa18   :  { %v10711_v59 = vadd.f32 %v9636_v43, %v1828_v52  ;;  %v10714_v38 = vadd.f32 %v10485_v60, %v1868_v44  ;;  %v1768_v14 = vmul.f32 %v1735_v57, %v10433_v25  ;;  %v1848_v60 = vmul.f32 %v1735_v57, %v10535_v11 }
 0xa19   :  { %v10719_v21 = vadd.f32 %v9637_v5, %v1827_v47  ;;  %v10722_v1 = vadd.f32 %v10479_v17, %v1867_v55  ;;  %8405 = vmatpush3.bf16.msra.mxu0 %v1947_v50  ;;  %v1767_v49 = vmul.f32 %v1730_v7, %v10429_v61  ;;  %v1847_v17 = vmul.f32 %v1730_v7, %v10529_v27  ;;  %v9638_v27 = vld [vmem:[%s13367_s0 + $0x8] sm:$0xff] }
 0xa1a   :  { %1844 = vst [vmem:[#allocation2 + $0x28] sm:$0xff] %v10711_v59  ;;  %1885 = vst [vmem:[#allocation2 + $0x128] sm:$0xff] %v10714_v38  ;;  %8406 = vmatprep.subr.bf16.mxu0 %v13375_v3  ;;  %v1945_v61 = vpack.c.bf16 %v10671_v31, %v10659_v6 }
 0xa1b   :  { %1843 = vst [vmem:[#allocation2 + $0x20] sm:$0xff] %v10719_v21  ;;  %1884 = vst [vmem:[#allocation2 + $0x120] sm:$0xff] %v10722_v1  ;;  %v1783_v34 = vpop.permute.xlu0 %1782  ;;  %v1946_v29 = vpack.c.bf16 %v10711_v59, %v10719_v21  ;;  %v1778_v51 = vpop.permute.xlu1 %1777 }
 0xa1c   :  { %v1816_v56 = vadd.f32 %v1783_v34, %v1768_v14  ;;  %v1856_v15 = vadd.f32 %v1848_v60, %v1783_v34  ;;  %v1815_v25 = vadd.f32 %v1778_v51, %v1767_v49  ;;  %v1855_v28 = vadd.f32 %v1847_v17, %v1778_v51  ;;  %v10789_v14 = vld [vmem:[%s13368_s1 + $0x30] sm:$0xff]   ;;  %v10804_v17 = vld [vmem:[%s13368_s1 + $0x38] sm:$0xff]   ;;  %v10819_v51 = vld [vmem:[%s13368_s1 + $0x40] sm:$0xff]  }
 0xa1d   :  { %8407 = vmatpush3.bf16.msra.mxu0 %v1946_v29 }
 0xa1e   :  { %v1824_v11 = vmax.f32 %v1816_v56, 0.0  ;;  %v1864_v30 = vmax.f32 %v1856_v15, 0.0  ;;  %8408 = vmatprep.subr.bf16.mxu0 %v13375_v3  ;;  %v1823_v4 = vmax.f32 %v1815_v25, 0.0  ;;  %v1863_v45 = vmax.f32 %v1855_v28, 0.0  ;;  %v10834_v25 = vld [vmem:[%s13368_s1 + $0x48] sm:$0xff]  }
 0xa20   :  { %v10741_v0 = vadd.f32 %v9638_v27, %v1824_v11  ;;  %v10744_v19 = vadd.f32 %v10503_v32, %v1864_v30  ;;  %v10749_v20 = vadd.f32 %v9639_v23, %v1823_v4  ;;  %v10752_v53 = vadd.f32 %v10509_v63, %v1863_v45 }
 0xa21   :  { %8409 = vmatpush3.bf16.msra.mxu0 %v1945_v61 }
 0xa22   :  { %1840 = vst [vmem:[#allocation2 + $0x8] sm:$0xff] %v10741_v0  ;;  %1881 = vst [vmem:[#allocation2 + $0x108] sm:$0xff] %v10744_v19  ;;  %8410 = vmatprep.subr.bf16.mxu0 %v13375_v3  ;;  %v1944_v32 = vpack.c.bf16 %v10741_v0, %v10749_v20 }
 0xa23   :  { %1839 = vst [vmem:[#allocation2] sm:$0xff] %v10749_v20  ;;  %1880 = vst [vmem:[#allocation2 + $0x100] sm:$0xff] %v10752_v53 }
 0xa25   :  { %8411 = vmatpush3.bf16.msra.mxu0 %v1944_v32 }
 0xa28   :  { %8413 = vmatmul.mubr.msk.bf16.vlgmr.msra.gmra.mxu0 %vm124_vm1, %v10764_v54 }
 0xa29   :  { %8416 = vmatprep.mubr.msk.bf16.mxu0 %vm9711_vm0, %v13375_v3 }
 0xa30   :  { %8417 = vmatmul.mubr.msk.bf16.gmra.mxu0 %vm124_vm1, %v10789_v14 }
 0xa31   :  { %8420 = vmatprep.mubr.msk.bf16.mxu0 %vm9711_vm0, %v13375_v3 }
 0xa38   :  { %8421 = vmatmul.mubr.msk.bf16.gmra.mxu0 %vm124_vm1, %v10804_v17 }
 0xa39   :  { %8424 = vmatprep.mubr.msk.bf16.mxu0 %vm9711_vm0, %v13375_v3 }
 0xa40   :  { %8425 = vmatmul.mubr.msk.bf16.gmra.mxu0 %vm124_vm1, %v10819_v51 }
 0xa41   :  { %8428 = vmatprep.mubr.msk.bf16.mxu0 %vm9711_vm0, %v13375_v3 }
 0xa48   :  { %8429 = vmatmul.mubr.msk.bf16.gmra.mxu0 %vm124_vm1, %v10834_v25 }
 0xae8   :  { %v2022_v63 = vpop.f32.mrf.mxu0 }
 0xae9   :  { %2109 = vxpose.xlu1.b32.start [1/2] (short) %v2022_v63, 128 }
 0xaea   :  { %v8414_v48 = vpop.f32.mrf.mxu0 }
 0xaec   :  { %v2025_v40 = vpop.f32.mrf.mxu0 }
 0xaed   :  { %2110 = vxpose.xlu1.b32.end [2/2] (short) %v2025_v40, 128  ;;  %8432 = vmatprep.subr.mxu1 %v2025_v40 }
 0xaee   :  { %v8415_v58 = vpop.f32.mrf.mxu0  ;;  %8433 = vmatpush3.msra.mxu1 %v2025_v40 }
 0xaef   :  { %8434 = vmatprep.subr.mxu1 %v2022_v63 }
 0xaf0   :  { %8435 = vmatpush3.msra.mxu1 %v2022_v63 }
 0xb65   :  { %v2125_v16 = vpop.trf.xlu1 }
 0xb66   :  { %8436 = vmatprep.mubr.msk.f32.mxu1 %vm293_vm2, %v2125_v16 }
 0xb69   :  { %v2126_v18 = vpop.trf.xlu1 }
 0xb6a   :  { %8437 = vmatmul.mubr.msk.f32.vlgmr.msra.gmra.mxu1 %vm293_vm2, %v2126_v18 }
 0xb6d   :  { %v2127_v46 = vpop.trf.xlu1 }
 0xb6e   :  { %8439 = vmatprep.mubr.msk.f32.mxu1 %vm293_vm2, %v2127_v46 }
 0xb71   :  { %v2128_v41 = vpop.trf.xlu1 }
 0xb72   :  { %8440 = vmatmul.mubr.msk.f32.gmra.mxu1 %vm293_vm2, %v2128_v41 }
 0xb75   :  { %v2129_v33 = vpop.trf.xlu1 }
 0xb76   :  { %8442 = vmatprep.mubr.msk.f32.mxu1 %vm293_vm2, %v2129_v33 }
 0xb79   :  { %v2130_v8 = vpop.trf.xlu1 }
 0xb7a   :  { %8443 = vmatmul.mubr.msk.f32.gmra.mxu1 %vm293_vm2, %v2130_v8 }
 0xb7d   :  { %v2131_v37 = vpop.trf.xlu1 }
 0xb7e   :  { %8445 = vmatprep.mubr.msk.f32.mxu1 %vm293_vm2, %v2131_v37 }
 0xb81   :  { %v2132_v42 = vpop.trf.xlu1 }
 0xb82   :  { %8446 = vmatmul.mubr.msk.f32.gmra.mxu1 %vm293_vm2, %v2132_v42 }
 0xb85   :  { %v2133_v12 = vpop.trf.xlu1 }
 0xb86   :  { %8448 = vmatprep.mubr.msk.f32.mxu1 %vm293_vm2, %v2133_v12 }
 0xb89   :  { %v2134_v22 = vpop.trf.xlu1 }
 0xb8a   :  { %8449 = vmatmul.mubr.msk.f32.gmra.mxu1 %vm293_vm2, %v2134_v22 }
 0xb8d   :  { %v2135_v24 = vpop.trf.xlu1 }
 0xb8e   :  { %8451 = vmatprep.mubr.msk.f32.mxu1 %vm293_vm2, %v2135_v24 }
 0xb91   :  { %v2136_v2 = vpop.trf.xlu1 }
 0xb92   :  { %8452 = vmatmul.mubr.msk.f32.gmra.mxu1 %vm293_vm2, %v2136_v2 }
 0xb95   :  { %v2137_v35 = vpop.trf.xlu1 }
 0xb96   :  { %8454 = vmatprep.mubr.msk.f32.mxu1 %vm293_vm2, %v2137_v35 }
 0xb99   :  { %v2138_v13 = vpop.trf.xlu1 }
 0xb9a   :  { %8455 = vmatmul.mubr.msk.f32.gmra.mxu1 %vm293_vm2, %v2138_v13 }
 0xb9d   :  { %v2139_v52 = vpop.trf.xlu1 }
 0xb9e   :  { %8457 = vmatprep.mubr.msk.f32.mxu1 %vm293_vm2, %v2139_v52 }
 0xba1   :  { %v2140_v44 = vpop.trf.xlu1 }
 0xba2   :  { %8458 = vmatmul.mubr.msk.f32.gmra.mxu1 %vm293_vm2, %v2140_v44 }
 0xc2a   :  { %v8438_v47 = vpop.f32.mrf.mxu1 }
 0xc2b   :  { %2336 = vmax.xlane.f32.xlu0 %v8438_v47 }
 0xc2c   :  { %v2255_v55 = vpop.f32.mrf.mxu1 }
 0xc2f   :  { %2334 = vmax.xlane.f32.xlu0 %v2255_v55 }
 0xc32   :  { %v8441_v57 = vpop.f32.mrf.mxu1 }
 0xc33   :  { %2340 = vmax.xlane.f32.xlu0 %v8441_v57 }
 0xc34   :  { %v2265_v50 = vpop.f32.mrf.mxu1 }
 0xc37   :  { %2338 = vmax.xlane.f32.xlu0 %v2265_v50 }
 0xc3a   :  { %v8444_v43 = vpop.f32.mrf.mxu1 }
 0xc3b   :  { %2344 = vmax.xlane.f32.xlu0 %v8444_v43 }
 0xc3c   :  { %v2275_v7 = vpop.f32.mrf.mxu1 }
 0xc3d   :  { %2342 = vmax.xlane.f32.xlu1 %v2275_v7 }
 0xc42   :  { %v8447_v5 = vpop.f32.mrf.mxu1 }
 0xc43   :  { %2348 = vmax.xlane.f32.xlu0 %v8447_v5 }
 0xc44   :  { %v10791_v60 = vpop.f32.mrf.mxu1 }
 0xc47   :  { %2346 = vmax.xlane.f32.xlu0 %v10791_v60 }
 0xc4a   :  { %v10798_v49 = vpop.f32.mrf.mxu1 }
 0xc4b   :  { %2352 = vmax.xlane.f32.xlu0 %v10798_v49 }
 0xc4c   :  { %v10806_v34 = vpop.f32.mrf.mxu1 }
 0xc4f   :  { %2350 = vmax.xlane.f32.xlu0 %v10806_v34 }
 0xc52   :  { %v10813_v29 = vpop.f32.mrf.mxu1 }
 0xc53   :  { %2356 = vmax.xlane.f32.xlu0 %v10813_v29 }
 0xc54   :  { %v10821_v56 = vpop.f32.mrf.mxu1 }
 0xc57   :  { %2354 = vmax.xlane.f32.xlu0 %v10821_v56 }
 0xc5a   :  { %v10828_v15 = vpop.f32.mrf.mxu1 }
 0xc5b   :  { %2360 = vmax.xlane.f32.xlu0 %v10828_v15 }
 0xc5c   :  { %v10836_v28 = vpop.f32.mrf.mxu1 }
 0xc5f   :  { %2358 = vmax.xlane.f32.xlu0 %v10836_v28 }
 0xc62   :  { %v10841_v11 = vpop.f32.mrf.mxu1 }
 0xc64   :  { %v10843_v30 = vpop.f32.mrf.mxu1 }
 0xc65   :  { %2362 = vmax.xlane.f32.xlu0 %v10843_v30 }
 0xc69   :  { %2364 = vmax.xlane.f32.xlu0 %v10841_v11 }
 0xcb4   :  { %v2337_v4 = vpop.xlane.xlu0 %2336 }
 0xcb5   :  { %v2367_v45 = vsub.f32 %v8438_v47, %v2337_v4 }
 0xcb7   :  { %v2384_v61 = vmul.f32 1.442695, %v2367_v45 }
 0xcb8   :  { %v2335_v27 = vpop.xlane.xlu0 %2334 }
 0xcb9   :  { %9172 = vpow2.f32 %v2384_v61  ;;  %v2366_v23 = vsub.f32 %v2255_v55, %v2335_v27 }
 0xcbb   :  { %v2382_v32 = vmul.f32 1.442695, %v2366_v23 }
 0xcbc   :  { %v2341_v63 = vpop.xlane.xlu0 %2340 }
 0xcbd   :  { %9174 = vpow2.f32 %v2382_v32  ;;  %v2369_v48 = vsub.f32 %v8441_v57, %v2341_v63 }
 0xcbf   :  { %v2388_v40 = vmul.f32 1.442695, %v2369_v48 }
 0xcc0   :  { %v2339_v58 = vpop.xlane.xlu0 %2338 }
 0xcc1   :  { %9176 = vpow2.f32 %v2388_v40  ;;  %v2368_v16 = vsub.f32 %v2265_v50, %v2339_v58 }
 0xcc3   :  { %v2386_v18 = vmul.f32 1.442695, %v2368_v16 }
 0xcc4   :  { %v2345_v46 = vpop.xlane.xlu0 %2344 }
 0xcc5   :  { %9178 = vpow2.f32 %v2386_v18  ;;  %v2371_v41 = vsub.f32 %v8444_v43, %v2345_v46 }
 0xcc6   :  { %v10847_v33 = vpop.eup %9172  ;;  %v2343_v8 = vpop.xlane.xlu1 %2342 }
 0xcc7   :  { %v2392_v37 = vmul.f32 1.442695, %v2371_v41  ;;  %v2370_v42 = vsub.f32 %v2275_v7, %v2343_v8  ;;  %2416 = vadd.xlane.f32.xlu0 %v10847_v33 }
 0xcc9   :  { %9180 = vpow2.f32 %v2392_v37  ;;  %v2390_v12 = vmul.f32 1.442695, %v2370_v42 }
 0xcca   :  { %v10850_v22 = vpop.eup %9174 }
 0xccb   :  { %2414 = vadd.xlane.f32.xlu0 %v10850_v22  ;;  %9182 = vpow2.f32 %v2390_v12 }
 0xccc   :  { %v2349_v24 = vpop.xlane.xlu0 %2348 }
 0xccd   :  { %v2373_v2 = vsub.f32 %v8447_v5, %v2349_v24 }
 0xcce   :  { %v10853_v35 = vpop.eup %9176 }
 0xccf   :  { %v2396_v13 = vmul.f32 1.442695, %v2373_v2  ;;  %2420 = vadd.xlane.f32.xlu0 %v10853_v35 }
 0xcd0   :  { %v2347_v52 = vpop.xlane.xlu0 %2346 }
 0xcd1   :  { %9184 = vpow2.f32 %v2396_v13  ;;  %v2372_v44 = vsub.f32 %v10791_v60, %v2347_v52 }
 0xcd2   :  { %v10857_v47 = vpop.eup %9178 }
 0xcd3   :  { %v2394_v55 = vmul.f32 1.442695, %v2372_v44  ;;  %2418 = vadd.xlane.f32.xlu0 %v10857_v47 }
 0xcd4   :  { %v2353_v57 = vpop.xlane.xlu0 %2352 }
 0xcd5   :  { %9186 = vpow2.f32 %v2394_v55  ;;  %v2375_v50 = vsub.f32 %v10798_v49, %v2353_v57 }
 0xcd6   :  { %v10861_v43 = vpop.eup %9180 }
 0xcd7   :  { %v2400_v7 = vmul.f32 1.442695, %v2375_v50  ;;  %2424 = vadd.xlane.f32.xlu0 %v10861_v43 }
 0xcd8   :  { %v2351_v5 = vpop.xlane.xlu0 %2350  ;;  %v10865_v45 = vpop.eup %9182 }
 0xcd9   :  { %9188 = vpow2.f32 %v2400_v7  ;;  %v2374_v4 = vsub.f32 %v10806_v34, %v2351_v5 }
 0xcdb   :  { %v2398_v60 = vmul.f32 1.442695, %v2374_v4  ;;  %2422 = vadd.xlane.f32.xlu0 %v10865_v45 }
 0xcdc   :  { %v2357_v61 = vpop.xlane.xlu0 %2356 }
 0xcdd   :  { %9190 = vpow2.f32 %v2398_v60  ;;  %v2377_v27 = vsub.f32 %v10813_v29, %v2357_v61  ;;  %v7520_v60 = vld [vmem:[%s13369_s2 + $0x48] sm:$0xff]  ;;  %v7519_v61 = vld [vmem:[%s13369_s2 + $0x40] sm:$0xff] }
 0xcde   :  { %v10869_v23 = vpop.eup %9184 }
 0xcdf   :  { %v2404_v49 = vmul.f32 1.442695, %v2377_v27  ;;  %2428 = vadd.xlane.f32.xlu0 %v10869_v23 }
 0xce0   :  { %v2355_v32 = vpop.xlane.xlu0 %2354 }
 0xce1   :  { %9192 = vpow2.f32 %v2404_v49  ;;  %v2376_v63 = vsub.f32 %v10821_v56, %v2355_v32  ;;  %v7521_v32 = vld [vmem:[%s13369_s2 + $0x50] sm:$0xff] }
 0xce2   :  { %v10873_v48 = vpop.eup %9186 }
 0xce3   :  { %v2402_v34 = vmul.f32 1.442695, %v2376_v63  ;;  %2426 = vadd.xlane.f32.xlu0 %v10873_v48  ;;  %v7522_v63 = vld [vmem:[%s13369_s2 + $0x58] sm:$0xff] }
 0xce4   :  { %v2361_v40 = vpop.xlane.xlu0 %2360 }
 0xce5   :  { %9194 = vpow2.f32 %v2402_v34  ;;  %v2379_v58 = vsub.f32 %v10828_v15, %v2361_v40 }
 0xce6   :  { %v10877_v16 = vpop.eup %9188 }
 0xce7   :  { %v2408_v29 = vmul.f32 1.442695, %v2379_v58  ;;  %2432 = vadd.xlane.f32.xlu0 %v10877_v16  ;;  %v7523_v58 = vld [vmem:[%s13369_s2 + $0x60] sm:$0xff] }
 0xce8   :  { %v2359_v18 = vpop.xlane.xlu0 %2358 }
 0xce9   :  { %9196 = vpow2.f32 %v2408_v29  ;;  %v2378_v46 = vsub.f32 %v10836_v28, %v2359_v18  ;;  %v7524_v29 = vld [vmem:[%s13369_s2 + $0x68] sm:$0xff] }
 0xcea   :  { %v10881_v41 = vpop.eup %9190 }
 0xceb   :  { %v2406_v56 = vmul.f32 1.442695, %v2378_v46  ;;  %2430 = vadd.xlane.f32.xlu0 %v10881_v41 }
 0xced   :  { %9198 = vpow2.f32 %v2406_v56  ;;  %v7525_v56 = vld [vmem:[%s13369_s2 + $0x70] sm:$0xff] }
 0xcee   :  { %v10884_v8 = vpop.eup %9192  ;;  %v2363_v37 = vpop.xlane.xlu0 %2362 }
 0xcef   :  { %v2380_v15 = vsub.f32 %v10843_v30, %v2363_v37  ;;  %2436 = vadd.xlane.f32.xlu0 %v10884_v8  ;;  %v7526_v37 = vld [vmem:[%s13369_s2 + $0x78] sm:$0xff] }
 0xcf1   :  { %v2410_v42 = vmul.f32 1.442695, %v2380_v15 }
 0xcf2   :  { %v10888_v12 = vpop.eup %9194  ;;  %v2365_v24 = vpop.xlane.xlu0 %2364 }
 0xcf3   :  { %9200 = vpow2.f32 %v2410_v42  ;;  %v2381_v28 = vsub.f32 %v10841_v11, %v2365_v24  ;;  %2434 = vadd.xlane.f32.xlu0 %v10888_v12  ;;  %v10904_v11 = vpop.f32.mrf.mxu0 }
 0xcf5   :  { %v2412_v2 = vmul.f32 1.442695, %v2381_v28  ;;  %v8418_v55 = vpop.f32.mrf.mxu0 }
 0xcf6   :  { %v10892_v13 = vpop.eup %9196 }
 0xcf7   :  { %9202 = vpow2.f32 %v2412_v2  ;;  %2440 = vadd.xlane.f32.xlu1 %v10892_v13  ;;  %v10906_v57 = vpop.f32.mrf.mxu0 }
 0xcf9   :  { %v8419_v50 = vpop.f32.mrf.mxu0 }
 0xcfa   :  { %v10895_v52 = vpop.eup %9198 }
 0xcfb   :  { %2438 = vadd.xlane.f32.xlu0 %v10895_v52  ;;  %v10908_v7 = vpop.f32.mrf.mxu0 }
 0xcfd   :  { %v8422_v5 = vpop.f32.mrf.mxu0 }
 0xcff   :  { %v10910_v4 = vpop.f32.mrf.mxu0 }
 0xd00   :  { %v10898_v30 = vpop.eup %9200 }
 0xd01   :  { %2442 = vadd.xlane.f32.xlu0 %v10898_v30  ;;  %v8423_v27 = vpop.f32.mrf.mxu0 }
 0xd03   :  { %v10918_v49 = vpop.f32.mrf.mxu0 }
 0xd04   :  { %v10901_v44 = vpop.eup %9202 }
 0xd05   :  { %2444 = vadd.xlane.f32.xlu1 %v10901_v44  ;;  %v8426_v34 = vpop.f32.mrf.mxu0 }
 0xd07   :  { %v10926_v40 = vpop.f32.mrf.mxu0 }
 0xd09   :  { %v8427_v18 = vpop.f32.mrf.mxu0 }
 0xd0b   :  { %v10934_v46 = vpop.f32.mrf.mxu0 }
 0xd0d   :  { %v8430_v15 = vpop.f32.mrf.mxu0 }
 0xd0f   :  { %v10942_v42 = vpop.f32.mrf.mxu0 }
 0xd11   :  { %v8431_v24 = vpop.f32.mrf.mxu0 }
 0xd16   :  { %2068 = vperm.xlu1 %8986, %v7520_v60  }
 0xd17   :  { %2063 = vperm.xlu0 %8987, %v7519_v61  }
 0xd1a   :  { %2073 = vperm.xlu1 %8986, %v7521_v32  }
 0xd1b   :  { %2078 = vperm.xlu0 %8987, %v7522_v63  }
 0xd1e   :  { %2083 = vperm.xlu1 %8986, %v7523_v58  }
 0xd1f   :  { %2088 = vperm.xlu0 %8987, %v7524_v29  }
 0xd22   :  { %2093 = vperm.xlu1 %8986, %v7525_v56  }
 0xd23   :  { %2098 = vperm.xlu0 %8987, %v7526_v37  }
 0xd50   :  { %v2417_v28 = vpop.xlane.xlu0 %2416 }
 0xd54   :  { %v2415_v2 = vpop.xlane.xlu0 %2414 }
 0xd55   :  { %9204 = vrcp.f32 %v2415_v2 }
 0xd56   :  { %9206 = vrcp.f32 %v2417_v28 }
 0xd58   :  { %v2421_v55 = vpop.xlane.xlu0 %2420 }
 0xd5c   :  { %v2419_v50 = vpop.xlane.xlu0 %2418 }
 0xd5d   :  { %9208 = vrcp.f32 %v2419_v50 }
 0xd5e   :  { %9210 = vrcp.f32 %v2421_v55 }
 0xd60   :  { %v2425_v5 = vpop.xlane.xlu0 %2424 }
 0xd62   :  { %v9205_v32 = vpop.eup %9204 }
 0xd63   :  { %v9207_v34 = vpop.eup %9206  ;;  %v10945_v29 = vmul.f32 %v9205_v32, %v10850_v22 }
 0xd64   :  { %v2423_v60 = vpop.xlane.xlu0 %2422  ;;  %v10948_v56 = vmul.f32 %v9207_v34, %v10847_v33 }
 0xd65   :  { %9212 = vrcp.f32 %v2423_v60 }
 0xd66   :  { %9214 = vrcp.f32 %v2425_v5  ;;  %v2478_v24 = vadd.f32 %v10948_v56, %v10945_v29 }
 0xd68   :  { %v2429_v61 = vpop.xlane.xlu0 %2428 }
 0xd6a   :  { %v9209_v58 = vpop.eup %9208 }
 0xd6b   :  { %v10951_v37 = vmul.f32 %v9209_v58, %v10857_v47  ;;  %v9211_v15 = vpop.eup %9210 }
 0xd6c   :  { %v2427_v27 = vpop.xlane.xlu0 %2426  ;;  %v10957_v22 = vmul.f32 %v9211_v15, %v10853_v35 }
 0xd6d   :  { %9216 = vrcp.f32 %v2427_v27  ;;  %v2479_v55 = vadd.f32 %v2478_v24, %v10951_v37 }
 0xd6e   :  { %9218 = vrcp.f32 %v2429_v61 }
 0xd6f   :  { %v2480_v5 = vadd.f32 %v2479_v55, %v10957_v22 }
 0xd70   :  { %v2433_v63 = vpop.xlane.xlu0 %2432 }
 0xd72   :  { %v9213_v28 = vpop.eup %9212 }
 0xd73   :  { %v10960_v50 = vmul.f32 %v9213_v28, %v10865_v45  ;;  %v9215_v47 = vpop.eup %9214 }
 0xd74   :  { %v2431_v18 = vpop.xlane.xlu0 %2430  ;;  %v10965_v27 = vmul.f32 %v9215_v47, %v10861_v43 }
 0xd75   :  { %9220 = vrcp.f32 %v2431_v18  ;;  %v2481_v61 = vadd.f32 %v2480_v5, %v10960_v50 }
 0xd76   :  { %9222 = vrcp.f32 %v2433_v63 }
 0xd77   :  { %v2482_v34 = vadd.f32 %v2481_v61, %v10965_v27 }
 0xd78   :  { %v2437_v2 = vpop.xlane.xlu0 %2436 }
 0xd7a   :  { %v9217_v60 = vpop.eup %9216 }
 0xd7b   :  { %v10968_v32 = vmul.f32 %v9217_v60, %v10873_v48  ;;  %v9219_v35 = vpop.eup %9218 }
 0xd7c   :  { %v2435_v33 = vpop.xlane.xlu0 %2434  ;;  %v10973_v15 = vmul.f32 %v9219_v35, %v10869_v23 }
 0xd7d   :  { %9224 = vrcp.f32 %v2435_v33  ;;  %v2483_v58 = vadd.f32 %v2482_v34, %v10968_v32 }
 0xd7e   :  { %9226 = vrcp.f32 %v2437_v2 }
 0xd7f   :  { %v2484_v28 = vadd.f32 %v2483_v58, %v10973_v15 }
 0xd80   :  { %v2441_v18 = vpop.xlane.xlu1 %2440 }
 0xd82   :  { %v9221_v45 = vpop.eup %9220 }
 0xd83   :  { %v2470_v24 = vmul.f32 %v9221_v45, %v10881_v41  ;;  %v9223_v43 = vpop.eup %9222 }
 0xd84   :  { %v2439_v63 = vpop.xlane.xlu0 %2438  ;;  %v2471_v2 = vmul.f32 %v9223_v43, %v10877_v16 }
 0xd85   :  { %9228 = vrcp.f32 %v2439_v63  ;;  %v2485_v33 = vadd.f32 %v2484_v28, %v2470_v24 }
 0xd86   :  { %9230 = vrcp.f32 %v2441_v18 }
 0xd87   :  { %v2486_v60 = vadd.f32 %v2485_v33, %v2471_v2 }
 0xd8a   :  { %v9225_v48 = vpop.eup %9224  ;;  %v2443_v55 = vpop.xlane.xlu0 %2442 }
 0xd8b   :  { %9232 = vrcp.f32 %v2443_v55  ;;  %v2472_v47 = vmul.f32 %v9225_v48, %v10888_v12  ;;  %v9227_v61 = vpop.eup %9226 }
 0xd8c   :  { %v2473_v45 = vmul.f32 %v9227_v61, %v10884_v8 }
 0xd8d   :  { %v2487_v23 = vadd.f32 %v2486_v60, %v2472_v47 }
 0xd8e   :  { %v2445_v5 = vpop.xlane.xlu1 %2444 }
 0xd8f   :  { %9234 = vrcp.f32 %v2445_v5  ;;  %v2488_v18 = vadd.f32 %v2487_v23, %v2473_v45 }
 0xd92   :  { %v9229_v35 = vpop.eup %9228  ;;  %v10979_v34 = vpop.permute.xlu1 %2068 }
 0xd93   :  { %13382 = vst [vmem:[#allocation5_spill] sm:$0xff] %v10979_v34  ;;  %v10981_v41 = vpop.permute.xlu0 %2063  ;;  %v2474_v63 = vmul.f32 %v9229_v35, %v10895_v52  ;;  %v2102_v58 = vadd.f32 %v10979_v34, %v10906_v57  ;;  %v9231_v43 = vpop.eup %9230 }
 0xd94   :  { %v2101_v16 = vadd.f32 %v10981_v41, %v10904_v11  ;;  %v2475_v55 = vmul.f32 %v9231_v43, %v10892_v13 }
 0xd95   :  { %v2489_v28 = vadd.f32 %v2488_v18, %v2474_v63 }
 0xd96   :  { %v2517_v12 = vpack.c.bf16 %v2102_v58, %v2101_v16 }
 0xd97   :  { %v2490_v5 = vadd.f32 %v2489_v28, %v2475_v55 }
 0xd98   :  { %8476 = vmatprep.mubr.bf16.mxu1 %v2517_v12  ;;  %v9233_v48 = vpop.eup %9232 }
 0xd99   :  { %v2476_v33 = vmul.f32 %v9233_v48, %v10898_v30 }
 0xd9b   :  { %v2491_v60 = vadd.f32 %v2490_v5, %v2476_v33 }
 0xd9c   :  { %v9235_v8 = vpop.eup %9234 }
 0xd9d   :  { %v2477_v52 = vmul.f32 %v9235_v8, %v10901_v44 }
 0xd9f   :  { %v2492_v61 = vadd.f32 %v2491_v60, %v2477_v52 }
 0xda1   :  { %v2493_v57 = vrot.slane %v2492_v61, 4 }
 0xda3   :  { %v2494_v35 = vadd.f32 %v2493_v57, %v2492_v61 }
 0xda5   :  { %v2495_v3 = vrot.slane %v2494_v35, 2 }
 0xda7   :  { %v2496_v11 = vadd.f32 %v2495_v3, %v2494_v35 }
 0xda9   :  { %v2497_v58 = vrot.slane %v2496_v11, 1 }
 0xdab   :  { %v2498_v23 = vadd.f32 %v2497_v58, %v2496_v11  ;;  %v13383_v58 = vmov 0.0  }
 0xdad   :  { %v2499_v16 = vadd.f32 1e-09, %v2498_v23 }
 0xdaf   :  { %9236 = vrcp.f32 %v2499_v16 }
 0xdbc   :  { %v9237_v12 = vpop.eup %9236 }
 0xdbd   :  { %v2515_v18 = vmul.f32 %v9237_v12, %v2476_v33  ;;  %v2516_v34 = vmul.f32 %v9237_v12, %v2477_v52  ;;  %v2513_v13 = vmul.f32 %v9237_v12, %v2474_v63  ;;  %v2514_v43 = vmul.f32 %v9237_v12, %v2475_v55  ;;  %v10998_v55 = vpop.permute.xlu1 %2073 }
 0xdbe   :  { %v2511_v48 = vmul.f32 %v9237_v12, %v2472_v47  ;;  %v2512_v44 = vmul.f32 %v9237_v12, %v2473_v45  ;;  %v2509_v8 = vmul.f32 %v9237_v12, %v2470_v24  ;;  %v2510_v60 = vmul.f32 %v9237_v12, %v2471_v2 }
 0xdbf   :  { %v2528_v30 = vpack.c.bf16 %v2516_v34, %v2515_v18  ;;  %v2527_v28 = vpack.c.bf16 %v2514_v43, %v2513_v13  ;;  %v2507_v61 = vmul.f32 %v9237_v12, %v10968_v32  ;;  %v2508_v33 = vmul.f32 %v9237_v12, %v10973_v15  ;;  %v11000_v32 = vpop.permute.xlu0 %2078 }
 0xdc0   :  { %v2526_v5 = vpack.c.bf16 %v2512_v44, %v2511_v48  ;;  %v2525_v3 = vpack.c.bf16 %v2510_v60, %v2509_v8  ;;  %v2505_v34 = vmul.f32 %v9237_v12, %v10960_v50  ;;  %v2506_v47 = vmul.f32 %v9237_v12, %v10965_v27 }
 0xdc1   :  { %8460 = vmatprep.subr.bf16.mxu1 %v2528_v30  ;;  %v2524_v63 = vpack.c.bf16 %v2508_v33, %v2507_v61  ;;  %v2503_v24 = vmul.f32 %v9237_v12, %v10951_v37  ;;  %v2504_v2 = vmul.f32 %v9237_v12, %v10957_v22  ;;  %v2501_v52 = vmul.f32 %v9237_v12, %v10945_v29  ;;  %v11004_v27 = vpop.permute.xlu1 %2083 }
 0xdc2   :  { %8461 = vmatpush3.bf16.msra.mxu1 %v2528_v30  ;;  %v2523_v45 = vpack.c.bf16 %v2506_v47, %v2505_v34  ;;  %v2502_v50 = vmul.f32 %v9237_v12, %v10948_v56  ;;  %v2103_v22 = vadd.f32 %v10998_v55, %v10908_v7  ;;  %v2104_v35 = vadd.f32 %v11000_v32, %v10910_v4 }
 0xdc3   :  { %8462 = vmatprep.subr.bf16.mxu1 %v2527_v28  ;;  %v2522_v15 = vpack.c.bf16 %v2504_v2, %v2503_v24  ;;  %v11006_v57 = vpop.permute.xlu0 %2088  ;;  %v2105_v29 = vadd.f32 %v11004_v27, %v10918_v49  ;;  %v2802_v7 = vpack.c.bf16 %v10692_v9, %v10700_v36  ;;  %v2800_v9 = vpack.c.bf16 %v10674_v39, %v10662_v26  ;;  %v9002_v26 = vld [vmem:[%s13370_s3 + $0x20] sm:$0xff]  }
 0xdc4   :  { %v2521_v37 = vpack.c.bf16 %v2502_v50, %v2501_v52  ;;  %v2106_v56 = vadd.f32 %v11006_v57, %v10926_v40  ;;  %v2518_v11 = vpack.c.bf16 %v2104_v35, %v2103_v22  ;;  %v2801_v40 = vpack.c.bf16 %v10714_v38, %v10722_v1  ;;  %8492 = vmatprep.mubr.msk.bf16.mxu0 %vm124_vm1, %v9002_v26 }
 0xdc5   :  { %v11017_v23 = vpop.permute.xlu1 %2093  ;;  %v2799_v36 = vpack.c.bf16 %v10744_v19, %v10752_v53 }
 0xdc6   :  { %8463 = vmatpush3.bf16.msra.mxu1 %v2527_v28  ;;  %v2519_v12 = vpack.c.bf16 %v2106_v56, %v2105_v29  ;;  %v2107_v4 = vadd.f32 %v11017_v23, %v10934_v46 }
 0xdc7   :  { %8464 = vmatprep.subr.bf16.mxu1 %v2526_v5  ;;  %v11019_v16 = vpop.permute.xlu0 %2098 }
 0xdc8   :  { %v2108_v49 = vadd.f32 %v11019_v16, %v10942_v42 }
 0xdca   :  { %8465 = vmatpush3.bf16.msra.mxu1 %v2526_v5  ;;  %v2520_v18 = vpack.c.bf16 %v2108_v49, %v2107_v4 }
 0xdcb   :  { %8466 = vmatprep.subr.bf16.mxu1 %v2525_v3 }
 0xdce   :  { %8467 = vmatpush3.bf16.msra.mxu1 %v2525_v3 }
 0xdcf   :  { %8468 = vmatprep.subr.bf16.mxu1 %v2524_v63 }
 0xdd2   :  { %8469 = vmatpush3.bf16.msra.mxu1 %v2524_v63  ;;  %v11083_v63 = vld [vmem:[%s13370_s3 + $0x30] sm:$0xff]  }
 0xdd3   :  { %8470 = vmatprep.subr.bf16.mxu1 %v2523_v45 }
 0xdd6   :  { %8471 = vmatpush3.bf16.msra.mxu1 %v2523_v45 }
 0xdd7   :  { %8472 = vmatprep.subr.bf16.mxu1 %v2522_v15 }
 0xdda   :  { %8473 = vmatpush3.bf16.msra.mxu1 %v2522_v15  ;;  %v11100_v15 = vld [vmem:[%s13370_s3 + $0x38] sm:$0xff]  }
 0xddb   :  { %8474 = vmatprep.subr.bf16.mxu1 %v2521_v37 }
 0xdde   :  { %8475 = vmatpush3.bf16.msra.mxu1 %v2521_v37 }
 0xddf   :  { %8500 = vmatprep.subr.bf16.mxu1 %v13383_v58 }
 0xde1   :  { %8477 = vmatmul.mubr.bf16.vlgmr.msra.gmra.mxu1 %v2518_v11 }
 0xde2   :  { %8480 = vmatprep.mubr.bf16.mxu1 %v2519_v12  ;;  %8501 = vmatpush3.bf16.msra.mxu1 %v2802_v7 }
 0xde3   :  { %8502 = vmatprep.subr.bf16.mxu1 %v13383_v58 }
 0xde6   :  { %8503 = vmatpush3.bf16.msra.mxu1 %v2801_v40 }
 0xde7   :  { %8504 = vmatprep.subr.bf16.mxu1 %v13383_v58 }
 0xde9   :  { %8481 = vmatmul.mubr.bf16.gmra.mxu1 %v2520_v18 }
 0xdea   :  { %8505 = vmatpush3.bf16.msra.mxu1 %v2800_v9  ;;  %8508 = vmatprep.mubr.msk.bf16.mxu1 %vm9711_vm0, %v13383_v58 }
 0xdeb   :  { %8506 = vmatprep.subr.bf16.mxu1 %v13383_v58 }
 0xdee   :  { %8507 = vmatpush3.bf16.msra.mxu1 %v2799_v36 }
 0xdf1   :  { %8509 = vmatmul.mubr.msk.bf16.vlgmr.msra.gmra.mxu1 %vm124_vm1, %v10764_v54 }
 0xdf2   :  { %8512 = vmatprep.mubr.msk.bf16.mxu1 %vm9711_vm0, %v13383_v58 }
 0xdf9   :  { %8513 = vmatmul.mubr.msk.bf16.gmra.mxu1 %vm124_vm1, %v10789_v14 }
 0xdfa   :  { %8516 = vmatprep.mubr.msk.bf16.mxu1 %vm9711_vm0, %v13383_v58 }
 0xe01   :  { %8517 = vmatmul.mubr.msk.bf16.gmra.mxu1 %vm124_vm1, %v10804_v17 }
 0xe02   :  { %8520 = vmatprep.mubr.msk.bf16.mxu1 %vm9711_vm0, %v13383_v58 }
 0xe09   :  { %8521 = vmatmul.mubr.msk.bf16.gmra.mxu1 %vm124_vm1, %v10819_v51 }
 0xe0a   :  { %8524 = vmatprep.mubr.msk.bf16.mxu1 %vm9711_vm0, %v13383_v58 }
 0xe11   :  { %8525 = vmatmul.mubr.msk.bf16.gmra.mxu1 %vm124_vm1, %v10834_v25 }
 0xe12   :  { %8588 = vmatprep.mubr.msk.bf16.mxu1 %vm124_vm1, %v9002_v26 }
 0xea1   :  { %v8478_v39 = vpop.f32.mrf.mxu1 }
 0xea2   :  { %v2596_v44 = vsub.f32 %v10659_v6, %v8478_v39  ;;  %v13384_v6 = vld [vmem:[#allocation5_spill] sm:$0xff] }
 0xea3   :  { %v2563_v38 = vpop.f32.mrf.mxu1 }
 0xea5   :  { %v8479_v1 = vpop.f32.mrf.mxu1 }
 0xea6   :  { %v2597_v30 = vsub.f32 %v10671_v31, %v8479_v1 }
 0xea7   :  { %v2566_v19 = vpop.f32.mrf.mxu1 }
 0xea8   :  { %v2603_v5 = vpack.c.bf16 %v2597_v30, %v2596_v44 }
 0xea9   :  { %v8482_v53 = vpop.f32.mrf.mxu1 }
 0xeaa   :  { %v2600_v17 = vsub.f32 %v10697_v10, %v8482_v53 }
 0xeab   :  { %v2579_v54 = vpop.f32.mrf.mxu1 }
 0xeac   :  { %v2598_v46 = vsub.f32 %v10719_v21, %v2579_v54 }
 0xead   :  { %v8483_v14 = vpop.f32.mrf.mxu1 }
 0xeae   :  { %v2601_v51 = vsub.f32 %v10689_v62, %v8483_v14  ;;  %v2595_v62 = vsub.f32 %v10741_v0, %v2566_v19  ;;  %v11078_v0 = vld [vmem:[%s13370_s3 + $0x28] sm:$0xff]  }
 0xeaf   :  { %v2582_v25 = vpop.f32.mrf.mxu1 }
 0xeb0   :  { %v2605_v42 = vpack.c.bf16 %v2601_v51, %v2600_v17  ;;  %v2599_v13 = vsub.f32 %v10711_v59, %v2582_v25  ;;  %v2594_v59 = vsub.f32 %v10749_v20, %v2563_v38 }
 0xeb1   :  { %v2837_v43 = vpop.f32.mrf.mxu1 }
 0xeb2   :  { %v2604_v28 = vpack.c.bf16 %v2599_v13, %v2598_v46  ;;  %8484 = vmatprep.subr.bf16.mxu0 %v2605_v42  ;;  %2884 = vxpose.xlu1.b32.start [1/2] (short) %v2837_v43, 128  ;;  %v2602_v31 = vpack.c.bf16 %v2595_v62, %v2594_v59 }
 0xeb3   :  { %8485 = vmatpush3.bf16.msra.mxu0 %v2605_v42  ;;  %v8510_v48 = vpop.f32.mrf.mxu1 }
 0xeb4   :  { %8486 = vmatprep.subr.bf16.mxu0 %v2604_v28 }
 0xeb5   :  { %v2840_v10 = vpop.f32.mrf.mxu1 }
 0xeb6   :  { %2885 = vxpose.xlu1.b32.end [2/2] (short) %v2840_v10, 128 }
 0xeb7   :  { %8487 = vmatpush3.bf16.msra.mxu0 %v2604_v28  ;;  %v8511_v21 = vpop.f32.mrf.mxu1 }
 0xeb8   :  { %8488 = vmatprep.subr.bf16.mxu0 %v2603_v5 }
 0xeb9   :  { %v2845_v8 = vpop.f32.mrf.mxu1 }
 0xeba   :  { %v11070_v61 = vadd.f32 %v2845_v8, %v10981_v41 }
 0xebb   :  { %8489 = vmatpush3.bf16.msra.mxu0 %v2603_v5  ;;  %v8514_v60 = vpop.f32.mrf.mxu1 }
 0xebc   :  { %8490 = vmatprep.subr.bf16.mxu0 %v2602_v31 }
 0xebd   :  { %v2848_v3 = vpop.f32.mrf.mxu1 }
 0xebe   :  { %v11073_v33 = vadd.f32 %v2848_v3, %v13384_v6 }
 0xebf   :  { %8491 = vmatpush3.bf16.msra.mxu0 %v2602_v31  ;;  %v8515_v20 = vpop.f32.mrf.mxu1 }
 0xec0   :  { %v3292_v34 = vpack.c.bf16 %v11073_v33, %v11070_v61  ;;  %8528 = vmatprep.subr.mxu0 %v2840_v10 }
 0xec1   :  { %v2853_v41 = vpop.f32.mrf.mxu1 }
 0xec2   :  { %8493 = vmatmul.mubr.msk.bf16.vlgmr.msra.gmra.mxu0 %vm124_vm1, %v11078_v0  ;;  %v11092_v24 = vadd.f32 %v2853_v41, %v10998_v55 }
 0xec3   :  { %v8518_v47 = vpop.f32.mrf.mxu1  ;;  %8529 = vmatpush3.msra.mxu0 %v2840_v10  ;;  %8496 = vmatprep.mubr.msk.bf16.mxu0 %vm124_vm1, %v11083_v63 }
 0xec4   :  { %8530 = vmatprep.subr.mxu0 %v2837_v43 }
 0xec5   :  { %v2856_v45 = vpop.f32.mrf.mxu1  ;;  %8531 = vmatpush3.msra.mxu0 %v2837_v43 }
 0xec6   :  { %v11095_v2 = vadd.f32 %v2856_v45, %v11000_v32 }
 0xec7   :  { %v8519_v52 = vpop.f32.mrf.mxu1 }
 0xec8   :  { %v3293_v50 = vpack.c.bf16 %v11095_v2, %v11092_v24  ;;  %v11398_v24 = vld [vmem:[#allocation2 + $0x130] sm:$0xff] }
 0xec9   :  { %v2861_v37 = vpop.f32.mrf.mxu1 }
 0xeca   :  { %8497 = vmatmul.mubr.msk.bf16.gmra.mxu0 %vm124_vm1, %v11100_v15  ;;  %v11107_v55 = vadd.f32 %v2861_v37, %v11004_v27 }
 0xecb   :  { %v8522_v22 = vpop.f32.mrf.mxu1 }
 0xecd   :  { %v2864_v35 = vpop.f32.mrf.mxu1 }
 0xece   :  { %v11110_v32 = vadd.f32 %v2864_v35, %v11006_v57 }
 0xecf   :  { %v8523_v29 = vpop.f32.mrf.mxu1 }
 0xed0   :  { %v3294_v56 = vpack.c.bf16 %v11110_v32, %v11107_v55 }
 0xed1   :  { %v2869_v11 = vpop.f32.mrf.mxu1 }
 0xed2   :  { %v11115_v4 = vadd.f32 %v2869_v11, %v11017_v23 }
 0xed3   :  { %v8526_v12 = vpop.f32.mrf.mxu1 }
 0xed5   :  { %v2872_v7 = vpop.f32.mrf.mxu1 }
 0xed6   :  { %v11118_v49 = vadd.f32 %v2872_v7, %v11019_v16 }
 0xed7   :  { %v8527_v40 = vpop.f32.mrf.mxu1 }
 0xed8   :  { %v3295_v27 = vpack.c.bf16 %v11118_v49, %v11115_v4 }
 0xf2e   :  { %v2900_v18 = vpop.trf.xlu1 }
 0xf2f   :  { %8532 = vmatprep.mubr.msk.f32.mxu0 %vm293_vm2, %v2900_v18 }
 0xf32   :  { %v2901_v57 = vpop.trf.xlu1 }
 0xf33   :  { %8533 = vmatmul.mubr.msk.f32.vlgmr.msra.gmra.mxu0 %vm293_vm2, %v2901_v57 }
 0xf36   :  { %v2902_v9 = vpop.trf.xlu1 }
 0xf37   :  { %8535 = vmatprep.mubr.msk.f32.mxu0 %vm293_vm2, %v2902_v9 }
 0xf3a   :  { %v2903_v36 = vpop.trf.xlu1 }
 0xf3b   :  { %8536 = vmatmul.mubr.msk.f32.gmra.mxu0 %vm293_vm2, %v2903_v36 }
 0xf3e   :  { %v2904_v23 = vpop.trf.xlu1 }
 0xf3f   :  { %8538 = vmatprep.mubr.msk.f32.mxu0 %vm293_vm2, %v2904_v23 }
 0xf42   :  { %v2905_v16 = vpop.trf.xlu1 }
 0xf43   :  { %8539 = vmatmul.mubr.msk.f32.gmra.mxu0 %vm293_vm2, %v2905_v16 }
 0xf46   :  { %v2906_v26 = vpop.trf.xlu1 }
 0xf47   :  { %8541 = vmatprep.mubr.msk.f32.mxu0 %vm293_vm2, %v2906_v26 }
 0xf4a   :  { %v2907_v39 = vpop.trf.xlu1 }
 0xf4b   :  { %8542 = vmatmul.mubr.msk.f32.gmra.mxu0 %vm293_vm2, %v2907_v39 }
 0xf4e   :  { %v2908_v38 = vpop.trf.xlu1 }
 0xf4f   :  { %8544 = vmatprep.mubr.msk.f32.mxu0 %vm293_vm2, %v2908_v38 }
 0xf52   :  { %v2909_v1 = vpop.trf.xlu1 }
 0xf53   :  { %8545 = vmatmul.mubr.msk.f32.gmra.mxu0 %vm293_vm2, %v2909_v1 }
 0xf56   :  { %v2910_v19 = vpop.trf.xlu1 }
 0xf57   :  { %8547 = vmatprep.mubr.msk.f32.mxu0 %vm293_vm2, %v2910_v19 }
 0xf5a   :  { %v2911_v53 = vpop.trf.xlu1 }
 0xf5b   :  { %8548 = vmatmul.mubr.msk.f32.gmra.mxu0 %vm293_vm2, %v2911_v53 }
 0xf5e   :  { %v2912_v54 = vpop.trf.xlu1 }
 0xf5f   :  { %8550 = vmatprep.mubr.msk.f32.mxu0 %vm293_vm2, %v2912_v54 }
 0xf62   :  { %v2913_v14 = vpop.trf.xlu1 }
 0xf63   :  { %8551 = vmatmul.mubr.msk.f32.gmra.mxu0 %vm293_vm2, %v2913_v14 }
 0xf66   :  { %v2914_v17 = vpop.trf.xlu1 }
 0xf67   :  { %8553 = vmatprep.mubr.msk.f32.mxu0 %vm293_vm2, %v2914_v17 }
 0xf6a   :  { %v2915_v51 = vpop.trf.xlu1 }
 0xf6b   :  { %8554 = vmatmul.mubr.msk.f32.gmra.mxu0 %vm293_vm2, %v2915_v51 }
 0xf6c   :  { %8572 = vmatprep.mubr.bf16.mxu0 %v3292_v34 }
 0xf82   :  { %v11138_v25 = vpop.f32.mrf.mxu0 }
 0xf84   :  { %v11140_v46 = vpop.f32.mrf.mxu0 }
 0xf86   :  { %v11142_v42 = vpop.f32.mrf.mxu0 }
 0xf88   :  { %v11144_v13 = vpop.f32.mrf.mxu0 }
 0xf8a   :  { %v11146_v43 = vpop.f32.mrf.mxu0 }
 0xf8c   :  { %v11148_v30 = vpop.f32.mrf.mxu0 }
 0xf8e   :  { %v11150_v28 = vpop.f32.mrf.mxu0 }
 0xf90   :  { %v11152_v48 = vpop.f32.mrf.mxu0 }
 0xff3   :  { %v8534_v44 = vpop.f32.mrf.mxu0 }
 0xff4   :  { %3111 = vmax.xlane.f32.xlu0 %v8534_v44 }
 0xff5   :  { %v3030_v10 = vpop.f32.mrf.mxu0 }
 0xff8   :  { %3109 = vmax.xlane.f32.xlu0 %v3030_v10 }
 0xffb   :  { %v8537_v5 = vpop.f32.mrf.mxu0 }
 0xffc   :  { %3115 = vmax.xlane.f32.xlu0 %v8537_v5 }
 0xffd   :  { %v3040_v62 = vpop.f32.mrf.mxu0 }
0x1000   :  { %3113 = vmax.xlane.f32.xlu0 %v3040_v62 }
0x1003   :  { %v8540_v21 = vpop.f32.mrf.mxu0 }
0x1004   :  { %3119 = vmax.xlane.f32.xlu0 %v8540_v21 }
0x1005   :  { %v3050_v59 = vpop.f32.mrf.mxu0 }
0x1006   :  { %3117 = vmax.xlane.f32.xlu1 %v3050_v59 }
0x100b   :  { %v8543_v8 = vpop.f32.mrf.mxu0 }
0x100c   :  { %3123 = vmax.xlane.f32.xlu0 %v8543_v8 }
0x100d   :  { %v3060_v31 = vpop.f32.mrf.mxu0 }
0x1010   :  { %3121 = vmax.xlane.f32.xlu0 %v3060_v31 }
0x1013   :  { %v8546_v60 = vpop.f32.mrf.mxu0 }
0x1014   :  { %3127 = vmax.xlane.f32.xlu0 %v8546_v60 }
0x1015   :  { %v11154_v3 = vpop.f32.mrf.mxu0 }
0x1018   :  { %3125 = vmax.xlane.f32.xlu0 %v11154_v3 }
0x101b   :  { %v11157_v61 = vpop.f32.mrf.mxu0 }
0x101c   :  { %3131 = vmax.xlane.f32.xlu0 %v11157_v61 }
0x101d   :  { %v11160_v6 = vpop.f32.mrf.mxu0 }
0x1020   :  { %3129 = vmax.xlane.f32.xlu0 %v11160_v6 }
0x1023   :  { %v11163_v33 = vpop.f32.mrf.mxu0 }
0x1024   :  { %3135 = vmax.xlane.f32.xlu0 %v11163_v33 }
0x1025   :  { %v11166_v20 = vpop.f32.mrf.mxu0 }
0x1028   :  { %3133 = vmax.xlane.f32.xlu0 %v11166_v20 }
0x102b   :  { %v11169_v34 = vpop.f32.mrf.mxu0 }
0x102d   :  { %v11171_v41 = vpop.f32.mrf.mxu0 }
0x102e   :  { %3137 = vmax.xlane.f32.xlu0 %v11171_v41 }
0x1032   :  { %3139 = vmax.xlane.f32.xlu0 %v11169_v34 }
0x107d   :  { %v3112_v47 = vpop.xlane.xlu0 %3111 }
0x107e   :  { %v3142_v45 = vsub.f32 %v8534_v44, %v3112_v47 }
0x1080   :  { %v3159_v52 = vmul.f32 1.442695, %v3142_v45 }
0x1081   :  { %v3110_v37 = vpop.xlane.xlu0 %3109 }
0x1082   :  { %9238 = vpow2.f32 %v3159_v52  ;;  %v3141_v22 = vsub.f32 %v3030_v10, %v3110_v37 }
0x1084   :  { %v3157_v35 = vmul.f32 1.442695, %v3141_v22 }
0x1085   :  { %v3116_v29 = vpop.xlane.xlu0 %3115 }
0x1086   :  { %9240 = vpow2.f32 %v3157_v35  ;;  %v3144_v11 = vsub.f32 %v8537_v5, %v3116_v29 }
0x1088   :  { %v3163_v12 = vmul.f32 1.442695, %v3144_v11 }
0x1089   :  { %v3114_v7 = vpop.xlane.xlu0 %3113 }
0x108a   :  { %9242 = vpow2.f32 %v3163_v12  ;;  %v3143_v40 = vsub.f32 %v3040_v62, %v3114_v7 }
0x108c   :  { %v3161_v18 = vmul.f32 1.442695, %v3143_v40 }
0x108d   :  { %v3120_v57 = vpop.xlane.xlu0 %3119 }
0x108e   :  { %9244 = vpow2.f32 %v3161_v18  ;;  %v3146_v9 = vsub.f32 %v8540_v21, %v3120_v57 }
0x108f   :  { %v11175_v36 = vpop.eup %9238  ;;  %v3118_v23 = vpop.xlane.xlu1 %3117 }
0x1090   :  { %v3167_v16 = vmul.f32 1.442695, %v3146_v9  ;;  %v3145_v26 = vsub.f32 %v3050_v59, %v3118_v23  ;;  %3191 = vadd.xlane.f32.xlu0 %v11175_v36 }
0x1092   :  { %9246 = vpow2.f32 %v3167_v16  ;;  %v3165_v39 = vmul.f32 1.442695, %v3145_v26 }
0x1093   :  { %v11178_v38 = vpop.eup %9240 }
0x1094   :  { %3189 = vadd.xlane.f32.xlu0 %v11178_v38  ;;  %9248 = vpow2.f32 %v3165_v39 }
0x1095   :  { %v3124_v1 = vpop.xlane.xlu0 %3123 }
0x1096   :  { %v3148_v19 = vsub.f32 %v8543_v8, %v3124_v1 }
0x1097   :  { %v11181_v53 = vpop.eup %9242 }
0x1098   :  { %v3171_v54 = vmul.f32 1.442695, %v3148_v19  ;;  %3195 = vadd.xlane.f32.xlu0 %v11181_v53 }
0x1099   :  { %v3122_v14 = vpop.xlane.xlu0 %3121 }
0x109a   :  { %9250 = vpow2.f32 %v3171_v54  ;;  %v3147_v17 = vsub.f32 %v3060_v31, %v3122_v14 }
0x109b   :  { %v11184_v51 = vpop.eup %9244 }
0x109c   :  { %v3169_v44 = vmul.f32 1.442695, %v3147_v17  ;;  %3193 = vadd.xlane.f32.xlu0 %v11184_v51  ;;  %v7541_v17 = vld [vmem:[%s13371_s4 + $0x70] sm:$0xff] }
0x109d   :  { %v3128_v10 = vpop.xlane.xlu0 %3127 }
0x109e   :  { %9252 = vpow2.f32 %v3169_v44  ;;  %v3150_v5 = vsub.f32 %v8546_v60, %v3128_v10  ;;  %v7539_v44 = vld [vmem:[%s13371_s4 + $0x60] sm:$0xff]  ;;  %v7540_v10 = vld [vmem:[%s13371_s4 + $0x68] sm:$0xff] }
0x109f   :  { %v11187_v62 = vpop.eup %9246 }
0x10a0   :  { %v3175_v21 = vmul.f32 1.442695, %v3150_v5  ;;  %3199 = vadd.xlane.f32.xlu0 %v11187_v62  ;;  %v7537_v5 = vld [vmem:[%s13371_s4 + $0x50] sm:$0xff] }
0x10a1   :  { %v3126_v59 = vpop.xlane.xlu0 %3125  ;;  %v11191_v47 = vpop.eup %9248 }
0x10a2   :  { %9254 = vpow2.f32 %v3175_v21  ;;  %v3149_v8 = vsub.f32 %v11154_v3, %v3126_v59  ;;  %v7538_v21 = vld [vmem:[%s13371_s4 + $0x58] sm:$0xff]  ;;  %v7535_v59 = vld [vmem:[%s13371_s4 + $0x40] sm:$0xff] }
0x10a4   :  { %v3173_v31 = vmul.f32 1.442695, %v3149_v8  ;;  %3197 = vadd.xlane.f32.xlu0 %v11191_v47  ;;  %v7536_v8 = vld [vmem:[%s13371_s4 + $0x48] sm:$0xff] }
0x10a5   :  { %v3132_v45 = vpop.xlane.xlu0 %3131 }
0x10a6   :  { %9256 = vpow2.f32 %v3173_v31  ;;  %v3152_v52 = vsub.f32 %v11157_v61, %v3132_v45 }
0x10a7   :  { %v11195_v37 = vpop.eup %9250 }
0x10a8   :  { %v3179_v60 = vmul.f32 1.442695, %v3152_v52  ;;  %3203 = vadd.xlane.f32.xlu0 %v11195_v37 }
0x10a9   :  { %v3130_v22 = vpop.xlane.xlu0 %3129 }
0x10aa   :  { %9258 = vpow2.f32 %v3179_v60  ;;  %v3151_v35 = vsub.f32 %v11160_v6, %v3130_v22 }
0x10ab   :  { %v11199_v29 = vpop.eup %9252 }
0x10ac   :  { %v3177_v3 = vmul.f32 1.442695, %v3151_v35  ;;  %3201 = vadd.xlane.f32.xlu0 %v11199_v29 }
0x10ad   :  { %v3136_v11 = vpop.xlane.xlu0 %3135 }
0x10ae   :  { %9260 = vpow2.f32 %v3177_v3  ;;  %v3154_v12 = vsub.f32 %v11163_v33, %v3136_v11 }
0x10af   :  { %v11203_v7 = vpop.eup %9254 }
0x10b0   :  { %v3183_v61 = vmul.f32 1.442695, %v3154_v12  ;;  %3207 = vadd.xlane.f32.xlu0 %v11203_v7 }
0x10b1   :  { %v3134_v40 = vpop.xlane.xlu0 %3133 }
0x10b2   :  { %9262 = vpow2.f32 %v3183_v61  ;;  %v3153_v18 = vsub.f32 %v11166_v20, %v3134_v40 }
0x10b3   :  { %v11207_v57 = vpop.eup %9256 }
0x10b4   :  { %v3181_v6 = vmul.f32 1.442695, %v3153_v18  ;;  %3205 = vadd.xlane.f32.xlu0 %v11207_v57 }
0x10b6   :  { %9264 = vpow2.f32 %v3181_v6 }
0x10b7   :  { %v11210_v9 = vpop.eup %9258  ;;  %v3138_v23 = vpop.xlane.xlu0 %3137 }
0x10b8   :  { %v3155_v33 = vsub.f32 %v11171_v41, %v3138_v23  ;;  %3211 = vadd.xlane.f32.xlu0 %v11210_v9 }
0x10ba   :  { %v3185_v16 = vmul.f32 1.442695, %v3155_v33 }
0x10bb   :  { %v11214_v26 = vpop.eup %9260  ;;  %v3140_v39 = vpop.xlane.xlu0 %3139 }
0x10bc   :  { %9266 = vpow2.f32 %v3185_v16  ;;  %v3156_v20 = vsub.f32 %v11169_v34, %v3140_v39  ;;  %3209 = vadd.xlane.f32.xlu0 %v11214_v26  ;;  %v7542_v34 = vld [vmem:[%s13371_s4 + $0x78] sm:$0xff] }
0x10be   :  { %v3187_v1 = vmul.f32 1.442695, %v3156_v20 }
0x10bf   :  { %v11218_v19 = vpop.eup %9262 }
0x10c0   :  { %9268 = vpow2.f32 %v3187_v1  ;;  %3215 = vadd.xlane.f32.xlu1 %v11218_v19 }
0x10c3   :  { %v11221_v54 = vpop.eup %9264 }
0x10c4   :  { %3213 = vadd.xlane.f32.xlu0 %v11221_v54 }
0x10c9   :  { %v11224_v41 = vpop.eup %9266 }
0x10ca   :  { %3217 = vadd.xlane.f32.xlu0 %v11224_v41 }
0x10cd   :  { %v11227_v14 = vpop.eup %9268 }
0x10ce   :  { %3219 = vadd.xlane.f32.xlu1 %v11227_v14 }
0x10df   :  { %2643 = vperm.xlu1 %8986, %v7542_v34  }
0x10e0   :  { %2638 = vperm.xlu0 %8987, %v7541_v17  }
0x10e3   :  { %2628 = vperm.xlu1 %8986, %v7539_v44  }
0x10e4   :  { %2633 = vperm.xlu0 %8987, %v7540_v10  }
0x10e7   :  { %2618 = vperm.xlu1 %8986, %v7537_v5  }
0x10e8   :  { %2623 = vperm.xlu0 %8987, %v7538_v21  }
0x10eb   :  { %2608 = vperm.xlu1 %8986, %v7535_v59  }
0x10ec   :  { %2613 = vperm.xlu0 %8987, %v7536_v8  }
0x1119   :  { %v3192_v31 = vpop.xlane.xlu0 %3191 }
0x111d   :  { %v3190_v45 = vpop.xlane.xlu0 %3189 }
0x111e   :  { %9270 = vrcp.f32 %v3190_v45 }
0x111f   :  { %9272 = vrcp.f32 %v3192_v31 }
0x1121   :  { %v3196_v52 = vpop.xlane.xlu0 %3195 }
0x1125   :  { %v3194_v60 = vpop.xlane.xlu0 %3193 }
0x1126   :  { %9274 = vrcp.f32 %v3194_v60 }
0x1127   :  { %9276 = vrcp.f32 %v3196_v52 }
0x1129   :  { %v3200_v22 = vpop.xlane.xlu0 %3199 }
0x112b   :  { %v9271_v12 = vpop.eup %9270 }
0x112c   :  { %v9273_v40 = vpop.eup %9272  ;;  %v11255_v6 = vmul.f32 %v9271_v12, %v11178_v38 }
0x112d   :  { %v3198_v35 = vpop.xlane.xlu0 %3197  ;;  %v11258_v33 = vmul.f32 %v9273_v40, %v11175_v36 }
0x112e   :  { %9278 = vrcp.f32 %v3198_v35 }
0x112f   :  { %9280 = vrcp.f32 %v3200_v22  ;;  %v3253_v20 = vadd.f32 %v11258_v33, %v11255_v6 }
0x1131   :  { %v3204_v3 = vpop.xlane.xlu0 %3203 }
0x1133   :  { %v9275_v18 = vpop.eup %9274 }
0x1134   :  { %v11261_v16 = vmul.f32 %v9275_v18, %v11184_v51  ;;  %v9277_v39 = vpop.eup %9276 }
0x1135   :  { %v3202_v11 = vpop.xlane.xlu0 %3201  ;;  %v11267_v38 = vmul.f32 %v9277_v39, %v11181_v53 }
0x1136   :  { %9282 = vrcp.f32 %v3202_v11  ;;  %v3254_v17 = vadd.f32 %v3253_v20, %v11261_v16 }
0x1137   :  { %9284 = vrcp.f32 %v3204_v3 }
0x1138   :  { %v3255_v10 = vadd.f32 %v3254_v17, %v11267_v38 }
0x1139   :  { %v3208_v61 = vpop.xlane.xlu0 %3207 }
0x113b   :  { %v9279_v1 = vpop.eup %9278 }
0x113c   :  { %v11270_v44 = vmul.f32 %v9279_v1, %v11191_v47  ;;  %v9281_v51 = vpop.eup %9280 }
0x113d   :  { %v3206_v23 = vpop.xlane.xlu0 %3205  ;;  %v11275_v59 = vmul.f32 %v9281_v51, %v11187_v62 }
0x113e   :  { %9286 = vrcp.f32 %v3206_v23  ;;  %v3256_v21 = vadd.f32 %v3255_v10, %v11270_v44 }
0x113f   :  { %9288 = vrcp.f32 %v3208_v61 }
0x1140   :  { %v3257_v31 = vadd.f32 %v3256_v21, %v11275_v59 }
0x1141   :  { %v3212_v34 = vpop.xlane.xlu0 %3211 }
0x1143   :  { %v9283_v5 = vpop.eup %9282 }
0x1144   :  { %v11278_v8 = vmul.f32 %v9283_v5, %v11199_v29  ;;  %v9285_v53 = vpop.eup %9284 }
0x1145   :  { %v3210_v36 = vpop.xlane.xlu0 %3209  ;;  %v11283_v22 = vmul.f32 %v9285_v53, %v11195_v37 }
0x1146   :  { %9290 = vrcp.f32 %v3210_v36  ;;  %v3258_v52 = vadd.f32 %v3257_v31, %v11278_v8 }
0x1147   :  { %9292 = vrcp.f32 %v3212_v34 }
0x1148   :  { %v3259_v29 = vadd.f32 %v3258_v52, %v11283_v22 }
0x1149   :  { %v3216_v60 = vpop.xlane.xlu1 %3215 }
0x114b   :  { %v9287_v47 = vpop.eup %9286 }
0x114c   :  { %v11286_v35 = vmul.f32 %v9287_v47, %v11207_v57  ;;  %v9289_v62 = vpop.eup %9288 }
0x114d   :  { %v3214_v45 = vpop.xlane.xlu0 %3213  ;;  %v11291_v61 = vmul.f32 %v9289_v62, %v11203_v7 }
0x114e   :  { %9294 = vrcp.f32 %v3214_v45  ;;  %v3260_v12 = vadd.f32 %v3259_v29, %v11286_v35 }
0x114f   :  { %9296 = vrcp.f32 %v3216_v60 }
0x1150   :  { %v3261_v18 = vadd.f32 %v3260_v12, %v11291_v61 }
0x1153   :  { %v9291_v3 = vpop.eup %9290  ;;  %v3218_v11 = vpop.xlane.xlu0 %3217 }
0x1154   :  { %9298 = vrcp.f32 %v3218_v11  ;;  %v11294_v40 = vmul.f32 %v9291_v3, %v11214_v26  ;;  %v9293_v57 = vpop.eup %9292 }
0x1155   :  { %v11303_v34 = vmul.f32 %v9293_v57, %v11210_v9 }
0x1156   :  { %v3262_v23 = vadd.f32 %v3261_v18, %v11294_v40 }
0x1157   :  { %v3220_v37 = vpop.xlane.xlu1 %3219 }
0x1158   :  { %9300 = vrcp.f32 %v3220_v37  ;;  %v3263_v36 = vadd.f32 %v3262_v23, %v11303_v34 }
0x115b   :  { %v9295_v39 = vpop.eup %9294  ;;  %v11298_v20 = vpop.permute.xlu1 %2643 }
0x115c   :  { %v11300_v1 = vpop.permute.xlu0 %2638  ;;  %v3249_v7 = vmul.f32 %v9295_v39, %v11221_v54  ;;  %v11308_v26 = vadd.f32 %v11150_v28, %v11298_v20  ;;  %v9297_v51 = vpop.eup %9296 }
0x115d   :  { %v11312_v17 = vadd.f32 %v11146_v43, %v11300_v1  ;;  %v3250_v43 = vmul.f32 %v9297_v51, %v11218_v19 }
0x115e   :  { %2757 = vadd.xlane.f32.xlu0 %v11308_v26  ;;  %v2774_v9 = vmul.f32 %v11308_v26, %v11308_v26  ;;  %v3264_v10 = vadd.f32 %v3263_v36, %v3249_v7 }
0x115f   :  { %2755 = vadd.xlane.f32.xlu1 %v11312_v17  ;;  %v2773_v54 = vmul.f32 %v11312_v17, %v11312_v17  ;;  %v11321_v5 = vpop.permute.xlu1 %2628 }
0x1160   :  { %v11323_v21 = vpop.permute.xlu0 %2633  ;;  %v11329_v31 = vadd.f32 %v11148_v30, %v11321_v5  ;;  %v3265_v45 = vadd.f32 %v3264_v10, %v3250_v43 }
0x1161   :  { %v9299_v28 = vpop.eup %9298  ;;  %v11333_v47 = vadd.f32 %v11152_v48, %v11323_v21 }
0x1162   :  { %2787 = vadd.xlane.f32.xlu0 %v2773_v54  ;;  %v3251_v53 = vmul.f32 %v9299_v28, %v11224_v41  ;;  %v2771_v19 = vmul.f32 %v11329_v31, %v11329_v31 }
0x1163   :  { %2789 = vadd.xlane.f32.xlu1 %v2774_v9  ;;  %v2772_v30 = vmul.f32 %v11333_v47, %v11333_v47  ;;  %v11342_v29 = vpop.permute.xlu1 %2618 }
0x1164   :  { %v3266_v62 = vadd.f32 %v3265_v45, %v3251_v53  ;;  %v11344_v48 = vpop.permute.xlu0 %2623  ;;  %v11348_v11 = vadd.f32 %v11138_v25, %v11342_v29 }
0x1165   :  { %v9301_v52 = vpop.eup %9300 }
0x1166   :  { %2751 = vadd.xlane.f32.xlu0 %v11329_v31  ;;  %v3252_v60 = vmul.f32 %v9301_v52, %v11227_v14  ;;  %v11352_v14 = vadd.f32 %v11142_v42, %v11344_v48  ;;  %v2769_v18 = vmul.f32 %v11348_v11, %v11348_v11 }
0x1167   :  { %2753 = vadd.xlane.f32.xlu1 %v11333_v47  ;;  %v11360_v39 = vpop.permute.xlu1 %2608 }
0x1168   :  { %v3267_v41 = vadd.f32 %v3266_v62, %v3252_v60  ;;  %v2770_v57 = vmul.f32 %v11352_v14, %v11352_v14  ;;  %v11362_v25 = vpop.permute.xlu0 %2613  ;;  %v11366_v36 = vadd.f32 %v11140_v46, %v11360_v39 }
0x1169   :  { %v11370_v51 = vadd.f32 %v11144_v13, %v11362_v25 }
0x116a   :  { %2783 = vadd.xlane.f32.xlu0 %v2771_v19  ;;  %v3268_v3 = vrot.slane %v3267_v41, 4 }
0x116b   :  { %2785 = vadd.xlane.f32.xlu1 %v2772_v30 }
0x116c   :  { %v3269_v12 = vadd.f32 %v3268_v3, %v3267_v41 }
0x116e   :  { %2747 = vadd.xlane.f32.xlu0 %v11348_v11  ;;  %v3270_v37 = vrot.slane %v3269_v12, 2 }
0x116f   :  { %2749 = vadd.xlane.f32.xlu1 %v11352_v14 }
0x1170   :  { %v3271_v23 = vadd.f32 %v3270_v37, %v3269_v12 }
0x1172   :  { %2779 = vadd.xlane.f32.xlu0 %v2769_v18  ;;  %v3272_v42 = vrot.slane %v3271_v23, 1 }
0x1173   :  { %2781 = vadd.xlane.f32.xlu1 %v2770_v57 }
0x1174   :  { %v3273_v9 = vadd.f32 %v3272_v42, %v3271_v23 }
0x1176   :  { %2743 = vadd.xlane.f32.xlu0 %v11366_v36  ;;  %v3274_v54 = vadd.f32 1e-09, %v3273_v9  ;;  %v11410_v9 = vld [vmem:[#allocation2 + $0x118] sm:$0xff] }
0x1177   :  { %2745 = vadd.xlane.f32.xlu1 %v11370_v51 }
0x1178   :  { %9302 = vrcp.f32 %v3274_v54 }
0x1185   :  { %v9303_v10 = vpop.eup %9302 }
0x1186   :  { %v3290_v28 = vmul.f32 %v9303_v10, %v3251_v53  ;;  %v3291_v45 = vmul.f32 %v9303_v10, %v3252_v60  ;;  %v3288_v52 = vmul.f32 %v9303_v10, %v3249_v7  ;;  %v3289_v62 = vmul.f32 %v9303_v10, %v3250_v43 }
0x1187   :  { %v3286_v30 = vmul.f32 %v9303_v10, %v11294_v40  ;;  %v3287_v13 = vmul.f32 %v9303_v10, %v11303_v34  ;;  %v3284_v3 = vmul.f32 %v9303_v10, %v11286_v35  ;;  %v3285_v12 = vmul.f32 %v9303_v10, %v11291_v61 }
0x1188   :  { %v3303_v19 = vpack.c.bf16 %v3291_v45, %v3290_v28  ;;  %v3302_v46 = vpack.c.bf16 %v3289_v62, %v3288_v52  ;;  %v3282_v7 = vmul.f32 %v9303_v10, %v11278_v8  ;;  %v3283_v43 = vmul.f32 %v9303_v10, %v11283_v22  ;;  %v11413_v28 = vld [vmem:[#allocation2 + $0x110] sm:$0xff]  ;;  %v11416_v62 = vld [vmem:[#allocation2 + $0x108] sm:$0xff] }
0x1189   :  { %v3301_v41 = vpack.c.bf16 %v3287_v13, %v3286_v30  ;;  %v3300_v53 = vpack.c.bf16 %v3285_v12, %v3284_v3  ;;  %v3280_v40 = vmul.f32 %v9303_v10, %v11270_v44  ;;  %v3281_v34 = vmul.f32 %v9303_v10, %v11275_v59 }
0x118a   :  { %8556 = vmatprep.subr.bf16.mxu0 %v3303_v19  ;;  %v3299_v60 = vpack.c.bf16 %v3283_v43, %v3282_v7  ;;  %v3278_v35 = vmul.f32 %v9303_v10, %v11261_v16  ;;  %v3279_v61 = vmul.f32 %v9303_v10, %v11267_v38  ;;  %v3276_v8 = vmul.f32 %v9303_v10, %v11255_v6 }
0x118b   :  { %8557 = vmatpush3.bf16.msra.mxu0 %v3303_v19  ;;  %v3298_v37 = vpack.c.bf16 %v3281_v34, %v3280_v40  ;;  %v3277_v22 = vmul.f32 %v9303_v10, %v11258_v33 }
0x118c   :  { %8558 = vmatprep.subr.bf16.mxu0 %v3302_v46  ;;  %v3297_v18 = vpack.c.bf16 %v3279_v61, %v3278_v35 }
0x118d   :  { %v3296_v57 = vpack.c.bf16 %v3277_v22, %v3276_v8  ;;  %v2768_v8 = vmul.f32 %v11370_v51, %v11370_v51 }
0x118f   :  { %8559 = vmatpush3.bf16.msra.mxu0 %v3302_v46  ;;  %v11419_v46 = vld [vmem:[#allocation2 + $0x100] sm:$0xff] }
0x1190   :  { %8560 = vmatprep.subr.bf16.mxu0 %v3301_v41 }
0x1193   :  { %8561 = vmatpush3.bf16.msra.mxu0 %v3301_v41 }
0x1194   :  { %8562 = vmatprep.subr.bf16.mxu0 %v3300_v53 }
0x1197   :  { %8563 = vmatpush3.bf16.msra.mxu0 %v3300_v53 }
0x1198   :  { %8564 = vmatprep.subr.bf16.mxu0 %v3299_v60 }
0x119b   :  { %8565 = vmatpush3.bf16.msra.mxu0 %v3299_v60 }
0x119c   :  { %8566 = vmatprep.subr.bf16.mxu0 %v3298_v37 }
0x119f   :  { %8567 = vmatpush3.bf16.msra.mxu0 %v3298_v37 }
0x11a0   :  { %8568 = vmatprep.subr.bf16.mxu0 %v3297_v18 }
0x11a3   :  { %8569 = vmatpush3.bf16.msra.mxu0 %v3297_v18  ;;  %v2767_v18 = vmul.f32 %v11366_v36, %v11366_v36 }
0x11a4   :  { %8570 = vmatprep.subr.bf16.mxu0 %v3296_v57 }
0x11a7   :  { %8571 = vmatpush3.bf16.msra.mxu0 %v3296_v57 }
0x11a8   :  { %8596 = vmatprep.subr.bf16.mxu0 %v13383_v58 }
0x11aa   :  { %8573 = vmatmul.mubr.bf16.vlgmr.msra.gmra.mxu0 %v3293_v50  ;;  %v11401_v50 = vld [vmem:[#allocation2 + $0x138] sm:$0xff] }
0x11ab   :  { %8576 = vmatprep.mubr.bf16.mxu0 %v3294_v56  ;;  %v11404_v56 = vld [vmem:[#allocation2 + $0x120] sm:$0xff] }
0x11b2   :  { %8577 = vmatmul.mubr.bf16.gmra.mxu0 %v3295_v27  ;;  %v11407_v27 = vld [vmem:[#allocation2 + $0x128] sm:$0xff] }
0x11b3   :  { %8604 = vmatprep.mubr.msk.bf16.mxu0 %vm9711_vm0, %v13383_v58 }
0x11e7   :  { %v2758_v57 = vpop.xlane.xlu0 %2757 }
0x126a   :  { %v8574_v6 = vpop.f32.mrf.mxu0 }
0x126b   :  { %v3371_v45 = vsub.f32 %v11413_v28, %v8574_v6  ;;  %v2756_v6 = vpop.xlane.xlu1 %2755 }
0x126c   :  { %v3338_v33 = vpop.f32.mrf.mxu0 }
0x126d   :  { %v3369_v30 = vsub.f32 %v11419_v46, %v3338_v33  ;;  %v2788_v33 = vpop.xlane.xlu0 %2787 }
0x126e   :  { %v8575_v16 = vpop.f32.mrf.mxu0 }
0x126f   :  { %v3372_v54 = vsub.f32 %v11410_v9, %v8575_v16  ;;  %v2790_v16 = vpop.xlane.xlu1 %2789 }
0x1270   :  { %v3341_v38 = vpop.f32.mrf.mxu0 }
0x1271   :  { %v3378_v52 = vpack.c.bf16 %v3372_v54, %v3371_v45  ;;  %v3370_v19 = vsub.f32 %v11416_v62, %v3341_v38  ;;  %v2752_v38 = vpop.xlane.xlu0 %2751 }
0x1272   :  { %v8578_v44 = vpop.f32.mrf.mxu0 }
0x1273   :  { %v3375_v2 = vsub.f32 %v11398_v24, %v8578_v44  ;;  %v3377_v13 = vpack.c.bf16 %v3370_v19, %v3369_v30  ;;  %v2754_v44 = vpop.xlane.xlu1 %2753 }
0x1274   :  { %v3354_v59 = vpop.f32.mrf.mxu0 }
0x1275   :  { %v3373_v4 = vsub.f32 %v11404_v56, %v3354_v59  ;;  %v2784_v59 = vpop.xlane.xlu0 %2783 }
0x1276   :  { %v8579_v23 = vpop.f32.mrf.mxu0 }
0x1277   :  { %v3376_v55 = vsub.f32 %v11401_v50, %v8579_v23  ;;  %v11480_v23 = vpop.xlane.xlu1 %2785 }
0x1278   :  { %v3357_v32 = vpop.f32.mrf.mxu0 }
0x1279   :  { %v3380_v49 = vpack.c.bf16 %v3376_v55, %v3375_v2  ;;  %v3374_v42 = vsub.f32 %v11407_v27, %v3357_v32  ;;  %v2748_v2 = vpop.xlane.xlu0 %2747 }
0x127b   :  { %v3379_v10 = vpack.c.bf16 %v3374_v42, %v3373_v4  ;;  %8580 = vmatprep.subr.bf16.mxu1 %v3380_v49  ;;  %v2750_v55 = vpop.xlane.xlu1 %2749 }
0x127c   :  { %8581 = vmatpush3.bf16.msra.mxu1 %v3380_v49 }
0x127d   :  { %8582 = vmatprep.subr.bf16.mxu1 %v3379_v10  ;;  %v2780_v32 = vpop.xlane.xlu0 %2779 }
0x127f   :  { %v2782_v4 = vpop.xlane.xlu1 %2781 }
0x1280   :  { %8583 = vmatpush3.bf16.msra.mxu1 %v3379_v10 }
0x1281   :  { %8584 = vmatprep.subr.bf16.mxu1 %v3378_v52  ;;  %v2744_v49 = vpop.xlane.xlu0 %2743 }
0x1283   :  { %v11482_v42 = vpop.xlane.xlu1 %2745 }
0x1284   :  { %8585 = vmatpush3.bf16.msra.mxu1 %v3378_v52 }
0x1285   :  { %8586 = vmatprep.subr.bf16.mxu1 %v3377_v13 }
0x1288   :  { %8587 = vmatpush3.bf16.msra.mxu1 %v3377_v13 }
0x128b   :  { %8589 = vmatmul.mubr.msk.bf16.vlgmr.msra.gmra.mxu1 %vm124_vm1, %v11078_v0 }
0x128c   :  { %8592 = vmatprep.mubr.msk.bf16.mxu1 %vm124_vm1, %v11083_v63 }
0x1293   :  { %8593 = vmatmul.mubr.msk.bf16.gmra.mxu1 %vm124_vm1, %v11100_v15 }
0x134b   :  { %v8590_v41 = vpop.f32.mrf.mxu1 }
0x134c   :  { %v11429_v3 = vadd.f32 %v8590_v41, %v11342_v29 }
0x134d   :  { %v3415_v12 = vpop.f32.mrf.mxu1 }
0x134e   :  { %3450 = vadd.xlane.f32.xlu0 %v11429_v3  ;;  %v3472_v0 = vmul.f32 %v11429_v3, %v11429_v3  ;;  %v11439_v15 = vadd.f32 %v3415_v12, %v11360_v39 }
0x134f   :  { %v8591_v53 = vpop.f32.mrf.mxu1 }
0x1350   :  { %v11433_v7 = vadd.f32 %v8591_v53, %v11344_v48 }
0x1351   :  { %v3418_v43 = vpop.f32.mrf.mxu1 }
0x1352   :  { %3482 = vadd.xlane.f32.xlu0 %v3472_v0  ;;  %3452 = vadd.xlane.f32.xlu1 %v11433_v7  ;;  %v3473_v29 = vmul.f32 %v11433_v7, %v11433_v7  ;;  %v11445_v48 = vadd.f32 %v3418_v43, %v11362_v25 }
0x1353   :  { %v8594_v63 = vpop.f32.mrf.mxu1 }
0x1354   :  { %v11448_v40 = vadd.f32 %v8594_v63, %v11300_v1  ;;  %v3471_v22 = vmul.f32 %v11445_v48, %v11445_v48 }
0x1355   :  { %v3431_v60 = vpop.f32.mrf.mxu1 }
0x1356   :  { %3484 = vadd.xlane.f32.xlu1 %v3473_v29  ;;  %3446 = vadd.xlane.f32.xlu0 %v11439_v15  ;;  %v3476_v37 = vmul.f32 %v11448_v40, %v11448_v40  ;;  %v11459_v25 = vadd.f32 %v3431_v60, %v11321_v5 }
0x1357   :  { %v8595_v34 = vpop.f32.mrf.mxu1 }
0x1358   :  { %v11453_v39 = vadd.f32 %v8595_v34, %v11298_v20  ;;  %v3474_v20 = vmul.f32 %v11459_v25, %v11459_v25 }
0x1359   :  { %v3434_v35 = vpop.f32.mrf.mxu1 }
0x135a   :  { %3448 = vadd.xlane.f32.xlu1 %v11445_v48  ;;  %3458 = vadd.xlane.f32.xlu0 %v11448_v40  ;;  %v3477_v1 = vmul.f32 %v11453_v39, %v11453_v39  ;;  %v11465_v61 = vadd.f32 %v3434_v35, %v11323_v21  ;;  %v3470_v21 = vmul.f32 %v11439_v15, %v11439_v15 }
0x135c   :  { %v3475_v5 = vmul.f32 %v11465_v61, %v11465_v61 }
0x135e   :  { %3460 = vadd.xlane.f32.xlu1 %v11453_v39  ;;  %3490 = vadd.xlane.f32.xlu0 %v3476_v37 }
0x1362   :  { %3492 = vadd.xlane.f32.xlu1 %v3477_v1  ;;  %3454 = vadd.xlane.f32.xlu0 %v11459_v25 }
0x1366   :  { %3456 = vadd.xlane.f32.xlu1 %v11465_v61  ;;  %3486 = vadd.xlane.f32.xlu0 %v3474_v20 }
0x136a   :  { %3488 = vadd.xlane.f32.xlu1 %v3475_v5  ;;  %2775 = vadd.xlane.f32.xlu0 %v2767_v18 }
0x136e   :  { %2777 = vadd.xlane.f32.xlu1 %v2768_v8  ;;  %3478 = vadd.xlane.f32.xlu0 %v3470_v21 }
0x1372   :  { %3480 = vadd.xlane.f32.xlu1 %v3471_v22 }
0x13d7   :  { %v3451_v54 = vpop.xlane.xlu0 %3450 }
0x13d8   :  { %v3464_v10 = vadd.f32 %v3451_v54, %v2748_v2 }
0x13da   :  { %v3504_v45 = vmul.f32 0.00390625, %v3464_v10 }
0x13db   :  { %v3483_v52 = vpop.xlane.xlu0 %3482  ;;  %v3453_v19 = vpop.xlane.xlu1 %3452 }
0x13dc   :  { %v3496_v30 = vadd.f32 %v3483_v52, %v2780_v32  ;;  %v3465_v13 = vadd.f32 %v3453_v19, %v2750_v55  ;;  %v3520_v41 = vmul.f32 %v3504_v45, %v3504_v45 }
0x13de   :  { %v3512_v12 = vmul.f32 0.00390625, %v3496_v30  ;;  %v11484_v53 = vmul.f32 0.00390625, %v3465_v13 }
0x13df   :  { %v3485_v0 = vpop.xlane.xlu1 %3484  ;;  %v3447_v43 = vpop.xlane.xlu0 %3446 }
0x13e0   :  { %v3528_v63 = vsub.f32 %v3512_v12, %v3520_v41  ;;  %v3497_v29 = vadd.f32 %v3485_v0, %v2782_v4  ;;  %v3521_v34 = vmul.f32 %v11484_v53, %v11484_v53 }
0x13e2   :  { %v3536_v60 = vadd.f32 1e-05, %v3528_v63  ;;  %v3513_v37 = vmul.f32 0.00390625, %v3497_v29  ;;  %v7545_v63 = vld [vmem:[%s13372_s5 + $0x50] sm:$0xff] }
0x13e3   :  { %v3449_v1 = vpop.xlane.xlu1 %3448  ;;  %v3459_v35 = vpop.xlane.xlu0 %3458 }
0x13e4   :  { %9304 = vrsqrt.f32 %v3536_v60  ;;  %v3529_v20 = vsub.f32 %v3513_v37, %v3521_v34  ;;  %v3468_v5 = vadd.f32 %v3459_v35, %v2756_v6  ;;  %v3462_v37 = vadd.f32 %v3447_v43, %v2744_v49 }
0x13e6   :  { %v3537_v18 = vadd.f32 1e-05, %v3529_v20  ;;  %v11488_v8 = vmul.f32 0.00390625, %v3468_v5 }
0x13e7   :  { %v3461_v21 = vpop.xlane.xlu1 %3460  ;;  %v3491_v22 = vpop.xlane.xlu0 %3490 }
0x13e8   :  { %9306 = vrsqrt.f32 %v3537_v18  ;;  %v3469_v2 = vadd.f32 %v3461_v21, %v2758_v57  ;;  %v3500_v55 = vadd.f32 %v3491_v22, %v2788_v33  ;;  %v3524_v32 = vmul.f32 %v11488_v8, %v11488_v8 }
0x13ea   :  { %v11492_v4 = vmul.f32 0.00390625, %v3469_v2  ;;  %v3516_v54 = vmul.f32 0.00390625, %v3500_v55  ;;  %v7553_v2 = vld [vmem:[%s13373_s6 + $0x50] sm:$0xff]  ;;  %v11512_v55 = vmul.f32 0.00390625, %v3462_v37 }
0x13eb   :  { %v3493_v10 = vpop.xlane.xlu1 %3492  ;;  %v3455_v52 = vpop.xlane.xlu0 %3454 }
0x13ec   :  { %v3532_v19 = vsub.f32 %v3516_v54, %v3524_v32  ;;  %v3501_v30 = vadd.f32 %v3493_v10, %v2790_v16  ;;  %v3466_v13 = vadd.f32 %v3455_v52, %v2752_v38  ;;  %v3525_v6 = vmul.f32 %v11492_v4, %v11492_v4 }
0x13ed   :  { %v3463_v32 = vadd.f32 %v3449_v1, %v11482_v42 }
0x13ee   :  { %v3540_v41 = vadd.f32 1e-05, %v3532_v19  ;;  %v3517_v12 = vmul.f32 0.00390625, %v3501_v30  ;;  %v11496_v0 = vmul.f32 0.00390625, %v3466_v13 }
0x13ef   :  { %v3457_v57 = vpop.xlane.xlu1 %3456  ;;  %v3487_v33 = vpop.xlane.xlu0 %3486  ;;  %v3503_v42 = vmul.f32 0.00390625, %v3463_v32 }
0x13f0   :  { %9308 = vrsqrt.f32 %v3540_v41  ;;  %v3533_v29 = vsub.f32 %v3517_v12, %v3525_v6  ;;  %v3467_v60 = vadd.f32 %v3457_v57, %v2754_v44  ;;  %v3498_v16 = vadd.f32 %v3487_v33, %v2784_v59  ;;  %v7546_v44 = vld [vmem:[%s13372_s5 + $0x58] sm:$0xff] }
0x13f1   :  { %v9305_v34 = vpop.eup %9304  ;;  %v3522_v5 = vmul.f32 %v11496_v0, %v11496_v0  ;;  %v3519_v37 = vmul.f32 %v3503_v42, %v3503_v42 }
0x13f2   :  { %v3541_v38 = vadd.f32 1e-05, %v3533_v29  ;;  %v11501_v35 = vmul.f32 0.00390625, %v3467_v60  ;;  %v3552_v20 = vmul.f32 %v9305_v34, %v7545_v63  ;;  %v3514_v18 = vmul.f32 0.00390625, %v3498_v16  ;;  %v7549_v63 = vld [vmem:[%s13372_s5 + $0x70] sm:$0xff] }
0x13f3   :  { %v3489_v21 = vpop.xlane.xlu1 %3488  ;;  %v2776_v22 = vpop.xlane.xlu0 %2775 }
0x13f4   :  { %v3499_v59 = vadd.f32 %v3489_v21, %v11480_v23  ;;  %3586 = vperm.xlu1 %8986, %v3552_v20   ;;  %v3560_v49 = vmul.f32 %v3552_v20, %v3504_v45  ;;  %9310 = vrsqrt.f32 %v3541_v38  ;;  %v3530_v54 = vsub.f32 %v3514_v18, %v3522_v5  ;;  %v7554_v18 = vld [vmem:[%s13373_s6 + $0x58] sm:$0xff] }
0x13f5   :  { %v9307_v43 = vpop.eup %9306  ;;  %v3523_v10 = vmul.f32 %v11501_v35, %v11501_v35  ;;  %v3518_v45 = vmul.f32 %v11512_v55, %v11512_v55 }
0x13f6   :  { %v3515_v52 = vmul.f32 0.00390625, %v3499_v59  ;;  %v3568_v19 = vsub.f32 %v7553_v2, %v3560_v49  ;;  %v3553_v30 = vmul.f32 %v9307_v43, %v7546_v44  ;;  %v3538_v13 = vadd.f32 1e-05, %v3530_v54  ;;  %v7550_v59 = vld [vmem:[%s13372_s5 + $0x78] sm:$0xff]  ;;  %v7548_v54 = vld [vmem:[%s13372_s5 + $0x68] sm:$0xff] }
0x13f7   :  { %v2778_v6 = vpop.xlane.xlu1 %2777  ;;  %v3479_v41 = vpop.xlane.xlu0 %3478 }
0x13f8   :  { %v3531_v12 = vsub.f32 %v3515_v52, %v3523_v10  ;;  %v3494_v23 = vadd.f32 %v3479_v41, %v2776_v22  ;;  %3634 = vperm.xlu1 %8986, %v3568_v19   ;;  %3591 = vperm.xlu0 %8987, %v3553_v30   ;;  %9312 = vrsqrt.f32 %v3538_v13  ;;  %v3561_v20 = vmul.f32 %v3553_v30, %v11484_v53  ;;  %v7547_v53 = vld [vmem:[%s13372_s5 + $0x60] sm:$0xff]  ;;  %v7558_v13 = vld [vmem:[%s13373_s6 + $0x78] sm:$0xff] }
0x13fa   :  { %v3539_v1 = vadd.f32 1e-05, %v3531_v12  ;;  %v3510_v57 = vmul.f32 0.00390625, %v3494_v23  ;;  %v3569_v44 = vsub.f32 %v7554_v18, %v3561_v20 }
0x13fb   :  { %v3481_v33 = vpop.xlane.xlu1 %3480 }
0x13fc   :  { %9314 = vrsqrt.f32 %v3539_v1  ;;  %v3526_v29 = vsub.f32 %v3510_v57, %v3518_v45  ;;  %v3495_v60 = vadd.f32 %v3481_v33, %v2778_v6  ;;  %v7557_v6 = vld [vmem:[%s13373_s6 + $0x70] sm:$0xff]  ;;  %v7555_v57 = vld [vmem:[%s13373_s6 + $0x60] sm:$0xff] }
0x13fd   :  { %v9309_v34 = vpop.eup %9308 }
0x13fe   :  { %v3511_v16 = vmul.f32 0.00390625, %v3495_v60  ;;  %v3556_v38 = vmul.f32 %v9309_v34, %v7549_v63  ;;  %v3534_v5 = vadd.f32 1e-05, %v3526_v29 }
0x1400   :  { %v3527_v21 = vsub.f32 %v3511_v16, %v3519_v37  ;;  %3606 = vperm.xlu0 %8987, %v3556_v38   ;;  %9316 = vrsqrt.f32 %v3534_v5  ;;  %v3564_v30 = vmul.f32 %v3556_v38, %v11488_v8  ;;  %v7556_v8 = vld [vmem:[%s13373_s6 + $0x68] sm:$0xff]  ;;  %v7551_v38 = vld [vmem:[%s13373_s6 + $0x40] sm:$0xff] }
0x1401   :  { %v9311_v22 = vpop.eup %9310  ;;  %v7552_v37 = vld [vmem:[%s13373_s6 + $0x48] sm:$0xff] }
0x1402   :  { %v3535_v2 = vadd.f32 1e-05, %v3527_v21  ;;  %v3557_v43 = vmul.f32 %v9311_v22, %v7550_v59  ;;  %v3572_v23 = vsub.f32 %v7557_v6, %v3564_v30  ;;  %v9649_v6 = vld [vmem:[#allocation2 + $0x18] sm:$0xff] }
0x1404   :  { %9318 = vrsqrt.f32 %v3535_v2  ;;  %3639 = vperm.xlu0 %8987, %v3569_v44   ;;  %v3565_v19 = vmul.f32 %v3557_v43, %v11492_v4  ;;  %v7544_v4 = vld [vmem:[%s13372_s5 + $0x48] sm:$0xff] }
0x1405   :  { %v9313_v49 = vpop.eup %9312 }
0x1406   :  { %v3554_v32 = vmul.f32 %v9313_v49, %v7547_v53  ;;  %v3573_v41 = vsub.f32 %v7558_v13, %v3565_v19  ;;  %v9648_v49 = vld [vmem:[#allocation2 + $0x10] sm:$0xff] }
0x1408   :  { %3596 = vperm.xlu1 %8986, %v3554_v32   ;;  %v3562_v45 = vmul.f32 %v3554_v32, %v11496_v0 }
0x1409   :  { %v9315_v10 = vpop.eup %9314 }
0x140a   :  { %v3555_v52 = vmul.f32 %v9315_v10, %v7548_v54  ;;  %v3570_v29 = vsub.f32 %v7555_v57, %v3562_v45 }
0x140c   :  { %3601 = vperm.xlu0 %8987, %v3555_v52   ;;  %3611 = vperm.xlu1 %8986, %v3557_v43   ;;  %v3563_v12 = vmul.f32 %v3555_v52, %v11501_v35  ;;  %v7543_v35 = vld [vmem:[%s13372_s5 + $0x40] sm:$0xff] }
0x140d   :  { %v9317_v1 = vpop.eup %9316 }
0x140e   :  { %v3571_v0 = vsub.f32 %v7556_v8, %v3563_v12  ;;  %v3550_v60 = vmul.f32 %v9317_v1, %v7543_v35 }
0x1410   :  { %3659 = vperm.xlu0 %8987, %v3573_v41   ;;  %3654 = vperm.xlu1 %8986, %v3572_v23   ;;  %v3558_v16 = vmul.f32 %v3550_v60, %v11512_v55 }
0x1411   :  { %v9319_v33 = vpop.eup %9318 }
0x1412   :  { %v3551_v63 = vmul.f32 %v9319_v33, %v7544_v4  ;;  %v3566_v5 = vsub.f32 %v7551_v38, %v3558_v16 }
0x1414   :  { %3649 = vperm.xlu0 %8987, %v3571_v0   ;;  %3644 = vperm.xlu1 %8986, %v3570_v29   ;;  %v3559_v34 = vmul.f32 %v3551_v63, %v3503_v42 }
0x1416   :  { %v3567_v20 = vsub.f32 %v7552_v37, %v3559_v34 }
0x1418   :  { %3581 = vperm.xlu0 %8987, %v3551_v63   ;;  %3576 = vperm.xlu1 %8986, %v3550_v60  }
0x141c   :  { %3629 = vperm.xlu0 %8987, %v3567_v20   ;;  %3624 = vperm.xlu1 %8986, %v3566_v5  }
0x146f   :  { %v3587_v18 = vpop.permute.xlu1 %3586 }
0x1470   :  { %v3616_v21 = vmul.f32 %v3587_v18, %v11348_v11  ;;  %v3696_v42 = vmul.f32 %v3587_v18, %v11429_v3 }
0x1473   :  { %v3635_v22 = vpop.permute.xlu1 %3634  ;;  %v3592_v53 = vpop.permute.xlu0 %3591 }
0x1474   :  { %v3664_v2 = vadd.f32 %v3635_v22, %v3616_v21  ;;  %v3704_v44 = vadd.f32 %v3696_v42, %v3635_v22  ;;  %v3617_v11 = vmul.f32 %v3592_v53, %v11352_v14  ;;  %v3697_v3 = vmul.f32 %v3592_v53, %v11433_v7  ;;  %v9651_v21 = vld [vmem:[#allocation2 + $0x30] sm:$0xff] }
0x1476   :  { %v3672_v59 = vmax.f32 %v3664_v2, 0.0  ;;  %v3712_v55 = vmax.f32 %v3704_v44, 0.0 }
0x1478   :  { %v11566_v43 = vadd.f32 %v9648_v49, %v3672_v59  ;;  %v11569_v32 = vadd.f32 %v11413_v28, %v3712_v55 }
0x147a   :  { %3688 = vst [vmem:[#allocation2 + $0x50] sm:$0xff] %v11566_v43  ;;  %3728 = vst [vmem:[#allocation2 + $0x150] sm:$0xff] %v11569_v32 }
0x147b   :  { %v3607_v54 = vpop.permute.xlu0 %3606 }
0x147c   :  { %v3620_v8 = vmul.f32 %v3607_v54, %v11312_v17  ;;  %v3700_v4 = vmul.f32 %v3607_v54, %v11448_v40  ;;  %v9650_v40 = vld [vmem:[#allocation2 + $0x38] sm:$0xff] }
0x147f   :  { %v3640_v10 = vpop.permute.xlu0 %3639 }
0x1480   :  { %v3665_v52 = vadd.f32 %v3640_v10, %v3617_v11  ;;  %v3705_v19 = vadd.f32 %v3697_v3, %v3640_v10  ;;  %v9653_v11 = vld [vmem:[#allocation2 + $0x20] sm:$0xff] }
0x1482   :  { %v3673_v30 = vmax.f32 %v3665_v52, 0.0  ;;  %v3713_v13 = vmax.f32 %v3705_v19, 0.0 }
0x1483   :  { %v3597_v12 = vpop.permute.xlu1 %3596 }
0x1484   :  { %v11575_v41 = vadd.f32 %v9649_v6, %v3673_v30  ;;  %v11578_v28 = vadd.f32 %v11410_v9, %v3713_v13 }
0x1486   :  { %3689 = vst [vmem:[#allocation2 + $0x58] sm:$0xff] %v11575_v41  ;;  %3729 = vst [vmem:[#allocation2 + $0x158] sm:$0xff] %v11578_v28 }
0x1487   :  { %v3602_v23 = vpop.permute.xlu0 %3601  ;;  %v3612_v14 = vpop.permute.xlu1 %3611 }
0x1488   :  { %v3621_v7 = vmul.f32 %v3612_v14, %v11308_v26  ;;  %v3701_v45 = vmul.f32 %v3612_v14, %v11453_v39  ;;  %v3619_v63 = vmul.f32 %v3602_v23, %v11333_v47  ;;  %v3699_v29 = vmul.f32 %v3602_v23, %v11465_v61 }
0x1489   :  { %v3618_v26 = vmul.f32 %v3597_v12, %v11329_v31  ;;  %v3698_v39 = vmul.f32 %v3597_v12, %v11459_v25 }
0x148b   :  { %v3660_v1 = vpop.permute.xlu0 %3659  ;;  %v3655_v57 = vpop.permute.xlu1 %3654 }
0x148c   :  { %v3669_v35 = vadd.f32 %v3660_v1, %v3621_v7  ;;  %v3709_v9 = vadd.f32 %v3701_v45, %v3660_v1  ;;  %v3668_v33 = vadd.f32 %v3655_v57, %v3620_v8  ;;  %v3708_v0 = vadd.f32 %v3700_v4, %v3655_v57  ;;  %v9655_v57 = vld [vmem:[#allocation2] sm:$0xff] }
0x148e   :  { %v3677_v60 = vmax.f32 %v3669_v35, 0.0  ;;  %v3717_v34 = vmax.f32 %v3709_v9, 0.0  ;;  %v3676_v37 = vmax.f32 %v3668_v33, 0.0  ;;  %v3716_v17 = vmax.f32 %v3708_v0, 0.0  ;;  %v11650_v33 = vld [vmem:[%s13368_s1 + $0x50] sm:$0xff]  }
0x148f   :  { %v3650_v16 = vpop.permute.xlu0 %3649  ;;  %v3645_v5 = vpop.permute.xlu1 %3644 }
0x1490   :  { %v11590_v38 = vadd.f32 %v9650_v40, %v3677_v60  ;;  %v11593_v20 = vadd.f32 %v11401_v50, %v3717_v34  ;;  %v3667_v18 = vadd.f32 %v3650_v16, %v3619_v63  ;;  %v3707_v47 = vadd.f32 %v3699_v29, %v3650_v16 }
0x1491   :  { %v11595_v61 = vadd.f32 %v9651_v21, %v3676_v37  ;;  %v11598_v42 = vadd.f32 %v11398_v24, %v3716_v17  ;;  %v3666_v31 = vadd.f32 %v3645_v5, %v3618_v26  ;;  %v3706_v25 = vadd.f32 %v3698_v39, %v3645_v5  ;;  %v9652_v24 = vld [vmem:[#allocation2 + $0x28] sm:$0xff] }
0x1492   :  { %3693 = vst [vmem:[#allocation2 + $0x78] sm:$0xff] %v11590_v38  ;;  %3733 = vst [vmem:[#allocation2 + $0x178] sm:$0xff] %v11593_v20  ;;  %v3675_v22 = vmax.f32 %v3667_v18, 0.0  ;;  %v3715_v2 = vmax.f32 %v3707_v47, 0.0 }
0x1493   :  { %3692 = vst [vmem:[#allocation2 + $0x70] sm:$0xff] %v11595_v61  ;;  %3732 = vst [vmem:[#allocation2 + $0x170] sm:$0xff] %v11598_v42  ;;  %v3674_v50 = vmax.f32 %v3666_v31, 0.0  ;;  %v3714_v44 = vmax.f32 %v3706_v25, 0.0  ;;  %v3582_v59 = vpop.permute.xlu0 %3581  ;;  %v3793_v55 = vpack.c.bf16 %v11590_v38, %v11595_v61  ;;  %v3577_v54 = vpop.permute.xlu1 %3576 }
0x1494   :  { %v11606_v53 = vadd.f32 %v9652_v24, %v3675_v22  ;;  %v11609_v49 = vadd.f32 %v11407_v27, %v3715_v2  ;;  %v3615_v52 = vmul.f32 %v3582_v59, %v11370_v51  ;;  %v3695_v19 = vmul.f32 %v3582_v59, %v11445_v48 }
0x1495   :  { %v11611_v3 = vadd.f32 %v9653_v11, %v3674_v50  ;;  %v11614_v10 = vadd.f32 %v11404_v56, %v3714_v44  ;;  %8597 = vmatpush3.bf16.msra.mxu0 %v3793_v55  ;;  %v3614_v27 = vmul.f32 %v3577_v54, %v11366_v36  ;;  %v3694_v56 = vmul.f32 %v3577_v54, %v11439_v15  ;;  %v9654_v15 = vld [vmem:[#allocation2 + $0x8] sm:$0xff] }
0x1496   :  { %3691 = vst [vmem:[#allocation2 + $0x68] sm:$0xff] %v11606_v53  ;;  %3731 = vst [vmem:[#allocation2 + $0x168] sm:$0xff] %v11609_v49  ;;  %8598 = vmatprep.subr.bf16.mxu0 %v13383_v58  ;;  %v3791_v36 = vpack.c.bf16 %v11575_v41, %v11566_v43 }
0x1497   :  { %3690 = vst [vmem:[#allocation2 + $0x60] sm:$0xff] %v11611_v3  ;;  %3730 = vst [vmem:[#allocation2 + $0x160] sm:$0xff] %v11614_v10  ;;  %v3630_v30 = vpop.permute.xlu0 %3629  ;;  %v3792_v13 = vpack.c.bf16 %v11606_v53, %v11611_v3  ;;  %v3625_v6 = vpop.permute.xlu1 %3624 }
0x1498   :  { %v3663_v12 = vadd.f32 %v3630_v30, %v3615_v52  ;;  %v3703_v23 = vadd.f32 %v3695_v19, %v3630_v30  ;;  %v3662_v51 = vadd.f32 %v3625_v6, %v3614_v27  ;;  %v3702_v14 = vadd.f32 %v3694_v56, %v3625_v6  ;;  %v11675_v52 = vld [vmem:[%s13368_s1 + $0x58] sm:$0xff]   ;;  %v11690_v56 = vld [vmem:[%s13368_s1 + $0x60] sm:$0xff]   ;;  %v11705_v6 = vld [vmem:[%s13368_s1 + $0x68] sm:$0xff]  }
0x1499   :  { %8599 = vmatpush3.bf16.msra.mxu0 %v3792_v13 }
0x149a   :  { %v3671_v48 = vmax.f32 %v3663_v12, 0.0  ;;  %v3711_v7 = vmax.f32 %v3703_v23, 0.0  ;;  %8600 = vmatprep.subr.bf16.mxu0 %v13383_v58  ;;  %v3670_v45 = vmax.f32 %v3662_v51, 0.0  ;;  %v3710_v8 = vmax.f32 %v3702_v14, 0.0  ;;  %v11720_v51 = vld [vmem:[%s13368_s1 + $0x70] sm:$0xff]  }
0x149c   :  { %v11630_v4 = vadd.f32 %v9654_v15, %v3671_v48  ;;  %v11633_v1 = vadd.f32 %v11416_v62, %v3711_v7  ;;  %v11635_v35 = vadd.f32 %v9655_v57, %v3670_v45  ;;  %v11638_v9 = vadd.f32 %v11419_v46, %v3710_v8 }
0x149d   :  { %8601 = vmatpush3.bf16.msra.mxu0 %v3791_v36 }
0x149e   :  { %3687 = vst [vmem:[#allocation2 + $0x48] sm:$0xff] %v11630_v4  ;;  %3727 = vst [vmem:[#allocation2 + $0x148] sm:$0xff] %v11633_v1  ;;  %8602 = vmatprep.subr.bf16.mxu0 %v13383_v58  ;;  %v3790_v62 = vpack.c.bf16 %v11630_v4, %v11635_v35 }
0x149f   :  { %3686 = vst [vmem:[#allocation2 + $0x40] sm:$0xff] %v11635_v35  ;;  %3726 = vst [vmem:[#allocation2 + $0x140] sm:$0xff] %v11638_v9 }
0x14a1   :  { %8603 = vmatpush3.bf16.msra.mxu0 %v3790_v62 }
0x14a4   :  { %8605 = vmatmul.mubr.msk.bf16.vlgmr.msra.gmra.mxu0 %vm124_vm1, %v11650_v33 }
0x14a5   :  { %8608 = vmatprep.mubr.msk.bf16.mxu0 %vm9711_vm0, %v13383_v58 }
0x14ac   :  { %8609 = vmatmul.mubr.msk.bf16.gmra.mxu0 %vm124_vm1, %v11675_v52 }
0x14ad   :  { %8612 = vmatprep.mubr.msk.bf16.mxu0 %vm9711_vm0, %v13383_v58 }
0x14b4   :  { %8613 = vmatmul.mubr.msk.bf16.gmra.mxu0 %vm124_vm1, %v11690_v56 }
0x14b5   :  { %8616 = vmatprep.mubr.msk.bf16.mxu0 %vm9711_vm0, %v13383_v58 }
0x14bc   :  { %8617 = vmatmul.mubr.msk.bf16.gmra.mxu0 %vm124_vm1, %v11705_v6 }
0x14bd   :  { %8620 = vmatprep.mubr.msk.bf16.mxu0 %vm9711_vm0, %v13383_v58 }
0x14c4   :  { %8621 = vmatmul.mubr.msk.bf16.gmra.mxu0 %vm124_vm1, %v11720_v51 }
0x1564   :  { %v3868_v46 = vpop.f32.mrf.mxu0 }
0x1565   :  { %3955 = vxpose.xlu1.b32.start [1/2] (short) %v3868_v46, 128 }
0x1566   :  { %v8606_v0 = vpop.f32.mrf.mxu0 }
0x1568   :  { %v3871_v63 = vpop.f32.mrf.mxu0 }
0x1569   :  { %3956 = vxpose.xlu1.b32.end [2/2] (short) %v3871_v63, 128  ;;  %8624 = vmatprep.subr.mxu1 %v3871_v63 }
0x156a   :  { %v8607_v29 = vpop.f32.mrf.mxu0  ;;  %8625 = vmatpush3.msra.mxu1 %v3871_v63 }
0x156b   :  { %8626 = vmatprep.subr.mxu1 %v3868_v46 }
0x156c   :  { %8627 = vmatpush3.msra.mxu1 %v3868_v46 }
0x15e1   :  { %v3971_v60 = vpop.trf.xlu1 }
0x15e2   :  { %8628 = vmatprep.mubr.msk.f32.mxu1 %vm293_vm2, %v3971_v60 }
0x15e5   :  { %v3972_v34 = vpop.trf.xlu1 }
0x15e6   :  { %8629 = vmatmul.mubr.msk.f32.vlgmr.msra.gmra.mxu1 %vm293_vm2, %v3972_v34 }
0x15e9   :  { %v3973_v26 = vpop.trf.xlu1 }
0x15ea   :  { %8631 = vmatprep.mubr.msk.f32.mxu1 %vm293_vm2, %v3973_v26 }
0x15ed   :  { %v3974_v39 = vpop.trf.xlu1 }
0x15ee   :  { %8632 = vmatmul.mubr.msk.f32.gmra.mxu1 %vm293_vm2, %v3974_v39 }
0x15f1   :  { %v3975_v37 = vpop.trf.xlu1 }
0x15f2   :  { %8634 = vmatprep.mubr.msk.f32.mxu1 %vm293_vm2, %v3975_v37 }
0x15f5   :  { %v3976_v17 = vpop.trf.xlu1 }
0x15f6   :  { %8635 = vmatmul.mubr.msk.f32.gmra.mxu1 %vm293_vm2, %v3976_v17 }
0x15f9   :  { %v3977_v16 = vpop.trf.xlu1 }
0x15fa   :  { %8637 = vmatprep.mubr.msk.f32.mxu1 %vm293_vm2, %v3977_v16 }
0x15fd   :  { %v3978_v40 = vpop.trf.xlu1 }
0x15fe   :  { %8638 = vmatmul.mubr.msk.f32.gmra.mxu1 %vm293_vm2, %v3978_v40 }
0x1601   :  { %v3979_v5 = vpop.trf.xlu1 }
0x1602   :  { %8640 = vmatprep.mubr.msk.f32.mxu1 %vm293_vm2, %v3979_v5 }
0x1605   :  { %v3980_v18 = vpop.trf.xlu1 }
0x1606   :  { %8641 = vmatmul.mubr.msk.f32.gmra.mxu1 %vm293_vm2, %v3980_v18 }
0x1609   :  { %v3981_v47 = vpop.trf.xlu1 }
0x160a   :  { %8643 = vmatprep.mubr.msk.f32.mxu1 %vm293_vm2, %v3981_v47 }
0x160d   :  { %v3982_v21 = vpop.trf.xlu1 }
0x160e   :  { %8644 = vmatmul.mubr.msk.f32.gmra.mxu1 %vm293_vm2, %v3982_v21 }
0x1611   :  { %v3983_v31 = vpop.trf.xlu1 }
0x1612   :  { %8646 = vmatprep.mubr.msk.f32.mxu1 %vm293_vm2, %v3983_v31 }
0x1615   :  { %v3984_v25 = vpop.trf.xlu1 }
0x1616   :  { %8647 = vmatmul.mubr.msk.f32.gmra.mxu1 %vm293_vm2, %v3984_v25 }
0x1619   :  { %v3985_v22 = vpop.trf.xlu1 }
0x161a   :  { %8649 = vmatprep.mubr.msk.f32.mxu1 %vm293_vm2, %v3985_v22 }
0x161d   :  { %v3986_v2 = vpop.trf.xlu1 }
0x161e   :  { %8650 = vmatmul.mubr.msk.f32.gmra.mxu1 %vm293_vm2, %v3986_v2 }
0x16a6   :  { %v8630_v50 = vpop.f32.mrf.mxu1 }
0x16a7   :  { %4182 = vmax.xlane.f32.xlu0 %v8630_v50 }
0x16a8   :  { %v4101_v44 = vpop.f32.mrf.mxu1 }
0x16ab   :  { %4180 = vmax.xlane.f32.xlu0 %v4101_v44 }
0x16ae   :  { %v8633_v59 = vpop.f32.mrf.mxu1 }
0x16af   :  { %4186 = vmax.xlane.f32.xlu0 %v8633_v59 }
0x16b0   :  { %v4111_v55 = vpop.f32.mrf.mxu1 }
0x16b3   :  { %4184 = vmax.xlane.f32.xlu0 %v4111_v55 }
0x16b6   :  { %v8636_v24 = vpop.f32.mrf.mxu1 }
0x16b7   :  { %4190 = vmax.xlane.f32.xlu0 %v8636_v24 }
0x16b8   :  { %v4121_v54 = vpop.f32.mrf.mxu1 }
0x16b9   :  { %4188 = vmax.xlane.f32.xlu1 %v4121_v54 }
0x16be   :  { %v8639_v11 = vpop.f32.mrf.mxu1 }
0x16bf   :  { %4194 = vmax.xlane.f32.xlu0 %v8639_v11 }
0x16c0   :  { %v11677_v19 = vpop.f32.mrf.mxu1 }
0x16c3   :  { %4192 = vmax.xlane.f32.xlu0 %v11677_v19 }
0x16c6   :  { %v11684_v27 = vpop.f32.mrf.mxu1 }
0x16c7   :  { %4198 = vmax.xlane.f32.xlu0 %v11684_v27 }
0x16c8   :  { %v11692_v30 = vpop.f32.mrf.mxu1 }
0x16cb   :  { %4196 = vmax.xlane.f32.xlu0 %v11692_v30 }
0x16ce   :  { %v11699_v13 = vpop.f32.mrf.mxu1 }
0x16cf   :  { %4202 = vmax.xlane.f32.xlu0 %v11699_v13 }
0x16d0   :  { %v11707_v12 = vpop.f32.mrf.mxu1 }
0x16d3   :  { %4200 = vmax.xlane.f32.xlu0 %v11707_v12 }
0x16d6   :  { %v11714_v23 = vpop.f32.mrf.mxu1 }
0x16d7   :  { %4206 = vmax.xlane.f32.xlu0 %v11714_v23 }
0x16d8   :  { %v11722_v14 = vpop.f32.mrf.mxu1 }
0x16db   :  { %4204 = vmax.xlane.f32.xlu0 %v11722_v14 }
0x16de   :  { %v11727_v48 = vpop.f32.mrf.mxu1 }
0x16e0   :  { %v11729_v7 = vpop.f32.mrf.mxu1 }
0x16e1   :  { %4208 = vmax.xlane.f32.xlu0 %v11729_v7 }
0x16e5   :  { %4210 = vmax.xlane.f32.xlu0 %v11727_v48 }
0x1730   :  { %v4183_v45 = vpop.xlane.xlu0 %4182 }
0x1731   :  { %v4213_v8 = vsub.f32 %v8630_v50, %v4183_v45 }
0x1733   :  { %v4230_v36 = vmul.f32 1.442695, %v4213_v8 }
0x1734   :  { %v4181_v15 = vpop.xlane.xlu0 %4180 }
0x1735   :  { %9320 = vpow2.f32 %v4230_v36  ;;  %v4212_v57 = vsub.f32 %v4101_v44, %v4181_v15 }
0x1737   :  { %v4228_v62 = vmul.f32 1.442695, %v4212_v57 }
0x1738   :  { %v4187_v46 = vpop.xlane.xlu0 %4186 }
0x1739   :  { %9322 = vpow2.f32 %v4228_v62  ;;  %v4215_v0 = vsub.f32 %v8633_v59, %v4187_v46 }
0x173b   :  { %v4234_v63 = vmul.f32 1.442695, %v4215_v0 }
0x173c   :  { %v4185_v29 = vpop.xlane.xlu0 %4184 }
0x173d   :  { %9324 = vpow2.f32 %v4234_v63  ;;  %v4214_v60 = vsub.f32 %v4111_v55, %v4185_v29 }
0x173f   :  { %v4232_v34 = vmul.f32 1.442695, %v4214_v60 }
0x1740   :  { %v4191_v26 = vpop.xlane.xlu0 %4190 }
0x1741   :  { %9326 = vpow2.f32 %v4232_v34  ;;  %v4217_v39 = vsub.f32 %v8636_v24, %v4191_v26 }
0x1742   :  { %v11733_v37 = vpop.eup %9320  ;;  %v4189_v17 = vpop.xlane.xlu1 %4188 }
0x1743   :  { %v4238_v16 = vmul.f32 1.442695, %v4217_v39  ;;  %v4216_v40 = vsub.f32 %v4121_v54, %v4189_v17  ;;  %4262 = vadd.xlane.f32.xlu0 %v11733_v37 }
0x1745   :  { %9328 = vpow2.f32 %v4238_v16  ;;  %v4236_v5 = vmul.f32 1.442695, %v4216_v40 }
0x1746   :  { %v11736_v18 = vpop.eup %9322 }
0x1747   :  { %4260 = vadd.xlane.f32.xlu0 %v11736_v18  ;;  %9330 = vpow2.f32 %v4236_v5 }
0x1748   :  { %v4195_v47 = vpop.xlane.xlu0 %4194 }
0x1749   :  { %v4219_v21 = vsub.f32 %v8639_v11, %v4195_v47 }
0x174a   :  { %v11739_v31 = vpop.eup %9324 }
0x174b   :  { %v4242_v25 = vmul.f32 1.442695, %v4219_v21  ;;  %4266 = vadd.xlane.f32.xlu0 %v11739_v31 }
0x174c   :  { %v4193_v22 = vpop.xlane.xlu0 %4192 }
0x174d   :  { %9332 = vpow2.f32 %v4242_v25  ;;  %v4218_v2 = vsub.f32 %v11677_v19, %v4193_v22 }
0x174e   :  { %v11743_v50 = vpop.eup %9326 }
0x174f   :  { %v4240_v44 = vmul.f32 1.442695, %v4218_v2  ;;  %4264 = vadd.xlane.f32.xlu0 %v11743_v50 }
0x1750   :  { %v4199_v59 = vpop.xlane.xlu0 %4198 }
0x1751   :  { %9334 = vpow2.f32 %v4240_v44  ;;  %v4221_v55 = vsub.f32 %v11684_v27, %v4199_v59 }
0x1752   :  { %v11747_v24 = vpop.eup %9328 }
0x1753   :  { %v4246_v54 = vmul.f32 1.442695, %v4221_v55  ;;  %4270 = vadd.xlane.f32.xlu0 %v11747_v24 }
0x1754   :  { %v4197_v11 = vpop.xlane.xlu0 %4196  ;;  %v11751_v8 = vpop.eup %9330 }
0x1755   :  { %9336 = vpow2.f32 %v4246_v54  ;;  %v4220_v45 = vsub.f32 %v11692_v30, %v4197_v11 }
0x1757   :  { %v4244_v19 = vmul.f32 1.442695, %v4220_v45  ;;  %4268 = vadd.xlane.f32.xlu0 %v11751_v8 }
0x1758   :  { %v4203_v36 = vpop.xlane.xlu0 %4202 }
0x1759   :  { %9338 = vpow2.f32 %v4244_v19  ;;  %v4223_v15 = vsub.f32 %v11699_v13, %v4203_v36  ;;  %v7629_v19 = vld [vmem:[%s13369_s2 + $0x88] sm:$0xff]  ;;  %v7628_v36 = vld [vmem:[%s13369_s2 + $0x80] sm:$0xff] }
0x175a   :  { %v11755_v57 = vpop.eup %9332 }
0x175b   :  { %v4250_v27 = vmul.f32 1.442695, %v4223_v15  ;;  %4274 = vadd.xlane.f32.xlu0 %v11755_v57 }
0x175c   :  { %v4201_v62 = vpop.xlane.xlu0 %4200 }
0x175d   :  { %9340 = vpow2.f32 %v4250_v27  ;;  %v4222_v46 = vsub.f32 %v11707_v12, %v4201_v62  ;;  %v7630_v62 = vld [vmem:[%s13369_s2 + $0x90] sm:$0xff] }
0x175e   :  { %v11759_v0 = vpop.eup %9334 }
0x175f   :  { %v4248_v30 = vmul.f32 1.442695, %v4222_v46  ;;  %4272 = vadd.xlane.f32.xlu0 %v11759_v0  ;;  %v7631_v46 = vld [vmem:[%s13369_s2 + $0x98] sm:$0xff] }
0x1760   :  { %v4207_v63 = vpop.xlane.xlu0 %4206 }
0x1761   :  { %9342 = vpow2.f32 %v4248_v30  ;;  %v4225_v29 = vsub.f32 %v11714_v23, %v4207_v63 }
0x1762   :  { %v11763_v60 = vpop.eup %9336 }
0x1763   :  { %v4254_v13 = vmul.f32 1.442695, %v4225_v29  ;;  %4278 = vadd.xlane.f32.xlu0 %v11763_v60  ;;  %v7632_v29 = vld [vmem:[%s13369_s2 + $0xa0] sm:$0xff] }
0x1764   :  { %v4205_v34 = vpop.xlane.xlu0 %4204 }
0x1765   :  { %9344 = vpow2.f32 %v4254_v13  ;;  %v4224_v26 = vsub.f32 %v11722_v14, %v4205_v34  ;;  %v7633_v13 = vld [vmem:[%s13369_s2 + $0xa8] sm:$0xff] }
0x1766   :  { %v11767_v39 = vpop.eup %9338 }
0x1767   :  { %v4252_v12 = vmul.f32 1.442695, %v4224_v26  ;;  %4276 = vadd.xlane.f32.xlu0 %v11767_v39 }
0x1769   :  { %9346 = vpow2.f32 %v4252_v12  ;;  %v7634_v12 = vld [vmem:[%s13369_s2 + $0xb0] sm:$0xff] }
0x176a   :  { %v11770_v17 = vpop.eup %9340  ;;  %v4209_v16 = vpop.xlane.xlu0 %4208 }
0x176b   :  { %v4226_v23 = vsub.f32 %v11729_v7, %v4209_v16  ;;  %4282 = vadd.xlane.f32.xlu0 %v11770_v17  ;;  %v7635_v16 = vld [vmem:[%s13369_s2 + $0xb8] sm:$0xff] }
0x176d   :  { %v4256_v40 = vmul.f32 1.442695, %v4226_v23 }
0x176e   :  { %v11774_v5 = vpop.eup %9342  ;;  %v4211_v47 = vpop.xlane.xlu0 %4210 }
0x176f   :  { %9348 = vpow2.f32 %v4256_v40  ;;  %v4227_v14 = vsub.f32 %v11727_v48, %v4211_v47  ;;  %4280 = vadd.xlane.f32.xlu0 %v11774_v5  ;;  %v11790_v48 = vpop.f32.mrf.mxu0 }
0x1771   :  { %v4258_v21 = vmul.f32 1.442695, %v4227_v14  ;;  %v8610_v44 = vpop.f32.mrf.mxu0 }
0x1772   :  { %v11778_v25 = vpop.eup %9344 }
0x1773   :  { %9350 = vpow2.f32 %v4258_v21  ;;  %4286 = vadd.xlane.f32.xlu1 %v11778_v25  ;;  %v11792_v59 = vpop.f32.mrf.mxu0 }
0x1775   :  { %v8611_v55 = vpop.f32.mrf.mxu0 }
0x1776   :  { %v11781_v22 = vpop.eup %9346 }
0x1777   :  { %4284 = vadd.xlane.f32.xlu0 %v11781_v22  ;;  %v11794_v54 = vpop.f32.mrf.mxu0 }
0x1779   :  { %v8614_v11 = vpop.f32.mrf.mxu0 }
0x177b   :  { %v11796_v45 = vpop.f32.mrf.mxu0 }
0x177c   :  { %v11784_v7 = vpop.eup %9348 }
0x177d   :  { %4288 = vadd.xlane.f32.xlu0 %v11784_v7  ;;  %v8615_v15 = vpop.f32.mrf.mxu0 }
0x177f   :  { %v11804_v27 = vpop.f32.mrf.mxu0 }
0x1780   :  { %v11787_v2 = vpop.eup %9350 }
0x1781   :  { %4290 = vadd.xlane.f32.xlu1 %v11787_v2  ;;  %v8618_v30 = vpop.f32.mrf.mxu0 }
0x1783   :  { %v11812_v63 = vpop.f32.mrf.mxu0 }
0x1785   :  { %v8619_v34 = vpop.f32.mrf.mxu0 }
0x1787   :  { %v11820_v26 = vpop.f32.mrf.mxu0 }
0x1789   :  { %v8622_v23 = vpop.f32.mrf.mxu0 }
0x178b   :  { %v11828_v40 = vpop.f32.mrf.mxu0 }
0x178d   :  { %v8623_v47 = vpop.f32.mrf.mxu0 }
0x1792   :  { %3914 = vperm.xlu1 %8986, %v7629_v19  }
0x1793   :  { %3909 = vperm.xlu0 %8987, %v7628_v36  }
0x1796   :  { %3919 = vperm.xlu1 %8986, %v7630_v62  }
0x1797   :  { %3924 = vperm.xlu0 %8987, %v7631_v46  }
0x179a   :  { %3929 = vperm.xlu1 %8986, %v7632_v29  }
0x179b   :  { %3934 = vperm.xlu0 %8987, %v7633_v13  }
0x179e   :  { %3939 = vperm.xlu1 %8986, %v7634_v12  }
0x179f   :  { %3944 = vperm.xlu0 %8987, %v7635_v16  }
0x17cc   :  { %v4263_v14 = vpop.xlane.xlu0 %4262 }
0x17d0   :  { %v4261_v21 = vpop.xlane.xlu0 %4260 }
0x17d1   :  { %9352 = vrcp.f32 %v4261_v21 }
0x17d2   :  { %9354 = vrcp.f32 %v4263_v14 }
0x17d4   :  { %v4267_v44 = vpop.xlane.xlu0 %4266 }
0x17d8   :  { %v4265_v55 = vpop.xlane.xlu0 %4264 }
0x17d9   :  { %9356 = vrcp.f32 %v4265_v55 }
0x17da   :  { %9358 = vrcp.f32 %v4267_v44 }
0x17dc   :  { %v4271_v11 = vpop.xlane.xlu0 %4270 }
0x17de   :  { %v9353_v62 = vpop.eup %9352 }
0x17df   :  { %v9355_v30 = vpop.eup %9354  ;;  %v11831_v13 = vmul.f32 %v9353_v62, %v11736_v18 }
0x17e0   :  { %v4269_v19 = vpop.xlane.xlu0 %4268  ;;  %v11834_v12 = vmul.f32 %v9355_v30, %v11733_v37 }
0x17e1   :  { %9360 = vrcp.f32 %v4269_v19 }
0x17e2   :  { %9362 = vrcp.f32 %v4271_v11  ;;  %v4324_v47 = vadd.f32 %v11834_v12, %v11831_v13 }
0x17e4   :  { %v4275_v36 = vpop.xlane.xlu0 %4274 }
0x17e6   :  { %v9357_v29 = vpop.eup %9356 }
0x17e7   :  { %v11837_v16 = vmul.f32 %v9357_v29, %v11743_v50  ;;  %v9359_v23 = vpop.eup %9358 }
0x17e8   :  { %v4273_v15 = vpop.xlane.xlu0 %4272  ;;  %v11843_v18 = vmul.f32 %v9359_v23, %v11739_v31 }
0x17e9   :  { %9364 = vrcp.f32 %v4273_v15  ;;  %v4325_v44 = vadd.f32 %v4324_v47, %v11837_v16 }
0x17ea   :  { %9366 = vrcp.f32 %v4275_v36 }
0x17eb   :  { %v4326_v11 = vadd.f32 %v4325_v44, %v11843_v18 }
0x17ec   :  { %v4279_v46 = vpop.xlane.xlu0 %4278 }
0x17ee   :  { %v9361_v14 = vpop.eup %9360 }
0x17ef   :  { %v11846_v55 = vmul.f32 %v9361_v14, %v11751_v8  ;;  %v9363_v50 = vpop.eup %9362 }
0x17f0   :  { %v4277_v34 = vpop.xlane.xlu0 %4276  ;;  %v11851_v15 = vmul.f32 %v9363_v50, %v11747_v24 }
0x17f1   :  { %9368 = vrcp.f32 %v4277_v34  ;;  %v4327_v36 = vadd.f32 %v4326_v11, %v11846_v55 }
0x17f2   :  { %9370 = vrcp.f32 %v4279_v46 }
0x17f3   :  { %v4328_v30 = vadd.f32 %v4327_v36, %v11851_v15 }
0x17f4   :  { %v4283_v21 = vpop.xlane.xlu0 %4282 }
0x17f6   :  { %v9365_v19 = vpop.eup %9364 }
0x17f7   :  { %v11854_v62 = vmul.f32 %v9365_v19, %v11759_v0  ;;  %v9367_v31 = vpop.eup %9366 }
0x17f8   :  { %v4281_v37 = vpop.xlane.xlu0 %4280  ;;  %v11859_v23 = vmul.f32 %v9367_v31, %v11755_v57 }
0x17f9   :  { %9372 = vrcp.f32 %v4281_v37  ;;  %v4329_v29 = vadd.f32 %v4328_v30, %v11854_v62 }
0x17fa   :  { %9374 = vrcp.f32 %v4283_v21 }
0x17fb   :  { %v4330_v14 = vadd.f32 %v4329_v29, %v11859_v23 }
0x17fc   :  { %v4287_v34 = vpop.xlane.xlu1 %4286 }
0x17fe   :  { %v9369_v8 = vpop.eup %9368 }
0x17ff   :  { %v4316_v47 = vmul.f32 %v9369_v8, %v11767_v39  ;;  %v9371_v24 = vpop.eup %9370 }
0x1800   :  { %v4285_v46 = vpop.xlane.xlu0 %4284  ;;  %v4317_v21 = vmul.f32 %v9371_v24, %v11763_v60 }
0x1801   :  { %9376 = vrcp.f32 %v4285_v46  ;;  %v4331_v37 = vadd.f32 %v4330_v14, %v4316_v47 }
0x1802   :  { %9378 = vrcp.f32 %v4287_v34 }
0x1803   :  { %v4332_v19 = vadd.f32 %v4331_v37, %v4317_v21 }
0x1806   :  { %v9373_v0 = vpop.eup %9372  ;;  %v4289_v44 = vpop.xlane.xlu0 %4288 }
0x1807   :  { %9380 = vrcp.f32 %v4289_v44  ;;  %v4318_v50 = vmul.f32 %v9373_v0, %v11774_v5  ;;  %v9375_v36 = vpop.eup %9374 }
0x1808   :  { %v4319_v8 = vmul.f32 %v9375_v36, %v11770_v17 }
0x1809   :  { %v4333_v57 = vadd.f32 %v4332_v19, %v4318_v50 }
0x180a   :  { %v4291_v11 = vpop.xlane.xlu1 %4290 }
0x180b   :  { %9382 = vrcp.f32 %v4291_v11  ;;  %v4334_v34 = vadd.f32 %v4333_v57, %v4319_v8 }
0x180e   :  { %v9377_v31 = vpop.eup %9376  ;;  %v11865_v30 = vpop.permute.xlu1 %3914 }
0x180f   :  { %13385 = vst [vmem:[#allocation5_spill] sm:$0xff] %v11865_v30  ;;  %v11867_v39 = vpop.permute.xlu0 %3909  ;;  %v4320_v46 = vmul.f32 %v9377_v31, %v11781_v22  ;;  %v3948_v29 = vadd.f32 %v11865_v30, %v11792_v59  ;;  %v9379_v24 = vpop.eup %9378 }
0x1810   :  { %13386 = vst [vmem:[#allocation6_spill] sm:$0xff] %v11867_v39  ;;  %v3947_v60 = vadd.f32 %v11867_v39, %v11790_v48  ;;  %v4321_v44 = vmul.f32 %v9379_v24, %v11778_v25 }
0x1811   :  { %v4335_v14 = vadd.f32 %v4334_v34, %v4320_v46 }
0x1812   :  { %v4363_v5 = vpack.c.bf16 %v3948_v29, %v3947_v60 }
0x1813   :  { %v4336_v11 = vadd.f32 %v4335_v14, %v4321_v44 }
0x1814   :  { %8668 = vmatprep.mubr.bf16.mxu1 %v4363_v5  ;;  %v9381_v0 = vpop.eup %9380 }
0x1815   :  { %v4322_v37 = vmul.f32 %v9381_v0, %v11784_v7 }
0x1817   :  { %v4337_v19 = vadd.f32 %v4336_v11, %v4322_v37 }
0x1818   :  { %v9383_v17 = vpop.eup %9382 }
0x1819   :  { %v4323_v22 = vmul.f32 %v9383_v17, %v11787_v2 }
0x181b   :  { %v4338_v36 = vadd.f32 %v4337_v19, %v4323_v22 }
0x181d   :  { %v4339_v59 = vrot.slane %v4338_v36, 4 }
0x181f   :  { %v4340_v31 = vadd.f32 %v4339_v59, %v4338_v36 }
0x1821   :  { %v4341_v30 = vrot.slane %v4340_v31, 2 }
0x1823   :  { %v4342_v48 = vadd.f32 %v4341_v30, %v4340_v31 }
0x1825   :  { %v4343_v29 = vrot.slane %v4342_v48, 1 }
0x1827   :  { %v4344_v57 = vadd.f32 %v4343_v29, %v4342_v48 }
0x1829   :  { %v4345_v60 = vadd.f32 1e-09, %v4344_v57 }
0x182b   :  { %9384 = vrcp.f32 %v4345_v60 }
0x1838   :  { %v9385_v5 = vpop.eup %9384 }
0x1839   :  { %v4361_v34 = vmul.f32 %v9385_v5, %v4322_v37  ;;  %v4362_v39 = vmul.f32 %v9385_v5, %v4323_v22  ;;  %v4359_v25 = vmul.f32 %v9385_v5, %v4320_v46  ;;  %v4360_v24 = vmul.f32 %v9385_v5, %v4321_v44  ;;  %v11884_v44 = vpop.permute.xlu1 %3919 }
0x183a   :  { %v4357_v0 = vmul.f32 %v9385_v5, %v4318_v50  ;;  %v4358_v2 = vmul.f32 %v9385_v5, %v4319_v8  ;;  %v4355_v17 = vmul.f32 %v9385_v5, %v4316_v47  ;;  %v4356_v19 = vmul.f32 %v9385_v5, %v4317_v21 }
0x183b   :  { %v4374_v7 = vpack.c.bf16 %v4362_v39, %v4361_v34  ;;  %v4373_v14 = vpack.c.bf16 %v4360_v24, %v4359_v25  ;;  %v4353_v36 = vmul.f32 %v9385_v5, %v11854_v62  ;;  %v4354_v37 = vmul.f32 %v9385_v5, %v11859_v23  ;;  %v11886_v62 = vpop.permute.xlu0 %3924 }
0x183c   :  { %v4372_v11 = vpack.c.bf16 %v4358_v2, %v4357_v0  ;;  %v4371_v30 = vpack.c.bf16 %v4356_v19, %v4355_v17  ;;  %v4351_v39 = vmul.f32 %v9385_v5, %v11846_v55  ;;  %v4352_v50 = vmul.f32 %v9385_v5, %v11851_v15 }
0x183d   :  { %8652 = vmatprep.subr.bf16.mxu1 %v4374_v7  ;;  %v4370_v46 = vpack.c.bf16 %v4354_v37, %v4353_v36  ;;  %v4349_v47 = vmul.f32 %v9385_v5, %v11837_v16  ;;  %v4350_v21 = vmul.f32 %v9385_v5, %v11843_v18  ;;  %v4347_v22 = vmul.f32 %v9385_v5, %v11831_v13  ;;  %v11890_v15 = vpop.permute.xlu1 %3929 }
0x183e   :  { %8653 = vmatpush3.bf16.msra.mxu1 %v4374_v7  ;;  %v4369_v8 = vpack.c.bf16 %v4352_v50, %v4351_v39  ;;  %v4348_v55 = vmul.f32 %v9385_v5, %v11834_v12  ;;  %v3949_v18 = vadd.f32 %v11884_v44, %v11794_v54  ;;  %v3950_v31 = vadd.f32 %v11886_v62, %v11796_v45 }
0x183f   :  { %8654 = vmatprep.subr.bf16.mxu1 %v4373_v14  ;;  %v4368_v23 = vpack.c.bf16 %v4350_v21, %v4349_v47  ;;  %v11892_v59 = vpop.permute.xlu0 %3934  ;;  %v3951_v13 = vadd.f32 %v11890_v15, %v11804_v27  ;;  %v4648_v54 = vpack.c.bf16 %v11593_v20, %v11598_v42  ;;  %v4646_v20 = vpack.c.bf16 %v11578_v28, %v11569_v32  ;;  %v9011_v32 = vld [vmem:[%s13370_s3 + $0x40] sm:$0xff]  }
0x1840   :  { %v4367_v16 = vpack.c.bf16 %v4348_v55, %v4347_v22  ;;  %v3952_v12 = vadd.f32 %v11892_v59, %v11812_v63  ;;  %v4364_v48 = vpack.c.bf16 %v3950_v31, %v3949_v18  ;;  %v4647_v63 = vpack.c.bf16 %v11609_v49, %v11614_v10  ;;  %8684 = vmatprep.mubr.msk.bf16.mxu0 %vm124_vm1, %v9011_v32  ;;  %v11986_v22 = vld [vmem:[%s13370_s3 + $0x58] sm:$0xff]  }
0x1841   :  { %v11903_v29 = vpop.permute.xlu1 %3939  ;;  %v4645_v42 = vpack.c.bf16 %v11633_v1, %v11638_v9 }
0x1842   :  { %8655 = vmatpush3.bf16.msra.mxu1 %v4373_v14  ;;  %v4365_v60 = vpack.c.bf16 %v3952_v12, %v3951_v13  ;;  %v3953_v45 = vadd.f32 %v11903_v29, %v11820_v26 }
0x1843   :  { %8656 = vmatprep.subr.bf16.mxu1 %v4372_v11  ;;  %v11905_v57 = vpop.permute.xlu0 %3944 }
0x1844   :  { %v3954_v27 = vadd.f32 %v11905_v57, %v11828_v40 }
0x1846   :  { %8657 = vmatpush3.bf16.msra.mxu1 %v4372_v11  ;;  %v4366_v5 = vpack.c.bf16 %v3954_v27, %v3953_v45 }
0x1847   :  { %8658 = vmatprep.subr.bf16.mxu1 %v4371_v30 }
0x184a   :  { %8659 = vmatpush3.bf16.msra.mxu1 %v4371_v30  ;;  %v13387_v30 = vld [vmem:[#allocation6_spill] sm:$0xff] }
0x184b   :  { %8660 = vmatprep.subr.bf16.mxu1 %v4370_v46 }
0x184e   :  { %8661 = vmatpush3.bf16.msra.mxu1 %v4370_v46  ;;  %v11969_v46 = vld [vmem:[%s13370_s3 + $0x50] sm:$0xff]  }
0x184f   :  { %8662 = vmatprep.subr.bf16.mxu1 %v4369_v8 }
0x1852   :  { %8663 = vmatpush3.bf16.msra.mxu1 %v4369_v8 }
0x1853   :  { %8664 = vmatprep.subr.bf16.mxu1 %v4368_v23 }
0x1856   :  { %8665 = vmatpush3.bf16.msra.mxu1 %v4368_v23 }
0x1857   :  { %8666 = vmatprep.subr.bf16.mxu1 %v4367_v16 }
0x185a   :  { %8667 = vmatpush3.bf16.msra.mxu1 %v4367_v16 }
0x185b   :  { %8692 = vmatprep.subr.bf16.mxu1 %v13383_v58 }
0x185d   :  { %8669 = vmatmul.mubr.bf16.vlgmr.msra.gmra.mxu1 %v4364_v48 }
0x185e   :  { %8672 = vmatprep.mubr.bf16.mxu1 %v4365_v60  ;;  %8693 = vmatpush3.bf16.msra.mxu1 %v4648_v54 }
0x185f   :  { %8694 = vmatprep.subr.bf16.mxu1 %v13383_v58 }
0x1862   :  { %8695 = vmatpush3.bf16.msra.mxu1 %v4647_v63 }
0x1863   :  { %8696 = vmatprep.subr.bf16.mxu1 %v13383_v58 }
0x1865   :  { %8673 = vmatmul.mubr.bf16.gmra.mxu1 %v4366_v5 }
0x1866   :  { %8697 = vmatpush3.bf16.msra.mxu1 %v4646_v20  ;;  %8700 = vmatprep.mubr.msk.bf16.mxu1 %vm9711_vm0, %v13383_v58 }
0x1867   :  { %8698 = vmatprep.subr.bf16.mxu1 %v13383_v58 }
0x186a   :  { %8699 = vmatpush3.bf16.msra.mxu1 %v4645_v42 }
0x186d   :  { %8701 = vmatmul.mubr.msk.bf16.vlgmr.msra.gmra.mxu1 %vm124_vm1, %v11650_v33 }
0x186e   :  { %8704 = vmatprep.mubr.msk.bf16.mxu1 %vm9711_vm0, %v13383_v58 }
0x1875   :  { %8705 = vmatmul.mubr.msk.bf16.gmra.mxu1 %vm124_vm1, %v11675_v52 }
0x1876   :  { %8708 = vmatprep.mubr.msk.bf16.mxu1 %vm9711_vm0, %v13383_v58 }
0x187d   :  { %8709 = vmatmul.mubr.msk.bf16.gmra.mxu1 %vm124_vm1, %v11690_v56 }
0x187e   :  { %8712 = vmatprep.mubr.msk.bf16.mxu1 %vm9711_vm0, %v13383_v58 }
0x1885   :  { %8713 = vmatmul.mubr.msk.bf16.gmra.mxu1 %vm124_vm1, %v11705_v6 }
0x1886   :  { %8716 = vmatprep.mubr.msk.bf16.mxu1 %vm9711_vm0, %v13383_v58 }
0x188d   :  { %8717 = vmatmul.mubr.msk.bf16.gmra.mxu1 %vm124_vm1, %v11720_v51 }
0x188e   :  { %8780 = vmatprep.mubr.msk.bf16.mxu1 %vm124_vm1, %v9011_v32 }
0x191d   :  { %v8670_v28 = vpop.f32.mrf.mxu1 }
0x191e   :  { %v4442_v0 = vsub.f32 %v11566_v43, %v8670_v28  ;;  %v13388_v43 = vld [vmem:[#allocation5_spill] sm:$0xff] }
0x191f   :  { %v4409_v49 = vpop.f32.mrf.mxu1 }
0x1921   :  { %v8671_v10 = vpop.f32.mrf.mxu1 }
0x1922   :  { %v4443_v24 = vsub.f32 %v11575_v41, %v8671_v10 }
0x1923   :  { %v4412_v1 = vpop.f32.mrf.mxu1 }
0x1924   :  { %v4449_v2 = vpack.c.bf16 %v4443_v24, %v4442_v0 }
0x1925   :  { %v8674_v9 = vpop.f32.mrf.mxu1 }
0x1926   :  { %v4446_v56 = vsub.f32 %v11595_v61, %v8674_v9 }
0x1927   :  { %v4425_v33 = vpop.f32.mrf.mxu1 }
0x1928   :  { %v4444_v26 = vsub.f32 %v11611_v3, %v4425_v33 }
0x1929   :  { %v8675_v52 = vpop.f32.mrf.mxu1 }
0x192a   :  { %v4447_v6 = vsub.f32 %v11590_v38, %v8675_v52  ;;  %v4441_v38 = vsub.f32 %v11630_v4, %v4412_v1  ;;  %v11964_v4 = vld [vmem:[%s13370_s3 + $0x48] sm:$0xff]  }
0x192b   :  { %v4428_v51 = vpop.f32.mrf.mxu1 }
0x192c   :  { %v4451_v40 = vpack.c.bf16 %v4447_v6, %v4446_v56  ;;  %v4445_v34 = vsub.f32 %v11606_v53, %v4428_v51  ;;  %v4440_v53 = vsub.f32 %v11635_v35, %v4409_v49 }
0x192d   :  { %v4683_v25 = vpop.f32.mrf.mxu1 }
0x192e   :  { %v4450_v7 = vpack.c.bf16 %v4445_v34, %v4444_v26  ;;  %8676 = vmatprep.subr.bf16.mxu0 %v4451_v40  ;;  %4730 = vxpose.xlu1.b32.start [1/2] (short) %v4683_v25, 128  ;;  %v4448_v41 = vpack.c.bf16 %v4441_v38, %v4440_v53 }
0x192f   :  { %8677 = vmatpush3.bf16.msra.mxu0 %v4451_v40  ;;  %v8702_v14 = vpop.f32.mrf.mxu1 }
0x1930   :  { %8678 = vmatprep.subr.bf16.mxu0 %v4450_v7 }
0x1931   :  { %v4686_v61 = vpop.f32.mrf.mxu1 }
0x1932   :  { %4731 = vxpose.xlu1.b32.end [2/2] (short) %v4686_v61, 128 }
0x1933   :  { %8679 = vmatpush3.bf16.msra.mxu0 %v4450_v7  ;;  %v8703_v3 = vpop.f32.mrf.mxu1 }
0x1934   :  { %8680 = vmatprep.subr.bf16.mxu0 %v4449_v2 }
0x1935   :  { %v4691_v11 = vpop.f32.mrf.mxu1 }
0x1936   :  { %v11956_v36 = vadd.f32 %v4691_v11, %v13387_v30 }
0x1937   :  { %8681 = vmatpush3.bf16.msra.mxu0 %v4449_v2  ;;  %v8706_v17 = vpop.f32.mrf.mxu1 }
0x1938   :  { %8682 = vmatprep.subr.bf16.mxu0 %v4448_v41 }
0x1939   :  { %v4694_v19 = vpop.f32.mrf.mxu1 }
0x193a   :  { %v11959_v37 = vadd.f32 %v4694_v19, %v13388_v43 }
0x193b   :  { %8683 = vmatpush3.bf16.msra.mxu0 %v4448_v41  ;;  %v8707_v35 = vpop.f32.mrf.mxu1 }
0x193c   :  { %v5138_v39 = vpack.c.bf16 %v11959_v37, %v11956_v36  ;;  %8720 = vmatprep.subr.mxu0 %v4686_v61 }
0x193d   :  { %v4699_v50 = vpop.f32.mrf.mxu1 }
0x193e   :  { %8685 = vmatmul.mubr.msk.bf16.vlgmr.msra.gmra.mxu0 %vm124_vm1, %v11964_v4  ;;  %v11978_v21 = vadd.f32 %v4699_v50, %v11884_v44 }
0x193f   :  { %v8710_v8 = vpop.f32.mrf.mxu1  ;;  %8721 = vmatpush3.msra.mxu0 %v4686_v61  ;;  %8688 = vmatprep.mubr.msk.bf16.mxu0 %vm124_vm1, %v11969_v46 }
0x1940   :  { %8722 = vmatprep.subr.mxu0 %v4683_v25 }
0x1941   :  { %v4702_v47 = vpop.f32.mrf.mxu1  ;;  %8723 = vmatpush3.msra.mxu0 %v4683_v25 }
0x1942   :  { %v11981_v23 = vadd.f32 %v4702_v47, %v11886_v62 }
0x1943   :  { %v8711_v55 = vpop.f32.mrf.mxu1 }
0x1944   :  { %v5139_v16 = vpack.c.bf16 %v11981_v23, %v11978_v21  ;;  %v12284_v21 = vld [vmem:[#allocation2 + $0x170] sm:$0xff] }
0x1945   :  { %v4707_v18 = vpop.f32.mrf.mxu1 }
0x1946   :  { %8689 = vmatmul.mubr.msk.bf16.gmra.mxu0 %vm124_vm1, %v11986_v22  ;;  %v11993_v44 = vadd.f32 %v4707_v18, %v11890_v15 }
0x1947   :  { %v8714_v31 = vpop.f32.mrf.mxu1 }
0x1949   :  { %v4710_v13 = vpop.f32.mrf.mxu1 }
0x194a   :  { %v11996_v62 = vadd.f32 %v4710_v13, %v11892_v59 }
0x194b   :  { %v8715_v12 = vpop.f32.mrf.mxu1 }
0x194c   :  { %v5140_v48 = vpack.c.bf16 %v11996_v62, %v11993_v44 }
0x194d   :  { %v4715_v60 = vpop.f32.mrf.mxu1 }
0x194e   :  { %v12001_v27 = vadd.f32 %v4715_v60, %v11903_v29 }
0x194f   :  { %v8718_v54 = vpop.f32.mrf.mxu1 }
0x1951   :  { %v4718_v45 = vpop.f32.mrf.mxu1 }
0x1952   :  { %v12004_v63 = vadd.f32 %v4718_v45, %v11905_v57 }
0x1953   :  { %v8719_v5 = vpop.f32.mrf.mxu1 }
0x1954   :  { %v5141_v15 = vpack.c.bf16 %v12004_v63, %v12001_v27 }
0x19aa   :  { %v4746_v20 = vpop.trf.xlu1 }
0x19ab   :  { %8724 = vmatprep.mubr.msk.f32.mxu0 %vm293_vm2, %v4746_v20 }
0x19ae   :  { %v4747_v59 = vpop.trf.xlu1 }
0x19af   :  { %8725 = vmatmul.mubr.msk.f32.vlgmr.msra.gmra.mxu0 %vm293_vm2, %v4747_v59 }
0x19b2   :  { %v4748_v42 = vpop.trf.xlu1 }
0x19b3   :  { %8727 = vmatprep.mubr.msk.f32.mxu0 %vm293_vm2, %v4748_v42 }
0x19b6   :  { %v4749_v32 = vpop.trf.xlu1 }
0x19b7   :  { %8728 = vmatmul.mubr.msk.f32.gmra.mxu0 %vm293_vm2, %v4749_v32 }
0x19ba   :  { %v4750_v29 = vpop.trf.xlu1 }
0x19bb   :  { %8730 = vmatprep.mubr.msk.f32.mxu0 %vm293_vm2, %v4750_v29 }
0x19be   :  { %v4751_v57 = vpop.trf.xlu1 }
0x19bf   :  { %8731 = vmatmul.mubr.msk.f32.gmra.mxu0 %vm293_vm2, %v4751_v57 }
0x19c2   :  { %v4752_v28 = vpop.trf.xlu1 }
0x19c3   :  { %8733 = vmatprep.mubr.msk.f32.mxu0 %vm293_vm2, %v4752_v28 }
0x19c6   :  { %v4753_v49 = vpop.trf.xlu1 }
0x19c7   :  { %8734 = vmatmul.mubr.msk.f32.gmra.mxu0 %vm293_vm2, %v4753_v49 }
0x19ca   :  { %v4754_v10 = vpop.trf.xlu1 }
0x19cb   :  { %8736 = vmatprep.mubr.msk.f32.mxu0 %vm293_vm2, %v4754_v10 }
0x19ce   :  { %v4755_v1 = vpop.trf.xlu1 }
0x19cf   :  { %8737 = vmatmul.mubr.msk.f32.gmra.mxu0 %vm293_vm2, %v4755_v1 }
0x19d2   :  { %v4756_v9 = vpop.trf.xlu1 }
0x19d3   :  { %8739 = vmatprep.mubr.msk.f32.mxu0 %vm293_vm2, %v4756_v9 }
0x19d6   :  { %v4757_v33 = vpop.trf.xlu1 }
0x19d7   :  { %8740 = vmatmul.mubr.msk.f32.gmra.mxu0 %vm293_vm2, %v4757_v33 }
0x19da   :  { %v4758_v52 = vpop.trf.xlu1 }
0x19db   :  { %8742 = vmatprep.mubr.msk.f32.mxu0 %vm293_vm2, %v4758_v52 }
0x19de   :  { %v4759_v56 = vpop.trf.xlu1 }
0x19df   :  { %8743 = vmatmul.mubr.msk.f32.gmra.mxu0 %vm293_vm2, %v4759_v56 }
0x19e2   :  { %v4760_v6 = vpop.trf.xlu1 }
0x19e3   :  { %8745 = vmatprep.mubr.msk.f32.mxu0 %vm293_vm2, %v4760_v6 }
0x19e6   :  { %v4761_v51 = vpop.trf.xlu1 }
0x19e7   :  { %8746 = vmatmul.mubr.msk.f32.gmra.mxu0 %vm293_vm2, %v4761_v51 }
0x19e8   :  { %8764 = vmatprep.mubr.bf16.mxu0 %v5138_v39 }
0x19fe   :  { %v12024_v26 = vpop.f32.mrf.mxu0 }
0x1a00   :  { %v12026_v40 = vpop.f32.mrf.mxu0 }
0x1a02   :  { %v12028_v34 = vpop.f32.mrf.mxu0 }
0x1a04   :  { %v12030_v25 = vpop.f32.mrf.mxu0 }
0x1a06   :  { %v12032_v24 = vpop.f32.mrf.mxu0 }
0x1a08   :  { %v12034_v7 = vpop.f32.mrf.mxu0 }
0x1a0a   :  { %v12036_v14 = vpop.f32.mrf.mxu0 }
0x1a0c   :  { %v12038_v0 = vpop.f32.mrf.mxu0 }
0x1a6f   :  { %v8726_v61 = vpop.f32.mrf.mxu0 }
0x1a70   :  { %4957 = vmax.xlane.f32.xlu0 %v8726_v61 }
0x1a71   :  { %v4876_v2 = vpop.f32.mrf.mxu0 }
0x1a74   :  { %4955 = vmax.xlane.f32.xlu0 %v4876_v2 }
0x1a77   :  { %v8729_v38 = vpop.f32.mrf.mxu0 }
0x1a78   :  { %4961 = vmax.xlane.f32.xlu0 %v8729_v38 }
0x1a79   :  { %v4886_v3 = vpop.f32.mrf.mxu0 }
0x1a7c   :  { %4959 = vmax.xlane.f32.xlu0 %v4886_v3 }
0x1a7f   :  { %v8732_v53 = vpop.f32.mrf.mxu0 }
0x1a80   :  { %4965 = vmax.xlane.f32.xlu0 %v8732_v53 }
0x1a81   :  { %v4896_v11 = vpop.f32.mrf.mxu0 }
0x1a82   :  { %4963 = vmax.xlane.f32.xlu1 %v4896_v11 }
0x1a87   :  { %v8735_v41 = vpop.f32.mrf.mxu0 }
0x1a88   :  { %4969 = vmax.xlane.f32.xlu0 %v8735_v41 }
0x1a89   :  { %v4906_v17 = vpop.f32.mrf.mxu0 }
0x1a8c   :  { %4967 = vmax.xlane.f32.xlu0 %v4906_v17 }
0x1a8f   :  { %v8738_v19 = vpop.f32.mrf.mxu0 }
0x1a90   :  { %4973 = vmax.xlane.f32.xlu0 %v8738_v19 }
0x1a91   :  { %v12040_v30 = vpop.f32.mrf.mxu0 }
0x1a94   :  { %4971 = vmax.xlane.f32.xlu0 %v12040_v30 }
0x1a97   :  { %v12043_v36 = vpop.f32.mrf.mxu0 }
0x1a98   :  { %4977 = vmax.xlane.f32.xlu0 %v12043_v36 }
0x1a99   :  { %v12046_v43 = vpop.f32.mrf.mxu0 }
0x1a9c   :  { %4975 = vmax.xlane.f32.xlu0 %v12046_v43 }
0x1a9f   :  { %v12049_v37 = vpop.f32.mrf.mxu0 }
0x1aa0   :  { %4981 = vmax.xlane.f32.xlu0 %v12049_v37 }
0x1aa1   :  { %v12052_v35 = vpop.f32.mrf.mxu0 }
0x1aa4   :  { %4979 = vmax.xlane.f32.xlu0 %v12052_v35 }
0x1aa7   :  { %v12055_v39 = vpop.f32.mrf.mxu0 }
0x1aa9   :  { %v12057_v50 = vpop.f32.mrf.mxu0 }
0x1aaa   :  { %4983 = vmax.xlane.f32.xlu0 %v12057_v50 }
0x1aae   :  { %4985 = vmax.xlane.f32.xlu0 %v12055_v39 }
0x1af9   :  { %v4958_v8 = vpop.xlane.xlu0 %4957 }
0x1afa   :  { %v4988_v47 = vsub.f32 %v8726_v61, %v4958_v8 }
0x1afc   :  { %v5005_v55 = vmul.f32 1.442695, %v4988_v47 }
0x1afd   :  { %v4956_v18 = vpop.xlane.xlu0 %4955 }
0x1afe   :  { %9386 = vpow2.f32 %v5005_v55  ;;  %v4987_v31 = vsub.f32 %v4876_v2, %v4956_v18 }
0x1b00   :  { %v5003_v13 = vmul.f32 1.442695, %v4987_v31 }
0x1b01   :  { %v4962_v12 = vpop.xlane.xlu0 %4961 }
0x1b02   :  { %9388 = vpow2.f32 %v5003_v13  ;;  %v4990_v60 = vsub.f32 %v8729_v38, %v4962_v12 }
0x1b04   :  { %v5009_v54 = vmul.f32 1.442695, %v4990_v60 }
0x1b05   :  { %v4960_v45 = vpop.xlane.xlu0 %4959 }
0x1b06   :  { %9390 = vpow2.f32 %v5009_v54  ;;  %v4989_v5 = vsub.f32 %v4886_v3, %v4960_v45 }
0x1b08   :  { %v5007_v20 = vmul.f32 1.442695, %v4989_v5 }
0x1b09   :  { %v4966_v59 = vpop.xlane.xlu0 %4965 }
0x1b0a   :  { %9392 = vpow2.f32 %v5007_v20  ;;  %v4992_v42 = vsub.f32 %v8732_v53, %v4966_v59 }
0x1b0b   :  { %v12061_v32 = vpop.eup %9386  ;;  %v4964_v29 = vpop.xlane.xlu1 %4963 }
0x1b0c   :  { %v5013_v57 = vmul.f32 1.442695, %v4992_v42  ;;  %v4991_v28 = vsub.f32 %v4896_v11, %v4964_v29  ;;  %5037 = vadd.xlane.f32.xlu0 %v12061_v32 }
0x1b0e   :  { %9394 = vpow2.f32 %v5013_v57  ;;  %v5011_v49 = vmul.f32 1.442695, %v4991_v28 }
0x1b0f   :  { %v12064_v10 = vpop.eup %9388 }
0x1b10   :  { %5035 = vadd.xlane.f32.xlu0 %v12064_v10  ;;  %9396 = vpow2.f32 %v5011_v49 }
0x1b11   :  { %v4970_v1 = vpop.xlane.xlu0 %4969 }
0x1b12   :  { %v4994_v9 = vsub.f32 %v8735_v41, %v4970_v1 }
0x1b13   :  { %v12067_v33 = vpop.eup %9390 }
0x1b14   :  { %v5017_v52 = vmul.f32 1.442695, %v4994_v9  ;;  %5041 = vadd.xlane.f32.xlu0 %v12067_v33 }
0x1b15   :  { %v4968_v56 = vpop.xlane.xlu0 %4967 }
0x1b16   :  { %9398 = vpow2.f32 %v5017_v52  ;;  %v4993_v6 = vsub.f32 %v4906_v17, %v4968_v56 }
0x1b17   :  { %v12070_v51 = vpop.eup %9392 }
0x1b18   :  { %v5015_v61 = vmul.f32 1.442695, %v4993_v6  ;;  %5039 = vadd.xlane.f32.xlu0 %v12070_v51  ;;  %v7650_v6 = vld [vmem:[%s13371_s4 + $0xb0] sm:$0xff] }
0x1b19   :  { %v4974_v2 = vpop.xlane.xlu0 %4973 }
0x1b1a   :  { %9400 = vpow2.f32 %v5015_v61  ;;  %v4996_v38 = vsub.f32 %v8738_v19, %v4974_v2  ;;  %v7648_v61 = vld [vmem:[%s13371_s4 + $0xa0] sm:$0xff]  ;;  %v7649_v2 = vld [vmem:[%s13371_s4 + $0xa8] sm:$0xff] }
0x1b1b   :  { %v12073_v3 = vpop.eup %9394 }
0x1b1c   :  { %v5021_v53 = vmul.f32 1.442695, %v4996_v38  ;;  %5045 = vadd.xlane.f32.xlu0 %v12073_v3  ;;  %v7646_v38 = vld [vmem:[%s13371_s4 + $0x90] sm:$0xff] }
0x1b1d   :  { %v4972_v11 = vpop.xlane.xlu0 %4971  ;;  %v12077_v8 = vpop.eup %9396 }
0x1b1e   :  { %9402 = vpow2.f32 %v5021_v53  ;;  %v4995_v41 = vsub.f32 %v12040_v30, %v4972_v11  ;;  %v7647_v53 = vld [vmem:[%s13371_s4 + $0x98] sm:$0xff]  ;;  %v7644_v11 = vld [vmem:[%s13371_s4 + $0x80] sm:$0xff] }
0x1b20   :  { %v5019_v17 = vmul.f32 1.442695, %v4995_v41  ;;  %5043 = vadd.xlane.f32.xlu0 %v12077_v8  ;;  %v7645_v41 = vld [vmem:[%s13371_s4 + $0x88] sm:$0xff] }
0x1b21   :  { %v4978_v47 = vpop.xlane.xlu0 %4977 }
0x1b22   :  { %9404 = vpow2.f32 %v5019_v17  ;;  %v4998_v55 = vsub.f32 %v12043_v36, %v4978_v47 }
0x1b23   :  { %v12081_v18 = vpop.eup %9398 }
0x1b24   :  { %v5025_v19 = vmul.f32 1.442695, %v4998_v55  ;;  %5049 = vadd.xlane.f32.xlu0 %v12081_v18 }
0x1b25   :  { %v4976_v31 = vpop.xlane.xlu0 %4975 }
0x1b26   :  { %9406 = vpow2.f32 %v5025_v19  ;;  %v4997_v13 = vsub.f32 %v12046_v43, %v4976_v31 }
0x1b27   :  { %v12085_v12 = vpop.eup %9400 }
0x1b28   :  { %v5023_v30 = vmul.f32 1.442695, %v4997_v13  ;;  %5047 = vadd.xlane.f32.xlu0 %v12085_v12 }
0x1b29   :  { %v4982_v60 = vpop.xlane.xlu0 %4981 }
0x1b2a   :  { %9408 = vpow2.f32 %v5023_v30  ;;  %v5000_v54 = vsub.f32 %v12049_v37, %v4982_v60 }
0x1b2b   :  { %v12089_v45 = vpop.eup %9402 }
0x1b2c   :  { %v5029_v36 = vmul.f32 1.442695, %v5000_v54  ;;  %5053 = vadd.xlane.f32.xlu0 %v12089_v45 }
0x1b2d   :  { %v4980_v5 = vpop.xlane.xlu0 %4979 }
0x1b2e   :  { %9410 = vpow2.f32 %v5029_v36  ;;  %v4999_v20 = vsub.f32 %v12052_v35, %v4980_v5 }
0x1b2f   :  { %v12093_v59 = vpop.eup %9404 }
0x1b30   :  { %v5027_v43 = vmul.f32 1.442695, %v4999_v20  ;;  %5051 = vadd.xlane.f32.xlu0 %v12093_v59 }
0x1b32   :  { %9412 = vpow2.f32 %v5027_v43 }
0x1b33   :  { %v12096_v42 = vpop.eup %9406  ;;  %v4984_v29 = vpop.xlane.xlu0 %4983 }
0x1b34   :  { %v5001_v37 = vsub.f32 %v12057_v50, %v4984_v29  ;;  %5057 = vadd.xlane.f32.xlu0 %v12096_v42 }
0x1b36   :  { %v5031_v57 = vmul.f32 1.442695, %v5001_v37 }
0x1b37   :  { %v12100_v28 = vpop.eup %9408  ;;  %v4986_v49 = vpop.xlane.xlu0 %4985 }
0x1b38   :  { %9414 = vpow2.f32 %v5031_v57  ;;  %v5002_v35 = vsub.f32 %v12055_v39, %v4986_v49  ;;  %5055 = vadd.xlane.f32.xlu0 %v12100_v28  ;;  %v7651_v39 = vld [vmem:[%s13371_s4 + $0xb8] sm:$0xff] }
0x1b3a   :  { %v5033_v1 = vmul.f32 1.442695, %v5002_v35 }
0x1b3b   :  { %v12104_v9 = vpop.eup %9410 }
0x1b3c   :  { %9416 = vpow2.f32 %v5033_v1  ;;  %5061 = vadd.xlane.f32.xlu1 %v12104_v9 }
0x1b3f   :  { %v12107_v52 = vpop.eup %9412 }
0x1b40   :  { %5059 = vadd.xlane.f32.xlu0 %v12107_v52 }
0x1b45   :  { %v12110_v50 = vpop.eup %9414 }
0x1b46   :  { %5063 = vadd.xlane.f32.xlu0 %v12110_v50 }
0x1b49   :  { %v12113_v56 = vpop.eup %9416 }
0x1b4a   :  { %5065 = vadd.xlane.f32.xlu1 %v12113_v56 }
0x1b5b   :  { %4489 = vperm.xlu1 %8986, %v7651_v39  }
0x1b5c   :  { %4484 = vperm.xlu0 %8987, %v7650_v6  }
0x1b5f   :  { %4474 = vperm.xlu1 %8986, %v7648_v61  }
0x1b60   :  { %4479 = vperm.xlu0 %8987, %v7649_v2  }
0x1b63   :  { %4464 = vperm.xlu1 %8986, %v7646_v38  }
0x1b64   :  { %4469 = vperm.xlu0 %8987, %v7647_v53  }
0x1b67   :  { %4454 = vperm.xlu1 %8986, %v7644_v11  }
0x1b68   :  { %4459 = vperm.xlu0 %8987, %v7645_v41  }
0x1b95   :  { %v5038_v17 = vpop.xlane.xlu0 %5037 }
0x1b99   :  { %v5036_v47 = vpop.xlane.xlu0 %5035 }
0x1b9a   :  { %9418 = vrcp.f32 %v5036_v47 }
0x1b9b   :  { %9420 = vrcp.f32 %v5038_v17 }
0x1b9d   :  { %v5042_v55 = vpop.xlane.xlu0 %5041 }
0x1ba1   :  { %v5040_v19 = vpop.xlane.xlu0 %5039 }
0x1ba2   :  { %9422 = vrcp.f32 %v5040_v19 }
0x1ba3   :  { %9424 = vrcp.f32 %v5042_v55 }
0x1ba5   :  { %v5046_v31 = vpop.xlane.xlu0 %5045 }
0x1ba7   :  { %v9419_v54 = vpop.eup %9418 }
0x1ba8   :  { %v9421_v5 = vpop.eup %9420  ;;  %v12141_v43 = vmul.f32 %v9419_v54, %v12064_v10 }
0x1ba9   :  { %v5044_v13 = vpop.xlane.xlu0 %5043  ;;  %v12144_v37 = vmul.f32 %v9421_v5, %v12061_v32 }
0x1baa   :  { %9426 = vrcp.f32 %v5044_v13 }
0x1bab   :  { %9428 = vrcp.f32 %v5046_v31  ;;  %v5099_v35 = vadd.f32 %v12144_v37, %v12141_v43 }
0x1bad   :  { %v5050_v30 = vpop.xlane.xlu0 %5049 }
0x1baf   :  { %v9423_v20 = vpop.eup %9422 }
0x1bb0   :  { %v12147_v57 = vmul.f32 %v9423_v20, %v12070_v51  ;;  %v9425_v49 = vpop.eup %9424 }
0x1bb1   :  { %v5048_v60 = vpop.xlane.xlu0 %5047  ;;  %v12153_v10 = vmul.f32 %v9425_v49, %v12067_v33 }
0x1bb2   :  { %9430 = vrcp.f32 %v5048_v60  ;;  %v5100_v6 = vadd.f32 %v5099_v35, %v12147_v57 }
0x1bb3   :  { %9432 = vrcp.f32 %v5050_v30 }
0x1bb4   :  { %v5101_v2 = vadd.f32 %v5100_v6, %v12153_v10 }
0x1bb5   :  { %v5054_v36 = vpop.xlane.xlu0 %5053 }
0x1bb7   :  { %v9427_v1 = vpop.eup %9426 }
0x1bb8   :  { %v12156_v61 = vmul.f32 %v9427_v1, %v12077_v8  ;;  %v9429_v51 = vpop.eup %9428 }
0x1bb9   :  { %v5052_v29 = vpop.xlane.xlu0 %5051  ;;  %v12161_v11 = vmul.f32 %v9429_v51, %v12073_v3 }
0x1bba   :  { %9434 = vrcp.f32 %v5052_v29  ;;  %v5102_v53 = vadd.f32 %v5101_v2, %v12156_v61 }
0x1bbb   :  { %9436 = vrcp.f32 %v5054_v36 }
0x1bbc   :  { %v5103_v17 = vadd.f32 %v5102_v53, %v12161_v11 }
0x1bbd   :  { %v5058_v39 = vpop.xlane.xlu0 %5057 }
0x1bbf   :  { %v9431_v38 = vpop.eup %9430 }
0x1bc0   :  { %v12164_v41 = vmul.f32 %v9431_v38, %v12085_v12  ;;  %v9433_v33 = vpop.eup %9432 }
0x1bc1   :  { %v5056_v32 = vpop.xlane.xlu0 %5055  ;;  %v12169_v31 = vmul.f32 %v9433_v33, %v12081_v18 }
0x1bc2   :  { %9438 = vrcp.f32 %v5056_v32  ;;  %v5104_v55 = vadd.f32 %v5103_v17, %v12164_v41 }
0x1bc3   :  { %9440 = vrcp.f32 %v5058_v39 }
0x1bc4   :  { %v5105_v12 = vadd.f32 %v5104_v55, %v12169_v31 }
0x1bc5   :  { %v5062_v19 = vpop.xlane.xlu1 %5061 }
0x1bc7   :  { %v9435_v8 = vpop.eup %9434 }
0x1bc8   :  { %v12172_v13 = vmul.f32 %v9435_v8, %v12093_v59  ;;  %v9437_v3 = vpop.eup %9436 }
0x1bc9   :  { %v5060_v47 = vpop.xlane.xlu0 %5059  ;;  %v12177_v36 = vmul.f32 %v9437_v3, %v12089_v45 }
0x1bca   :  { %9442 = vrcp.f32 %v5060_v47  ;;  %v5106_v54 = vadd.f32 %v5105_v12, %v12172_v13 }
0x1bcb   :  { %9444 = vrcp.f32 %v5062_v19 }
0x1bcc   :  { %v5107_v20 = vadd.f32 %v5106_v54, %v12177_v36 }
0x1bcf   :  { %v9439_v30 = vpop.eup %9438  ;;  %v5064_v60 = vpop.xlane.xlu0 %5063 }
0x1bd0   :  { %9446 = vrcp.f32 %v5064_v60  ;;  %v12180_v5 = vmul.f32 %v9439_v30, %v12100_v28  ;;  %v9441_v59 = vpop.eup %9440 }
0x1bd1   :  { %v12189_v39 = vmul.f32 %v9441_v59, %v12096_v42 }
0x1bd2   :  { %v5108_v29 = vadd.f32 %v5107_v20, %v12180_v5 }
0x1bd3   :  { %v5066_v18 = vpop.xlane.xlu1 %5065 }
0x1bd4   :  { %9448 = vrcp.f32 %v5066_v18  ;;  %v5109_v32 = vadd.f32 %v5108_v29, %v12189_v39 }
0x1bd7   :  { %v9443_v49 = vpop.eup %9442  ;;  %v12184_v35 = vpop.permute.xlu1 %4489 }
0x1bd8   :  { %v12186_v1 = vpop.permute.xlu0 %4484  ;;  %v5095_v45 = vmul.f32 %v9443_v49, %v12107_v52  ;;  %v12194_v28 = vadd.f32 %v12036_v14, %v12184_v35  ;;  %v9445_v51 = vpop.eup %9444 }
0x1bd9   :  { %v12198_v6 = vadd.f32 %v12032_v24, %v12186_v1  ;;  %v5096_v24 = vmul.f32 %v9445_v51, %v12104_v9 }
0x1bda   :  { %4603 = vadd.xlane.f32.xlu0 %v12194_v28  ;;  %v4620_v42 = vmul.f32 %v12194_v28, %v12194_v28  ;;  %v5110_v2 = vadd.f32 %v5109_v32, %v5095_v45 }
0x1bdb   :  { %4601 = vadd.xlane.f32.xlu1 %v12198_v6  ;;  %v4619_v52 = vmul.f32 %v12198_v6, %v12198_v6  ;;  %v12207_v38 = vpop.permute.xlu1 %4474 }
0x1bdc   :  { %v12209_v53 = vpop.permute.xlu0 %4479  ;;  %v12215_v17 = vadd.f32 %v12034_v7, %v12207_v38  ;;  %v5111_v47 = vadd.f32 %v5110_v2, %v5096_v24 }
0x1bdd   :  { %v9447_v14 = vpop.eup %9446  ;;  %v12219_v8 = vadd.f32 %v12038_v0, %v12209_v53 }
0x1bde   :  { %4633 = vadd.xlane.f32.xlu0 %v4619_v52  ;;  %v5097_v33 = vmul.f32 %v9447_v14, %v12110_v50  ;;  %v4617_v9 = vmul.f32 %v12215_v17, %v12215_v17 }
0x1bdf   :  { %4635 = vadd.xlane.f32.xlu1 %v4620_v42  ;;  %v4618_v7 = vmul.f32 %v12219_v8, %v12219_v8  ;;  %v12228_v12 = vpop.permute.xlu1 %4464 }
0x1be0   :  { %v5112_v3 = vadd.f32 %v5111_v47, %v5097_v33  ;;  %v12230_v0 = vpop.permute.xlu0 %4469  ;;  %v12234_v60 = vadd.f32 %v12024_v26, %v12228_v12 }
0x1be1   :  { %v9449_v55 = vpop.eup %9448 }
0x1be2   :  { %4597 = vadd.xlane.f32.xlu0 %v12215_v17  ;;  %v5098_v19 = vmul.f32 %v9449_v55, %v12113_v56  ;;  %v12238_v56 = vadd.f32 %v12028_v34, %v12230_v0  ;;  %v4615_v20 = vmul.f32 %v12234_v60, %v12234_v60 }
0x1be3   :  { %4599 = vadd.xlane.f32.xlu1 %v12219_v8  ;;  %v12246_v49 = vpop.permute.xlu1 %4454 }
0x1be4   :  { %v5113_v50 = vadd.f32 %v5112_v3, %v5098_v19  ;;  %v4616_v59 = vmul.f32 %v12238_v56, %v12238_v56  ;;  %v12248_v26 = vpop.permute.xlu0 %4459  ;;  %v12252_v32 = vadd.f32 %v12026_v40, %v12246_v49 }
0x1be5   :  { %v12256_v51 = vadd.f32 %v12030_v25, %v12248_v26 }
0x1be6   :  { %4629 = vadd.xlane.f32.xlu0 %v4617_v9  ;;  %v5114_v30 = vrot.slane %v5113_v50, 4 }
0x1be7   :  { %4631 = vadd.xlane.f32.xlu1 %v4618_v7 }
0x1be8   :  { %v5115_v54 = vadd.f32 %v5114_v30, %v5113_v50 }
0x1bea   :  { %4593 = vadd.xlane.f32.xlu0 %v12234_v60  ;;  %v5116_v18 = vrot.slane %v5115_v54, 2 }
0x1beb   :  { %4595 = vadd.xlane.f32.xlu1 %v12238_v56 }
0x1bec   :  { %v5117_v29 = vadd.f32 %v5116_v18, %v5115_v54 }
0x1bee   :  { %4625 = vadd.xlane.f32.xlu0 %v4615_v20  ;;  %v5118_v34 = vrot.slane %v5117_v29, 1 }
0x1bef   :  { %4627 = vadd.xlane.f32.xlu1 %v4616_v59 }
0x1bf0   :  { %v5119_v42 = vadd.f32 %v5118_v34, %v5117_v29 }
0x1bf2   :  { %4589 = vadd.xlane.f32.xlu0 %v12252_v32  ;;  %v5120_v52 = vadd.f32 1e-09, %v5119_v42  ;;  %v12296_v42 = vld [vmem:[#allocation2 + $0x158] sm:$0xff] }
0x1bf3   :  { %4591 = vadd.xlane.f32.xlu1 %v12256_v51 }
0x1bf4   :  { %9450 = vrcp.f32 %v5120_v52 }
0x1c01   :  { %v9451_v2 = vpop.eup %9450 }
0x1c02   :  { %v5136_v14 = vmul.f32 %v9451_v2, %v5097_v33  ;;  %v5137_v47 = vmul.f32 %v9451_v2, %v5098_v19  ;;  %v5134_v55 = vmul.f32 %v9451_v2, %v5095_v45  ;;  %v5135_v3 = vmul.f32 %v9451_v2, %v5096_v24 }
0x1c03   :  { %v5132_v7 = vmul.f32 %v9451_v2, %v12180_v5  ;;  %v5133_v25 = vmul.f32 %v9451_v2, %v12189_v39  ;;  %v5130_v30 = vmul.f32 %v9451_v2, %v12172_v13  ;;  %v5131_v54 = vmul.f32 %v9451_v2, %v12177_v36 }
0x1c04   :  { %v5149_v9 = vpack.c.bf16 %v5137_v47, %v5136_v14  ;;  %v5148_v40 = vpack.c.bf16 %v5135_v3, %v5134_v55  ;;  %v5128_v45 = vmul.f32 %v9451_v2, %v12164_v41  ;;  %v5129_v24 = vmul.f32 %v9451_v2, %v12169_v31  ;;  %v12299_v14 = vld [vmem:[#allocation2 + $0x150] sm:$0xff]  ;;  %v12302_v3 = vld [vmem:[#allocation2 + $0x148] sm:$0xff] }
0x1c05   :  { %v5147_v50 = vpack.c.bf16 %v5133_v25, %v5132_v7  ;;  %v5146_v33 = vpack.c.bf16 %v5131_v54, %v5130_v30  ;;  %v5126_v5 = vmul.f32 %v9451_v2, %v12156_v61  ;;  %v5127_v39 = vmul.f32 %v9451_v2, %v12161_v11 }
0x1c06   :  { %8748 = vmatprep.subr.bf16.mxu0 %v5149_v9  ;;  %v5145_v19 = vpack.c.bf16 %v5129_v24, %v5128_v45  ;;  %v5124_v13 = vmul.f32 %v9451_v2, %v12147_v57  ;;  %v5125_v36 = vmul.f32 %v9451_v2, %v12153_v10  ;;  %v5122_v41 = vmul.f32 %v9451_v2, %v12141_v43 }
0x1c07   :  { %8749 = vmatpush3.bf16.msra.mxu0 %v5149_v9  ;;  %v5144_v18 = vpack.c.bf16 %v5127_v39, %v5126_v5  ;;  %v5123_v31 = vmul.f32 %v9451_v2, %v12144_v37 }
0x1c08   :  { %8750 = vmatprep.subr.bf16.mxu0 %v5148_v40  ;;  %v5143_v20 = vpack.c.bf16 %v5125_v36, %v5124_v13 }
0x1c09   :  { %v5142_v59 = vpack.c.bf16 %v5123_v31, %v5122_v41  ;;  %v4614_v41 = vmul.f32 %v12256_v51, %v12256_v51 }
0x1c0b   :  { %8751 = vmatpush3.bf16.msra.mxu0 %v5148_v40  ;;  %v12305_v40 = vld [vmem:[#allocation2 + $0x140] sm:$0xff] }
0x1c0c   :  { %8752 = vmatprep.subr.bf16.mxu0 %v5147_v50 }
0x1c0f   :  { %8753 = vmatpush3.bf16.msra.mxu0 %v5147_v50 }
0x1c10   :  { %8754 = vmatprep.subr.bf16.mxu0 %v5146_v33 }
0x1c13   :  { %8755 = vmatpush3.bf16.msra.mxu0 %v5146_v33 }
0x1c14   :  { %8756 = vmatprep.subr.bf16.mxu0 %v5145_v19 }
0x1c17   :  { %8757 = vmatpush3.bf16.msra.mxu0 %v5145_v19 }
0x1c18   :  { %8758 = vmatprep.subr.bf16.mxu0 %v5144_v18 }
0x1c1b   :  { %8759 = vmatpush3.bf16.msra.mxu0 %v5144_v18 }
0x1c1c   :  { %8760 = vmatprep.subr.bf16.mxu0 %v5143_v20 }
0x1c1f   :  { %8761 = vmatpush3.bf16.msra.mxu0 %v5143_v20  ;;  %v4613_v20 = vmul.f32 %v12252_v32, %v12252_v32 }
0x1c20   :  { %8762 = vmatprep.subr.bf16.mxu0 %v5142_v59 }
0x1c23   :  { %8763 = vmatpush3.bf16.msra.mxu0 %v5142_v59 }
0x1c24   :  { %8788 = vmatprep.subr.bf16.mxu0 %v13383_v58 }
0x1c26   :  { %8765 = vmatmul.mubr.bf16.vlgmr.msra.gmra.mxu0 %v5139_v16  ;;  %v12287_v16 = vld [vmem:[#allocation2 + $0x178] sm:$0xff] }
0x1c27   :  { %8768 = vmatprep.mubr.bf16.mxu0 %v5140_v48  ;;  %v12290_v48 = vld [vmem:[#allocation2 + $0x160] sm:$0xff] }
0x1c2e   :  { %8769 = vmatmul.mubr.bf16.gmra.mxu0 %v5141_v15  ;;  %v12293_v15 = vld [vmem:[#allocation2 + $0x168] sm:$0xff] }
0x1c2f   :  { %8796 = vmatprep.mubr.msk.bf16.mxu0 %vm9711_vm0, %v13383_v58 }
0x1c63   :  { %v4604_v59 = vpop.xlane.xlu0 %4603 }
0x1ce6   :  { %v8766_v43 = vpop.f32.mrf.mxu0 }
0x1ce7   :  { %v5217_v47 = vsub.f32 %v12299_v14, %v8766_v43  ;;  %v4602_v43 = vpop.xlane.xlu1 %4601 }
0x1ce8   :  { %v5184_v37 = vpop.f32.mrf.mxu0 }
0x1ce9   :  { %v5215_v7 = vsub.f32 %v12305_v40, %v5184_v37  ;;  %v4634_v37 = vpop.xlane.xlu0 %4633 }
0x1cea   :  { %v8767_v57 = vpop.f32.mrf.mxu0 }
0x1ceb   :  { %v5218_v52 = vsub.f32 %v12296_v42, %v8767_v57  ;;  %v4636_v57 = vpop.xlane.xlu1 %4635 }
0x1cec   :  { %v5187_v10 = vpop.f32.mrf.mxu0 }
0x1ced   :  { %v5224_v55 = vpack.c.bf16 %v5218_v52, %v5217_v47  ;;  %v5216_v9 = vsub.f32 %v12302_v3, %v5187_v10  ;;  %v4598_v10 = vpop.xlane.xlu0 %4597 }
0x1cee   :  { %v8770_v61 = vpop.f32.mrf.mxu0 }
0x1cef   :  { %v5221_v23 = vsub.f32 %v12284_v21, %v8770_v61  ;;  %v5223_v25 = vpack.c.bf16 %v5216_v9, %v5215_v7  ;;  %v4600_v61 = vpop.xlane.xlu1 %4599 }
0x1cf0   :  { %v5200_v11 = vpop.f32.mrf.mxu0 }
0x1cf1   :  { %v5219_v27 = vsub.f32 %v12290_v48, %v5200_v11  ;;  %v4630_v11 = vpop.xlane.xlu0 %4629 }
0x1cf2   :  { %v8771_v29 = vpop.f32.mrf.mxu0 }
0x1cf3   :  { %v5222_v44 = vsub.f32 %v12287_v16, %v8771_v29  ;;  %v12366_v29 = vpop.xlane.xlu1 %4631 }
0x1cf4   :  { %v5203_v62 = vpop.f32.mrf.mxu0 }
0x1cf5   :  { %v5226_v63 = vpack.c.bf16 %v5222_v44, %v5221_v23  ;;  %v5220_v34 = vsub.f32 %v12293_v15, %v5203_v62  ;;  %v4594_v23 = vpop.xlane.xlu0 %4593 }
0x1cf7   :  { %v5225_v2 = vpack.c.bf16 %v5220_v34, %v5219_v27  ;;  %8772 = vmatprep.subr.bf16.mxu1 %v5226_v63  ;;  %v4596_v44 = vpop.xlane.xlu1 %4595 }
0x1cf8   :  { %8773 = vmatpush3.bf16.msra.mxu1 %v5226_v63 }
0x1cf9   :  { %8774 = vmatprep.subr.bf16.mxu1 %v5225_v2  ;;  %v4626_v62 = vpop.xlane.xlu0 %4625 }
0x1cfb   :  { %v4628_v27 = vpop.xlane.xlu1 %4627 }
0x1cfc   :  { %8775 = vmatpush3.bf16.msra.mxu1 %v5225_v2 }
0x1cfd   :  { %8776 = vmatprep.subr.bf16.mxu1 %v5224_v55  ;;  %v4590_v63 = vpop.xlane.xlu0 %4589 }
0x1cff   :  { %v12368_v34 = vpop.xlane.xlu1 %4591 }
0x1d00   :  { %8777 = vmatpush3.bf16.msra.mxu1 %v5224_v55 }
0x1d01   :  { %8778 = vmatprep.subr.bf16.mxu1 %v5223_v25 }
0x1d04   :  { %8779 = vmatpush3.bf16.msra.mxu1 %v5223_v25 }
0x1d07   :  { %8781 = vmatmul.mubr.msk.bf16.vlgmr.msra.gmra.mxu1 %vm124_vm1, %v11964_v4 }
0x1d08   :  { %8784 = vmatprep.mubr.msk.bf16.mxu1 %vm124_vm1, %v11969_v46 }
0x1d0f   :  { %8785 = vmatmul.mubr.msk.bf16.gmra.mxu1 %vm124_vm1, %v11986_v22 }
0x1dc7   :  { %v8782_v50 = vpop.f32.mrf.mxu1 }
0x1dc8   :  { %v12315_v30 = vadd.f32 %v8782_v50, %v12228_v12 }
0x1dc9   :  { %v5261_v54 = vpop.f32.mrf.mxu1 }
0x1dca   :  { %5296 = vadd.xlane.f32.xlu0 %v12315_v30  ;;  %v5318_v4 = vmul.f32 %v12315_v30, %v12315_v30  ;;  %v12325_v22 = vadd.f32 %v5261_v54, %v12246_v49 }
0x1dcb   :  { %v8783_v33 = vpop.f32.mrf.mxu1 }
0x1dcc   :  { %v12319_v45 = vadd.f32 %v8783_v33, %v12230_v0 }
0x1dcd   :  { %v5264_v24 = vpop.f32.mrf.mxu1 }
0x1dce   :  { %5328 = vadd.xlane.f32.xlu0 %v5318_v4  ;;  %5298 = vadd.xlane.f32.xlu1 %v12319_v45  ;;  %v5319_v12 = vmul.f32 %v12319_v45, %v12319_v45  ;;  %v12331_v0 = vadd.f32 %v5264_v24, %v12248_v26 }
0x1dcf   :  { %v8786_v46 = vpop.f32.mrf.mxu1 }
0x1dd0   :  { %v12334_v5 = vadd.f32 %v8786_v46, %v12186_v1  ;;  %v5317_v31 = vmul.f32 %v12331_v0, %v12331_v0 }
0x1dd1   :  { %v5277_v19 = vpop.f32.mrf.mxu1 }
0x1dd2   :  { %5330 = vadd.xlane.f32.xlu1 %v5319_v12  ;;  %5292 = vadd.xlane.f32.xlu0 %v12325_v22  ;;  %v5322_v18 = vmul.f32 %v12334_v5, %v12334_v5  ;;  %v12345_v26 = vadd.f32 %v5277_v19, %v12207_v38 }
0x1dd3   :  { %v8787_v39 = vpop.f32.mrf.mxu1 }
0x1dd4   :  { %v12339_v49 = vadd.f32 %v8787_v39, %v12184_v35  ;;  %v5320_v35 = vmul.f32 %v12345_v26, %v12345_v26 }
0x1dd5   :  { %v5280_v13 = vpop.f32.mrf.mxu1 }
0x1dd6   :  { %5294 = vadd.xlane.f32.xlu1 %v12331_v0  ;;  %5304 = vadd.xlane.f32.xlu0 %v12334_v5  ;;  %v5323_v1 = vmul.f32 %v12339_v49, %v12339_v49  ;;  %v12351_v36 = vadd.f32 %v5280_v13, %v12209_v53  ;;  %v5316_v53 = vmul.f32 %v12325_v22, %v12325_v22 }
0x1dd8   :  { %v5321_v38 = vmul.f32 %v12351_v36, %v12351_v36 }
0x1dda   :  { %5306 = vadd.xlane.f32.xlu1 %v12339_v49  ;;  %5336 = vadd.xlane.f32.xlu0 %v5322_v18 }
0x1dde   :  { %5338 = vadd.xlane.f32.xlu1 %v5323_v1  ;;  %5300 = vadd.xlane.f32.xlu0 %v12345_v26 }
0x1de2   :  { %5302 = vadd.xlane.f32.xlu1 %v12351_v36  ;;  %5332 = vadd.xlane.f32.xlu0 %v5320_v35 }
0x1de6   :  { %5334 = vadd.xlane.f32.xlu1 %v5321_v38  ;;  %4621 = vadd.xlane.f32.xlu0 %v4613_v20 }
0x1dea   :  { %4623 = vadd.xlane.f32.xlu1 %v4614_v41  ;;  %5324 = vadd.xlane.f32.xlu0 %v5316_v53 }
0x1dee   :  { %5326 = vadd.xlane.f32.xlu1 %v5317_v31 }
0x1e53   :  { %v5297_v52 = vpop.xlane.xlu0 %5296 }
0x1e54   :  { %v5310_v2 = vadd.f32 %v5297_v52, %v4594_v23 }
0x1e56   :  { %v5350_v47 = vmul.f32 0.00390625, %v5310_v2 }
0x1e57   :  { %v5329_v55 = vpop.xlane.xlu0 %5328  ;;  %v5299_v9 = vpop.xlane.xlu1 %5298 }
0x1e58   :  { %v5342_v7 = vadd.f32 %v5329_v55, %v4626_v62  ;;  %v5311_v25 = vadd.f32 %v5299_v9, %v4596_v44  ;;  %v5366_v50 = vmul.f32 %v5350_v47, %v5350_v47 }
0x1e5a   :  { %v5358_v54 = vmul.f32 0.00390625, %v5342_v7  ;;  %v12370_v33 = vmul.f32 0.00390625, %v5311_v25 }
0x1e5b   :  { %v5331_v4 = vpop.xlane.xlu1 %5330  ;;  %v5293_v24 = vpop.xlane.xlu0 %5292 }
0x1e5c   :  { %v5374_v46 = vsub.f32 %v5358_v54, %v5366_v50  ;;  %v5343_v12 = vadd.f32 %v5331_v4, %v4628_v27  ;;  %v5367_v39 = vmul.f32 %v12370_v33, %v12370_v33 }
0x1e5e   :  { %v5382_v19 = vadd.f32 1e-05, %v5374_v46  ;;  %v5359_v18 = vmul.f32 0.00390625, %v5343_v12  ;;  %v7654_v46 = vld [vmem:[%s13372_s5 + $0x90] sm:$0xff] }
0x1e5f   :  { %v5295_v1 = vpop.xlane.xlu1 %5294  ;;  %v5305_v13 = vpop.xlane.xlu0 %5304 }
0x1e60   :  { %9452 = vrsqrt.f32 %v5382_v19  ;;  %v5375_v35 = vsub.f32 %v5359_v18, %v5367_v39  ;;  %v5314_v38 = vadd.f32 %v5305_v13, %v4602_v43  ;;  %v5308_v18 = vadd.f32 %v5293_v24, %v4590_v63 }
0x1e62   :  { %v5383_v20 = vadd.f32 1e-05, %v5375_v35  ;;  %v12374_v41 = vmul.f32 0.00390625, %v5314_v38 }
0x1e63   :  { %v5307_v53 = vpop.xlane.xlu1 %5306  ;;  %v5337_v31 = vpop.xlane.xlu0 %5336 }
0x1e64   :  { %9454 = vrsqrt.f32 %v5383_v20  ;;  %v5315_v23 = vadd.f32 %v5307_v53, %v4604_v59  ;;  %v5346_v44 = vadd.f32 %v5337_v31, %v4634_v37  ;;  %v5370_v62 = vmul.f32 %v12374_v41, %v12374_v41 }
0x1e66   :  { %v12378_v27 = vmul.f32 0.00390625, %v5315_v23  ;;  %v5362_v52 = vmul.f32 0.00390625, %v5346_v44  ;;  %v7662_v23 = vld [vmem:[%s13373_s6 + $0x90] sm:$0xff]  ;;  %v12398_v44 = vmul.f32 0.00390625, %v5308_v18 }
0x1e67   :  { %v5339_v2 = vpop.xlane.xlu1 %5338  ;;  %v5301_v55 = vpop.xlane.xlu0 %5300 }
0x1e68   :  { %v5378_v9 = vsub.f32 %v5362_v52, %v5370_v62  ;;  %v5347_v7 = vadd.f32 %v5339_v2, %v4636_v57  ;;  %v5312_v25 = vadd.f32 %v5301_v55, %v4598_v10  ;;  %v5371_v43 = vmul.f32 %v12378_v27, %v12378_v27 }
0x1e69   :  { %v5309_v62 = vadd.f32 %v5295_v1, %v12368_v34 }
0x1e6a   :  { %v5386_v50 = vadd.f32 1e-05, %v5378_v9  ;;  %v5363_v54 = vmul.f32 0.00390625, %v5347_v7  ;;  %v12382_v4 = vmul.f32 0.00390625, %v5312_v25 }
0x1e6b   :  { %v5303_v59 = vpop.xlane.xlu1 %5302  ;;  %v5333_v37 = vpop.xlane.xlu0 %5332  ;;  %v5349_v34 = vmul.f32 0.00390625, %v5309_v62 }
0x1e6c   :  { %9456 = vrsqrt.f32 %v5386_v50  ;;  %v5379_v12 = vsub.f32 %v5363_v54, %v5371_v43  ;;  %v5313_v19 = vadd.f32 %v5303_v59, %v4600_v61  ;;  %v5344_v57 = vadd.f32 %v5333_v37, %v4630_v11  ;;  %v7655_v61 = vld [vmem:[%s13372_s5 + $0x98] sm:$0xff] }
0x1e6d   :  { %v9453_v39 = vpop.eup %9452  ;;  %v5368_v38 = vmul.f32 %v12382_v4, %v12382_v4  ;;  %v5365_v18 = vmul.f32 %v5349_v34, %v5349_v34 }
0x1e6e   :  { %v5387_v10 = vadd.f32 1e-05, %v5379_v12  ;;  %v12387_v13 = vmul.f32 0.00390625, %v5313_v19  ;;  %v5398_v35 = vmul.f32 %v9453_v39, %v7654_v46  ;;  %v5360_v20 = vmul.f32 0.00390625, %v5344_v57  ;;  %v7658_v46 = vld [vmem:[%s13372_s5 + $0xb0] sm:$0xff] }
0x1e6f   :  { %v5335_v53 = vpop.xlane.xlu1 %5334  ;;  %v4622_v31 = vpop.xlane.xlu0 %4621 }
0x1e70   :  { %v5345_v11 = vadd.f32 %v5335_v53, %v12366_v29  ;;  %5432 = vperm.xlu1 %8986, %v5398_v35   ;;  %v5406_v63 = vmul.f32 %v5398_v35, %v5350_v47  ;;  %9458 = vrsqrt.f32 %v5387_v10  ;;  %v5376_v52 = vsub.f32 %v5360_v20, %v5368_v38  ;;  %v7663_v20 = vld [vmem:[%s13373_s6 + $0x98] sm:$0xff] }
0x1e71   :  { %v9455_v24 = vpop.eup %9454  ;;  %v5369_v2 = vmul.f32 %v12387_v13, %v12387_v13  ;;  %v5364_v47 = vmul.f32 %v12398_v44, %v12398_v44 }
0x1e72   :  { %v5361_v55 = vmul.f32 0.00390625, %v5345_v11  ;;  %v5414_v9 = vsub.f32 %v7662_v23, %v5406_v63  ;;  %v5399_v7 = vmul.f32 %v9455_v24, %v7655_v61  ;;  %v5384_v25 = vadd.f32 1e-05, %v5376_v52  ;;  %v7659_v11 = vld [vmem:[%s13372_s5 + $0xb8] sm:$0xff]  ;;  %v7657_v52 = vld [vmem:[%s13372_s5 + $0xa8] sm:$0xff] }
0x1e73   :  { %v4624_v43 = vpop.xlane.xlu1 %4623  ;;  %v5325_v50 = vpop.xlane.xlu0 %5324 }
0x1e74   :  { %v5377_v54 = vsub.f32 %v5361_v55, %v5369_v2  ;;  %v5340_v29 = vadd.f32 %v5325_v50, %v4622_v31  ;;  %5480 = vperm.xlu1 %8986, %v5414_v9   ;;  %5437 = vperm.xlu0 %8987, %v5399_v7   ;;  %9460 = vrsqrt.f32 %v5384_v25  ;;  %v5407_v35 = vmul.f32 %v5399_v7, %v12370_v33  ;;  %v7656_v33 = vld [vmem:[%s13372_s5 + $0xa0] sm:$0xff]  ;;  %v7667_v25 = vld [vmem:[%s13373_s6 + $0xb8] sm:$0xff] }
0x1e76   :  { %v5385_v1 = vadd.f32 1e-05, %v5377_v54  ;;  %v5356_v59 = vmul.f32 0.00390625, %v5340_v29  ;;  %v5415_v61 = vsub.f32 %v7663_v20, %v5407_v35 }
0x1e77   :  { %v5327_v37 = vpop.xlane.xlu1 %5326 }
0x1e78   :  { %9462 = vrsqrt.f32 %v5385_v1  ;;  %v5372_v12 = vsub.f32 %v5356_v59, %v5364_v47  ;;  %v5341_v19 = vadd.f32 %v5327_v37, %v4624_v43  ;;  %v7666_v43 = vld [vmem:[%s13373_s6 + $0xb0] sm:$0xff]  ;;  %v7664_v59 = vld [vmem:[%s13373_s6 + $0xa0] sm:$0xff] }
0x1e79   :  { %v9457_v39 = vpop.eup %9456 }
0x1e7a   :  { %v5357_v57 = vmul.f32 0.00390625, %v5341_v19  ;;  %v5402_v10 = vmul.f32 %v9457_v39, %v7658_v46  ;;  %v5380_v38 = vadd.f32 1e-05, %v5372_v12 }
0x1e7c   :  { %v5373_v53 = vsub.f32 %v5357_v57, %v5365_v18  ;;  %5452 = vperm.xlu0 %8987, %v5402_v10   ;;  %9464 = vrsqrt.f32 %v5380_v38  ;;  %v5410_v7 = vmul.f32 %v5402_v10, %v12374_v41  ;;  %v7665_v41 = vld [vmem:[%s13373_s6 + $0xa8] sm:$0xff]  ;;  %v7660_v10 = vld [vmem:[%s13373_s6 + $0x80] sm:$0xff] }
0x1e7d   :  { %v9459_v31 = vpop.eup %9458  ;;  %v7661_v18 = vld [vmem:[%s13373_s6 + $0x88] sm:$0xff] }
0x1e7e   :  { %v5381_v23 = vadd.f32 1e-05, %v5373_v53  ;;  %v5403_v24 = vmul.f32 %v9459_v31, %v7659_v11  ;;  %v5418_v29 = vsub.f32 %v7666_v43, %v5410_v7  ;;  %v9665_v43 = vld [vmem:[#allocation2 + $0x58] sm:$0xff] }
0x1e80   :  { %9466 = vrsqrt.f32 %v5381_v23  ;;  %5485 = vperm.xlu0 %8987, %v5415_v61   ;;  %v5411_v9 = vmul.f32 %v5403_v24, %v12378_v27  ;;  %v7653_v27 = vld [vmem:[%s13372_s5 + $0x88] sm:$0xff] }
0x1e81   :  { %v9461_v63 = vpop.eup %9460 }
0x1e82   :  { %v5400_v62 = vmul.f32 %v9461_v63, %v7656_v33  ;;  %v5419_v50 = vsub.f32 %v7667_v25, %v5411_v9  ;;  %v9664_v63 = vld [vmem:[#allocation2 + $0x50] sm:$0xff] }
0x1e84   :  { %5442 = vperm.xlu1 %8986, %v5400_v62   ;;  %v5408_v47 = vmul.f32 %v5400_v62, %v12382_v4 }
0x1e85   :  { %v9463_v2 = vpop.eup %9462 }
0x1e86   :  { %v5401_v55 = vmul.f32 %v9463_v2, %v7657_v52  ;;  %v5416_v12 = vsub.f32 %v7664_v59, %v5408_v47 }
0x1e88   :  { %5447 = vperm.xlu0 %8987, %v5401_v55   ;;  %5457 = vperm.xlu1 %8986, %v5403_v24   ;;  %v5409_v54 = vmul.f32 %v5401_v55, %v12387_v13  ;;  %v7652_v13 = vld [vmem:[%s13372_s5 + $0x80] sm:$0xff] }
0x1e89   :  { %v9465_v1 = vpop.eup %9464 }
0x1e8a   :  { %v5417_v4 = vsub.f32 %v7665_v41, %v5409_v54  ;;  %v5396_v19 = vmul.f32 %v9465_v1, %v7652_v13 }
0x1e8c   :  { %5505 = vperm.xlu0 %8987, %v5419_v50   ;;  %5500 = vperm.xlu1 %8986, %v5418_v29   ;;  %v5404_v57 = vmul.f32 %v5396_v19, %v12398_v44 }
0x1e8d   :  { %v9467_v37 = vpop.eup %9466 }
0x1e8e   :  { %v5397_v46 = vmul.f32 %v9467_v37, %v7653_v27  ;;  %v5412_v38 = vsub.f32 %v7660_v10, %v5404_v57 }
0x1e90   :  { %5495 = vperm.xlu0 %8987, %v5417_v4   ;;  %5490 = vperm.xlu1 %8986, %v5416_v12   ;;  %v5405_v39 = vmul.f32 %v5397_v46, %v5349_v34 }
0x1e92   :  { %v5413_v35 = vsub.f32 %v7661_v18, %v5405_v39 }
0x1e94   :  { %5427 = vperm.xlu0 %8987, %v5397_v46   ;;  %5422 = vperm.xlu1 %8986, %v5396_v19  }
0x1e98   :  { %5475 = vperm.xlu0 %8987, %v5413_v35   ;;  %5470 = vperm.xlu1 %8986, %v5412_v38  }
0x1eeb   :  { %v5433_v20 = vpop.permute.xlu1 %5432 }
0x1eec   :  { %v5462_v53 = vmul.f32 %v5433_v20, %v12234_v60  ;;  %v5542_v34 = vmul.f32 %v5433_v20, %v12315_v30 }
0x1eef   :  { %v5481_v31 = vpop.permute.xlu1 %5480  ;;  %v5438_v33 = vpop.permute.xlu0 %5437 }
0x1ef0   :  { %v5510_v23 = vadd.f32 %v5481_v31, %v5462_v53  ;;  %v5550_v61 = vadd.f32 %v5542_v34, %v5481_v31  ;;  %v5463_v60 = vmul.f32 %v5438_v33, %v12238_v56  ;;  %v5543_v30 = vmul.f32 %v5438_v33, %v12319_v45  ;;  %v9667_v53 = vld [vmem:[#allocation2 + $0x70] sm:$0xff] }
0x1ef2   :  { %v5518_v11 = vmax.f32 %v5510_v23, 0.0  ;;  %v5558_v44 = vmax.f32 %v5550_v61, 0.0 }
0x1ef4   :  { %v12452_v24 = vadd.f32 %v9664_v63, %v5518_v11  ;;  %v12455_v62 = vadd.f32 %v12299_v14, %v5558_v44 }
0x1ef6   :  { %5534 = vst [vmem:[#allocation2 + $0x90] sm:$0xff] %v12452_v24  ;;  %5574 = vst [vmem:[#allocation2 + $0x190] sm:$0xff] %v12455_v62 }
0x1ef7   :  { %v5453_v52 = vpop.permute.xlu0 %5452 }
0x1ef8   :  { %v5466_v41 = vmul.f32 %v5453_v52, %v12198_v6  ;;  %v5546_v27 = vmul.f32 %v5453_v52, %v12334_v5  ;;  %v9666_v5 = vld [vmem:[#allocation2 + $0x78] sm:$0xff] }
0x1efb   :  { %v5486_v2 = vpop.permute.xlu0 %5485 }
0x1efc   :  { %v5511_v55 = vadd.f32 %v5486_v2, %v5463_v60  ;;  %v5551_v9 = vadd.f32 %v5543_v30, %v5486_v2  ;;  %v9669_v60 = vld [vmem:[#allocation2 + $0x60] sm:$0xff] }
0x1efe   :  { %v5519_v7 = vmax.f32 %v5511_v55, 0.0  ;;  %v5559_v25 = vmax.f32 %v5551_v9, 0.0 }
0x1eff   :  { %v5443_v54 = vpop.permute.xlu1 %5442 }
0x1f00   :  { %v12461_v50 = vadd.f32 %v9665_v43, %v5519_v7  ;;  %v12464_v14 = vadd.f32 %v12296_v42, %v5559_v25 }
0x1f02   :  { %5535 = vst [vmem:[#allocation2 + $0x98] sm:$0xff] %v12461_v50  ;;  %5575 = vst [vmem:[#allocation2 + $0x198] sm:$0xff] %v12464_v14 }
0x1f03   :  { %v5448_v29 = vpop.permute.xlu0 %5447  ;;  %v5458_v56 = vpop.permute.xlu1 %5457 }
0x1f04   :  { %v5467_v45 = vmul.f32 %v5458_v56, %v12194_v28  ;;  %v5547_v47 = vmul.f32 %v5458_v56, %v12339_v49  ;;  %v5465_v46 = vmul.f32 %v5448_v29, %v12219_v8  ;;  %v5545_v12 = vmul.f32 %v5448_v29, %v12351_v36 }
0x1f05   :  { %v5464_v28 = vmul.f32 %v5443_v54, %v12215_v17  ;;  %v5544_v49 = vmul.f32 %v5443_v54, %v12345_v26 }
0x1f07   :  { %v5506_v1 = vpop.permute.xlu0 %5505  ;;  %v5501_v59 = vpop.permute.xlu1 %5500 }
0x1f08   :  { %v5515_v13 = vadd.f32 %v5506_v1, %v5467_v45  ;;  %v5555_v42 = vadd.f32 %v5547_v47, %v5506_v1  ;;  %v5514_v37 = vadd.f32 %v5501_v59, %v5466_v41  ;;  %v5554_v4 = vadd.f32 %v5546_v27, %v5501_v59  ;;  %v9671_v59 = vld [vmem:[#allocation2 + $0x40] sm:$0xff] }
0x1f0a   :  { %v5523_v19 = vmax.f32 %v5515_v13, 0.0  ;;  %v5563_v39 = vmax.f32 %v5555_v42, 0.0  ;;  %v5522_v18 = vmax.f32 %v5514_v37, 0.0  ;;  %v5562_v6 = vmax.f32 %v5554_v4, 0.0  ;;  %v12536_v37 = vld [vmem:[%s13368_s1 + $0x78] sm:$0xff]  }
0x1f0b   :  { %v5496_v57 = vpop.permute.xlu0 %5495  ;;  %v5491_v38 = vpop.permute.xlu1 %5490 }
0x1f0c   :  { %v12476_v10 = vadd.f32 %v9666_v5, %v5523_v19  ;;  %v12479_v35 = vadd.f32 %v12287_v16, %v5563_v39  ;;  %v5513_v20 = vadd.f32 %v5496_v57, %v5465_v46  ;;  %v5553_v8 = vadd.f32 %v5545_v12, %v5496_v57 }
0x1f0d   :  { %v12481_v36 = vadd.f32 %v9667_v53, %v5522_v18  ;;  %v12484_v34 = vadd.f32 %v12284_v21, %v5562_v6  ;;  %v5512_v17 = vadd.f32 %v5491_v38, %v5464_v28  ;;  %v5552_v26 = vadd.f32 %v5544_v49, %v5491_v38  ;;  %v9668_v21 = vld [vmem:[#allocation2 + $0x68] sm:$0xff] }
0x1f0e   :  { %5539 = vst [vmem:[#allocation2 + $0xb8] sm:$0xff] %v12476_v10  ;;  %5579 = vst [vmem:[#allocation2 + $0x1b8] sm:$0xff] %v12479_v35  ;;  %v5521_v31 = vmax.f32 %v5513_v20, 0.0  ;;  %v5561_v23 = vmax.f32 %v5553_v8, 0.0 }
0x1f0f   :  { %5538 = vst [vmem:[#allocation2 + $0xb0] sm:$0xff] %v12481_v36  ;;  %5578 = vst [vmem:[#allocation2 + $0x1b0] sm:$0xff] %v12484_v34  ;;  %v5520_v16 = vmax.f32 %v5512_v17, 0.0  ;;  %v5560_v61 = vmax.f32 %v5552_v26, 0.0  ;;  %v5428_v11 = vpop.permute.xlu0 %5427  ;;  %v5639_v44 = vpack.c.bf16 %v12476_v10, %v12481_v36  ;;  %v5423_v52 = vpop.permute.xlu1 %5422 }
0x1f10   :  { %v12492_v33 = vadd.f32 %v9668_v21, %v5521_v31  ;;  %v12495_v63 = vadd.f32 %v12293_v15, %v5561_v23  ;;  %v5461_v55 = vmul.f32 %v5428_v11, %v12256_v51  ;;  %v5541_v9 = vmul.f32 %v5428_v11, %v12331_v0 }
0x1f11   :  { %v12497_v30 = vadd.f32 %v9669_v60, %v5520_v16  ;;  %v12500_v2 = vadd.f32 %v12290_v48, %v5560_v61  ;;  %8789 = vmatpush3.bf16.msra.mxu0 %v5639_v44  ;;  %v5460_v15 = vmul.f32 %v5423_v52, %v12252_v32  ;;  %v5540_v48 = vmul.f32 %v5423_v52, %v12325_v22  ;;  %v9670_v22 = vld [vmem:[#allocation2 + $0x48] sm:$0xff] }
0x1f12   :  { %5537 = vst [vmem:[#allocation2 + $0xa8] sm:$0xff] %v12492_v33  ;;  %5577 = vst [vmem:[#allocation2 + $0x1a8] sm:$0xff] %v12495_v63  ;;  %8790 = vmatprep.subr.bf16.mxu0 %v13383_v58  ;;  %v5637_v32 = vpack.c.bf16 %v12461_v50, %v12452_v24 }
0x1f13   :  { %5536 = vst [vmem:[#allocation2 + $0xa0] sm:$0xff] %v12497_v30  ;;  %5576 = vst [vmem:[#allocation2 + $0x1a0] sm:$0xff] %v12500_v2  ;;  %v5476_v7 = vpop.permute.xlu0 %5475  ;;  %v5638_v25 = vpack.c.bf16 %v12492_v33, %v12497_v30  ;;  %v5471_v43 = vpop.permute.xlu1 %5470 }
0x1f14   :  { %v5509_v54 = vadd.f32 %v5476_v7, %v5461_v55  ;;  %v5549_v29 = vadd.f32 %v5541_v9, %v5476_v7  ;;  %v5508_v51 = vadd.f32 %v5471_v43, %v5460_v15  ;;  %v5548_v56 = vadd.f32 %v5540_v48, %v5471_v43  ;;  %v12561_v55 = vld [vmem:[%s13368_s1 + $0x80] sm:$0xff]   ;;  %v12576_v48 = vld [vmem:[%s13368_s1 + $0x88] sm:$0xff]   ;;  %v12591_v43 = vld [vmem:[%s13368_s1 + $0x90] sm:$0xff]  }
0x1f15   :  { %8791 = vmatpush3.bf16.msra.mxu0 %v5638_v25 }
0x1f16   :  { %v5517_v0 = vmax.f32 %v5509_v54, 0.0  ;;  %v5557_v45 = vmax.f32 %v5549_v29, 0.0  ;;  %8792 = vmatprep.subr.bf16.mxu0 %v13383_v58  ;;  %v5516_v47 = vmax.f32 %v5508_v51, 0.0  ;;  %v5556_v41 = vmax.f32 %v5548_v56, 0.0  ;;  %v12606_v51 = vld [vmem:[%s13368_s1 + $0x98] sm:$0xff]  }
0x1f18   :  { %v12516_v27 = vadd.f32 %v9670_v22, %v5517_v0  ;;  %v12519_v1 = vadd.f32 %v12302_v3, %v5557_v45  ;;  %v12521_v13 = vadd.f32 %v9671_v59, %v5516_v47  ;;  %v12524_v42 = vadd.f32 %v12305_v40, %v5556_v41 }
0x1f19   :  { %8793 = vmatpush3.bf16.msra.mxu0 %v5637_v32 }
0x1f1a   :  { %5533 = vst [vmem:[#allocation2 + $0x88] sm:$0xff] %v12516_v27  ;;  %5573 = vst [vmem:[#allocation2 + $0x188] sm:$0xff] %v12519_v1  ;;  %8794 = vmatprep.subr.bf16.mxu0 %v13383_v58  ;;  %v5636_v3 = vpack.c.bf16 %v12516_v27, %v12521_v13 }
0x1f1b   :  { %5532 = vst [vmem:[#allocation2 + $0x80] sm:$0xff] %v12521_v13  ;;  %5572 = vst [vmem:[#allocation2 + $0x180] sm:$0xff] %v12524_v42 }
0x1f1d   :  { %8795 = vmatpush3.bf16.msra.mxu0 %v5636_v3 }
0x1f20   :  { %8797 = vmatmul.mubr.msk.bf16.vlgmr.msra.gmra.mxu0 %vm124_vm1, %v12536_v37 }
0x1f21   :  { %8800 = vmatprep.mubr.msk.bf16.mxu0 %vm9711_vm0, %v13383_v58 }
0x1f28   :  { %8801 = vmatmul.mubr.msk.bf16.gmra.mxu0 %vm124_vm1, %v12561_v55 }
0x1f29   :  { %8804 = vmatprep.mubr.msk.bf16.mxu0 %vm9711_vm0, %v13383_v58 }
0x1f30   :  { %8805 = vmatmul.mubr.msk.bf16.gmra.mxu0 %vm124_vm1, %v12576_v48 }
0x1f31   :  { %8808 = vmatprep.mubr.msk.bf16.mxu0 %vm9711_vm0, %v13383_v58 }
0x1f38   :  { %8809 = vmatmul.mubr.msk.bf16.gmra.mxu0 %vm124_vm1, %v12591_v43 }
0x1f39   :  { %8812 = vmatprep.mubr.msk.bf16.mxu0 %vm9711_vm0, %v13383_v58 }
0x1f40   :  { %8813 = vmatmul.mubr.msk.bf16.gmra.mxu0 %vm124_vm1, %v12606_v51 }
0x1fe0   :  { %v5714_v40 = vpop.f32.mrf.mxu0 }
0x1fe1   :  { %5801 = vxpose.xlu1.b32.start [1/2] (short) %v5714_v40, 128 }
0x1fe2   :  { %v8798_v4 = vpop.f32.mrf.mxu0 }
0x1fe4   :  { %v5717_v46 = vpop.f32.mrf.mxu0 }
0x1fe5   :  { %5802 = vxpose.xlu1.b32.end [2/2] (short) %v5717_v46, 128  ;;  %8816 = vmatprep.subr.mxu1 %v5717_v46 }
0x1fe6   :  { %v8799_v12 = vpop.f32.mrf.mxu0  ;;  %8817 = vmatpush3.msra.mxu1 %v5717_v46 }
0x1fe7   :  { %8818 = vmatprep.subr.mxu1 %v5714_v40 }
0x1fe8   :  { %8819 = vmatpush3.msra.mxu1 %v5714_v40 }
0x205d   :  { %v5817_v19 = vpop.trf.xlu1 }
0x205e   :  { %8820 = vmatprep.mubr.msk.f32.mxu1 %vm293_vm2, %v5817_v19 }
0x2061   :  { %v5818_v39 = vpop.trf.xlu1 }
0x2062   :  { %8821 = vmatmul.mubr.msk.f32.vlgmr.msra.gmra.mxu1 %vm293_vm2, %v5818_v39 }
0x2065   :  { %v5819_v28 = vpop.trf.xlu1 }
0x2066   :  { %8823 = vmatprep.mubr.msk.f32.mxu1 %vm293_vm2, %v5819_v28 }
0x2069   :  { %v5820_v49 = vpop.trf.xlu1 }
0x206a   :  { %8824 = vmatmul.mubr.msk.f32.gmra.mxu1 %vm293_vm2, %v5820_v49 }
0x206d   :  { %v5821_v18 = vpop.trf.xlu1 }
0x206e   :  { %8826 = vmatprep.mubr.msk.f32.mxu1 %vm293_vm2, %v5821_v18 }
0x2071   :  { %v5822_v6 = vpop.trf.xlu1 }
0x2072   :  { %8827 = vmatmul.mubr.msk.f32.gmra.mxu1 %vm293_vm2, %v5822_v6 }
0x2075   :  { %v5823_v57 = vpop.trf.xlu1 }
0x2076   :  { %8829 = vmatprep.mubr.msk.f32.mxu1 %vm293_vm2, %v5823_v57 }
0x2079   :  { %v5824_v5 = vpop.trf.xlu1 }
0x207a   :  { %8830 = vmatmul.mubr.msk.f32.gmra.mxu1 %vm293_vm2, %v5824_v5 }
0x207d   :  { %v5825_v38 = vpop.trf.xlu1 }
0x207e   :  { %8832 = vmatprep.mubr.msk.f32.mxu1 %vm293_vm2, %v5825_v38 }
0x2081   :  { %v5826_v20 = vpop.trf.xlu1 }
0x2082   :  { %8833 = vmatmul.mubr.msk.f32.gmra.mxu1 %vm293_vm2, %v5826_v20 }
0x2085   :  { %v5827_v8 = vpop.trf.xlu1 }
0x2086   :  { %8835 = vmatprep.mubr.msk.f32.mxu1 %vm293_vm2, %v5827_v8 }
0x2089   :  { %v5828_v53 = vpop.trf.xlu1 }
0x208a   :  { %8836 = vmatmul.mubr.msk.f32.gmra.mxu1 %vm293_vm2, %v5828_v53 }
0x208d   :  { %v5829_v17 = vpop.trf.xlu1 }
0x208e   :  { %8838 = vmatprep.mubr.msk.f32.mxu1 %vm293_vm2, %v5829_v17 }
0x2091   :  { %v5830_v26 = vpop.trf.xlu1 }
0x2092   :  { %8839 = vmatmul.mubr.msk.f32.gmra.mxu1 %vm293_vm2, %v5830_v26 }
0x2095   :  { %v5831_v31 = vpop.trf.xlu1 }
0x2096   :  { %8841 = vmatprep.mubr.msk.f32.mxu1 %vm293_vm2, %v5831_v31 }
0x2099   :  { %v5832_v23 = vpop.trf.xlu1 }
0x209a   :  { %8842 = vmatmul.mubr.msk.f32.gmra.mxu1 %vm293_vm2, %v5832_v23 }
0x2122   :  { %v8822_v16 = vpop.f32.mrf.mxu1 }
0x2123   :  { %6028 = vmax.xlane.f32.xlu0 %v8822_v16 }
0x2124   :  { %v5947_v61 = vpop.f32.mrf.mxu1 }
0x2127   :  { %6026 = vmax.xlane.f32.xlu0 %v5947_v61 }
0x212a   :  { %v8825_v11 = vpop.f32.mrf.mxu1 }
0x212b   :  { %6032 = vmax.xlane.f32.xlu0 %v8825_v11 }
0x212c   :  { %v5957_v44 = vpop.f32.mrf.mxu1 }
0x212f   :  { %6030 = vmax.xlane.f32.xlu0 %v5957_v44 }
0x2132   :  { %v8828_v21 = vpop.f32.mrf.mxu1 }
0x2133   :  { %6036 = vmax.xlane.f32.xlu0 %v8828_v21 }
0x2134   :  { %v5967_v52 = vpop.f32.mrf.mxu1 }
0x2135   :  { %6034 = vmax.xlane.f32.xlu1 %v5967_v52 }
0x213a   :  { %v8831_v60 = vpop.f32.mrf.mxu1 }
0x213b   :  { %6040 = vmax.xlane.f32.xlu0 %v8831_v60 }
0x213c   :  { %v12563_v9 = vpop.f32.mrf.mxu1 }
0x213f   :  { %6038 = vmax.xlane.f32.xlu0 %v12563_v9 }
0x2142   :  { %v12570_v15 = vpop.f32.mrf.mxu1 }
0x2143   :  { %6044 = vmax.xlane.f32.xlu0 %v12570_v15 }
0x2144   :  { %v12578_v7 = vpop.f32.mrf.mxu1 }
0x2147   :  { %6042 = vmax.xlane.f32.xlu0 %v12578_v7 }
0x214a   :  { %v12585_v25 = vpop.f32.mrf.mxu1 }
0x214b   :  { %6048 = vmax.xlane.f32.xlu0 %v12585_v25 }
0x214c   :  { %v12593_v54 = vpop.f32.mrf.mxu1 }
0x214f   :  { %6046 = vmax.xlane.f32.xlu0 %v12593_v54 }
0x2152   :  { %v12600_v29 = vpop.f32.mrf.mxu1 }
0x2153   :  { %6052 = vmax.xlane.f32.xlu0 %v12600_v29 }
0x2154   :  { %v12608_v56 = vpop.f32.mrf.mxu1 }
0x2157   :  { %6050 = vmax.xlane.f32.xlu0 %v12608_v56 }
0x215a   :  { %v12613_v0 = vpop.f32.mrf.mxu1 }
0x215c   :  { %v12615_v45 = vpop.f32.mrf.mxu1 }
0x215d   :  { %6054 = vmax.xlane.f32.xlu0 %v12615_v45 }
0x2161   :  { %6056 = vmax.xlane.f32.xlu0 %v12613_v0 }
0x21ac   :  { %v6029_v47 = vpop.xlane.xlu0 %6028 }
0x21ad   :  { %v6059_v41 = vsub.f32 %v8822_v16, %v6029_v47 }
0x21af   :  { %v6076_v32 = vmul.f32 1.442695, %v6059_v41 }
0x21b0   :  { %v6027_v22 = vpop.xlane.xlu0 %6026 }
0x21b1   :  { %9468 = vpow2.f32 %v6076_v32  ;;  %v6058_v59 = vsub.f32 %v5947_v61, %v6027_v22 }
0x21b3   :  { %v6074_v3 = vmul.f32 1.442695, %v6058_v59 }
0x21b4   :  { %v6033_v40 = vpop.xlane.xlu0 %6032 }
0x21b5   :  { %9470 = vpow2.f32 %v6074_v3  ;;  %v6061_v4 = vsub.f32 %v8825_v11, %v6033_v40 }
0x21b7   :  { %v6080_v46 = vmul.f32 1.442695, %v6061_v4 }
0x21b8   :  { %v6031_v12 = vpop.xlane.xlu0 %6030 }
0x21b9   :  { %9472 = vpow2.f32 %v6080_v46  ;;  %v6060_v19 = vsub.f32 %v5957_v44, %v6031_v12 }
0x21bb   :  { %v6078_v39 = vmul.f32 1.442695, %v6060_v19 }
0x21bc   :  { %v6037_v28 = vpop.xlane.xlu0 %6036 }
0x21bd   :  { %9474 = vpow2.f32 %v6078_v39  ;;  %v6063_v49 = vsub.f32 %v8828_v21, %v6037_v28 }
0x21be   :  { %v12619_v18 = vpop.eup %9468  ;;  %v6035_v6 = vpop.xlane.xlu1 %6034 }
0x21bf   :  { %v6084_v57 = vmul.f32 1.442695, %v6063_v49  ;;  %v6062_v5 = vsub.f32 %v5967_v52, %v6035_v6  ;;  %6108 = vadd.xlane.f32.xlu0 %v12619_v18 }
0x21c1   :  { %9476 = vpow2.f32 %v6084_v57  ;;  %v6082_v38 = vmul.f32 1.442695, %v6062_v5 }
0x21c2   :  { %v12622_v20 = vpop.eup %9470 }
0x21c3   :  { %6106 = vadd.xlane.f32.xlu0 %v12622_v20  ;;  %9478 = vpow2.f32 %v6082_v38 }
0x21c4   :  { %v6041_v8 = vpop.xlane.xlu0 %6040 }
0x21c5   :  { %v6065_v53 = vsub.f32 %v8831_v60, %v6041_v8 }
0x21c6   :  { %v12625_v17 = vpop.eup %9472 }
0x21c7   :  { %v6088_v26 = vmul.f32 1.442695, %v6065_v53  ;;  %6112 = vadd.xlane.f32.xlu0 %v12625_v17 }
0x21c8   :  { %v6039_v31 = vpop.xlane.xlu0 %6038 }
0x21c9   :  { %9480 = vpow2.f32 %v6088_v26  ;;  %v6064_v23 = vsub.f32 %v12563_v9, %v6039_v31 }
0x21ca   :  { %v12629_v16 = vpop.eup %9474 }
0x21cb   :  { %v6086_v61 = vmul.f32 1.442695, %v6064_v23  ;;  %6110 = vadd.xlane.f32.xlu0 %v12629_v16 }
0x21cc   :  { %v6045_v11 = vpop.xlane.xlu0 %6044 }
0x21cd   :  { %9482 = vpow2.f32 %v6086_v61  ;;  %v6067_v44 = vsub.f32 %v12570_v15, %v6045_v11 }
0x21ce   :  { %v12633_v21 = vpop.eup %9476 }
0x21cf   :  { %v6092_v52 = vmul.f32 1.442695, %v6067_v44  ;;  %6116 = vadd.xlane.f32.xlu0 %v12633_v21 }
0x21d0   :  { %v6043_v60 = vpop.xlane.xlu0 %6042  ;;  %v12637_v41 = vpop.eup %9478 }
0x21d1   :  { %9484 = vpow2.f32 %v6092_v52  ;;  %v6066_v47 = vsub.f32 %v12578_v7, %v6043_v60 }
0x21d3   :  { %v6090_v9 = vmul.f32 1.442695, %v6066_v47  ;;  %6114 = vadd.xlane.f32.xlu0 %v12637_v41 }
0x21d4   :  { %v6049_v32 = vpop.xlane.xlu0 %6048 }
0x21d5   :  { %9486 = vpow2.f32 %v6090_v9  ;;  %v6069_v22 = vsub.f32 %v12585_v25, %v6049_v32  ;;  %v7738_v9 = vld [vmem:[%s13369_s2 + $0xc8] sm:$0xff]  ;;  %v7737_v32 = vld [vmem:[%s13369_s2 + $0xc0] sm:$0xff] }
0x21d6   :  { %v12641_v59 = vpop.eup %9480 }
0x21d7   :  { %v6096_v15 = vmul.f32 1.442695, %v6069_v22  ;;  %6120 = vadd.xlane.f32.xlu0 %v12641_v59 }
0x21d8   :  { %v6047_v3 = vpop.xlane.xlu0 %6046 }
0x21d9   :  { %9488 = vpow2.f32 %v6096_v15  ;;  %v6068_v40 = vsub.f32 %v12593_v54, %v6047_v3  ;;  %v7739_v3 = vld [vmem:[%s13369_s2 + $0xd0] sm:$0xff] }
0x21da   :  { %v12645_v4 = vpop.eup %9482 }
0x21db   :  { %v6094_v7 = vmul.f32 1.442695, %v6068_v40  ;;  %6118 = vadd.xlane.f32.xlu0 %v12645_v4  ;;  %v7740_v40 = vld [vmem:[%s13369_s2 + $0xd8] sm:$0xff] }
0x21dc   :  { %v6053_v46 = vpop.xlane.xlu0 %6052 }
0x21dd   :  { %9490 = vpow2.f32 %v6094_v7  ;;  %v6071_v12 = vsub.f32 %v12600_v29, %v6053_v46 }
0x21de   :  { %v12649_v19 = vpop.eup %9484 }
0x21df   :  { %v6100_v25 = vmul.f32 1.442695, %v6071_v12  ;;  %6124 = vadd.xlane.f32.xlu0 %v12649_v19  ;;  %v7741_v12 = vld [vmem:[%s13369_s2 + $0xe0] sm:$0xff] }
0x21e0   :  { %v6051_v39 = vpop.xlane.xlu0 %6050 }
0x21e1   :  { %9492 = vpow2.f32 %v6100_v25  ;;  %v6070_v28 = vsub.f32 %v12608_v56, %v6051_v39  ;;  %v7742_v25 = vld [vmem:[%s13369_s2 + $0xe8] sm:$0xff] }
0x21e2   :  { %v12653_v49 = vpop.eup %9486 }
0x21e3   :  { %v6098_v54 = vmul.f32 1.442695, %v6070_v28  ;;  %6122 = vadd.xlane.f32.xlu0 %v12653_v49 }
0x21e5   :  { %9494 = vpow2.f32 %v6098_v54  ;;  %v7743_v54 = vld [vmem:[%s13369_s2 + $0xf0] sm:$0xff] }
0x21e6   :  { %v12656_v6 = vpop.eup %9488  ;;  %v6055_v57 = vpop.xlane.xlu0 %6054 }
0x21e7   :  { %v6072_v29 = vsub.f32 %v12615_v45, %v6055_v57  ;;  %6128 = vadd.xlane.f32.xlu0 %v12656_v6  ;;  %v7744_v57 = vld [vmem:[%s13369_s2 + $0xf8] sm:$0xff] }
0x21e9   :  { %v6102_v5 = vmul.f32 1.442695, %v6072_v29 }
0x21ea   :  { %v12660_v38 = vpop.eup %9490  ;;  %v6057_v8 = vpop.xlane.xlu0 %6056 }
0x21eb   :  { %9496 = vpow2.f32 %v6102_v5  ;;  %v6073_v56 = vsub.f32 %v12613_v0, %v6057_v8  ;;  %6126 = vadd.xlane.f32.xlu0 %v12660_v38  ;;  %v12676_v0 = vpop.f32.mrf.mxu0 }
0x21ed   :  { %v6104_v53 = vmul.f32 1.442695, %v6073_v56  ;;  %v8802_v61 = vpop.f32.mrf.mxu0 }
0x21ee   :  { %v12664_v26 = vpop.eup %9492 }
0x21ef   :  { %9498 = vpow2.f32 %v6104_v53  ;;  %6132 = vadd.xlane.f32.xlu1 %v12664_v26  ;;  %v12678_v11 = vpop.f32.mrf.mxu0 }
0x21f1   :  { %v8803_v44 = vpop.f32.mrf.mxu0 }
0x21f2   :  { %v12667_v31 = vpop.eup %9494 }
0x21f3   :  { %6130 = vadd.xlane.f32.xlu0 %v12667_v31  ;;  %v12680_v52 = vpop.f32.mrf.mxu0 }
0x21f5   :  { %v8806_v60 = vpop.f32.mrf.mxu0 }
0x21f7   :  { %v12682_v47 = vpop.f32.mrf.mxu0 }
0x21f8   :  { %v12670_v45 = vpop.eup %9496 }
0x21f9   :  { %6134 = vadd.xlane.f32.xlu0 %v12670_v45  ;;  %v8807_v22 = vpop.f32.mrf.mxu0 }
0x21fb   :  { %v12690_v15 = vpop.f32.mrf.mxu0 }
0x21fc   :  { %v12673_v23 = vpop.eup %9498 }
0x21fd   :  { %6136 = vadd.xlane.f32.xlu1 %v12673_v23  ;;  %v8810_v7 = vpop.f32.mrf.mxu0 }
0x21ff   :  { %v12698_v46 = vpop.f32.mrf.mxu0 }
0x2201   :  { %v8811_v39 = vpop.f32.mrf.mxu0 }
0x2203   :  { %v12706_v28 = vpop.f32.mrf.mxu0 }
0x2205   :  { %v8814_v29 = vpop.f32.mrf.mxu0 }
0x2207   :  { %v12714_v5 = vpop.f32.mrf.mxu0 }
0x2209   :  { %v8815_v8 = vpop.f32.mrf.mxu0 }
0x220e   :  { %5760 = vperm.xlu1 %8986, %v7738_v9  }
0x220f   :  { %5755 = vperm.xlu0 %8987, %v7737_v32  }
0x2212   :  { %5765 = vperm.xlu1 %8986, %v7739_v3  }
0x2213   :  { %5770 = vperm.xlu0 %8987, %v7740_v40  }
0x2216   :  { %5775 = vperm.xlu1 %8986, %v7741_v12  }
0x2217   :  { %5780 = vperm.xlu0 %8987, %v7742_v25  }
0x221a   :  { %5785 = vperm.xlu1 %8986, %v7743_v54  }
0x221b   :  { %5790 = vperm.xlu0 %8987, %v7744_v57  }
0x2248   :  { %v6109_v56 = vpop.xlane.xlu0 %6108 }
0x224c   :  { %v6107_v53 = vpop.xlane.xlu0 %6106 }
0x224d   :  { %9500 = vrcp.f32 %v6107_v53 }
0x224e   :  { %9502 = vrcp.f32 %v6109_v56 }
0x2250   :  { %v6113_v61 = vpop.xlane.xlu0 %6112 }
0x2254   :  { %v6111_v44 = vpop.xlane.xlu0 %6110 }
0x2255   :  { %9504 = vrcp.f32 %v6111_v44 }
0x2256   :  { %9506 = vrcp.f32 %v6113_v61 }
0x2258   :  { %v6117_v60 = vpop.xlane.xlu0 %6116 }
0x225a   :  { %v9501_v3 = vpop.eup %9500 }
0x225b   :  { %v9503_v7 = vpop.eup %9502  ;;  %v12717_v25 = vmul.f32 %v9501_v3, %v12622_v20 }
0x225c   :  { %v6115_v9 = vpop.xlane.xlu0 %6114  ;;  %v12720_v54 = vmul.f32 %v9503_v7, %v12619_v18 }
0x225d   :  { %9508 = vrcp.f32 %v6115_v9 }
0x225e   :  { %9510 = vrcp.f32 %v6117_v60  ;;  %v6170_v8 = vadd.f32 %v12720_v54, %v12717_v25 }
0x2260   :  { %v6121_v32 = vpop.xlane.xlu0 %6120 }
0x2262   :  { %v9505_v12 = vpop.eup %9504 }
0x2263   :  { %v12723_v57 = vmul.f32 %v9505_v12, %v12629_v16  ;;  %v9507_v29 = vpop.eup %9506 }
0x2264   :  { %v6119_v22 = vpop.xlane.xlu0 %6118  ;;  %v12729_v20 = vmul.f32 %v9507_v29, %v12625_v17 }
0x2265   :  { %9512 = vrcp.f32 %v6119_v22  ;;  %v6171_v61 = vadd.f32 %v6170_v8, %v12723_v57 }
0x2266   :  { %9514 = vrcp.f32 %v6121_v32 }
0x2267   :  { %v6172_v60 = vadd.f32 %v6171_v61, %v12729_v20 }
0x2268   :  { %v6125_v40 = vpop.xlane.xlu0 %6124 }
0x226a   :  { %v9509_v56 = vpop.eup %9508 }
0x226b   :  { %v12732_v44 = vmul.f32 %v9509_v56, %v12637_v41  ;;  %v9511_v16 = vpop.eup %9510 }
0x226c   :  { %v6123_v39 = vpop.xlane.xlu0 %6122  ;;  %v12737_v22 = vmul.f32 %v9511_v16, %v12633_v21 }
0x226d   :  { %9516 = vrcp.f32 %v6123_v39  ;;  %v6173_v32 = vadd.f32 %v6172_v60, %v12732_v44 }
0x226e   :  { %9518 = vrcp.f32 %v6125_v40 }
0x226f   :  { %v6174_v7 = vadd.f32 %v6173_v32, %v12737_v22 }
0x2270   :  { %v6129_v53 = vpop.xlane.xlu0 %6128 }
0x2272   :  { %v9513_v9 = vpop.eup %9512 }
0x2273   :  { %v12740_v3 = vmul.f32 %v9513_v9, %v12645_v4  ;;  %v9515_v17 = vpop.eup %9514 }
0x2274   :  { %v6127_v18 = vpop.xlane.xlu0 %6126  ;;  %v12745_v29 = vmul.f32 %v9515_v17, %v12641_v59 }
0x2275   :  { %9520 = vrcp.f32 %v6127_v18  ;;  %v6175_v12 = vadd.f32 %v6174_v7, %v12740_v3 }
0x2276   :  { %9522 = vrcp.f32 %v6129_v53 }
0x2277   :  { %v6176_v56 = vadd.f32 %v6175_v12, %v12745_v29 }
0x2278   :  { %v6133_v39 = vpop.xlane.xlu1 %6132 }
0x227a   :  { %v9517_v41 = vpop.eup %9516 }
0x227b   :  { %v6162_v8 = vmul.f32 %v9517_v41, %v12653_v49  ;;  %v9519_v21 = vpop.eup %9518 }
0x227c   :  { %v6131_v40 = vpop.xlane.xlu0 %6130  ;;  %v6163_v53 = vmul.f32 %v9519_v21, %v12649_v19 }
0x227d   :  { %9524 = vrcp.f32 %v6131_v40  ;;  %v6177_v18 = vadd.f32 %v6176_v56, %v6162_v8 }
0x227e   :  { %9526 = vrcp.f32 %v6133_v39 }
0x227f   :  { %v6178_v9 = vadd.f32 %v6177_v18, %v6163_v53 }
0x2282   :  { %v9521_v4 = vpop.eup %9520  ;;  %v6135_v61 = vpop.xlane.xlu0 %6134 }
0x2283   :  { %9528 = vrcp.f32 %v6135_v61  ;;  %v6164_v16 = vmul.f32 %v9521_v4, %v12660_v38  ;;  %v9523_v32 = vpop.eup %9522 }
0x2284   :  { %v6165_v41 = vmul.f32 %v9523_v32, %v12656_v6 }
0x2285   :  { %v6179_v59 = vadd.f32 %v6178_v9, %v6164_v16 }
0x2286   :  { %v6137_v60 = vpop.xlane.xlu1 %6136 }
0x2287   :  { %9530 = vrcp.f32 %v6137_v60  ;;  %v6180_v39 = vadd.f32 %v6179_v59, %v6165_v41 }
0x228a   :  { %v9525_v17 = vpop.eup %9524  ;;  %v12751_v7 = vpop.permute.xlu1 %5760 }
0x228b   :  { %13389 = vst [vmem:[#allocation6_spill] sm:$0xff] %v12751_v7  ;;  %v12753_v49 = vpop.permute.xlu0 %5755  ;;  %v6166_v40 = vmul.f32 %v9525_v17, %v12667_v31  ;;  %v5794_v12 = vadd.f32 %v12751_v7, %v12678_v11  ;;  %v9527_v21 = vpop.eup %9526 }
0x228c   :  { %13390 = vst [vmem:[#allocation5_spill] sm:$0xff] %v12753_v49  ;;  %v5793_v19 = vadd.f32 %v12753_v49, %v12676_v0  ;;  %v6167_v61 = vmul.f32 %v9527_v21, %v12664_v26 }
0x228d   :  { %v6181_v56 = vadd.f32 %v6180_v39, %v6166_v40 }
0x228e   :  { %v6209_v38 = vpack.c.bf16 %v5794_v12, %v5793_v19 }
0x228f   :  { %v6182_v60 = vadd.f32 %v6181_v56, %v6167_v61 }
0x2290   :  { %8860 = vmatprep.mubr.bf16.mxu1 %v6209_v38  ;;  %v9529_v4 = vpop.eup %9528 }
0x2291   :  { %v6168_v18 = vmul.f32 %v9529_v4, %v12670_v45 }
0x2293   :  { %v6183_v9 = vadd.f32 %v6182_v60, %v6168_v18 }
0x2294   :  { %v9531_v6 = vpop.eup %9530 }
0x2295   :  { %v6169_v31 = vmul.f32 %v9531_v6, %v12673_v23 }
0x2297   :  { %v6184_v32 = vadd.f32 %v6183_v9, %v6169_v31 }
0x2299   :  { %v6185_v11 = vrot.slane %v6184_v32, 4 }
0x229b   :  { %v6186_v17 = vadd.f32 %v6185_v11, %v6184_v32 }
0x229d   :  { %v6187_v7 = vrot.slane %v6186_v17, 2 }
0x229f   :  { %v6188_v0 = vadd.f32 %v6187_v7, %v6186_v17 }
0x22a1   :  { %v6189_v12 = vrot.slane %v6188_v0, 1 }
0x22a3   :  { %v6190_v59 = vadd.f32 %v6189_v12, %v6188_v0 }
0x22a5   :  { %v6191_v19 = vadd.f32 1e-09, %v6190_v59 }
0x22a7   :  { %9532 = vrcp.f32 %v6191_v19 }
0x22b4   :  { %v9533_v38 = vpop.eup %9532 }
0x22b5   :  { %v6207_v39 = vmul.f32 %v9533_v38, %v6168_v18  ;;  %v6208_v49 = vmul.f32 %v9533_v38, %v6169_v31  ;;  %v6205_v26 = vmul.f32 %v9533_v38, %v6166_v40  ;;  %v6206_v21 = vmul.f32 %v9533_v38, %v6167_v61  ;;  %v12770_v61 = vpop.permute.xlu1 %5765 }
0x22b6   :  { %v6203_v4 = vmul.f32 %v9533_v38, %v6164_v16  ;;  %v6204_v23 = vmul.f32 %v9533_v38, %v6165_v41  ;;  %v6201_v6 = vmul.f32 %v9533_v38, %v6162_v8  ;;  %v6202_v9 = vmul.f32 %v9533_v38, %v6163_v53 }
0x22b7   :  { %v6220_v45 = vpack.c.bf16 %v6208_v49, %v6207_v39  ;;  %v6219_v56 = vpack.c.bf16 %v6206_v21, %v6205_v26  ;;  %v6199_v32 = vmul.f32 %v9533_v38, %v12740_v3  ;;  %v6200_v18 = vmul.f32 %v9533_v38, %v12745_v29  ;;  %v12772_v3 = vpop.permute.xlu0 %5770 }
0x22b8   :  { %v6218_v60 = vpack.c.bf16 %v6204_v23, %v6203_v4  ;;  %v6217_v7 = vpack.c.bf16 %v6202_v9, %v6201_v6  ;;  %v6197_v49 = vmul.f32 %v9533_v38, %v12732_v44  ;;  %v6198_v16 = vmul.f32 %v9533_v38, %v12737_v22  ;;  %v13391_v9 = vld [vmem:[#allocation5_spill] sm:$0xff] }
0x22b9   :  { %8844 = vmatprep.subr.bf16.mxu1 %v6220_v45  ;;  %v6216_v40 = vpack.c.bf16 %v6200_v18, %v6199_v32  ;;  %v6195_v8 = vmul.f32 %v9533_v38, %v12723_v57  ;;  %v6196_v53 = vmul.f32 %v9533_v38, %v12729_v20  ;;  %v6193_v31 = vmul.f32 %v9533_v38, %v12717_v25  ;;  %v12776_v22 = vpop.permute.xlu1 %5775  ;;  %v12855_v18 = vld [vmem:[%s13370_s3 + $0x70] sm:$0xff]  }
0x22ba   :  { %8845 = vmatpush3.bf16.msra.mxu1 %v6220_v45  ;;  %v6215_v41 = vpack.c.bf16 %v6198_v16, %v6197_v49  ;;  %v6194_v44 = vmul.f32 %v9533_v38, %v12720_v54  ;;  %v5795_v20 = vadd.f32 %v12770_v61, %v12680_v52  ;;  %v5796_v17 = vadd.f32 %v12772_v3, %v12682_v47 }
0x22bb   :  { %8846 = vmatprep.subr.bf16.mxu1 %v6219_v56  ;;  %v6214_v29 = vpack.c.bf16 %v6196_v53, %v6195_v8  ;;  %v12778_v11 = vpop.permute.xlu0 %5780  ;;  %v5797_v25 = vadd.f32 %v12776_v22, %v12690_v15  ;;  %v6494_v52 = vpack.c.bf16 %v12479_v35, %v12484_v34  ;;  %v6492_v35 = vpack.c.bf16 %v12464_v14, %v12455_v62  ;;  %v9020_v62 = vld [vmem:[%s13370_s3 + $0x60] sm:$0xff]  }
0x22bc   :  { %v6213_v57 = vpack.c.bf16 %v6194_v44, %v6193_v31  ;;  %v5798_v54 = vadd.f32 %v12778_v11, %v12698_v46  ;;  %v6210_v0 = vpack.c.bf16 %v5796_v17, %v5795_v20  ;;  %v6493_v46 = vpack.c.bf16 %v12495_v63, %v12500_v2  ;;  %8876 = vmatprep.mubr.msk.bf16.mxu0 %vm124_vm1, %v9020_v62 }
0x22bd   :  { %v12789_v12 = vpop.permute.xlu1 %5785  ;;  %v6491_v34 = vpack.c.bf16 %v12519_v1, %v12524_v42 }
0x22be   :  { %8847 = vmatpush3.bf16.msra.mxu1 %v6219_v56  ;;  %v6211_v19 = vpack.c.bf16 %v5798_v54, %v5797_v25  ;;  %v5799_v47 = vadd.f32 %v12789_v12, %v12706_v28 }
0x22bf   :  { %8848 = vmatprep.subr.bf16.mxu1 %v6218_v60  ;;  %v12791_v59 = vpop.permute.xlu0 %5790 }
0x22c0   :  { %v5800_v15 = vadd.f32 %v12791_v59, %v12714_v5 }
0x22c2   :  { %8849 = vmatpush3.bf16.msra.mxu1 %v6218_v60  ;;  %v6212_v38 = vpack.c.bf16 %v5800_v15, %v5799_v47 }
0x22c3   :  { %8850 = vmatprep.subr.bf16.mxu1 %v6217_v7 }
0x22c6   :  { %8851 = vmatpush3.bf16.msra.mxu1 %v6217_v7 }
0x22c7   :  { %8852 = vmatprep.subr.bf16.mxu1 %v6216_v40 }
0x22ca   :  { %8853 = vmatpush3.bf16.msra.mxu1 %v6216_v40 }
0x22cb   :  { %8854 = vmatprep.subr.bf16.mxu1 %v6215_v41 }
0x22ce   :  { %8855 = vmatpush3.bf16.msra.mxu1 %v6215_v41 }
0x22cf   :  { %8856 = vmatprep.subr.bf16.mxu1 %v6214_v29 }
0x22d2   :  { %8857 = vmatpush3.bf16.msra.mxu1 %v6214_v29  ;;  %v12872_v29 = vld [vmem:[%s13370_s3 + $0x78] sm:$0xff]  }
0x22d3   :  { %8858 = vmatprep.subr.bf16.mxu1 %v6213_v57 }
0x22d6   :  { %8859 = vmatpush3.bf16.msra.mxu1 %v6213_v57 }
0x22d7   :  { %8884 = vmatprep.subr.bf16.mxu1 %v13383_v58 }
0x22d9   :  { %8861 = vmatmul.mubr.bf16.vlgmr.msra.gmra.mxu1 %v6210_v0 }
0x22da   :  { %8864 = vmatprep.mubr.bf16.mxu1 %v6211_v19  ;;  %8885 = vmatpush3.bf16.msra.mxu1 %v6494_v52 }
0x22db   :  { %8886 = vmatprep.subr.bf16.mxu1 %v13383_v58 }
0x22de   :  { %8887 = vmatpush3.bf16.msra.mxu1 %v6493_v46 }
0x22df   :  { %8888 = vmatprep.subr.bf16.mxu1 %v13383_v58 }
0x22e1   :  { %8865 = vmatmul.mubr.bf16.gmra.mxu1 %v6212_v38 }
0x22e2   :  { %8889 = vmatpush3.bf16.msra.mxu1 %v6492_v35  ;;  %8892 = vmatprep.mubr.msk.bf16.mxu1 %vm9711_vm0, %v13383_v58 }
0x22e3   :  { %8890 = vmatprep.subr.bf16.mxu1 %v13383_v58 }
0x22e6   :  { %8891 = vmatpush3.bf16.msra.mxu1 %v6491_v34 }
0x22e9   :  { %8893 = vmatmul.mubr.msk.bf16.vlgmr.msra.gmra.mxu1 %vm124_vm1, %v12536_v37 }
0x22ea   :  { %8896 = vmatprep.mubr.msk.bf16.mxu1 %vm9711_vm0, %v13383_v58 }
0x22f1   :  { %8897 = vmatmul.mubr.msk.bf16.gmra.mxu1 %vm124_vm1, %v12561_v55 }
0x22f2   :  { %8900 = vmatprep.mubr.msk.bf16.mxu1 %vm9711_vm0, %v13383_v58 }
0x22f9   :  { %8901 = vmatmul.mubr.msk.bf16.gmra.mxu1 %vm124_vm1, %v12576_v48 }
0x22fa   :  { %8904 = vmatprep.mubr.msk.bf16.mxu1 %vm9711_vm0, %v13383_v58 }
0x2301   :  { %8905 = vmatmul.mubr.msk.bf16.gmra.mxu1 %vm124_vm1, %v12591_v43 }
0x2302   :  { %8908 = vmatprep.mubr.msk.bf16.mxu1 %vm9711_vm0, %v13383_v58 }
0x2309   :  { %8909 = vmatmul.mubr.msk.bf16.gmra.mxu1 %vm124_vm1, %v12606_v51 }
0x230a   :  { %8972 = vmatprep.mubr.msk.bf16.mxu1 %vm124_vm1, %v9020_v62 }
0x2399   :  { %v8862_v14 = vpop.f32.mrf.mxu1 }
0x239a   :  { %v6288_v56 = vsub.f32 %v12452_v24, %v8862_v14  ;;  %v13392_v24 = vld [vmem:[#allocation6_spill] sm:$0xff] }
0x239b   :  { %v6255_v63 = vpop.f32.mrf.mxu1 }
0x239d   :  { %v8863_v2 = vpop.f32.mrf.mxu1 }
0x239e   :  { %v6289_v26 = vsub.f32 %v12461_v50, %v8863_v2 }
0x239f   :  { %v6258_v1 = vpop.f32.mrf.mxu1 }
0x23a0   :  { %v6295_v4 = vpack.c.bf16 %v6289_v26, %v6288_v56 }
0x23a1   :  { %v8866_v42 = vpop.f32.mrf.mxu1 }
0x23a2   :  { %v6292_v58 = vsub.f32 %v12481_v36, %v8866_v42 }
0x23a3   :  { %v6271_v37 = vpop.f32.mrf.mxu1 }
0x23a4   :  { %v6290_v51 = vsub.f32 %v12497_v30, %v6271_v37 }
0x23a5   :  { %v8867_v55 = vpop.f32.mrf.mxu1 }
0x23a6   :  { %v6293_v48 = vsub.f32 %v12476_v10, %v8867_v55  ;;  %v6287_v10 = vsub.f32 %v12516_v27, %v6258_v1  ;;  %v12850_v27 = vld [vmem:[%s13370_s3 + $0x68] sm:$0xff]  }
0x23a7   :  { %v6274_v43 = vpop.f32.mrf.mxu1 }
0x23a8   :  { %v6297_v28 = vpack.c.bf16 %v6293_v48, %v6292_v58  ;;  %v6291_v5 = vsub.f32 %v12492_v33, %v6274_v43  ;;  %v6286_v33 = vsub.f32 %v12521_v13, %v6255_v63 }
0x23a9   :  { %v6529_v39 = vpop.f32.mrf.mxu1 }
0x23aa   :  { %v6296_v21 = vpack.c.bf16 %v6291_v5, %v6290_v51  ;;  %8868 = vmatprep.subr.bf16.mxu0 %v6297_v28  ;;  %6576 = vxpose.xlu1.b32.start [1/2] (short) %v6529_v39, 128  ;;  %v6294_v50 = vpack.c.bf16 %v6287_v10, %v6286_v33 }
0x23ab   :  { %8869 = vmatpush3.bf16.msra.mxu0 %v6297_v28  ;;  %v8894_v45 = vpop.f32.mrf.mxu1 }
0x23ac   :  { %8870 = vmatprep.subr.bf16.mxu0 %v6296_v21 }
0x23ad   :  { %v6532_v36 = vpop.f32.mrf.mxu1 }
0x23ae   :  { %6577 = vxpose.xlu1.b32.end [2/2] (short) %v6532_v36, 128 }
0x23af   :  { %8871 = vmatpush3.bf16.msra.mxu0 %v6296_v21  ;;  %v8895_v30 = vpop.f32.mrf.mxu1 }
0x23b0   :  { %8872 = vmatprep.subr.bf16.mxu0 %v6295_v4 }
0x23b1   :  { %v6537_v23 = vpop.f32.mrf.mxu1 }
0x23b2   :  { %v12842_v7 = vadd.f32 %v6537_v23, %v13391_v9 }
0x23b3   :  { %8873 = vmatpush3.bf16.msra.mxu0 %v6295_v4  ;;  %v8898_v60 = vpop.f32.mrf.mxu1 }
0x23b4   :  { %8874 = vmatprep.subr.bf16.mxu0 %v6294_v50 }
0x23b5   :  { %v6540_v6 = vpop.f32.mrf.mxu1 }
0x23b6   :  { %v12845_v32 = vadd.f32 %v6540_v6, %v13392_v24 }
0x23b7   :  { %8875 = vmatpush3.bf16.msra.mxu0 %v6294_v50  ;;  %v8899_v13 = vpop.f32.mrf.mxu1 }
0x23b8   :  { %v6984_v40 = vpack.c.bf16 %v12845_v32, %v12842_v7  ;;  %8912 = vmatprep.subr.mxu0 %v6532_v36 }
0x23b9   :  { %v6545_v49 = vpop.f32.mrf.mxu1 }
0x23ba   :  { %8877 = vmatmul.mubr.msk.bf16.vlgmr.msra.gmra.mxu0 %vm124_vm1, %v12850_v27  ;;  %v12864_v8 = vadd.f32 %v6545_v49, %v12770_v61 }
0x23bb   :  { %v8902_v16 = vpop.f32.mrf.mxu1  ;;  %8913 = vmatpush3.msra.mxu0 %v6532_v36  ;;  %8880 = vmatprep.mubr.msk.bf16.mxu0 %vm124_vm1, %v12855_v18 }
0x23bc   :  { %8914 = vmatprep.subr.mxu0 %v6529_v39 }
0x23bd   :  { %v6548_v41 = vpop.f32.mrf.mxu1  ;;  %8915 = vmatpush3.msra.mxu0 %v6529_v39 }
0x23be   :  { %v12867_v53 = vadd.f32 %v6548_v41, %v12772_v3 }
0x23bf   :  { %v8903_v31 = vpop.f32.mrf.mxu1 }
0x23c0   :  { %v6985_v44 = vpack.c.bf16 %v12867_v53, %v12864_v8  ;;  %v13174_v53 = vld [vmem:[#allocation2 + $0x1b8] sm:$0xff] }
0x23c1   :  { %v6553_v57 = vpop.f32.mrf.mxu1 }
0x23c2   :  { %8881 = vmatmul.mubr.msk.bf16.gmra.mxu0 %vm124_vm1, %v12872_v29  ;;  %v12879_v61 = vadd.f32 %v6553_v57, %v12776_v22 }
0x23c3   :  { %v8906_v20 = vpop.f32.mrf.mxu1 }
0x23c5   :  { %v6556_v17 = vpop.f32.mrf.mxu1 }
0x23c6   :  { %v12882_v3 = vadd.f32 %v6556_v17, %v12778_v11 }
0x23c7   :  { %v8907_v25 = vpop.f32.mrf.mxu1 }
0x23c8   :  { %v6986_v54 = vpack.c.bf16 %v12882_v3, %v12879_v61  ;;  %v13177_v3 = vld [vmem:[#allocation2 + $0x1a0] sm:$0xff] }
0x23c9   :  { %v6561_v0 = vpop.f32.mrf.mxu1 }
0x23ca   :  { %v12887_v47 = vadd.f32 %v6561_v0, %v12789_v12 }
0x23cb   :  { %v8910_v19 = vpop.f32.mrf.mxu1 }
0x23cd   :  { %v6564_v52 = vpop.f32.mrf.mxu1 }
0x23ce   :  { %v12890_v15 = vadd.f32 %v6564_v52, %v12791_v59 }
0x23cf   :  { %v8911_v46 = vpop.f32.mrf.mxu1 }
0x23d0   :  { %v6987_v22 = vpack.c.bf16 %v12890_v15, %v12887_v47  ;;  %v13180_v15 = vld [vmem:[#allocation2 + $0x1a8] sm:$0xff] }
0x2426   :  { %v6592_v38 = vpop.trf.xlu1 }
0x2427   :  { %8916 = vmatprep.mubr.msk.f32.mxu0 %vm293_vm2, %v6592_v38 }
0x242a   :  { %v6593_v11 = vpop.trf.xlu1 }
0x242b   :  { %8917 = vmatmul.mubr.msk.f32.vlgmr.msra.gmra.mxu0 %vm293_vm2, %v6593_v11 }
0x242e   :  { %v6594_v35 = vpop.trf.xlu1 }
0x242f   :  { %8919 = vmatprep.mubr.msk.f32.mxu0 %vm293_vm2, %v6594_v35 }
0x2432   :  { %v6595_v34 = vpop.trf.xlu1 }
0x2433   :  { %8920 = vmatmul.mubr.msk.f32.gmra.mxu0 %vm293_vm2, %v6595_v34 }
0x2436   :  { %v6596_v12 = vpop.trf.xlu1 }
0x2437   :  { %8922 = vmatprep.mubr.msk.f32.mxu0 %vm293_vm2, %v6596_v12 }
0x243a   :  { %v6597_v59 = vpop.trf.xlu1 }
0x243b   :  { %8923 = vmatmul.mubr.msk.f32.gmra.mxu0 %vm293_vm2, %v6597_v59 }
0x243e   :  { %v6598_v62 = vpop.trf.xlu1 }
0x243f   :  { %8925 = vmatprep.mubr.msk.f32.mxu0 %vm293_vm2, %v6598_v62 }
0x2442   :  { %v6599_v14 = vpop.trf.xlu1 }
0x2443   :  { %8926 = vmatmul.mubr.msk.f32.gmra.mxu0 %vm293_vm2, %v6599_v14 }
0x2446   :  { %v6600_v63 = vpop.trf.xlu1 }
0x2447   :  { %8928 = vmatprep.mubr.msk.f32.mxu0 %vm293_vm2, %v6600_v63 }
0x244a   :  { %v6601_v2 = vpop.trf.xlu1 }
0x244b   :  { %8929 = vmatmul.mubr.msk.f32.gmra.mxu0 %vm293_vm2, %v6601_v2 }
0x244e   :  { %v6602_v1 = vpop.trf.xlu1 }
0x244f   :  { %8931 = vmatprep.mubr.msk.f32.mxu0 %vm293_vm2, %v6602_v1 }
0x2452   :  { %v6603_v42 = vpop.trf.xlu1 }
0x2453   :  { %8932 = vmatmul.mubr.msk.f32.gmra.mxu0 %vm293_vm2, %v6603_v42 }
0x2456   :  { %v6604_v37 = vpop.trf.xlu1 }
0x2457   :  { %8934 = vmatprep.mubr.msk.f32.mxu0 %vm293_vm2, %v6604_v37 }
0x245a   :  { %v6605_v55 = vpop.trf.xlu1 }
0x245b   :  { %8935 = vmatmul.mubr.msk.f32.gmra.mxu0 %vm293_vm2, %v6605_v55 }
0x245e   :  { %v6606_v58 = vpop.trf.xlu1 }
0x245f   :  { %8937 = vmatprep.mubr.msk.f32.mxu0 %vm293_vm2, %v6606_v58 }
0x2462   :  { %v6607_v48 = vpop.trf.xlu1 }
0x2463   :  { %8938 = vmatmul.mubr.msk.f32.gmra.mxu0 %vm293_vm2, %v6607_v48 }
0x2464   :  { %8956 = vmatprep.mubr.bf16.mxu0 %v6984_v40 }
0x247a   :  { %v12910_v43 = vpop.f32.mrf.mxu0 }
0x247c   :  { %v12912_v51 = vpop.f32.mrf.mxu0 }
0x247e   :  { %v12914_v28 = vpop.f32.mrf.mxu0 }
0x2480   :  { %v12916_v5 = vpop.f32.mrf.mxu0 }
0x2482   :  { %v12918_v39 = vpop.f32.mrf.mxu0 }
0x2484   :  { %v12920_v26 = vpop.f32.mrf.mxu0 }
0x2486   :  { %v12922_v21 = vpop.f32.mrf.mxu0 }
0x2488   :  { %v12924_v45 = vpop.f32.mrf.mxu0 }
0x24eb   :  { %v8918_v56 = vpop.f32.mrf.mxu0 }
0x24ec   :  { %6803 = vmax.xlane.f32.xlu0 %v8918_v56 }
0x24ed   :  { %v6722_v36 = vpop.f32.mrf.mxu0 }
0x24f0   :  { %6801 = vmax.xlane.f32.xlu0 %v6722_v36 }
0x24f3   :  { %v8921_v4 = vpop.f32.mrf.mxu0 }
0x24f4   :  { %6807 = vmax.xlane.f32.xlu0 %v8921_v4 }
0x24f5   :  { %v6732_v10 = vpop.f32.mrf.mxu0 }
0x24f8   :  { %6805 = vmax.xlane.f32.xlu0 %v6732_v10 }
0x24fb   :  { %v8924_v30 = vpop.f32.mrf.mxu0 }
0x24fc   :  { %6811 = vmax.xlane.f32.xlu0 %v8924_v30 }
0x24fd   :  { %v6742_v33 = vpop.f32.mrf.mxu0 }
0x24fe   :  { %6809 = vmax.xlane.f32.xlu1 %v6742_v33 }
0x2503   :  { %v8927_v23 = vpop.f32.mrf.mxu0 }
0x2504   :  { %6815 = vmax.xlane.f32.xlu0 %v8927_v23 }
0x2505   :  { %v6752_v50 = vpop.f32.mrf.mxu0 }
0x2508   :  { %6813 = vmax.xlane.f32.xlu0 %v6752_v50 }
0x250b   :  { %v8930_v60 = vpop.f32.mrf.mxu0 }
0x250c   :  { %6819 = vmax.xlane.f32.xlu0 %v8930_v60 }
0x250d   :  { %v12926_v6 = vpop.f32.mrf.mxu0 }
0x2510   :  { %6817 = vmax.xlane.f32.xlu0 %v12926_v6 }
0x2513   :  { %v12929_v9 = vpop.f32.mrf.mxu0 }
0x2514   :  { %6823 = vmax.xlane.f32.xlu0 %v12929_v9 }
0x2515   :  { %v12932_v7 = vpop.f32.mrf.mxu0 }
0x2518   :  { %6821 = vmax.xlane.f32.xlu0 %v12932_v7 }
0x251b   :  { %v12935_v24 = vpop.f32.mrf.mxu0 }
0x251c   :  { %6827 = vmax.xlane.f32.xlu0 %v12935_v24 }
0x251d   :  { %v12938_v32 = vpop.f32.mrf.mxu0 }
0x2520   :  { %6825 = vmax.xlane.f32.xlu0 %v12938_v32 }
0x2523   :  { %v12941_v13 = vpop.f32.mrf.mxu0 }
0x2525   :  { %v12943_v40 = vpop.f32.mrf.mxu0 }
0x2526   :  { %6829 = vmax.xlane.f32.xlu0 %v12943_v40 }
0x252a   :  { %6831 = vmax.xlane.f32.xlu0 %v12941_v13 }
0x2575   :  { %v6804_v49 = vpop.xlane.xlu0 %6803 }
0x2576   :  { %v6834_v16 = vsub.f32 %v8918_v56, %v6804_v49 }
0x2578   :  { %v6851_v41 = vmul.f32 1.442695, %v6834_v16 }
0x2579   :  { %v6802_v31 = vpop.xlane.xlu0 %6801 }
0x257a   :  { %9534 = vpow2.f32 %v6851_v41  ;;  %v6833_v57 = vsub.f32 %v6722_v36, %v6802_v31 }
0x257c   :  { %v6849_v20 = vmul.f32 1.442695, %v6833_v57 }
0x257d   :  { %v6808_v17 = vpop.xlane.xlu0 %6807 }
0x257e   :  { %9536 = vpow2.f32 %v6849_v20  ;;  %v6836_v25 = vsub.f32 %v8921_v4, %v6808_v17 }
0x2580   :  { %v6855_v0 = vmul.f32 1.442695, %v6836_v25 }
0x2581   :  { %v6806_v19 = vpop.xlane.xlu0 %6805 }
0x2582   :  { %9538 = vpow2.f32 %v6855_v0  ;;  %v6835_v52 = vsub.f32 %v6732_v10, %v6806_v19 }
0x2584   :  { %v6853_v46 = vmul.f32 1.442695, %v6835_v52 }
0x2585   :  { %v6812_v38 = vpop.xlane.xlu0 %6811 }
0x2586   :  { %9540 = vpow2.f32 %v6853_v46  ;;  %v6838_v11 = vsub.f32 %v8924_v30, %v6812_v38 }
0x2587   :  { %v12947_v35 = vpop.eup %9534  ;;  %v6810_v34 = vpop.xlane.xlu1 %6809 }
0x2588   :  { %v6859_v12 = vmul.f32 1.442695, %v6838_v11  ;;  %v6837_v59 = vsub.f32 %v6742_v33, %v6810_v34  ;;  %6883 = vadd.xlane.f32.xlu0 %v12947_v35 }
0x258a   :  { %9542 = vpow2.f32 %v6859_v12  ;;  %v6857_v62 = vmul.f32 1.442695, %v6837_v59 }
0x258b   :  { %v12950_v14 = vpop.eup %9536 }
0x258c   :  { %6881 = vadd.xlane.f32.xlu0 %v12950_v14  ;;  %9544 = vpow2.f32 %v6857_v62 }
0x258d   :  { %v6816_v63 = vpop.xlane.xlu0 %6815 }
0x258e   :  { %v6840_v2 = vsub.f32 %v8927_v23, %v6816_v63 }
0x258f   :  { %v12953_v1 = vpop.eup %9538 }
0x2590   :  { %v6863_v42 = vmul.f32 1.442695, %v6840_v2  ;;  %6887 = vadd.xlane.f32.xlu0 %v12953_v1 }
0x2591   :  { %v6814_v37 = vpop.xlane.xlu0 %6813 }
0x2592   :  { %9546 = vpow2.f32 %v6863_v42  ;;  %v6839_v55 = vsub.f32 %v6752_v50, %v6814_v37  ;;  %v7753_v37 = vld [vmem:[%s13371_s4 + $0xc0] sm:$0xff] }
0x2593   :  { %v12956_v58 = vpop.eup %9540 }
0x2594   :  { %v6861_v48 = vmul.f32 1.442695, %v6839_v55  ;;  %6885 = vadd.xlane.f32.xlu0 %v12956_v58  ;;  %v7755_v55 = vld [vmem:[%s13371_s4 + $0xd0] sm:$0xff] }
0x2595   :  { %v6820_v56 = vpop.xlane.xlu0 %6819 }
0x2596   :  { %9548 = vpow2.f32 %v6861_v48  ;;  %v6842_v36 = vsub.f32 %v8930_v60, %v6820_v56  ;;  %v7756_v48 = vld [vmem:[%s13371_s4 + $0xd8] sm:$0xff]  ;;  %v7757_v56 = vld [vmem:[%s13371_s4 + $0xe0] sm:$0xff] }
0x2597   :  { %v12959_v4 = vpop.eup %9542 }
0x2598   :  { %v6867_v10 = vmul.f32 1.442695, %v6842_v36  ;;  %6891 = vadd.xlane.f32.xlu0 %v12959_v4  ;;  %v7758_v36 = vld [vmem:[%s13371_s4 + $0xe8] sm:$0xff] }
0x2599   :  { %v6818_v30 = vpop.xlane.xlu0 %6817  ;;  %v12963_v23 = vpop.eup %9544 }
0x259a   :  { %9550 = vpow2.f32 %v6867_v10  ;;  %v6841_v33 = vsub.f32 %v12926_v6, %v6818_v30  ;;  %v7759_v10 = vld [vmem:[%s13371_s4 + $0xf0] sm:$0xff]  ;;  %v7760_v30 = vld [vmem:[%s13371_s4 + $0xf8] sm:$0xff] }
0x259c   :  { %v6865_v50 = vmul.f32 1.442695, %v6841_v33  ;;  %6889 = vadd.xlane.f32.xlu0 %v12963_v23 }
0x259d   :  { %v6824_v49 = vpop.xlane.xlu0 %6823 }
0x259e   :  { %9552 = vpow2.f32 %v6865_v50  ;;  %v6844_v16 = vsub.f32 %v12929_v9, %v6824_v49 }
0x259f   :  { %v12967_v41 = vpop.eup %9546 }
0x25a0   :  { %v6871_v60 = vmul.f32 1.442695, %v6844_v16  ;;  %6895 = vadd.xlane.f32.xlu0 %v12967_v41 }
0x25a1   :  { %v6822_v31 = vpop.xlane.xlu0 %6821 }
0x25a2   :  { %9554 = vpow2.f32 %v6871_v60  ;;  %v6843_v57 = vsub.f32 %v12932_v7, %v6822_v31 }
0x25a3   :  { %v12971_v20 = vpop.eup %9548 }
0x25a4   :  { %v6869_v6 = vmul.f32 1.442695, %v6843_v57  ;;  %6893 = vadd.xlane.f32.xlu0 %v12971_v20 }
0x25a5   :  { %v6828_v17 = vpop.xlane.xlu0 %6827 }
0x25a6   :  { %9556 = vpow2.f32 %v6869_v6  ;;  %v6846_v25 = vsub.f32 %v12935_v24, %v6828_v17 }
0x25a7   :  { %v12975_v0 = vpop.eup %9550 }
0x25a8   :  { %v6875_v9 = vmul.f32 1.442695, %v6846_v25  ;;  %6899 = vadd.xlane.f32.xlu0 %v12975_v0 }
0x25a9   :  { %v6826_v19 = vpop.xlane.xlu0 %6825 }
0x25aa   :  { %9558 = vpow2.f32 %v6875_v9  ;;  %v6845_v52 = vsub.f32 %v12938_v32, %v6826_v19 }
0x25ab   :  { %v12979_v46 = vpop.eup %9552 }
0x25ac   :  { %v6873_v7 = vmul.f32 1.442695, %v6845_v52  ;;  %6897 = vadd.xlane.f32.xlu0 %v12979_v46 }
0x25ae   :  { %9560 = vpow2.f32 %v6873_v7 }
0x25af   :  { %v12982_v38 = vpop.eup %9554  ;;  %v6830_v11 = vpop.xlane.xlu0 %6829 }
0x25b0   :  { %v6847_v24 = vsub.f32 %v12943_v40, %v6830_v11  ;;  %6903 = vadd.xlane.f32.xlu0 %v12982_v38 }
0x25b2   :  { %v6877_v34 = vmul.f32 1.442695, %v6847_v24 }
0x25b3   :  { %v12986_v12 = vpop.eup %9556  ;;  %v6832_v59 = vpop.xlane.xlu0 %6831 }
0x25b4   :  { %9562 = vpow2.f32 %v6877_v34  ;;  %v6848_v32 = vsub.f32 %v12941_v13, %v6832_v59  ;;  %6901 = vadd.xlane.f32.xlu0 %v12986_v12  ;;  %v7754_v13 = vld [vmem:[%s13371_s4 + $0xc8] sm:$0xff] }
0x25b6   :  { %v6879_v62 = vmul.f32 1.442695, %v6848_v32 }
0x25b7   :  { %v12990_v63 = vpop.eup %9558 }
0x25b8   :  { %9564 = vpow2.f32 %v6879_v62  ;;  %6907 = vadd.xlane.f32.xlu1 %v12990_v63 }
0x25bb   :  { %v12993_v2 = vpop.eup %9560 }
0x25bc   :  { %6905 = vadd.xlane.f32.xlu0 %v12993_v2 }
0x25c1   :  { %v12996_v40 = vpop.eup %9562 }
0x25c2   :  { %6909 = vadd.xlane.f32.xlu0 %v12996_v40 }
0x25c5   :  { %v12999_v42 = vpop.eup %9564 }
0x25c6   :  { %6911 = vadd.xlane.f32.xlu1 %v12999_v42 }
0x25d7   :  { %6305 = vperm.xlu1 %8986, %v7754_v13  }
0x25d8   :  { %6300 = vperm.xlu0 %8987, %v7753_v37  }
0x25db   :  { %6310 = vperm.xlu1 %8986, %v7755_v55  }
0x25dc   :  { %6315 = vperm.xlu0 %8987, %v7756_v48  }
0x25df   :  { %6320 = vperm.xlu1 %8986, %v7757_v56  }
0x25e0   :  { %6325 = vperm.xlu0 %8987, %v7758_v36  }
0x25e3   :  { %6330 = vperm.xlu1 %8986, %v7759_v10  }
0x25e4   :  { %6335 = vperm.xlu0 %8987, %v7760_v30  }
0x2611   :  { %v6884_v33 = vpop.xlane.xlu0 %6883 }
0x2615   :  { %v6882_v50 = vpop.xlane.xlu0 %6881 }
0x2616   :  { %9566 = vrcp.f32 %v6882_v50 }
0x2617   :  { %9568 = vrcp.f32 %v6884_v33 }
0x2619   :  { %v6888_v49 = vpop.xlane.xlu0 %6887 }
0x261d   :  { %v6886_v16 = vpop.xlane.xlu0 %6885 }
0x261e   :  { %9570 = vrcp.f32 %v6886_v16 }
0x261f   :  { %9572 = vrcp.f32 %v6888_v49 }
0x2621   :  { %v6892_v60 = vpop.xlane.xlu0 %6891 }
0x2623   :  { %v9567_v17 = vpop.eup %9566 }
0x2624   :  { %v9569_v9 = vpop.eup %9568  ;;  %v13027_v52 = vmul.f32 %v9567_v17, %v12950_v14 }
0x2625   :  { %v6890_v31 = vpop.xlane.xlu0 %6889  ;;  %v13030_v11 = vmul.f32 %v9569_v9, %v12947_v35 }
0x2626   :  { %9574 = vrcp.f32 %v6890_v31 }
0x2627   :  { %9576 = vrcp.f32 %v6892_v60  ;;  %v6945_v59 = vadd.f32 %v13030_v11, %v13027_v52 }
0x2629   :  { %v6896_v57 = vpop.xlane.xlu0 %6895 }
0x262b   :  { %v9571_v19 = vpop.eup %9570 }
0x262c   :  { %v13033_v24 = vmul.f32 %v9571_v19, %v12956_v58  ;;  %v9573_v34 = vpop.eup %9572 }
0x262d   :  { %v6894_v6 = vpop.xlane.xlu0 %6893  ;;  %v13039_v14 = vmul.f32 %v9573_v34, %v12953_v1 }
0x262e   :  { %9578 = vrcp.f32 %v6894_v6  ;;  %v6946_v13 = vadd.f32 %v6945_v59, %v13033_v24 }
0x262f   :  { %9580 = vrcp.f32 %v6896_v57 }
0x2630   :  { %v6947_v55 = vadd.f32 %v6946_v13, %v13039_v14 }
0x2631   :  { %v6900_v25 = vpop.xlane.xlu0 %6899 }
0x2633   :  { %v9575_v32 = vpop.eup %9574 }
0x2634   :  { %v13042_v37 = vmul.f32 %v9575_v32, %v12963_v23  ;;  %v9577_v58 = vpop.eup %9576 }
0x2635   :  { %v6898_v7 = vpop.xlane.xlu0 %6897  ;;  %v13047_v36 = vmul.f32 %v9577_v58, %v12959_v4 }
0x2636   :  { %9582 = vrcp.f32 %v6898_v7  ;;  %v6948_v56 = vadd.f32 %v6947_v55, %v13042_v37 }
0x2637   :  { %9584 = vrcp.f32 %v6900_v25 }
0x2638   :  { %v6949_v30 = vadd.f32 %v6948_v56, %v13047_v36 }
0x2639   :  { %v6904_v62 = vpop.xlane.xlu0 %6903 }
0x263b   :  { %v9579_v48 = vpop.eup %9578 }
0x263c   :  { %v13050_v10 = vmul.f32 %v9579_v48, %v12971_v20  ;;  %v9581_v1 = vpop.eup %9580 }
0x263d   :  { %v6902_v35 = vpop.xlane.xlu0 %6901  ;;  %v13055_v16 = vmul.f32 %v9581_v1, %v12967_v41 }
0x263e   :  { %9586 = vrcp.f32 %v6902_v35  ;;  %v6950_v50 = vadd.f32 %v6949_v30, %v13050_v10 }
0x263f   :  { %9588 = vrcp.f32 %v6904_v62 }
0x2640   :  { %v6951_v20 = vadd.f32 %v6950_v50, %v13055_v16 }
0x2641   :  { %v6908_v49 = vpop.xlane.xlu1 %6907 }
0x2643   :  { %v9583_v23 = vpop.eup %9582 }
0x2644   :  { %v13058_v60 = vmul.f32 %v9583_v23, %v12979_v46  ;;  %v9585_v4 = vpop.eup %9584 }
0x2645   :  { %v6906_v33 = vpop.xlane.xlu0 %6905  ;;  %v13063_v17 = vmul.f32 %v9585_v4, %v12975_v0 }
0x2646   :  { %9590 = vrcp.f32 %v6906_v33  ;;  %v6952_v6 = vadd.f32 %v6951_v20, %v13058_v60 }
0x2647   :  { %9592 = vrcp.f32 %v6908_v49 }
0x2648   :  { %v6953_v9 = vadd.f32 %v6952_v6, %v13063_v17 }
0x264b   :  { %v9587_v31 = vpop.eup %9586  ;;  %v6910_v57 = vpop.xlane.xlu0 %6909 }
0x264c   :  { %9594 = vrcp.f32 %v6910_v57  ;;  %v13066_v25 = vmul.f32 %v9587_v31, %v12986_v12  ;;  %v9589_v46 = vpop.eup %9588 }
0x264d   :  { %v13075_v32 = vmul.f32 %v9589_v46, %v12982_v38 }
0x264e   :  { %v6954_v19 = vadd.f32 %v6953_v9, %v13066_v25 }
0x264f   :  { %v6912_v41 = vpop.xlane.xlu1 %6911 }
0x2650   :  { %9596 = vrcp.f32 %v6912_v41  ;;  %v6955_v13 = vadd.f32 %v6954_v19, %v13075_v32 }
0x2653   :  { %v9591_v7 = vpop.eup %9590  ;;  %v13070_v34 = vpop.permute.xlu1 %6305 }
0x2654   :  { %v13072_v59 = vpop.permute.xlu0 %6300  ;;  %v6941_v0 = vmul.f32 %v9591_v7, %v12993_v2  ;;  %v13080_v12 = vadd.f32 %v12916_v5, %v13070_v34  ;;  %v9593_v35 = vpop.eup %9592 }
0x2655   :  { %v13084_v62 = vadd.f32 %v12912_v51, %v13072_v59  ;;  %v6942_v48 = vmul.f32 %v9593_v35, %v12990_v63 }
0x2656   :  { %6437 = vadd.xlane.f32.xlu0 %v13080_v12  ;;  %v6956_v51 = vadd.f32 %v6955_v13, %v6941_v0  ;;  %v6460_v31 = vmul.f32 %v13080_v12, %v13080_v12 }
0x2657   :  { %6435 = vadd.xlane.f32.xlu1 %v13084_v62  ;;  %v13089_v58 = vpop.permute.xlu1 %6310 }
0x2658   :  { %v13091_v38 = vpop.permute.xlu0 %6315  ;;  %v13095_v2 = vadd.f32 %v12910_v43, %v13089_v58  ;;  %v6957_v23 = vadd.f32 %v6956_v51, %v6942_v48 }
0x2659   :  { %v13099_v5 = vadd.f32 %v12914_v28, %v13091_v38  ;;  %v9595_v55 = vpop.eup %9594 }
0x265a   :  { %6439 = vadd.xlane.f32.xlu0 %v13095_v2  ;;  %v6943_v56 = vmul.f32 %v9595_v55, %v12996_v40 }
0x265b   :  { %6441 = vadd.xlane.f32.xlu1 %v13099_v5  ;;  %v13105_v1 = vpop.permute.xlu1 %6320  ;;  %v6462_v6 = vmul.f32 %v13099_v5, %v13099_v5 }
0x265c   :  { %v13107_v30 = vpop.permute.xlu0 %6325  ;;  %v13111_v43 = vadd.f32 %v12920_v26, %v13105_v1  ;;  %v6958_v40 = vadd.f32 %v6957_v23, %v6943_v56 }
0x265d   :  { %v13115_v28 = vadd.f32 %v12924_v45, %v13107_v30  ;;  %v9597_v33 = vpop.eup %9596 }
0x265e   :  { %6443 = vadd.xlane.f32.xlu0 %v13111_v43  ;;  %v6944_v63 = vmul.f32 %v9597_v33, %v12999_v42  ;;  %v6459_v42 = vmul.f32 %v13084_v62, %v13084_v62  ;;  %v6463_v46 = vmul.f32 %v13111_v43, %v13111_v43 }
0x265f   :  { %6445 = vadd.xlane.f32.xlu1 %v13115_v28  ;;  %v13120_v50 = vpop.permute.xlu1 %6330  ;;  %v6464_v19 = vmul.f32 %v13115_v28, %v13115_v28 }
0x2660   :  { %v13122_v49 = vpop.permute.xlu0 %6335  ;;  %v13126_v26 = vadd.f32 %v12918_v39, %v13120_v50  ;;  %v6959_v4 = vadd.f32 %v6958_v40, %v6944_v63 }
0x2661   :  { %v13130_v45 = vadd.f32 %v12922_v21, %v13122_v49  ;;  %v6461_v21 = vmul.f32 %v13095_v2, %v13095_v2 }
0x2662   :  { %6447 = vadd.xlane.f32.xlu0 %v13126_v26  ;;  %v6960_v20 = vrot.slane %v6959_v4, 4  ;;  %v6465_v35 = vmul.f32 %v13126_v26, %v13126_v26 }
0x2663   :  { %6449 = vadd.xlane.f32.xlu1 %v13130_v45  ;;  %v6466_v51 = vmul.f32 %v13130_v45, %v13130_v45 }
0x2664   :  { %v6961_v57 = vadd.f32 %v6960_v20, %v6959_v4 }
0x2666   :  { %6467 = vadd.xlane.f32.xlu0 %v6459_v42  ;;  %v6962_v39 = vrot.slane %v6961_v57, 2 }
0x2667   :  { %6469 = vadd.xlane.f32.xlu1 %v6460_v31 }
0x2668   :  { %v6963_v41 = vadd.f32 %v6962_v39, %v6961_v57 }
0x266a   :  { %6471 = vadd.xlane.f32.xlu0 %v6461_v21  ;;  %v6964_v9 = vrot.slane %v6963_v41, 1 }
0x266b   :  { %6473 = vadd.xlane.f32.xlu1 %v6462_v6 }
0x266c   :  { %v6965_v7 = vadd.f32 %v6964_v9, %v6963_v41 }
0x266e   :  { %6475 = vadd.xlane.f32.xlu0 %v6463_v46  ;;  %v6966_v13 = vadd.f32 1e-09, %v6965_v7  ;;  %v13171_v7 = vld [vmem:[#allocation2 + $0x1b0] sm:$0xff] }
0x266f   :  { %6477 = vadd.xlane.f32.xlu1 %v6464_v19 }
0x2670   :  { %9598 = vrcp.f32 %v6966_v13  ;;  %v13183_v13 = vld [vmem:[#allocation2 + $0x198] sm:$0xff] }
0x2672   :  { %6479 = vadd.xlane.f32.xlu0 %v6465_v35 }
0x2673   :  { %6481 = vadd.xlane.f32.xlu1 %v6466_v51 }
0x267d   :  { %v9599_v55 = vpop.eup %9598 }
0x267e   :  { %v6982_v23 = vmul.f32 %v9599_v55, %v6943_v56  ;;  %v6983_v33 = vmul.f32 %v9599_v55, %v6944_v63  ;;  %v6980_v40 = vmul.f32 %v9599_v55, %v6941_v0  ;;  %v6981_v4 = vmul.f32 %v9599_v55, %v6942_v48 }
0x267f   :  { %v6978_v31 = vmul.f32 %v9599_v55, %v13066_v25  ;;  %v6979_v57 = vmul.f32 %v9599_v55, %v13075_v32  ;;  %v6976_v21 = vmul.f32 %v9599_v55, %v13058_v60  ;;  %v6977_v6 = vmul.f32 %v9599_v55, %v13063_v17 }
0x2680   :  { %v6995_v20 = vpack.c.bf16 %v6983_v33, %v6982_v23  ;;  %v6994_v42 = vpack.c.bf16 %v6981_v4, %v6980_v40  ;;  %v6974_v0 = vmul.f32 %v9599_v55, %v13050_v10  ;;  %v6975_v48 = vmul.f32 %v9599_v55, %v13055_v16  ;;  %v13189_v40 = vld [vmem:[#allocation2 + $0x188] sm:$0xff] }
0x2681   :  { %v6993_v39 = vpack.c.bf16 %v6979_v57, %v6978_v31  ;;  %v6992_v56 = vpack.c.bf16 %v6977_v6, %v6976_v21  ;;  %v6972_v25 = vmul.f32 %v9599_v55, %v13042_v37  ;;  %v6973_v32 = vmul.f32 %v9599_v55, %v13047_v36 }
0x2682   :  { %8940 = vmatprep.subr.bf16.mxu0 %v6995_v20  ;;  %v6991_v63 = vpack.c.bf16 %v6975_v48, %v6974_v0  ;;  %v6970_v60 = vmul.f32 %v9599_v55, %v13033_v24  ;;  %v6971_v17 = vmul.f32 %v9599_v55, %v13039_v14  ;;  %v6968_v10 = vmul.f32 %v9599_v55, %v13027_v52 }
0x2683   :  { %8941 = vmatpush3.bf16.msra.mxu0 %v6995_v20  ;;  %v6990_v41 = vpack.c.bf16 %v6973_v32, %v6972_v25  ;;  %v6969_v16 = vmul.f32 %v9599_v55, %v13030_v11  ;;  %v13186_v55 = vld [vmem:[#allocation2 + $0x190] sm:$0xff]  ;;  %v13192_v20 = vld [vmem:[#allocation2 + $0x180] sm:$0xff] }
0x2684   :  { %8942 = vmatprep.subr.bf16.mxu0 %v6994_v42  ;;  %v6989_v9 = vpack.c.bf16 %v6971_v17, %v6970_v60 }
0x2685   :  { %v6988_v46 = vpack.c.bf16 %v6969_v16, %v6968_v10 }
0x2687   :  { %8943 = vmatpush3.bf16.msra.mxu0 %v6994_v42 }
0x2688   :  { %8944 = vmatprep.subr.bf16.mxu0 %v6993_v39 }
0x268b   :  { %8945 = vmatpush3.bf16.msra.mxu0 %v6993_v39 }
0x268c   :  { %8946 = vmatprep.subr.bf16.mxu0 %v6992_v56 }
0x268f   :  { %8947 = vmatpush3.bf16.msra.mxu0 %v6992_v56 }
0x2690   :  { %8948 = vmatprep.subr.bf16.mxu0 %v6991_v63 }
0x2693   :  { %8949 = vmatpush3.bf16.msra.mxu0 %v6991_v63 }
0x2694   :  { %8950 = vmatprep.subr.bf16.mxu0 %v6990_v41 }
0x2697   :  { %8951 = vmatpush3.bf16.msra.mxu0 %v6990_v41 }
0x2698   :  { %8952 = vmatprep.subr.bf16.mxu0 %v6989_v9 }
0x269b   :  { %8953 = vmatpush3.bf16.msra.mxu0 %v6989_v9 }
0x269c   :  { %8954 = vmatprep.subr.bf16.mxu0 %v6988_v46 }
0x269f   :  { %8955 = vmatpush3.bf16.msra.mxu0 %v6988_v46 }
0x26a2   :  { %8957 = vmatmul.mubr.bf16.vlgmr.msra.gmra.mxu0 %v6985_v44 }
0x26a3   :  { %8960 = vmatprep.mubr.bf16.mxu0 %v6986_v54 }
0x26aa   :  { %8961 = vmatmul.mubr.bf16.gmra.mxu0 %v6987_v22 }
0x26e0   :  { %v6436_v10 = vpop.xlane.xlu1 %6435 }
0x26e4   :  { %v6442_v46 = vpop.xlane.xlu1 %6441 }
0x2762   :  { %v8958_v52 = vpop.f32.mrf.mxu0 }
0x2763   :  { %v7063_v23 = vsub.f32 %v13186_v55, %v8958_v52 }
0x2764   :  { %v7030_v11 = vpop.f32.mrf.mxu0 }
0x2765   :  { %v7061_v42 = vsub.f32 %v13192_v20, %v7030_v11  ;;  %v6446_v11 = vpop.xlane.xlu1 %6445 }
0x2766   :  { %v8959_v24 = vpop.f32.mrf.mxu0 }
0x2767   :  { %v7064_v35 = vsub.f32 %v13183_v13, %v8959_v24 }
0x2768   :  { %v7033_v14 = vpop.f32.mrf.mxu0 }
0x2769   :  { %v7070_v33 = vpack.c.bf16 %v7064_v35, %v7063_v23  ;;  %v7062_v4 = vsub.f32 %v13189_v40, %v7033_v14  ;;  %v6450_v14 = vpop.xlane.xlu1 %6449 }
0x276a   :  { %v8962_v37 = vpop.f32.mrf.mxu0 }
0x276b   :  { %v7067_v8 = vsub.f32 %v13171_v7, %v8962_v37  ;;  %v7069_v31 = vpack.c.bf16 %v7062_v4, %v7061_v42 }
0x276c   :  { %v7046_v36 = vpop.f32.mrf.mxu0 }
0x276d   :  { %v7065_v54 = vsub.f32 %v13177_v3, %v7046_v36  ;;  %v6470_v36 = vpop.xlane.xlu1 %6469 }
0x276e   :  { %v8963_v19 = vpop.f32.mrf.mxu0 }
0x276f   :  { %v7068_v44 = vsub.f32 %v13174_v53, %v8963_v19 }
0x2770   :  { %v7049_v61 = vpop.f32.mrf.mxu0 }
0x2771   :  { %v7072_v47 = vpack.c.bf16 %v7068_v44, %v7067_v8  ;;  %v7066_v22 = vsub.f32 %v13180_v15, %v7049_v61  ;;  %v6474_v8 = vpop.xlane.xlu1 %6473 }
0x2773   :  { %v7071_v51 = vpack.c.bf16 %v7066_v22, %v7065_v54  ;;  %8964 = vmatprep.subr.bf16.mxu1 %v7072_v47 }
0x2774   :  { %8965 = vmatpush3.bf16.msra.mxu1 %v7072_v47 }
0x2775   :  { %8966 = vmatprep.subr.bf16.mxu1 %v7071_v51  ;;  %v6478_v61 = vpop.xlane.xlu1 %6477 }
0x2778   :  { %8967 = vmatpush3.bf16.msra.mxu1 %v7071_v51 }
0x2779   :  { %8968 = vmatprep.subr.bf16.mxu1 %v7070_v33  ;;  %v13249_v47 = vpop.xlane.xlu1 %6481 }
0x277c   :  { %8969 = vmatpush3.bf16.msra.mxu1 %v7070_v33 }
0x277d   :  { %8970 = vmatprep.subr.bf16.mxu1 %v7069_v31 }
0x2780   :  { %8971 = vmatpush3.bf16.msra.mxu1 %v7069_v31 }
0x2783   :  { %8973 = vmatmul.mubr.msk.bf16.vlgmr.msra.gmra.mxu1 %vm124_vm1, %v12850_v27 }
0x2784   :  { %8976 = vmatprep.mubr.msk.bf16.mxu1 %vm124_vm1, %v12855_v18 }
0x278b   :  { %8977 = vmatmul.mubr.msk.bf16.gmra.mxu1 %vm124_vm1, %v12872_v29 }
0x2843   :  { %v8974_v57 = vpop.f32.mrf.mxu1 }
0x2844   :  { %v13202_v39 = vadd.f32 %v8974_v57, %v13089_v58 }
0x2845   :  { %v7107_v21 = vpop.f32.mrf.mxu1 }
0x2846   :  { %7142 = vadd.xlane.f32.xlu0 %v13202_v39  ;;  %v13206_v56 = vadd.f32 %v7107_v21, %v13072_v59  ;;  %v7164_v29 = vmul.f32 %v13202_v39, %v13202_v39 }
0x2847   :  { %v8975_v6 = vpop.f32.mrf.mxu1 }
0x2848   :  { %v13209_v0 = vadd.f32 %v8975_v6, %v13091_v38  ;;  %v7162_v38 = vmul.f32 %v13206_v56, %v13206_v56 }
0x2849   :  { %v7110_v27 = vpop.f32.mrf.mxu1 }
0x284a   :  { %7144 = vadd.xlane.f32.xlu1 %v13209_v0  ;;  %7138 = vadd.xlane.f32.xlu0 %v13206_v56  ;;  %v13214_v18 = vadd.f32 %v7110_v27, %v13070_v34  ;;  %v7165_v59 = vmul.f32 %v13209_v0, %v13209_v0 }
0x284b   :  { %v8978_v58 = vpop.f32.mrf.mxu1 }
0x284c   :  { %v13224_v63 = vadd.f32 %v8978_v58, %v13120_v50  ;;  %v7163_v34 = vmul.f32 %v13214_v18, %v13214_v18 }
0x284d   :  { %v7123_v48 = vpop.f32.mrf.mxu1 }
0x284e   :  { %7140 = vadd.xlane.f32.xlu1 %v13214_v18  ;;  %7174 = vadd.xlane.f32.xlu0 %v7164_v29  ;;  %v13230_v32 = vadd.f32 %v7123_v48, %v13105_v1 }
0x284f   :  { %v8979_v25 = vpop.f32.mrf.mxu1 }
0x2850   :  { %v13233_v41 = vadd.f32 %v8979_v25, %v13122_v49  ;;  %v7166_v17 = vmul.f32 %v13230_v32, %v13230_v32  ;;  %v7168_v49 = vmul.f32 %v13224_v63, %v13224_v63 }
0x2851   :  { %v7126_v60 = vpop.f32.mrf.mxu1 }
0x2852   :  { %7176 = vadd.xlane.f32.xlu1 %v7165_v59  ;;  %7170 = vadd.xlane.f32.xlu0 %v7162_v38  ;;  %v13238_v50 = vadd.f32 %v7126_v60, %v13107_v30  ;;  %v7169_v9 = vmul.f32 %v13233_v41, %v13233_v41  ;;  %v6438_v30 = vpop.xlane.xlu0 %6437 }
0x2854   :  { %v7167_v1 = vmul.f32 %v13238_v50, %v13238_v50 }
0x2856   :  { %7172 = vadd.xlane.f32.xlu1 %v7163_v34  ;;  %7150 = vadd.xlane.f32.xlu0 %v13224_v63  ;;  %v6440_v16 = vpop.xlane.xlu0 %6439 }
0x285a   :  { %7152 = vadd.xlane.f32.xlu1 %v13233_v41  ;;  %7146 = vadd.xlane.f32.xlu0 %v13230_v32  ;;  %v6444_v52 = vpop.xlane.xlu0 %6443 }
0x285e   :  { %7148 = vadd.xlane.f32.xlu1 %v13238_v50  ;;  %7178 = vadd.xlane.f32.xlu0 %v7166_v17  ;;  %v6448_v24 = vpop.xlane.xlu0 %6447 }
0x2862   :  { %7180 = vadd.xlane.f32.xlu1 %v7167_v1  ;;  %7182 = vadd.xlane.f32.xlu0 %v7168_v49  ;;  %v6468_v37 = vpop.xlane.xlu0 %6467 }
0x2866   :  { %7184 = vadd.xlane.f32.xlu1 %v7169_v9  ;;  %v6472_v19 = vpop.xlane.xlu0 %6471 }
0x286a   :  { %v6476_v44 = vpop.xlane.xlu0 %6475 }
0x286e   :  { %v6480_v54 = vpop.xlane.xlu0 %6479 }
0x28cf   :  { %v7143_v22 = vpop.xlane.xlu0 %7142 }
0x28d0   :  { %v7156_v35 = vadd.f32 %v7143_v22, %v6440_v16 }
0x28d2   :  { %v13251_v42 = vmul.f32 0.00390625, %v7156_v35 }
0x28d3   :  { %v7145_v51 = vpop.xlane.xlu1 %7144  ;;  %v7139_v23 = vpop.xlane.xlu0 %7138 }
0x28d4   :  { %v7157_v33 = vadd.f32 %v7145_v51, %v6442_v46  ;;  %v7154_v4 = vadd.f32 %v7139_v23, %v6436_v10  ;;  %v7212_v29 = vmul.f32 %v13251_v42, %v13251_v42 }
0x28d6   :  { %v13253_v6 = vmul.f32 0.00390625, %v7157_v33  ;;  %v13255_v27 = vmul.f32 0.00390625, %v7154_v4 }
0x28d7   :  { %v7141_v31 = vpop.xlane.xlu1 %7140  ;;  %v7175_v57 = vpop.xlane.xlu0 %7174 }
0x28d8   :  { %v7188_v21 = vadd.f32 %v7175_v57, %v6472_v19  ;;  %v7155_v58 = vadd.f32 %v7141_v31, %v6438_v30  ;;  %v7213_v17 = vmul.f32 %v13253_v6, %v13253_v6  ;;  %v7210_v1 = vmul.f32 %v13255_v27, %v13255_v27 }
0x28da   :  { %v7204_v59 = vmul.f32 0.00390625, %v7188_v21  ;;  %v13263_v49 = vmul.f32 0.00390625, %v7155_v58 }
0x28db   :  { %v7177_v38 = vpop.xlane.xlu1 %7176  ;;  %v7171_v48 = vpop.xlane.xlu0 %7170 }
0x28dc   :  { %v7220_v34 = vsub.f32 %v7204_v59, %v7212_v29  ;;  %v7189_v25 = vadd.f32 %v7177_v38, %v6474_v8  ;;  %v7186_v60 = vadd.f32 %v7171_v48, %v6468_v37  ;;  %v7211_v37 = vmul.f32 %v13263_v49, %v13263_v49 }
0x28de   :  { %v7228_v9 = vadd.f32 1e-05, %v7220_v34  ;;  %v7205_v10 = vmul.f32 0.00390625, %v7189_v25  ;;  %v7202_v16 = vmul.f32 0.00390625, %v7186_v60 }
0x28df   :  { %v7173_v46 = vpop.xlane.xlu1 %7172  ;;  %v7151_v19 = vpop.xlane.xlu0 %7150 }
0x28e0   :  { %9600 = vrsqrt.f32 %v7228_v9  ;;  %v7221_v30 = vsub.f32 %v7205_v10, %v7213_v17  ;;  %v7218_v22 = vsub.f32 %v7202_v16, %v7210_v1  ;;  %v7187_v35 = vadd.f32 %v7173_v46, %v6470_v36 }
0x28e1   :  { %v7160_v21 = vadd.f32 %v7151_v19, %v6448_v24  ;;  %v7763_v24 = vld [vmem:[%s13372_s5 + $0xd0] sm:$0xff] }
0x28e2   :  { %v7229_v8 = vadd.f32 1e-05, %v7221_v30  ;;  %v7226_v51 = vadd.f32 1e-05, %v7218_v22  ;;  %v7203_v23 = vmul.f32 0.00390625, %v7187_v35 }
0x28e3   :  { %v7153_v33 = vpop.xlane.xlu1 %7152  ;;  %v7147_v4 = vpop.xlane.xlu0 %7146  ;;  %v13269_v48 = vmul.f32 0.00390625, %v7160_v21 }
0x28e4   :  { %9602 = vrsqrt.f32 %v7229_v8  ;;  %v7219_v31 = vsub.f32 %v7203_v23, %v7211_v37  ;;  %v7158_v57 = vadd.f32 %v7147_v4, %v6444_v52  ;;  %v7161_v34 = vadd.f32 %v7153_v33, %v6450_v14  ;;  %v7761_v4 = vld [vmem:[%s13372_s5 + $0xc0] sm:$0xff] }
0x28e5   :  { %9604 = vrsqrt.f32 %v7226_v51 }
0x28e6   :  { %v7227_v29 = vadd.f32 1e-05, %v7219_v31  ;;  %v13267_v58 = vmul.f32 0.00390625, %v7158_v57  ;;  %v13280_v14 = vmul.f32 0.00390625, %v7161_v34  ;;  %v7764_v31 = vld [vmem:[%s13372_s5 + $0xd8] sm:$0xff] }
0x28e7   :  { %v7149_v59 = vpop.xlane.xlu1 %7148  ;;  %v7179_v38 = vpop.xlane.xlu0 %7178 }
0x28e8   :  { %9606 = vrsqrt.f32 %v7227_v29  ;;  %v7159_v36 = vadd.f32 %v7149_v59, %v6446_v11  ;;  %v7190_v25 = vadd.f32 %v7179_v38, %v6476_v44  ;;  %v7214_v17 = vmul.f32 %v13267_v58, %v13267_v58 }
0x28e9   :  { %v7216_v11 = vmul.f32 %v13269_v48, %v13269_v48  ;;  %v7217_v21 = vmul.f32 %v13280_v14, %v13280_v14 }
0x28ea   :  { %v13271_v60 = vmul.f32 0.00390625, %v7159_v36  ;;  %v7206_v1 = vmul.f32 0.00390625, %v7190_v25 }
0x28eb   :  { %v7181_v52 = vpop.xlane.xlu1 %7180  ;;  %v7183_v9 = vpop.xlane.xlu0 %7182 }
0x28ec   :  { %v7191_v10 = vadd.f32 %v7181_v52, %v6478_v61  ;;  %v7192_v16 = vadd.f32 %v7183_v9, %v6480_v54  ;;  %v7222_v44 = vsub.f32 %v7206_v1, %v7214_v17  ;;  %v7215_v19 = vmul.f32 %v13271_v60, %v13271_v60  ;;  %v7771_v61 = vld [vmem:[%s13373_s6 + $0xd0] sm:$0xff] }
0x28ed   :  { %v9601_v46 = vpop.eup %9600 }
0x28ee   :  { %v7207_v30 = vmul.f32 0.00390625, %v7191_v10  ;;  %v7208_v22 = vmul.f32 0.00390625, %v7192_v16  ;;  %v7244_v35 = vmul.f32 %v9601_v46, %v7763_v24  ;;  %v7230_v37 = vadd.f32 1e-05, %v7222_v44  ;;  %v7769_v16 = vld [vmem:[%s13373_s6 + $0xc0] sm:$0xff]  ;;  %v7772_v46 = vld [vmem:[%s13373_s6 + $0xd8] sm:$0xff] }
0x28ef   :  { %v7185_v8 = vpop.xlane.xlu1 %7184 }
0x28f0   :  { %v7223_v54 = vsub.f32 %v7207_v30, %v7215_v19  ;;  %v7224_v51 = vsub.f32 %v7208_v22, %v7216_v11  ;;  %v7193_v23 = vadd.f32 %v7185_v8, %v13249_v47  ;;  %7278 = vperm.xlu1 %8986, %v7244_v35   ;;  %v7252_v33 = vmul.f32 %v7244_v35, %v13251_v42  ;;  %v7762_v42 = vld [vmem:[%s13372_s5 + $0xc8] sm:$0xff]  ;;  %v7767_v22 = vld [vmem:[%s13372_s5 + $0xf0] sm:$0xff]  ;;  %v7765_v35 = vld [vmem:[%s13372_s5 + $0xe0] sm:$0xff] }
0x28f1   :  { %v9603_v57 = vpop.eup %9602  ;;  %9608 = vrsqrt.f32 %v7230_v37 }
0x28f2   :  { %v9605_v29 = vpop.eup %9604  ;;  %v7231_v59 = vadd.f32 1e-05, %v7223_v54  ;;  %v7232_v38 = vadd.f32 1e-05, %v7224_v51  ;;  %v7209_v36 = vmul.f32 0.00390625, %v7193_v23  ;;  %v7260_v47 = vsub.f32 %v7771_v61, %v7252_v33  ;;  %v7768_v61 = vld [vmem:[%s13372_s5 + $0xf8] sm:$0xff] }
0x28f3   :  { %v7242_v34 = vmul.f32 %v9605_v29, %v7761_v4  ;;  %v7245_v25 = vmul.f32 %v9603_v57, %v7764_v31  ;;  %v7766_v51 = vld [vmem:[%s13372_s5 + $0xe8] sm:$0xff]  ;;  %v7773_v57 = vld [vmem:[%s13373_s6 + $0xe0] sm:$0xff] }
0x28f4   :  { %v7225_v17 = vsub.f32 %v7209_v36, %v7217_v21  ;;  %7326 = vperm.xlu1 %8986, %v7260_v47   ;;  %9610 = vrsqrt.f32 %v7232_v38 }
0x28f5   :  { %v9607_v1 = vpop.eup %9606  ;;  %7268 = vperm.xlu0 %8987, %v7242_v34   ;;  %9612 = vrsqrt.f32 %v7231_v59  ;;  %v7250_v24 = vmul.f32 %v7242_v34, %v13255_v27  ;;  %v7253_v10 = vmul.f32 %v7245_v25, %v13253_v6  ;;  %v7770_v6 = vld [vmem:[%s13373_s6 + $0xc8] sm:$0xff] }
0x28f6   :  { %v7233_v52 = vadd.f32 1e-05, %v7225_v17  ;;  %v7243_v9 = vmul.f32 %v9607_v1, %v7762_v42  ;;  %v7774_v59 = vld [vmem:[%s13373_s6 + $0xe8] sm:$0xff] }
0x28f7   :  { %v7258_v11 = vsub.f32 %v7769_v16, %v7250_v24  ;;  %v7261_v44 = vsub.f32 %v7772_v46, %v7253_v10  ;;  %v9680_v46 = vld [vmem:[#allocation2 + $0x90] sm:$0xff] }
0x28f8   :  { %9614 = vrsqrt.f32 %v7233_v52  ;;  %7273 = vperm.xlu1 %8986, %v7243_v9   ;;  %v7251_v19 = vmul.f32 %v7243_v9, %v13263_v49 }
0x28f9   :  { %7283 = vperm.xlu0 %8987, %v7245_v25  }
0x28fa   :  { %v7259_v27 = vsub.f32 %v7770_v6, %v7251_v19 }
0x28fc   :  { %7316 = vperm.xlu1 %8986, %v7258_v11  }
0x28fd   :  { %7331 = vperm.xlu0 %8987, %v7261_v44  }
0x28fe   :  { %v9609_v30 = vpop.eup %9608 }
0x28ff   :  { %v7246_v54 = vmul.f32 %v9609_v30, %v7765_v35 }
0x2901   :  { %7321 = vperm.xlu0 %8987, %v7259_v27   ;;  %v9611_v37 = vpop.eup %9610  ;;  %v7254_v31 = vmul.f32 %v7246_v54, %v13267_v58  ;;  %v7775_v58 = vld [vmem:[%s13373_s6 + $0xf0] sm:$0xff] }
0x2902   :  { %v9613_v8 = vpop.eup %9612  ;;  %v7248_v49 = vmul.f32 %v9611_v37, %v7767_v22 }
0x2903   :  { %v7247_v4 = vmul.f32 %v9613_v8, %v7766_v51  ;;  %v7262_v29 = vsub.f32 %v7773_v57, %v7254_v31 }
0x2904   :  { %7298 = vperm.xlu1 %8986, %v7248_v49   ;;  %v7256_v38 = vmul.f32 %v7248_v49, %v13269_v48 }
0x2905   :  { %v9615_v23 = vpop.eup %9614  ;;  %v7255_v21 = vmul.f32 %v7247_v4, %v13271_v60  ;;  %v7776_v60 = vld [vmem:[%s13373_s6 + $0xf8] sm:$0xff]  ;;  %s9713_s6 = smov [#allocation2]  }
0x2906   :  { %v7249_v33 = vmul.f32 %v9615_v23, %v7768_v61  ;;  %v7264_v34 = vsub.f32 %v7775_v58, %v7256_v38  ;;  %v9683_v38 = vld [vmem:[#allocation2 + $0x88] sm:$0xff]  ;;  %s7431_s21 = sshll.u32 %s9713_s6, 4  ;;  %s7432_s21 = int_to_ptr.vmem [resolvable:$true] %s7431_s21 }
0x2907   :  { %v7263_v36 = vsub.f32 %v7774_v59, %v7255_v21  ;;  %s9688_s2 = scalar_lea.vmem %s7432_s21, 8192  ;;  %p9693_p1 = scmp.lt.s32.totalorder %s7432_s21, %s7432_s21 }
0x2908   :  { %7303 = vperm.xlu0 %8987, %v7249_v33   ;;  %7288 = vperm.xlu1 %8986, %v7246_v54   ;;  %v7257_v47 = vmul.f32 %v7249_v33, %v13280_v14  ;;  %v9681_v33 = vld [vmem:[#allocation2 + $0x80] sm:$0xff]  ;;  %p9689_p0 = scmp.ne.s32.totalorder %s7432_s21, %s9688_s2  ;;  %p9694_p2 = scmp.lt.s32.totalorder %s9688_s2, %s9688_s2 }
0x290a   :  { %v7265_v42 = vsub.f32 %v7776_v60, %v7257_v47  ;;  %p9695_p3 = por %p9694_p2, %p9693_p1 }
0x290c   :  { %7293 = vperm.xlu0 %8987, %v7247_v4   ;;  %7336 = vperm.xlu1 %8986, %v7262_v29   ;;  %p9696_p4 = pnand %p9695_p3, %p9689_p0 }
0x2910   :  { %7341 = vperm.xlu0 %8987, %v7263_v36   ;;  %7346 = vperm.xlu1 %8986, %v7264_v34  }
0x2914   :  { %7351 = vperm.xlu0 %8987, %v7265_v42  }
0x296b   :  { %v7279_v25 = vpop.permute.xlu1 %7278 }
0x296c   :  { %v7308_v48 = vmul.f32 %v7279_v25, %v13095_v2  ;;  %v7388_v17 = vmul.f32 %v7279_v25, %v13202_v39 }
0x296f   :  { %v7327_v1 = vpop.permute.xlu1 %7326 }
0x2970   :  { %v7356_v52 = vadd.f32 %v7327_v1, %v7308_v48  ;;  %v7396_v9 = vadd.f32 %v7388_v17, %v7327_v1  ;;  %v7269_v24 = vpop.permute.xlu0 %7268 }
0x2971   :  { %v7306_v6 = vmul.f32 %v7269_v24, %v13084_v62  ;;  %v7386_v2 = vmul.f32 %v7269_v24, %v13206_v56 }
0x2972   :  { %v7364_v10 = vmax.f32 %v7356_v52, 0.0  ;;  %v7404_v14 = vmax.f32 %v7396_v9, 0.0 }
0x2973   :  { %v7274_v16 = vpop.permute.xlu1 %7273 }
0x2974   :  { %v7372_v11 = vadd.f32 %v9680_v46, %v7364_v10  ;;  %v7412_v44 = vadd.f32 %v13186_v55, %v7404_v14  ;;  %v7284_v19 = vpop.permute.xlu0 %7283  ;;  %v7307_v55 = vmul.f32 %v7274_v16, %v13080_v12  ;;  %v7387_v51 = vmul.f32 %v7274_v16, %v13214_v18  ;;  %v9684_v46 = vld [vmem:[#allocation2 + $0xa0] sm:$0xff] }
0x2975   :  { %v7309_v39 = vmul.f32 %v7284_v19, %v13099_v5  ;;  %v7389_v27 = vmul.f32 %v7284_v19, %v13209_v0  ;;  %v9682_v0 = vld [vmem:[#allocation2 + $0x98] sm:$0xff] }
0x2976   :  { %7380 = vst [vmem:[#allocation2 + $0xd0] sm:$0xff] %v7372_v11  ;;  %7420 = vst [vmem:[#allocation2 + $0x1d0] sm:$0xff] %v7412_v44 }
0x2977   :  { %v7317_v30 = vpop.permute.xlu1 %7316 }
0x2978   :  { %v7354_v22 = vadd.f32 %v7317_v30, %v7306_v6  ;;  %v7394_v35 = vadd.f32 %v7386_v2, %v7317_v30  ;;  %v7332_v37 = vpop.permute.xlu0 %7331 }
0x2979   :  { %v7357_v8 = vadd.f32 %v7332_v37, %v7309_v39  ;;  %v7397_v49 = vadd.f32 %v7389_v27, %v7332_v37  ;;  %v9685_v27 = vld [vmem:[#allocation2 + $0xa8] sm:$0xff] }
0x297a   :  { %v7362_v61 = vmax.f32 %v7354_v22, 0.0  ;;  %v7402_v54 = vmax.f32 %v7394_v35, 0.0 }
0x297b   :  { %v7365_v23 = vmax.f32 %v7357_v8, 0.0  ;;  %v7405_v62 = vmax.f32 %v7397_v49, 0.0 }
0x297c   :  { %v7370_v56 = vadd.f32 %v9681_v33, %v7362_v61  ;;  %v7410_v5 = vadd.f32 %v13192_v20, %v7402_v54  ;;  %v7322_v4 = vpop.permute.xlu0 %7321  ;;  %v9687_v61 = vld [vmem:[#allocation2 + $0xb8] sm:$0xff] }
0x297d   :  { %v7373_v31 = vadd.f32 %v9682_v0, %v7365_v23  ;;  %v7413_v57 = vadd.f32 %v13183_v13, %v7405_v62  ;;  %v7355_v21 = vadd.f32 %v7322_v4, %v7307_v55  ;;  %v7395_v29 = vadd.f32 %v7387_v51, %v7322_v4 }
0x297e   :  { %7378 = vst [vmem:[#allocation2 + $0xc0] sm:$0xff] %v7370_v56  ;;  %7418 = vst [vmem:[#allocation2 + $0x1c0] sm:$0xff] %v7410_v5 }
0x297f   :  { %7381 = vst [vmem:[#allocation2 + $0xd8] sm:$0xff] %v7373_v31  ;;  %7421 = vst [vmem:[#allocation2 + $0x1d8] sm:$0xff] %v7413_v57  ;;  %v7363_v12 = vmax.f32 %v7355_v21, 0.0  ;;  %v7403_v59 = vmax.f32 %v7395_v29, 0.0  ;;  %v7299_v18 = vpop.permute.xlu1 %7298 }
0x2980   :  { %v7312_v52 = vmul.f32 %v7299_v18, %v13126_v26 }
0x2981   :  { %v7371_v58 = vadd.f32 %v9683_v38, %v7363_v12  ;;  %v7411_v36 = vadd.f32 %v13189_v40, %v7403_v59  ;;  %v7392_v40 = vmul.f32 %v7299_v18, %v13224_v63 }
0x2983   :  { %7379 = vst [vmem:[#allocation2 + $0xc8] sm:$0xff] %v7371_v58  ;;  %7419 = vst [vmem:[#allocation2 + $0x1c8] sm:$0xff] %v7411_v36  ;;  %v7304_v20 = vpop.permute.xlu0 %7303  ;;  %v7289_v47 = vpop.permute.xlu1 %7288 }
0x2984   :  { %v7310_v34 = vmul.f32 %v7289_v47, %v13111_v43  ;;  %v7390_v13 = vmul.f32 %v7289_v47, %v13230_v32 }
0x2987   :  { %v7294_v60 = vpop.permute.xlu0 %7293  ;;  %v7337_v42 = vpop.permute.xlu1 %7336 }
0x2988   :  { %v7358_v25 = vadd.f32 %v7337_v42, %v7310_v34  ;;  %v7398_v48 = vadd.f32 %v7390_v13, %v7337_v42  ;;  %v7311_v17 = vmul.f32 %v7294_v60, %v13115_v28  ;;  %v7391_v1 = vmul.f32 %v7294_v60, %v13238_v50 }
0x2989   :  { %v7313_v28 = vmul.f32 %v7304_v20, %v13130_v45  ;;  %v7393_v50 = vmul.f32 %v7304_v20, %v13233_v41 }
0x298a   :  { %v7366_v9 = vmax.f32 %v7358_v25, 0.0  ;;  %v7406_v24 = vmax.f32 %v7398_v48, 0.0 }
0x298b   :  { %v7342_v10 = vpop.permute.xlu0 %7341  ;;  %v7347_v14 = vpop.permute.xlu1 %7346 }
0x298c   :  { %v7359_v16 = vadd.f32 %v7342_v10, %v7311_v17  ;;  %v7399_v43 = vadd.f32 %v7391_v1, %v7342_v10  ;;  %v7374_v32 = vadd.f32 %v9684_v46, %v7366_v9  ;;  %v7414_v11 = vadd.f32 %v13177_v3, %v7406_v24  ;;  %v9686_v3 = vld [vmem:[#allocation2 + $0xb0] sm:$0xff] }
0x298d   :  { %v7360_v44 = vadd.f32 %v7347_v14, %v7312_v52  ;;  %v7400_v19 = vadd.f32 %v7392_v40, %v7347_v14 }
0x298e   :  { %v7367_v6 = vmax.f32 %v7359_v16, 0.0  ;;  %v7407_v26 = vmax.f32 %v7399_v43, 0.0  ;;  %7382 = vst [vmem:[#allocation2 + $0xe0] sm:$0xff] %v7374_v32  ;;  %7422 = vst [vmem:[#allocation2 + $0x1e0] sm:$0xff] %v7414_v11 }
0x298f   :  { %v7368_v63 = vmax.f32 %v7360_v44, 0.0  ;;  %v7408_v2 = vmax.f32 %v7400_v19, 0.0  ;;  %v7352_v39 = vpop.permute.xlu0 %7351 }
0x2990   :  { %v7375_v30 = vadd.f32 %v9685_v27, %v7367_v6  ;;  %v7415_v22 = vadd.f32 %v13180_v15, %v7407_v26  ;;  %v7361_v35 = vadd.f32 %v7352_v39, %v7313_v28  ;;  %v7401_v37 = vadd.f32 %v7393_v50, %v7352_v39 }
0x2991   :  { %v7376_v8 = vadd.f32 %v9686_v3, %v7368_v63  ;;  %v7416_v49 = vadd.f32 %v13171_v7, %v7408_v2 }
0x2992   :  { %7383 = vst [vmem:[#allocation2 + $0xe8] sm:$0xff] %v7375_v30  ;;  %7423 = vst [vmem:[#allocation2 + $0x1e8] sm:$0xff] %v7415_v22  ;;  %v7369_v45 = vmax.f32 %v7361_v35, 0.0  ;;  %v7409_v41 = vmax.f32 %v7401_v37, 0.0 }
0x2993   :  { %7384 = vst [vmem:[#allocation2 + $0xf0] sm:$0xff] %v7376_v8  ;;  %7424 = vst [vmem:[#allocation2 + $0x1f0] sm:$0xff] %v7416_v49 }
0x2994   :  { %v7377_v54 = vadd.f32 %v9687_v61, %v7369_v45  ;;  %v7417_v55 = vadd.f32 %v13174_v53, %v7409_v41 }
0x2996   :  { %7385 = vst [vmem:[#allocation2 + $0xf8] sm:$0xff] %v7377_v54  ;;  %7425 = vst [vmem:[#allocation2 + $0x1f8] sm:$0xff] %v7417_v55 }
0x2997   :  { %9699 = shalt.err (!%p9696_p4)
}
0x2998   :  { %s9714_s22 = smov 128   ;;  %s9715_s23 = smov 8  }
0x2999   :  { %7437 = dma.vmem_to_hbm [thread:$0]  %s7432_s21, 8192, %s13374_s7, [#allocation3], %s9714_s22, %s9714_s22, %s9715_s23  }
0x299a   :  { %9708 = dma.done.wait [#allocation3], 8192  }
0x299b   :  { %9709 = vsyncadd [#allocation3], 4294959104 }
0x299c   :  { %7441 = vsyncpa [#allocation3], 1 }

</bundles_post_ra>
